<compile_context>
chip_gen: v6e
topology: v6e:2x2x1
jax: 0.10.0
libtpu: 0.0.40
codegen_flags: <defaults>
</compile_context>

<pallas_src>
import numpy as np
import jax
import jax.numpy as jnp
from jax import lax
from jax.experimental import pallas as pl
from jax.experimental.pallas import tpu as pltpu

LEAKY_SLOPE = 0.05
TILE_M = 512                            # rows per matmul tile (multiple of 8)
VMEM_LIMIT_BYTES = 48 * 1024 * 1024     # fits v7x's 64 MiB physical VMEM


def _round_up(x, m):
    return (x + m - 1) // m * m


def _m_tiling(M, min_tiles=1):
    """Pick an M tile (multiple of 8, <= TILE_M, >= min_tiles tiles) + padded M."""
    tm = max(8, min(TILE_M, _round_up(-(-M // min_tiles), 8)))
    grid = -(-M // tm)
    return tm, grid * tm


def _cparams(*sem):
    return pltpu.CompilerParams(dimension_semantics=sem,
                                vmem_limit_bytes=VMEM_LIMIT_BYTES)


def _pad_rows(t, Mp, axis):
    M = t.shape[axis]
    if Mp == M:
        return t
    pads = [(0, 0)] * t.ndim
    pads[axis] = (0, Mp - M)
    return jnp.pad(t, pads)


# ----------------------------------------------------------------------------
# Pallas kernels (bf16 operands on the MXU, f32 accumulate, fused epilogues)
# ----------------------------------------------------------------------------
def _mm_kernel(a_ref, b_ref, o_ref):
    o_ref[...] = jnp.dot(a_ref[...], b_ref[...],
                         preferred_element_type=jnp.float32).astype(o_ref.dtype)


def _mm_act_kernel(a_ref, b_ref, o_ref):
    y = jnp.dot(a_ref[...], b_ref[...], preferred_element_type=jnp.float32)
    o_ref[...] = jnp.where(y >= 0, y, LEAKY_SLOPE * y).astype(o_ref.dtype)


def _mm_res_kernel(a_ref, b_ref, r_ref, o_ref):
    y = jnp.dot(a_ref[...], b_ref[...], preferred_element_type=jnp.float32)
    o_ref[...] = (y + r_ref[...].astype(jnp.float32)).astype(o_ref.dtype)


def _add_mm_kernel(a1_ref, a2_ref, b_ref, o_ref):
    a = (a1_ref[...].astype(jnp.float32) +
         a2_ref[...].astype(jnp.float32)).astype(jnp.bfloat16)
    o_ref[...] = jnp.dot(a, b_ref[...],
                         preferred_element_type=jnp.float32).astype(o_ref.dtype)


def _dfu_branch_kernel(x_ref, a1_ref, a2_ref, o_ref):
    # fused DualFourierUnit branch: (rfft o 1x1conv) matmul -> LeakyReLU -> irfft
    y = jnp.dot(x_ref[...], a1_ref[...], preferred_element_type=jnp.float32)
    y = jnp.where(y >= 0, y, LEAKY_SLOPE * y).astype(jnp.bfloat16)
    o_ref[...] = jnp.dot(y, a2_ref[...],
                         preferred_element_type=jnp.float32).astype(o_ref.dtype)


def _gate_sa_kernel(xs_ref, xf_ref, ws_ref, wf_ref, o_ref):
    o_ref[...] = (
        jnp.dot(xs_ref[...], ws_ref[...], preferred_element_type=jnp.float32) +
        jnp.dot(xf_ref[...], wf_ref[...], preferred_element_type=jnp.float32))


def _combine_kernel(s2s_ref, f2s_ref, s2f_ref, f2f_ref, gf_ref, gs_ref,
                    oxs_ref, oxf_ref):
    gf = pl.reciprocal(1.0 + jnp.exp(-gf_ref[...]), approx=True)   # sigmoid
    gs = pl.reciprocal(1.0 + jnp.exp(-gs_ref[...]), approx=True)
    xs = s2s_ref[...].astype(jnp.float32) + f2s_ref[...].astype(jnp.float32) * gf
    xf = s2f_ref[...].astype(jnp.float32) * gs + f2f_ref[...].astype(jnp.float32)
    oxs_ref[...] = jnp.where(xs >= 0, xs, LEAKY_SLOPE * xs)
    oxf_ref[...] = jnp.where(xf >= 0, xf, LEAKY_SLOPE * xf)


# ----------------------------------------------------------------------------
# generic batched + M-tiled matmul wrapper (bf16 in / bf16 or f32 out)
# ----------------------------------------------------------------------------
def _bmm(a, b, *, act=False, residual=None, pre_add=None,
         out_dtype=jnp.bfloat16):
    """a:(G,M,K) @ b:(G,K,N)|(K,N) -> (G,M,N)."""
    a = a.astype(jnp.bfloat16)
    b = b.astype(jnp.bfloat16)
    G, M, K = a.shape
    N = b.shape[-1]
    tm, Mp = _m_tiling(M)
    a = _pad_rows(a, Mp, 1)

    a_spec = pl.BlockSpec((None, tm, K), lambda g, i: (g, i, 0))
    if b.ndim == 2:                      # weight / DFT matrix shared across G
        b_spec = pl.BlockSpec((K, N), lambda g, i: (0, 0))
    else:
        b_spec = pl.BlockSpec((None, K, N), lambda g, i: (g, 0, 0))
    o_spec = pl.BlockSpec((None, tm, N), lambda g, i: (g, i, 0))

    if pre_add is not None:
        kernel = _add_mm_kernel
        inputs = (a, _pad_rows(pre_add.astype(jnp.bfloat16), Mp, 1), b)
        in_specs = [a_spec, a_spec, b_spec]
    elif residual is not None:
        kernel = _mm_res_kernel
        inputs = (a, b, _pad_rows(residual.astype(jnp.bfloat16), Mp, 1))
        in_specs = [a_spec, b_spec, o_spec]
    elif act:
        kernel = _mm_act_kernel
        inputs = (a, b)
        in_specs = [a_spec, b_spec]
    else:
        kernel = _mm_kernel
        inputs = (a, b)
        in_specs = [a_spec, b_spec]

    out = pl.pallas_call(
        kernel,
        out_shape=jax.ShapeDtypeStruct((G, Mp, N), out_dtype),
        grid=(G, Mp // tm),
        in_specs=in_specs,
        out_specs=o_spec,
        compiler_params=_cparams("parallel", "parallel"),
    )(*inputs)
    return out if Mp == M else out[:, :M]


def _dfu_branch(x, a1, a2, out_dtype=jnp.bfloat16):
    """Fused DualFourierUnit branch:  leaky(x @ A1) @ A2, batched over G.

    x : (G, M, L*ch)   NHWC row-slabs (bf16)
    a1: (G, L*ch, 2K*ch)  rfft folded with the frequency-domain 1x1 conv
    a2: (2K*ch, L*ch)     channel-block-diagonal irfft (shared across G)
    """
    x = x.astype(jnp.bfloat16)
    a1 = a1.astype(jnp.bfloat16)
    a2 = a2.astype(jnp.bfloat16)
    G, M, K1 = x.shape
    N1 = a1.shape[-1]
    N2 = a2.shape[-1]
    tm, Mp = _m_tiling(M)
    x = _pad_rows(x, Mp, 1)
    out = pl.pallas_call(
        _dfu_branch_kernel,
        out_shape=jax.ShapeDtypeStruct((G, Mp, N2), out_dtype),
        grid=(G, Mp // tm),
        in_specs=[pl.BlockSpec((None, tm, K1), lambda g, i: (g, i, 0)),
                  pl.BlockSpec((None, K1, N1), lambda g, i: (g, 0, 0)),
                  pl.BlockSpec((N1, N2), lambda g, i: (0, 0))],
        out_specs=pl.BlockSpec((None, tm, N2), lambda g, i: (g, i, 0)),
        compiler_params=_cparams("parallel", "parallel"),
    )(x, a1, a2)
    return out if Mp == M else out[:, :M]


def _gate_sa(xs2, xf2, ws, wf):
    """1x1 'sa' conv as one matmul: xs@Ws + xf@Wf (no channel concat needed)."""
    M, C = xs2.shape
    tm, Mp = _m_tiling(M, min_tiles=2)       # >=2 tiles keeps both v7x TCs busy
    xs2 = _pad_rows(xs2.astype(jnp.bfloat16), Mp, 0)
    xf2 = _pad_rows(xf2.astype(jnp.bfloat16), Mp, 0)
    spec_x = pl.BlockSpec((tm, C), lambda i: (i, 0))
    spec_w = pl.BlockSpec((C, 2), lambda i: (0, 0))
    out = pl.pallas_call(
        _gate_sa_kernel,
        out_shape=jax.ShapeDtypeStruct((Mp, 2), jnp.float32),
        grid=(Mp // tm,),
        in_specs=[spec_x, spec_x, spec_w, spec_w],
        out_specs=pl.BlockSpec((tm, 2), lambda i: (i, 0)),
        compiler_params=_cparams("parallel"),
    )(xs2, xf2, ws.astype(jnp.bfloat16), wf.astype(jnp.bfloat16))
    return out if Mp == M else out[:M]


def pl_ffc_combine(s2s, f2s, s2f, f2f, g_f2s, g_s2f):
    """All args (R, N) with N = W*C lane-dense.  Returns f32 outputs."""
    R, N = s2s.shape
    tm, Rp = _m_tiling(R, min_tiles=2)
    s2s = _pad_rows(s2s.astype(jnp.bfloat16), Rp, 0)
    f2s = _pad_rows(f2s.astype(jnp.bfloat16), Rp, 0)
    s2f = _pad_rows(s2f.astype(jnp.bfloat16), Rp, 0)
    f2f = _pad_rows(f2f.astype(jnp.bfloat16), Rp, 0)
    g_f2s = _pad_rows(g_f2s.astype(jnp.float32), Rp, 0)
    g_s2f = _pad_rows(g_s2f.astype(jnp.float32), Rp, 0)
    spec = pl.BlockSpec((tm, N), lambda i: (i, 0))
    out_sds = jax.ShapeDtypeStruct((Rp, N), jnp.float32)
    oxs, oxf = pl.pallas_call(
        _combine_kernel,
        out_shape=[out_sds, out_sds],
        grid=(Rp // tm,),
        in_specs=[spec] * 6,
        out_specs=[spec, spec],
        compiler_params=_cparams("parallel"),
    )(s2s, f2s, s2f, f2f, g_f2s, g_s2f)
    return (oxs if Rp == R else oxs[:R]), (oxf if Rp == R else oxf[:R])


# ----------------------------------------------------------------------------
# im2col / weight reshaping glue (pure JAX, bf16)
# ----------------------------------------------------------------------------
def im2col_3x3(x):                                   # (B',H,W,C) -> (B'HW, 9C)
    # TODO(synk): replace with an in-kernel halo scheme (DMA a (rows+2,W+2,C)
    # slab and form the 9 shifted views in VMEM) to remove the 9x read blow-up.
    B, H, W, C = x.shape
    xp = jnp.pad(x, ((0, 0), (1, 1), (1, 1), (0, 0)))
    cols = [xp[:, kh:kh + H, kw:kw + W, :] for kh in range(3) for kw in range(3)]
    return jnp.concatenate(cols, axis=-1).reshape(B * H * W, 9 * C)


def w3x3_to_mat(w):                                  # (Co,Ci,3,3) -> (9Ci, Co)
    Co, Ci = w.shape[0], w.shape[1]
    return jnp.transpose(w, (2, 3, 1, 0)).reshape(9 * Ci, Co)


def w1x1_to_mat(w):                                  # (Co,Ci,1,1) -> (Ci, Co)
    return w[:, :, 0, 0].T


# ----------------------------------------------------------------------------
# paired (G=2) conv wrappers
# ----------------------------------------------------------------------------
def conv3x3_pair(x2, w_a, w_b, *, act=False, residual2=None,
                 out_dtype=jnp.bfloat16):
    G, B, H, W, Ci = x2.shape
    Co = w_a.shape[0]
    a = im2col_3x3(x2.reshape(G * B, H, W, Ci)).reshape(G, B * H * W, 9 * Ci)
    wmat = jnp.stack([w3x3_to_mat(w_a), w3x3_to_mat(w_b)])
    res = None if residual2 is None else residual2.reshape(G, B * H * W, Co)
    y = _bmm(a, wmat, act=act, residual=res, out_dtype=out_dtype)
    return y.reshape(G, B, H, W, Co)


def conv1x1_pair(x2, w_a, w_b, *, act=False, pre_add2=None,
                 out_dtype=jnp.bfloat16):
    G = x2.shape[0]
    lead = x2.shape[1:-1]
    Ci = x2.shape[-1]
    Co = w_a.shape[0]
    M = int(np.prod(lead))
    a = x2.reshape(G, M, Ci)
    pa = None if pre_add2 is None else pre_add2.reshape(G, M, Ci)
    wmat = jnp.stack([w1x1_to_mat(w_a), w1x1_to_mat(w_b)])
    y = _bmm(a, wmat, act=act, pre_add=pa, out_dtype=out_dtype)
    return y.reshape((G,) + lead + (Co,))


# ----------------------------------------------------------------------------
# folded DFT matrices for the fused DualFourierUnit branch
# ----------------------------------------------------------------------------
def _rfft_cos_sin(L):
    n = np.arange(L)[:, None].astype(np.float64)
    k = np.arange(L // 2 + 1)[None, :].astype(np.float64)
    ang = 2.0 * np.pi * n * k / L
    s = 1.0 / np.sqrt(L)
    return (np.cos(ang) * s).astype(np.float32), (-np.sin(ang) * s).astype(np.float32)


def _irfft_mat(L):                                   # (2K, L): [Re rows; Im rows]
    K = L // 2 + 1
    k = np.arange(K)[:, None].astype(np.float64)
    n = np.arange(L)[None, :].astype(np.float64)
    ang = 2.0 * np.pi * k * n / L
    w = np.full((K, 1), 2.0)
    w[0, 0] = 1.0
    if L % 2 == 0:
        w[-1, 0] = 1.0
    s = 1.0 / np.sqrt(L)
    return np.concatenate([w * np.cos(ang) * s, -w * np.sin(ang) * s],
                          axis=0).astype(np.float32)


def _dfu_branch_mats(wmix_a, wmix_b, L, ch):
    """Fold rfft + frequency 1x1 conv into A1 (per pair element) and irfft into
    a channel-block-diagonal A2; column orderings chosen so the branch consumes
    and produces plain NHWC row-slabs (no data transposes around the kernel)."""
    K = L // 2 + 1
    Fc, Fs = _rfft_cos_sin(L)
    Fc = jnp.asarray(Fc)
    Fs = jnp.asarray(Fs)

    def a1(wmix):                                    # wmix: (2ch, 2ch) [out, in]
        wr = wmix[:, :ch].reshape(2, ch, ch)         # (part_out, c_out, c_in)
        wi = wmix[:, ch:].reshape(2, ch, ch)
        m = (jnp.einsum('pdc,wk->wcdpk', wr, Fc) +
             jnp.einsum('pdc,wk->wcdpk', wi, Fs))
        # rows (w, c_in)  <->  NHWC (..., L, ch);  cols (c_out, part, k)
        return m.reshape(L * ch, ch * 2 * K)

    A1 = jnp.stack([a1(wmix_a), a1(wmix_b)]).astype(jnp.bfloat16)
    irp = jnp.asarray(_irfft_mat(L)).reshape(2, K, L)
    A2 = jnp.einsum('cd,pkl->cpkld', jnp.eye(ch, dtype=jnp.float32),
                    irp).reshape(ch * 2 * K, L * ch).astype(jnp.bfloat16)
    return A1, A2


# ----------------------------------------------------------------------------
# FFC submodules (paired Pallas path, NHWC, bf16 intermediates)
# ----------------------------------------------------------------------------
def residual_block_pair(x2, p_a, p_b):
    """x2: (2,B,H,W,C); p_a applied to x2[0], p_b to x2[1]."""
    C = x2.shape[-1]
    d = (C // 2) // 2
    # TODO(synk): emit the distilled/remaining split directly as two kernel
    # outputs instead of XLA channel slices.
    o1 = conv3x3_pair(x2, p_a['c1'], p_b['c1'], act=True)
    d1, r1 = o1[..., :d], o1[..., d:]
    o2 = conv3x3_pair(r1, p_a['c2'], p_b['c2'], act=True)
    d2, r2 = o2[..., :d], o2[..., d:]
    o3 = conv3x3_pair(r2, p_a['c3'], p_b['c3'], act=True)
    out = jnp.concatenate([d1, d2, o3], axis=-1)
    return conv3x3_pair(out, p_a['c5'], p_b['c5'], residual2=x2)   # c5(out)+x


def spectral_transform_pair(x2, p_a, p_b):
    G, B, H, W, C = x2.shape
    half = C // 2
    ch = half // 2
    x1 = conv1x1_pair(x2, p_a['conv1'], p_b['conv1'], act=True)    # (G,B,H,W,half)

    # horizontal branch: rfft along W -- NHWC row-slabs, zero transposes
    hx = x1[..., :ch].reshape(G, B * H, W * ch)
    A1h, A2h = _dfu_branch_mats(p_a['fu_hor'][:, :, 0, 0],
                                p_b['fu_hor'][:, :, 0, 0], W, ch)
    ho = _dfu_branch(hx, A1h, A2h).reshape(G, B, H, W, ch)

    # vertical branch: rfft along H -- one transpose in, one out
    vx = jnp.transpose(x1[..., ch:], (0, 1, 3, 2, 4)).reshape(G, B * W, H * ch)
    A1v, A2v = _dfu_branch_mats(p_a['fu_vert'][:, :, 0, 0],
                                p_b['fu_vert'][:, :, 0, 0], H, ch)
    vo = _dfu_branch(vx, A1v, A2v).reshape(G, B, W, H, ch)
    vo = jnp.transpose(vo, (0, 1, 3, 2, 4))

    fu = jnp.concatenate([ho, vo], axis=-1)                        # (G,B,H,W,half)
    return conv1x1_pair(x1, p_a['conv2'], p_b['conv2'], pre_add2=fu)


def gate_attn(xs, xf, p):
    """1x1 'sa' conv as a Pallas matmul, then the cheap 5-tap hor/vert stencils
    on the tiny 2-channel map in XLA.  Returns pre-sigmoid logits (B,H,W,2)."""
    B, H, W, C = xs.shape
    M = B * H * W
    sa = p['sa'][:, :, 0, 0]                                       # (2, 2C)
    attn = _gate_sa(xs.reshape(M, C), xf.reshape(M, C),
                    sa[:, :C].T, sa[:, C:].T).reshape(B, H, W, 2)
    wh = p['sa_hor'][:, :, 0, :]                                   # (o, i, t)
    wv = p['sa_vert'][:, :, :, 0]                                  # (o, i, t)
    ah = jnp.pad(attn, ((0, 0), (0, 0), (2, 2), (0, 0)))
    av = jnp.pad(attn, ((0, 0), (2, 2), (0, 0), (0, 0)))
    out = jnp.zeros((B, H, W, 2), jnp.float32)
    for t in range(5):
        out = out + jnp.einsum('bhwi,oi->bhwo', ah[:, :, t:t + W, :], wh[:, :, t])
        out = out + jnp.einsum('bhwi,oi->bhwo', av[:, t:t + H, :, :], wv[:, :, t])
    return out


def ffc_act_forward(x_s, x_f, params):
    """x_s, x_f: NCHW float32.  Returns (out_xs, out_xf) in NCHW float32."""
    B, C, H, W = x_s.shape
    # TODO(synk): boundary NCHW<->NHWC transposes remain plain XLA ops.
    xs = jnp.transpose(x_s, (0, 2, 3, 1)).astype(jnp.bfloat16)
    xf = jnp.transpose(x_f, (0, 2, 3, 1)).astype(jnp.bfloat16)

    g = gate_attn(xs, xf, params['gate'])                          # (B,H,W,2) f32

    pair = jnp.stack([xs, xf])                                     # (2,B,H,W,C)
    pair_res = residual_block_pair(pair, params['convs2s'], params['convf2s'])
    pair_spec = spectral_transform_pair(pair, params['convs2f'], params['convf2f'])

    # lane-dense (B*H, W*C) slabs for the fused sigmoid-gate / combine kernel
    R, N = B * H, W * C
    gf2s = jnp.broadcast_to(g[..., 0:1], (B, H, W, C)).reshape(R, N)
    gs2f = jnp.broadcast_to(g[..., 1:2], (B, H, W, C)).reshape(R, N)
    oxs, oxf = pl_ffc_combine(
        pair_res[0].reshape(R, N), pair_res[1].reshape(R, N),
        pair_spec[0].reshape(R, N), pair_spec[1].reshape(R, N), gf2s, gs2f)
    oxs = jnp.transpose(oxs.reshape(B, H, W, C), (0, 3, 1, 2))
    oxf = jnp.transpose(oxf.reshape(B, H, W, C), (0, 3, 1, 2))
    return oxs, oxf


# ----------------------------------------------------------------------------
# deterministic parameter init (weight_norm at init == plain conv weight)
# ----------------------------------------------------------------------------
def init_params(C, key):
    keys = iter(jax.random.split(key, 32))

    def w(shape):
        return jax.random.normal(next(keys), shape, jnp.float32) * 0.2

    half = C // 2
    d = half // 2                 # distilled
    r = half - d                  # remaining

    def res_block():
        return dict(c1=w((half, C, 3, 3)), c2=w((half, r, 3, 3)),
                    c3=w((d, r, 3, 3)), c5=w((C, 3 * d, 3, 3)))

    def spec_trans():
        return dict(conv1=w((half, C, 1, 1)),
                    fu_hor=w((half, half, 1, 1)),
                    fu_vert=w((half, half, 1, 1)),
                    conv2=w((C, half, 1, 1)))

    gate = dict(sa=w((2, 2 * C, 1, 1)),
                sa_hor=w((2, 2, 1, 5)),
                sa_vert=w((2, 2, 5, 1)))
    return dict(convs2s=res_block(), convf2s=res_block(),
                convs2f=spec_trans(), convf2f=spec_trans(), gate=gate)


# ----------------------------------------------------------------------------
# pure-JAX reference (NCHW, f32-highest convs + jnp.fft) for validation
# ----------------------------------------------------------------------------
def _leaky(x):
    return jnp.where(x >= 0, x, LEAKY_SLOPE * x)


def _conv_ref(x, w, ph, pw):
    return lax.conv_general_dilated(
        x, w, (1, 1), ((ph, ph), (pw, pw)),
        dimension_numbers=('NCHW', 'OIHW', 'NCHW'),
        precision=lax.Precision.HIGHEST)


def _residual_ref(x, p):
    C = x.shape[1]
    d = (C // 2) // 2
    o1 = _leaky(_conv_ref(x, p['c1'], 1, 1))
    d1, r1 = o1[:, :d], o1[:, d:]
    o2 = _leaky(_conv_ref(r1, p['c2'], 1, 1))
    d2, r2 = o2[:, :d], o2[:, d:]
    o3 = _leaky(_conv_ref(r2, p['c3'], 1, 1))
    out = jnp.concatenate([d1, d2, o3], axis=1)
    return _conv_ref(out, p['c5'], 1, 1) + x


def _dfu_ref(x, wh, wv):
    B, c, H, W = x.shape
    hx, vx = x[:, :c // 2], x[:, c // 2:]
    hf = jnp.fft.rfft(hx, axis=-1, norm='ortho')
    hf = jnp.concatenate([hf.real, hf.imag], axis=1)
    vf = jnp.fft.rfft(vx, axis=-2, norm='ortho')
    vf = jnp.concatenate([vf.real, vf.imag], axis=1)
    hf = _leaky(_conv_ref(hf, wh, 0, 0))
    vf = _leaky(_conv_ref(vf, wv, 0, 0))
    hr, hi = jnp.split(hf, 2, axis=1)
    ho = jnp.fft.irfft(hr + 1j * hi, n=W, axis=-1, norm='ortho')
    vr, vi = jnp.split(vf, 2, axis=1)
    vo = jnp.fft.irfft(vr + 1j * vi, n=H, axis=-2, norm='ortho')
    return jnp.concatenate([ho, vo], axis=1)


def _spectral_ref(x, p):
    x1 = _leaky(_conv_ref(x, p['conv1'], 0, 0))
    fu = _dfu_ref(x1, p['fu_hor'], p['fu_vert'])
    return _conv_ref(x1 + fu, p['conv2'], 0, 0)


def _gate_ref(xt, p):
    a = _conv_ref(xt, p['sa'], 0, 0)
    return _conv_ref(a, p['sa_hor'], 0, 2) + _conv_ref(a, p['sa_vert'], 2, 0)


def ffc_act_ref(x_s, x_f, params):
    total = jnp.concatenate([x_s, x_f], axis=1)
    gates = jax.nn.sigmoid(_gate_ref(total, params['gate']))
    f2s_g, s2f_g = gates[:, 0:1], gates[:, 1:2]
    out_xs = _residual_ref(x_s, params['convs2s']) + \
        _residual_ref(x_f, params['convf2s']) * f2s_g
    out_xf = _spectral_ref(x_s, params['convs2f']) * s2f_g + \
        _spectral_ref(x_f, params['convf2f'])
    return _leaky(out_xs), _leaky(out_xf)


# ----------------------------------------------------------------------------
if __name__ == "__main__":
    B, C, H, W = 2, 4, 16, 16
    key = jax.random.PRNGKey(0)
    k_xs, k_xf, k_params = jax.random.split(key, 3)
    x_s = jax.random.normal(k_xs, (B, C, H, W), jnp.float32)
    x_f = jax.random.normal(k_xf, (B, C, H, W), jnp.float32)
    params = init_params(C, k_params)

    out_s, out_f = jax.jit(ffc_act_forward)(x_s, x_f, params)
    jax.block_until_ready((out_s, out_f))

    # Reference is f32-highest; the Pallas path runs the MXU in bf16 with bf16
    # intermediates, so the tolerance is sized for a bf16 conv/FFT chain.
    ref_s, ref_f = ffc_act_ref(x_s, x_f, params)
    assert np.allclose(np.asarray(out_s), np.asarray(ref_s),
                       rtol=5e-2, atol=2e-1), float(np.abs(out_s - ref_s).max())
    assert np.allclose(np.asarray(out_f), np.asarray(ref_f),
                       rtol=5e-2, atol=2e-1), float(np.abs(out_f - ref_f).max())
    print("KERNEL_OK")
</pallas_src>

<mosaic_0001>
module attributes {stable_mosaic.version = 11 : i64} {
  func.func @_gate_sa_kernel(%arg0: i32, %arg1: memref<256x4xbf16, #tpu.memory_space<vmem>>, %arg2: memref<256x4xbf16, #tpu.memory_space<vmem>>, %arg3: memref<4x2xbf16, #tpu.memory_space<vmem>>, %arg4: memref<4x2xbf16, #tpu.memory_space<vmem>>, %arg5: memref<256x2xf32, #tpu.memory_space<vmem>>) attributes {dimension_semantics = [#tpu.dimension_semantics<parallel>], iteration_bounds = array<i64: 2>, scalar_prefetch = 0 : i64, scratch_operands = 0 : i64, tpu.core_type = #tpu.core_type<tc>, window_params = [{transform_indices = @transform_0, window_bounds = array<i64: 256, 4>}, {transform_indices = @transform_1, window_bounds = array<i64: 256, 4>}, {pipeline_mode = #tpu.pipeline_mode<synchronous>, transform_indices = @transform_2, window_bounds = array<i64: 4, 2>}, {pipeline_mode = #tpu.pipeline_mode<synchronous>, transform_indices = @transform_3, window_bounds = array<i64: 4, 2>}, {transform_indices = @transform_4, window_bounds = array<i64: 256, 2>}]} {
    %c0 = arith.constant 0 : index
    %c0_0 = arith.constant 0 : index
    %0 = vector.load %arg1[%c0, %c0_0] : memref<256x4xbf16, #tpu.memory_space<vmem>>, vector<256x4xbf16>
    %c0_1 = arith.constant 0 : index
    %c0_2 = arith.constant 0 : index
    %1 = vector.load %arg3[%c0_1, %c0_2] : memref<4x2xbf16, #tpu.memory_space<vmem>>, vector<4x2xbf16>
    %cst = arith.constant dense<0.000000e+00> : vector<256x2xf32>
    %2 = tpu.matmul %0, %1, %cst {dimension_numbers = #tpu.dot_dimension_numbers<[1], [0], [0], [1], [0, 0, 1, 1], [], []>} : vector<256x4xbf16>, vector<4x2xbf16>, vector<256x2xf32> -> vector<256x2xf32>
    %c0_3 = arith.constant 0 : index
    %c0_4 = arith.constant 0 : index
    %3 = vector.load %arg2[%c0_3, %c0_4] : memref<256x4xbf16, #tpu.memory_space<vmem>>, vector<256x4xbf16>
    %c0_5 = arith.constant 0 : index
    %c0_6 = arith.constant 0 : index
    %4 = vector.load %arg4[%c0_5, %c0_6] : memref<4x2xbf16, #tpu.memory_space<vmem>>, vector<4x2xbf16>
    %cst_7 = arith.constant dense<0.000000e+00> : vector<256x2xf32>
    %5 = tpu.matmul %3, %4, %cst_7 {dimension_numbers = #tpu.dot_dimension_numbers<[1], [0], [0], [1], [0, 0, 1, 1], [], []>} : vector<256x4xbf16>, vector<4x2xbf16>, vector<256x2xf32> -> vector<256x2xf32>
    %6 = arith.addf %2, %5 : vector<256x2xf32>
    %c0_8 = arith.constant 0 : index
    %c0_9 = arith.constant 0 : index
    %7 = vector.load %arg5[%c0_8, %c0_9] : memref<256x2xf32, #tpu.memory_space<vmem>>, vector<256x2xf32>
    tpu.vector_store %arg5[%c0_8, %c0_9], %6 {strides = array<i32>} : memref<256x2xf32, #tpu.memory_space<vmem>>, vector<256x2xf32>,
    return
  }
  func.func @transform_0(%arg0: i32) -> (i32, i32) {
    %c0_i32 = arith.constant 0 : i32
    %c0_i32_0 = arith.constant 0 : i32
    return %arg0, %c0_i32 : i32, i32
  }
  func.func @transform_1(%arg0: i32) -> (i32, i32) {
    %c0_i32 = arith.constant 0 : i32
    %c0_i32_0 = arith.constant 0 : i32
    return %arg0, %c0_i32 : i32, i32
  }
  func.func @transform_2(%arg0: i32) -> (i32, i32) {
    %c0_i32 = arith.constant 0 : i32
    %c0_i32_0 = arith.constant 0 : i32
    %c0_i32_1 = arith.constant 0 : i32
    return %c0_i32, %c0_i32_0 : i32, i32
  }
  func.func @transform_3(%arg0: i32) -> (i32, i32) {
    %c0_i32 = arith.constant 0 : i32
    %c0_i32_0 = arith.constant 0 : i32
    %c0_i32_1 = arith.constant 0 : i32
    return %c0_i32, %c0_i32_0 : i32, i32
  }
  func.func @transform_4(%arg0: i32) -> (i32, i32) {
    %c0_i32 = arith.constant 0 : i32
    %c0_i32_0 = arith.constant 0 : i32
    return %arg0, %c0_i32 : i32, i32
  }
}

module attributes {stable_mosaic.version = 11 : i64} {
  func.func @_mm_act_kernel(%arg0: i32, %arg1: i32, %arg2: memref<1x512x4xbf16, #tpu.memory_space<vmem>>, %arg3: memref<1x4x2xbf16, #tpu.memory_space<vmem>>, %arg4: memref<1x512x2xbf16, #tpu.memory_space<vmem>>) attributes {dimension_semantics = [#tpu.dimension_semantics<parallel>, #tpu.dimension_semantics<parallel>], iteration_bounds = array<i64: 2, 1>, scalar_prefetch = 0 : i64, scratch_operands = 0 : i64, tpu.core_type = #tpu.core_type<tc>, window_params = [{transform_indices = @transform_0, window_bounds = array<i64: 1, 512, 4>}, {transform_indices = @transform_1, window_bounds = array<i64: 1, 4, 2>}, {transform_indices = @transform_2, window_bounds = array<i64: 1, 512, 2>}]} {
    %c0 = arith.constant 0 : index
    %c0_0 = arith.constant 0 : index
    %c0_1 = arith.constant 0 : index
    %0 = vector.load %arg2[%c0, %c0_0, %c0_1] : memref<1x512x4xbf16, #tpu.memory_space<vmem>>, vector<1x512x4xbf16>
    %1 = vector.shape_cast %0 : vector<1x512x4xbf16> to vector<512x4xbf16>
    %c0_2 = arith.constant 0 : index
    %c0_3 = arith.constant 0 : index
    %c0_4 = arith.constant 0 : index
    %2 = vector.load %arg3[%c0_2, %c0_3, %c0_4] : memref<1x4x2xbf16, #tpu.memory_space<vmem>>, vector<1x4x2xbf16>
    %3 = vector.shape_cast %2 : vector<1x4x2xbf16> to vector<4x2xbf16>
    %cst = arith.constant dense<0.000000e+00> : vector<512x2xf32>
    %4 = tpu.matmul %1, %3, %cst {dimension_numbers = #tpu.dot_dimension_numbers<[1], [0], [0], [1], [0, 0, 1, 1], [], []>} : vector<512x4xbf16>, vector<4x2xbf16>, vector<512x2xf32> -> vector<512x2xf32>
    %cst_5 = arith.constant 0.000000e+00 : f32
    %5 = vector.broadcast %cst_5 : f32 to vector<512x2xf32>
    %6 = arith.cmpf oge, %4, %5 : vector<512x2xf32>
    %cst_6 = arith.constant 5.000000e-02 : f32
    %7 = vector.broadcast %cst_6 : f32 to vector<512x2xf32>
    %8 = arith.mulf %7, %4 : vector<512x2xf32>
    %9 = arith.select %6, %4, %8 : vector<512x2xi1>, vector<512x2xf32>
    %10 = arith.truncf %9 : vector<512x2xf32> to vector<512x2xbf16>
    %c0_7 = arith.constant 0 : index
    %c0_8 = arith.constant 0 : index
    %c0_9 = arith.constant 0 : index
    %11 = vector.load %arg4[%c0_7, %c0_8, %c0_9] : memref<1x512x2xbf16, #tpu.memory_space<vmem>>, vector<1x512x2xbf16>
    %12 = vector.shape_cast %11 : vector<1x512x2xbf16> to vector<512x2xbf16>
    %13 = vector.shape_cast %10 : vector<512x2xbf16> to vector<1x512x2xbf16>
    tpu.vector_store %arg4[%c0_7, %c0_8, %c0_9], %13 {strides = array<i32>} : memref<1x512x2xbf16, #tpu.memory_space<vmem>>, vector<1x512x2xbf16>,
    return
  }
  func.func @transform_0(%arg0: i32, %arg1: i32) -> (i32, i32, i32) {
    %c0_i32 = arith.constant 0 : i32
    %c0_i32_0 = arith.constant 0 : i32
    return %arg0, %arg1, %c0_i32 : i32, i32, i32
  }
  func.func @transform_1(%arg0: i32, %arg1: i32) -> (i32, i32, i32) {
    %c0_i32 = arith.constant 0 : i32
    %c0_i32_0 = arith.constant 0 : i32
    %c0_i32_1 = arith.constant 0 : i32
    return %arg0, %c0_i32, %c0_i32_0 : i32, i32, i32
  }
  func.func @transform_2(%arg0: i32, %arg1: i32) -> (i32, i32, i32) {
    %c0_i32 = arith.constant 0 : i32
    %c0_i32_0 = arith.constant 0 : i32
    return %arg0, %arg1, %c0_i32 : i32, i32, i32
  }
}

module attributes {stable_mosaic.version = 11 : i64} {
  func.func @_dfu_branch_kernel(%arg0: i32, %arg1: i32, %arg2: memref<1x32x16xbf16, #tpu.memory_space<vmem>>, %arg3: memref<1x16x18xbf16, #tpu.memory_space<vmem>>, %arg4: memref<18x16xbf16, #tpu.memory_space<vmem>>, %arg5: memref<1x32x16xbf16, #tpu.memory_space<vmem>>) attributes {dimension_semantics = [#tpu.dimension_semantics<parallel>, #tpu.dimension_semantics<parallel>], iteration_bounds = array<i64: 2, 1>, scalar_prefetch = 0 : i64, scratch_operands = 0 : i64, tpu.core_type = #tpu.core_type<tc>, window_params = [{transform_indices = @transform_0, window_bounds = array<i64: 1, 32, 16>}, {transform_indices = @transform_1, window_bounds = array<i64: 1, 16, 18>}, {pipeline_mode = #tpu.pipeline_mode<synchronous>, transform_indices = @transform_2, window_bounds = array<i64: 18, 16>}, {transform_indices = @transform_3, window_bounds = array<i64: 1, 32, 16>}]} {
    %c0 = arith.constant 0 : index
    %c0_0 = arith.constant 0 : index
    %c0_1 = arith.constant 0 : index
    %0 = vector.load %arg2[%c0, %c0_0, %c0_1] : memref<1x32x16xbf16, #tpu.memory_space<vmem>>, vector<1x32x16xbf16>
    %1 = vector.shape_cast %0 : vector<1x32x16xbf16> to vector<32x16xbf16>
    %c0_2 = arith.constant 0 : index
    %c0_3 = arith.constant 0 : index
    %c0_4 = arith.constant 0 : index
    %2 = vector.load %arg3[%c0_2, %c0_3, %c0_4] : memref<1x16x18xbf16, #tpu.memory_space<vmem>>, vector<1x16x18xbf16>
    %3 = vector.shape_cast %2 : vector<1x16x18xbf16> to vector<16x18xbf16>
    %cst = arith.constant dense<0.000000e+00> : vector<32x18xf32>
    %4 = tpu.matmul %1, %3, %cst {dimension_numbers = #tpu.dot_dimension_numbers<[1], [0], [0], [1], [0, 0, 1, 1], [], []>} : vector<32x16xbf16>, vector<16x18xbf16>, vector<32x18xf32> -> vector<32x18xf32>
    %cst_5 = arith.constant 0.000000e+00 : f32
    %5 = vector.broadcast %cst_5 : f32 to vector<32x18xf32>
    %6 = arith.cmpf oge, %4, %5 : vector<32x18xf32>
    %cst_6 = arith.constant 5.000000e-02 : f32
    %7 = vector.broadcast %cst_6 : f32 to vector<32x18xf32>
    %8 = arith.mulf %7, %4 : vector<32x18xf32>
    %9 = arith.select %6, %4, %8 : vector<32x18xi1>, vector<32x18xf32>
    %10 = arith.truncf %9 : vector<32x18xf32> to vector<32x18xbf16>
    %c0_7 = arith.constant 0 : index
    %c0_8 = arith.constant 0 : index
    %11 = vector.load %arg4[%c0_7, %c0_8] : memref<18x16xbf16, #tpu.memory_space<vmem>>, vector<18x16xbf16>
    %cst_9 = arith.constant dense<0.000000e+00> : vector<32x16xf32>
    %12 = tpu.matmul %10, %11, %cst_9 {dimension_numbers = #tpu.dot_dimension_numbers<[1], [0], [0], [1], [0, 0, 1, 1], [], []>} : vector<32x18xbf16>, vector<18x16xbf16>, vector<32x16xf32> -> vector<32x16xf32>
    %13 = arith.truncf %12 : vector<32x16xf32> to vector<32x16xbf16>
    %c0_10 = arith.constant 0 : index
    %c0_11 = arith.constant 0 : index
    %c0_12 = arith.constant 0 : index
    %14 = vector.load %arg5[%c0_10, %c0_11, %c0_12] : memref<1x32x16xbf16, #tpu.memory_space<vmem>>, vector<1x32x16xbf16>
    %15 = vector.shape_cast %14 : vector<1x32x16xbf16> to vector<32x16xbf16>
    %16 = vector.shape_cast %13 : vector<32x16xbf16> to vector<1x32x16xbf16>
    tpu.vector_store %arg5[%c0_10, %c0_11, %c0_12], %16 {strides = array<i32>} : memref<1x32x16xbf16, #tpu.memory_space<vmem>>, vector<1x32x16xbf16>,
    return
  }
  func.func @transform_0(%arg0: i32, %arg1: i32) -> (i32, i32, i32) {
    %c0_i32 = arith.constant 0 : i32
    %c0_i32_0 = arith.constant 0 : i32
    return %arg0, %arg1, %c0_i32 : i32, i32, i32
  }
  func.func @transform_1(%arg0: i32, %arg1: i32) -> (i32, i32, i32) {
    %c0_i32 = arith.constant 0 : i32
    %c0_i32_0 = arith.constant 0 : i32
    %c0_i32_1 = arith.constant 0 : i32
    return %arg0, %c0_i32, %c0_i32_0 : i32, i32, i32
  }
  func.func @transform_2(%arg0: i32, %arg1: i32) -> (i32, i32) {
    %c0_i32 = arith.constant 0 : i32
    %c0_i32_0 = arith.constant 0 : i32
    %c0_i32_1 = arith.constant 0 : i32
    return %c0_i32, %c0_i32_0 : i32, i32
  }
  func.func @transform_3(%arg0: i32, %arg1: i32) -> (i32, i32, i32) {
    %c0_i32 = arith.constant 0 : i32
    %c0_i32_0 = arith.constant 0 : i32
    return %arg0, %arg1, %c0_i32 : i32, i32, i32
  }
}

module attributes {stable_mosaic.version = 11 : i64} {
  func.func @_add_mm_kernel(%arg0: i32, %arg1: i32, %arg2: memref<1x512x2xbf16, #tpu.memory_space<vmem>>, %arg3: memref<1x512x2xbf16, #tpu.memory_space<vmem>>, %arg4: memref<1x2x4xbf16, #tpu.memory_space<vmem>>, %arg5: memref<1x512x4xbf16, #tpu.memory_space<vmem>>) attributes {dimension_semantics = [#tpu.dimension_semantics<parallel>, #tpu.dimension_semantics<parallel>], iteration_bounds = array<i64: 2, 1>, scalar_prefetch = 0 : i64, scratch_operands = 0 : i64, tpu.core_type = #tpu.core_type<tc>, window_params = [{transform_indices = @transform_0, window_bounds = array<i64: 1, 512, 2>}, {transform_indices = @transform_1, window_bounds = array<i64: 1, 512, 2>}, {transform_indices = @transform_2, window_bounds = array<i64: 1, 2, 4>}, {transform_indices = @transform_3, window_bounds = array<i64: 1, 512, 4>}]} {
    %c0 = arith.constant 0 : index
    %c0_0 = arith.constant 0 : index
    %c0_1 = arith.constant 0 : index
    %0 = vector.load %arg2[%c0, %c0_0, %c0_1] : memref<1x512x2xbf16, #tpu.memory_space<vmem>>, vector<1x512x2xbf16>
    %1 = vector.shape_cast %0 : vector<1x512x2xbf16> to vector<512x2xbf16>
    %2 = arith.extf %1 : vector<512x2xbf16> to vector<512x2xf32>
    %c0_2 = arith.constant 0 : index
    %c0_3 = arith.constant 0 : index
    %c0_4 = arith.constant 0 : index
    %3 = vector.load %arg3[%c0_2, %c0_3, %c0_4] : memref<1x512x2xbf16, #tpu.memory_space<vmem>>, vector<1x512x2xbf16>
    %4 = vector.shape_cast %3 : vector<1x512x2xbf16> to vector<512x2xbf16>
    %5 = arith.extf %4 : vector<512x2xbf16> to vector<512x2xf32>
    %6 = arith.addf %2, %5 : vector<512x2xf32>
    %7 = arith.truncf %6 : vector<512x2xf32> to vector<512x2xbf16>
    %c0_5 = arith.constant 0 : index
    %c0_6 = arith.constant 0 : index
    %c0_7 = arith.constant 0 : index
    %8 = vector.load %arg4[%c0_5, %c0_6, %c0_7] : memref<1x2x4xbf16, #tpu.memory_space<vmem>>, vector<1x2x4xbf16>
    %9 = vector.shape_cast %8 : vector<1x2x4xbf16> to vector<2x4xbf16>
    %cst = arith.constant dense<0.000000e+00> : vector<512x4xf32>
    %10 = tpu.matmul %7, %9, %cst {dimension_numbers = #tpu.dot_dimension_numbers<[1], [0], [0], [1], [0, 0, 1, 1], [], []>} : vector<512x2xbf16>, vector<2x4xbf16>, vector<512x4xf32> -> vector<512x4xf32>
    %11 = arith.truncf %10 : vector<512x4xf32> to vector<512x4xbf16>
    %c0_8 = arith.constant 0 : index
    %c0_9 = arith.constant 0 : index
    %c0_10 = arith.constant 0 : index
    %12 = vector.load %arg5[%c0_8, %c0_9, %c0_10] : memref<1x512x4xbf16, #tpu.memory_space<vmem>>, vector<1x512x4xbf16>
    %13 = vector.shape_cast %12 : vector<1x512x4xbf16> to vector<512x4xbf16>
    %14 = vector.shape_cast %11 : vector<512x4xbf16> to vector<1x512x4xbf16>
    tpu.vector_store %arg5[%c0_8, %c0_9, %c0_10], %14 {strides = array<i32>} : memref<1x512x4xbf16, #tpu.memory_space<vmem>>, vector<1x512x4xbf16>,
    return
  }
  func.func @transform_0(%arg0: i32, %arg1: i32) -> (i32, i32, i32) {
    %c0_i32 = arith.constant 0 : i32
    %c0_i32_0 = arith.constant 0 : i32
    return %arg0, %arg1, %c0_i32 : i32, i32, i32
  }
  func.func @transform_1(%arg0: i32, %arg1: i32) -> (i32, i32, i32) {
    %c0_i32 = arith.constant 0 : i32
    %c0_i32_0 = arith.constant 0 : i32
    return %arg0, %arg1, %c0_i32 : i32, i32, i32
  }
  func.func @transform_2(%arg0: i32, %arg1: i32) -> (i32, i32, i32) {
    %c0_i32 = arith.constant 0 : i32
    %c0_i32_0 = arith.constant 0 : i32
    %c0_i32_1 = arith.constant 0 : i32
    return %arg0, %c0_i32, %c0_i32_0 : i32, i32, i32
  }
  func.func @transform_3(%arg0: i32, %arg1: i32) -> (i32, i32, i32) {
    %c0_i32 = arith.constant 0 : i32
    %c0_i32_0 = arith.constant 0 : i32
    return %arg0, %arg1, %c0_i32 : i32, i32, i32
  }
}

module attributes {stable_mosaic.version = 11 : i64} {
  func.func @_mm_act_kernel(%arg0: i32, %arg1: i32, %arg2: memref<1x512x36xbf16, #tpu.memory_space<vmem>>, %arg3: memref<1x36x2xbf16, #tpu.memory_space<vmem>>, %arg4: memref<1x512x2xbf16, #tpu.memory_space<vmem>>) attributes {dimension_semantics = [#tpu.dimension_semantics<parallel>, #tpu.dimension_semantics<parallel>], iteration_bounds = array<i64: 2, 1>, scalar_prefetch = 0 : i64, scratch_operands = 0 : i64, tpu.core_type = #tpu.core_type<tc>, window_params = [{transform_indices = @transform_0, window_bounds = array<i64: 1, 512, 36>}, {transform_indices = @transform_1, window_bounds = array<i64: 1, 36, 2>}, {transform_indices = @transform_2, window_bounds = array<i64: 1, 512, 2>}]} {
    %c0 = arith.constant 0 : index
    %c0_0 = arith.constant 0 : index
    %c0_1 = arith.constant 0 : index
    %0 = vector.load %arg2[%c0, %c0_0, %c0_1] : memref<1x512x36xbf16, #tpu.memory_space<vmem>>, vector<1x512x36xbf16>
    %1 = vector.shape_cast %0 : vector<1x512x36xbf16> to vector<512x36xbf16>
    %c0_2 = arith.constant 0 : index
    %c0_3 = arith.constant 0 : index
    %c0_4 = arith.constant 0 : index
    %2 = vector.load %arg3[%c0_2, %c0_3, %c0_4] : memref<1x36x2xbf16, #tpu.memory_space<vmem>>, vector<1x36x2xbf16>
    %3 = vector.shape_cast %2 : vector<1x36x2xbf16> to vector<36x2xbf16>
    %cst = arith.constant dense<0.000000e+00> : vector<512x2xf32>
    %4 = tpu.matmul %1, %3, %cst {dimension_numbers = #tpu.dot_dimension_numbers<[1], [0], [0], [1], [0, 0, 1, 1], [], []>} : vector<512x36xbf16>, vector<36x2xbf16>, vector<512x2xf32> -> vector<512x2xf32>
    %cst_5 = arith.constant 0.000000e+00 : f32
    %5 = vector.broadcast %cst_5 : f32 to vector<512x2xf32>
    %6 = arith.cmpf oge, %4, %5 : vector<512x2xf32>
    %cst_6 = arith.constant 5.000000e-02 : f32
    %7 = vector.broadcast %cst_6 : f32 to vector<512x2xf32>
    %8 = arith.mulf %7, %4 : vector<512x2xf32>
    %9 = arith.select %6, %4, %8 : vector<512x2xi1>, vector<512x2xf32>
    %10 = arith.truncf %9 : vector<512x2xf32> to vector<512x2xbf16>
    %c0_7 = arith.constant 0 : index
    %c0_8 = arith.constant 0 : index
    %c0_9 = arith.constant 0 : index
    %11 = vector.load %arg4[%c0_7, %c0_8, %c0_9] : memref<1x512x2xbf16, #tpu.memory_space<vmem>>, vector<1x512x2xbf16>
    %12 = vector.shape_cast %11 : vector<1x512x2xbf16> to vector<512x2xbf16>
    %13 = vector.shape_cast %10 : vector<512x2xbf16> to vector<1x512x2xbf16>
    tpu.vector_store %arg4[%c0_7, %c0_8, %c0_9], %13 {strides = array<i32>} : memref<1x512x2xbf16, #tpu.memory_space<vmem>>, vector<1x512x2xbf16>,
    return
  }
  func.func @transform_0(%arg0: i32, %arg1: i32) -> (i32, i32, i32) {
    %c0_i32 = arith.constant 0 : i32
    %c0_i32_0 = arith.constant 0 : i32
    return %arg0, %arg1, %c0_i32 : i32, i32, i32
  }
  func.func @transform_1(%arg0: i32, %arg1: i32) -> (i32, i32, i32) {
    %c0_i32 = arith.constant 0 : i32
    %c0_i32_0 = arith.constant 0 : i32
    %c0_i32_1 = arith.constant 0 : i32
    return %arg0, %c0_i32, %c0_i32_0 : i32, i32, i32
  }
  func.func @transform_2(%arg0: i32, %arg1: i32) -> (i32, i32, i32) {
    %c0_i32 = arith.constant 0 : i32
    %c0_i32_0 = arith.constant 0 : i32
    return %arg0, %arg1, %c0_i32 : i32, i32, i32
  }
}

module attributes {stable_mosaic.version = 11 : i64} {
  func.func @_mm_act_kernel(%arg0: i32, %arg1: i32, %arg2: memref<1x512x9xbf16, #tpu.memory_space<vmem>>, %arg3: memref<1x9x2xbf16, #tpu.memory_space<vmem>>, %arg4: memref<1x512x2xbf16, #tpu.memory_space<vmem>>) attributes {dimension_semantics = [#tpu.dimension_semantics<parallel>, #tpu.dimension_semantics<parallel>], iteration_bounds = array<i64: 2, 1>, scalar_prefetch = 0 : i64, scratch_operands = 0 : i64, tpu.core_type = #tpu.core_type<tc>, window_params = [{transform_indices = @transform_0, window_bounds = array<i64: 1, 512, 9>}, {transform_indices = @transform_1, window_bounds = array<i64: 1, 9, 2>}, {transform_indices = @transform_2, window_bounds = array<i64: 1, 512, 2>}]} {
    %c0 = arith.constant 0 : index
    %c0_0 = arith.constant 0 : index
    %c0_1 = arith.constant 0 : index
    %0 = vector.load %arg2[%c0, %c0_0, %c0_1] : memref<1x512x9xbf16, #tpu.memory_space<vmem>>, vector<1x512x9xbf16>
    %1 = vector.shape_cast %0 : vector<1x512x9xbf16> to vector<512x9xbf16>
    %c0_2 = arith.constant 0 : index
    %c0_3 = arith.constant 0 : index
    %c0_4 = arith.constant 0 : index
    %2 = vector.load %arg3[%c0_2, %c0_3, %c0_4] : memref<1x9x2xbf16, #tpu.memory_space<vmem>>, vector<1x9x2xbf16>
    %3 = vector.shape_cast %2 : vector<1x9x2xbf16> to vector<9x2xbf16>
    %cst = arith.constant dense<0.000000e+00> : vector<512x2xf32>
    %4 = tpu.matmul %1, %3, %cst {dimension_numbers = #tpu.dot_dimension_numbers<[1], [0], [0], [1], [0, 0, 1, 1], [], []>} : vector<512x9xbf16>, vector<9x2xbf16>, vector<512x2xf32> -> vector<512x2xf32>
    %cst_5 = arith.constant 0.000000e+00 : f32
    %5 = vector.broadcast %cst_5 : f32 to vector<512x2xf32>
    %6 = arith.cmpf oge, %4, %5 : vector<512x2xf32>
    %cst_6 = arith.constant 5.000000e-02 : f32
    %7 = vector.broadcast %cst_6 : f32 to vector<512x2xf32>
    %8 = arith.mulf %7, %4 : vector<512x2xf32>
    %9 = arith.select %6, %4, %8 : vector<512x2xi1>, vector<512x2xf32>
    %10 = arith.truncf %9 : vector<512x2xf32> to vector<512x2xbf16>
    %c0_7 = arith.constant 0 : index
    %c0_8 = arith.constant 0 : index
    %c0_9 = arith.constant 0 : index
    %11 = vector.load %arg4[%c0_7, %c0_8, %c0_9] : memref<1x512x2xbf16, #tpu.memory_space<vmem>>, vector<1x512x2xbf16>
    %12 = vector.shape_cast %11 : vector<1x512x2xbf16> to vector<512x2xbf16>
    %13 = vector.shape_cast %10 : vector<512x2xbf16> to vector<1x512x2xbf16>
    tpu.vector_store %arg4[%c0_7, %c0_8, %c0_9], %13 {strides = array<i32>} : memref<1x512x2xbf16, #tpu.memory_space<vmem>>, vector<1x512x2xbf16>,
    return
  }
  func.func @transform_0(%arg0: i32, %arg1: i32) -> (i32, i32, i32) {
    %c0_i32 = arith.constant 0 : i32
    %c0_i32_0 = arith.constant 0 : i32
    return %arg0, %arg1, %c0_i32 : i32, i32, i32
  }
  func.func @transform_1(%arg0: i32, %arg1: i32) -> (i32, i32, i32) {
    %c0_i32 = arith.constant 0 : i32
    %c0_i32_0 = arith.constant 0 : i32
    %c0_i32_1 = arith.constant 0 : i32
    return %arg0, %c0_i32, %c0_i32_0 : i32, i32, i32
  }
  func.func @transform_2(%arg0: i32, %arg1: i32) -> (i32, i32, i32) {
    %c0_i32 = arith.constant 0 : i32
    %c0_i32_0 = arith.constant 0 : i32
    return %arg0, %arg1, %c0_i32 : i32, i32, i32
  }
}

module attributes {stable_mosaic.version = 11 : i64} {
  func.func @_mm_act_kernel(%arg0: i32, %arg1: i32, %arg2: memref<1x512x9xbf16, #tpu.memory_space<vmem>>, %arg3: memref<1x9x1xbf16, #tpu.memory_space<vmem>>, %arg4: memref<1x512x1xbf16, #tpu.memory_space<vmem>>) attributes {dimension_semantics = [#tpu.dimension_semantics<parallel>, #tpu.dimension_semantics<parallel>], iteration_bounds = array<i64: 2, 1>, scalar_prefetch = 0 : i64, scratch_operands = 0 : i64, tpu.core_type = #tpu.core_type<tc>, window_params = [{transform_indices = @transform_0, window_bounds = array<i64: 1, 512, 9>}, {transform_indices = @transform_1, window_bounds = array<i64: 1, 9, 1>}, {transform_indices = @transform_2, window_bounds = array<i64: 1, 512, 1>}]} {
    %c0 = arith.constant 0 : index
    %c0_0 = arith.constant 0 : index
    %c0_1 = arith.constant 0 : index
    %0 = vector.load %arg2[%c0, %c0_0, %c0_1] : memref<1x512x9xbf16, #tpu.memory_space<vmem>>, vector<1x512x9xbf16>
    %1 = vector.shape_cast %0 : vector<1x512x9xbf16> to vector<512x9xbf16>
    %c0_2 = arith.constant 0 : index
    %c0_3 = arith.constant 0 : index
    %c0_4 = arith.constant 0 : index
    %2 = vector.load %arg3[%c0_2, %c0_3, %c0_4] : memref<1x9x1xbf16, #tpu.memory_space<vmem>>, vector<1x9x1xbf16>
    %3 = vector.shape_cast %2 : vector<1x9x1xbf16> to vector<9x1xbf16>
    %cst = arith.constant dense<0.000000e+00> : vector<512x1xf32>
    %4 = tpu.matmul %1, %3, %cst {dimension_numbers = #tpu.dot_dimension_numbers<[1], [0], [0], [1], [0, 0, 1, 1], [], []>} : vector<512x9xbf16>, vector<9x1xbf16>, vector<512x1xf32> -> vector<512x1xf32>
    %cst_5 = arith.constant 0.000000e+00 : f32
    %5 = vector.broadcast %cst_5 : f32 to vector<512x1xf32>
    %6 = arith.cmpf oge, %4, %5 : vector<512x1xf32>
    %cst_6 = arith.constant 5.000000e-02 : f32
    %7 = vector.broadcast %cst_6 : f32 to vector<512x1xf32>
    %8 = arith.mulf %7, %4 : vector<512x1xf32>
    %9 = arith.select %6, %4, %8 : vector<512x1xi1>, vector<512x1xf32>
    %10 = arith.truncf %9 : vector<512x1xf32> to vector<512x1xbf16>
    %c0_7 = arith.constant 0 : index
    %c0_8 = arith.constant 0 : index
    %c0_9 = arith.constant 0 : index
    %11 = vector.load %arg4[%c0_7, %c0_8, %c0_9] : memref<1x512x1xbf16, #tpu.memory_space<vmem>>, vector<1x512x1xbf16>
    %12 = vector.shape_cast %11 : vector<1x512x1xbf16> to vector<512x1xbf16>
    %13 = vector.shape_cast %10 : vector<512x1xbf16> to vector<1x512x1xbf16>
    tpu.vector_store %arg4[%c0_7, %c0_8, %c0_9], %13 {strides = array<i32>} : memref<1x512x1xbf16, #tpu.memory_space<vmem>>, vector<1x512x1xbf16>,
    return
  }
  func.func @transform_0(%arg0: i32, %arg1: i32) -> (i32, i32, i32) {
    %c0_i32 = arith.constant 0 : i32
    %c0_i32_0 = arith.constant 0 : i32
    return %arg0, %arg1, %c0_i32 : i32, i32, i32
  }
  func.func @transform_1(%arg0: i32, %arg1: i32) -> (i32, i32, i32) {
    %c0_i32 = arith.constant 0 : i32
    %c0_i32_0 = arith.constant 0 : i32
    %c0_i32_1 = arith.constant 0 : i32
    return %arg0, %c0_i32, %c0_i32_0 : i32, i32, i32
  }
  func.func @transform_2(%arg0: i32, %arg1: i32) -> (i32, i32, i32) {
    %c0_i32 = arith.constant 0 : i32
    %c0_i32_0 = arith.constant 0 : i32
    return %arg0, %arg1, %c0_i32 : i32, i32, i32
  }
}

module attributes {stable_mosaic.version = 11 : i64} {
  func.func @_mm_res_kernel(%arg0: i32, %arg1: i32, %arg2: memref<1x512x27xbf16, #tpu.memory_space<vmem>>, %arg3: memref<1x27x4xbf16, #tpu.memory_space<vmem>>, %arg4: memref<1x512x4xbf16, #tpu.memory_space<vmem>>, %arg5: memref<1x512x4xbf16, #tpu.memory_space<vmem>>) attributes {dimension_semantics = [#tpu.dimension_semantics<parallel>, #tpu.dimension_semantics<parallel>], iteration_bounds = array<i64: 2, 1>, scalar_prefetch = 0 : i64, scratch_operands = 0 : i64, tpu.core_type = #tpu.core_type<tc>, window_params = [{transform_indices = @transform_0, window_bounds = array<i64: 1, 512, 27>}, {transform_indices = @transform_1, window_bounds = array<i64: 1, 27, 4>}, {transform_indices = @transform_2, window_bounds = array<i64: 1, 512, 4>}, {transform_indices = @transform_3, window_bounds = array<i64: 1, 512, 4>}]} {
    %c0 = arith.constant 0 : index
    %c0_0 = arith.constant 0 : index
    %c0_1 = arith.constant 0 : index
    %0 = vector.load %arg2[%c0, %c0_0, %c0_1] : memref<1x512x27xbf16, #tpu.memory_space<vmem>>, vector<1x512x27xbf16>
    %1 = vector.shape_cast %0 : vector<1x512x27xbf16> to vector<512x27xbf16>
    %c0_2 = arith.constant 0 : index
    %c0_3 = arith.constant 0 : index
    %c0_4 = arith.constant 0 : index
    %2 = vector.load %arg3[%c0_2, %c0_3, %c0_4] : memref<1x27x4xbf16, #tpu.memory_space<vmem>>, vector<1x27x4xbf16>
    %3 = vector.shape_cast %2 : vector<1x27x4xbf16> to vector<27x4xbf16>
    %cst = arith.constant dense<0.000000e+00> : vector<512x4xf32>
    %4 = tpu.matmul %1, %3, %cst {dimension_numbers = #tpu.dot_dimension_numbers<[1], [0], [0], [1], [0, 0, 1, 1], [], []>} : vector<512x27xbf16>, vector<27x4xbf16>, vector<512x4xf32> -> vector<512x4xf32>
    %c0_5 = arith.constant 0 : index
    %c0_6 = arith.constant 0 : index
    %c0_7 = arith.constant 0 : index
    %5 = vector.load %arg4[%c0_5, %c0_6, %c0_7] : memref<1x512x4xbf16, #tpu.memory_space<vmem>>, vector<1x512x4xbf16>
    %6 = vector.shape_cast %5 : vector<1x512x4xbf16> to vector<512x4xbf16>
    %7 = arith.extf %6 : vector<512x4xbf16> to vector<512x4xf32>
    %8 = arith.addf %4, %7 : vector<512x4xf32>
    %9 = arith.truncf %8 : vector<512x4xf32> to vector<512x4xbf16>
    %c0_8 = arith.constant 0 : index
    %c0_9 = arith.constant 0 : index
    %c0_10 = arith.constant 0 : index
    %10 = vector.load %arg5[%c0_8, %c0_9, %c0_10] : memref<1x512x4xbf16, #tpu.memory_space<vmem>>, vector<1x512x4xbf16>
    %11 = vector.shape_cast %10 : vector<1x512x4xbf16> to vector<512x4xbf16>
    %12 = vector.shape_cast %9 : vector<512x4xbf16> to vector<1x512x4xbf16>
    tpu.vector_store %arg5[%c0_8, %c0_9, %c0_10], %12 {strides = array<i32>} : memref<1x512x4xbf16, #tpu.memory_space<vmem>>, vector<1x512x4xbf16>,
    return
  }
  func.func @transform_0(%arg0: i32, %arg1: i32) -> (i32, i32, i32) {
    %c0_i32 = arith.constant 0 : i32
    %c0_i32_0 = arith.constant 0 : i32
    return %arg0, %arg1, %c0_i32 : i32, i32, i32
  }
  func.func @transform_1(%arg0: i32, %arg1: i32) -> (i32, i32, i32) {
    %c0_i32 = arith.constant 0 : i32
    %c0_i32_0 = arith.constant 0 : i32
    %c0_i32_1 = arith.constant 0 : i32
    return %arg0, %c0_i32, %c0_i32_0 : i32, i32, i32
  }
  func.func @transform_2(%arg0: i32, %arg1: i32) -> (i32, i32, i32) {
    %c0_i32 = arith.constant 0 : i32
    %c0_i32_0 = arith.constant 0 : i32
    return %arg0, %arg1, %c0_i32 : i32, i32, i32
  }
  func.func @transform_3(%arg0: i32, %arg1: i32) -> (i32, i32, i32) {
    %c0_i32 = arith.constant 0 : i32
    %c0_i32_0 = arith.constant 0 : i32
    return %arg0, %arg1, %c0_i32 : i32, i32, i32
  }
}

module attributes {stable_mosaic.version = 11 : i64} {
  func.func @_combine_kernel(%arg0: i32, %arg1: memref<16x64xbf16, #tpu.memory_space<vmem>>, %arg2: memref<16x64xbf16, #tpu.memory_space<vmem>>, %arg3: memref<16x64xbf16, #tpu.memory_space<vmem>>, %arg4: memref<16x64xbf16, #tpu.memory_space<vmem>>, %arg5: memref<16x64xf32, #tpu.memory_space<vmem>>, %arg6: memref<16x64xf32, #tpu.memory_space<vmem>>, %arg7: memref<16x64xf32, #tpu.memory_space<vmem>>, %arg8: memref<16x64xf32, #tpu.memory_space<vmem>>) attributes {dimension_semantics = [#tpu.dimension_semantics<parallel>], iteration_bounds = array<i64: 2>, scalar_prefetch = 0 : i64, scratch_operands = 0 : i64, tpu.core_type = #tpu.core_type<tc>, window_params = [{transform_indices = @transform_0, window_bounds = array<i64: 16, 64>}, {transform_indices = @transform_1, window_bounds = array<i64: 16, 64>}, {transform_indices = @transform_2, window_bounds = array<i64: 16, 64>}, {transform_indices = @transform_3, window_bounds = array<i64: 16, 64>}, {transform_indices = @transform_4, window_bounds = array<i64: 16, 64>}, {transform_indices = @transform_5, window_bounds = array<i64: 16, 64>}, {transform_indices = @transform_6, window_bounds = array<i64: 16, 64>}, {transform_indices = @transform_7, window_bounds = array<i64: 16, 64>}]} {
    %c0 = arith.constant 0 : index
    %c0_0 = arith.constant 0 : index
    %0 = vector.load %arg5[%c0, %c0_0] : memref<16x64xf32, #tpu.memory_space<vmem>>, vector<16x64xf32>
    %cst = arith.constant 0.000000e+00 : f32
    %1 = vector.broadcast %cst : f32 to vector<16x64xf32>
    %2 = arith.subf %1, %0 : vector<16x64xf32>
    %3 = math.exp %2 : vector<16x64xf32>
    %cst_1 = arith.constant 1.000000e+00 : f32
    %4 = vector.broadcast %cst_1 : f32 to vector<16x64xf32>
    %5 = arith.addf %4, %3 : vector<16x64xf32>
    %6 = tpu.reciprocal %5 {approx = true} : vector<16x64xf32> -> vector<16x64xf32>
    %c0_2 = arith.constant 0 : index
    %c0_3 = arith.constant 0 : index
    %7 = vector.load %arg6[%c0_2, %c0_3] : memref<16x64xf32, #tpu.memory_space<vmem>>, vector<16x64xf32>
    %cst_4 = arith.constant 0.000000e+00 : f32
    %8 = vector.broadcast %cst_4 : f32 to vector<16x64xf32>
    %9 = arith.subf %8, %7 : vector<16x64xf32>
    %10 = math.exp %9 : vector<16x64xf32>
    %cst_5 = arith.constant 1.000000e+00 : f32
    %11 = vector.broadcast %cst_5 : f32 to vector<16x64xf32>
    %12 = arith.addf %11, %10 : vector<16x64xf32>
    %13 = tpu.reciprocal %12 {approx = true} : vector<16x64xf32> -> vector<16x64xf32>
    %c0_6 = arith.constant 0 : index
    %c0_7 = arith.constant 0 : index
    %14 = vector.load %arg1[%c0_6, %c0_7] : memref<16x64xbf16, #tpu.memory_space<vmem>>, vector<16x64xbf16>
    %15 = arith.extf %14 : vector<16x64xbf16> to vector<16x64xf32>
    %c0_8 = arith.constant 0 : index
    %c0_9 = arith.constant 0 : index
    %16 = vector.load %arg2[%c0_8, %c0_9] : memref<16x64xbf16, #tpu.memory_space<vmem>>, vector<16x64xbf16>
    %17 = arith.extf %16 : vector<16x64xbf16> to vector<16x64xf32>
    %18 = arith.mulf %17, %6 : vector<16x64xf32>
    %19 = arith.addf %15, %18 : vector<16x64xf32>
    %c0_10 = arith.constant 0 : index
    %c0_11 = arith.constant 0 : index
    %20 = vector.load %arg3[%c0_10, %c0_11] : memref<16x64xbf16, #tpu.memory_space<vmem>>, vector<16x64xbf16>
    %21 = arith.extf %20 : vector<16x64xbf16> to vector<16x64xf32>
    %22 = arith.mulf %21, %13 : vector<16x64xf32>
    %c0_12 = arith.constant 0 : index
    %c0_13 = arith.constant 0 : index
    %23 = vector.load %arg4[%c0_12, %c0_13] : memref<16x64xbf16, #tpu.memory_space<vmem>>, vector<16x64xbf16>
    %24 = arith.extf %23 : vector<16x64xbf16> to vector<16x64xf32>
    %25 = arith.addf %22, %24 : vector<16x64xf32>
    %cst_14 = arith.constant 0.000000e+00 : f32
    %26 = vector.broadcast %cst_14 : f32 to vector<16x64xf32>
    %27 = arith.cmpf oge, %19, %26 : vector<16x64xf32>
    %cst_15 = arith.constant 5.000000e-02 : f32
    %28 = vector.broadcast %cst_15 : f32 to vector<16x64xf32>
    %29 = arith.mulf %28, %19 : vector<16x64xf32>
    %30 = arith.select %27, %19, %29 : vector<16x64xi1>, vector<16x64xf32>
    %c0_16 = arith.constant 0 : index
    %c0_17 = arith.constant 0 : index
    %31 = vector.load %arg7[%c0_16, %c0_17] : memref<16x64xf32, #tpu.memory_space<vmem>>, vector<16x64xf32>
    tpu.vector_store %arg7[%c0_16, %c0_17], %30 {strides = array<i32>} : memref<16x64xf32, #tpu.memory_space<vmem>>, vector<16x64xf32>,
    %cst_18 = arith.constant 0.000000e+00 : f32
    %32 = vector.broadcast %cst_18 : f32 to vector<16x64xf32>
    %33 = arith.cmpf oge, %25, %32 : vector<16x64xf32>
    %cst_19 = arith.constant 5.000000e-02 : f32
    %34 = vector.broadcast %cst_19 : f32 to vector<16x64xf32>
    %35 = arith.mulf %34, %25 : vector<16x64xf32>
    %36 = arith.select %33, %25, %35 : vector<16x64xi1>, vector<16x64xf32>
    %c0_20 = arith.constant 0 : index
    %c0_21 = arith.constant 0 : index
    %37 = vector.load %arg8[%c0_20, %c0_21] : memref<16x64xf32, #tpu.memory_space<vmem>>, vector<16x64xf32>
    tpu.vector_store %arg8[%c0_20, %c0_21], %36 {strides = array<i32>} : memref<16x64xf32, #tpu.memory_space<vmem>>, vector<16x64xf32>,
    return
  }
  func.func @transform_0(%arg0: i32) -> (i32, i32) {
    %c0_i32 = arith.constant 0 : i32
    %c0_i32_0 = arith.constant 0 : i32
    return %arg0, %c0_i32 : i32, i32
  }
  func.func @transform_1(%arg0: i32) -> (i32, i32) {
    %c0_i32 = arith.constant 0 : i32
    %c0_i32_0 = arith.constant 0 : i32
    return %arg0, %c0_i32 : i32, i32
  }
  func.func @transform_2(%arg0: i32) -> (i32, i32) {
    %c0_i32 = arith.constant 0 : i32
    %c0_i32_0 = arith.constant 0 : i32
    return %arg0, %c0_i32 : i32, i32
  }
  func.func @transform_3(%arg0: i32) -> (i32, i32) {
    %c0_i32 = arith.constant 0 : i32
    %c0_i32_0 = arith.constant 0 : i32
    return %arg0, %c0_i32 : i32, i32
  }
  func.func @transform_4(%arg0: i32) -> (i32, i32) {
    %c0_i32 = arith.constant 0 : i32
    %c0_i32_0 = arith.constant 0 : i32
    return %arg0, %c0_i32 : i32, i32
  }
  func.func @transform_5(%arg0: i32) -> (i32, i32) {
    %c0_i32 = arith.constant 0 : i32
    %c0_i32_0 = arith.constant 0 : i32
    return %arg0, %c0_i32 : i32, i32
  }
  func.func @transform_6(%arg0: i32) -> (i32, i32) {
    %c0_i32 = arith.constant 0 : i32
    %c0_i32_0 = arith.constant 0 : i32
    return %arg0, %c0_i32 : i32, i32
  }
  func.func @transform_7(%arg0: i32) -> (i32, i32) {
    %c0_i32 = arith.constant 0 : i32
    %c0_i32_0 = arith.constant 0 : i32
    return %arg0, %c0_i32 : i32, i32
  }
}

</mosaic_0001>

<bundles_post_ra>
// kernel: ffc_act_forward.10
= control target key start
LH: loop header
LB: loop body
LE: loop exit
PB: predicated region body
PF: predicated region fallthrough
CT: control target
= control target key end

     0   :  { %s1231_s15 = smov 0   ;;  %s1395_s0 = inlined_call_operand.vmem [shape: bf16[512,4], index: 0, kind: input, shape index: {}]   ;;  %s1396_s1 = inlined_call_operand.vmem [shape: bf16[512,4], index: 1, kind: input, shape index: {}]   ;;  %s1397_s2 = inlined_call_operand.vmem [shape: bf16[4,2], index: 2, kind: input, shape index: {}]   ;;  %s1398_s3 = inlined_call_operand.vmem [shape: bf16[4,2], index: 3, kind: input, shape index: {}]   ;;  %s1399_s4 = inlined_call_operand.vmem [shape: f32[512,2], index: 4, kind: output, shape index: {}]  }
   0x1 LB: > { %s977_s16 = sadd.s32 4294967295, %s1204_s15   ;;  %p981_p0 = scmp.ge.s32.totalorder %s1204_s15, 1  ;;  %s1204_s15 = sphi %s1231_s15, %s14_s15  }
   0x2   : > { %p174_p1 = scmp.lt.s32.totalorder %s1204_s15, 3 }
   0x4   : > { %p175_p2 = pnand %p981_p0, %p174_p1 }
   0x5   : > { %s982_s21 = sshll.u32 (!%p175_p2), %s977_s16, 5 }
   0x6   : > { %178 = sbr.rel (%p175_p2) target bundleno = 275 (0x113), region = 36  ;;  %p206_p3 = scmp.lt.s32.totalorder (!%p175_p2), %s982_s21, 63 }
   0xb   : > { %v289_v0 = vld [vmem:[%s1398_s3] sm:$0x3]  ;;  %vm419_vm0 = vcmask 1041408   ;;  %s1401_s21 = smov (!%p206_p3, %s982_s21), 63  ;;  %vm370_vm1 = vcmask 31744   ;;  %vm876_vm2 = vcmask 15360  }
   0xc   : > { %v256_v1 = vld [vmem:[%s1397_s2] sm:$0x3]  ;;  %1156 = vmatprep.subr.msk.bf16.mxu0 %vm419_vm0, %v289_v0  ;;  %v421_v2 = vsel %vm419_vm0, %v289_v0, 0  ;;  %s983_s22 = sshll.u32 %s1401_s21, 2  ;;  %s987_s29 = sshll.u32 %s1401_s21, 3 }
   0xd   : > { %1157 = vmatprep.subr.msk.bf16.mxu1 %vm419_vm0, %v256_v1  ;;  %v713_v3 = vsel %vm419_vm0, %v256_v1, 0  ;;  %1089 = vmatpush3.bf16.msra.mxu0 %v421_v2  ;;  %s1251_s25 = scalar_lea.vmem %s1396_s1, %s983_s22  ;;  %s1256_s28 = scalar_lea.vmem %s1395_s0, %s983_s22 }
   0xe   : > { %1123 = vmatpush3.bf16.msra.mxu1 %v713_v3  ;;  %v1166_v4 = vld [vmem:[%s1251_s25] sm:$0xff]   ;;  %v1168_v6 = vld [vmem:[%s1251_s25 + $0x8] sm:$0xff]   ;;  %v1170_v8 = vld [vmem:[%s1251_s25 + $0x10] sm:$0xff]   ;;  %s1326_s6 = scalar_lea.vmem %s1399_s4, %s987_s29 }
   0xf   : > { %v1167_v5 = vld [vmem:[%s1256_s28] sm:$0xff]   ;;  %1090 = vmatprep.mubr.msk.bf16.mxu0 %vm370_vm1, %v1166_v4  ;;  %v1169_v7 = vld [vmem:[%s1256_s28 + $0x8] sm:$0xff]   ;;  %v1171_v9 = vld [vmem:[%s1256_s28 + $0x10] sm:$0xff]  }
  0x10   : > { %1124 = vmatprep.mubr.msk.bf16.mxu1 %vm370_vm1, %v1167_v5  ;;  %1091 = vmatmul.mubr.msk.bf16.vlgmr.msra.gmra.mxu0 %vm370_vm1, %v1168_v6  ;;  %v1172_v10 = vld [vmem:[%s1251_s25 + $0x18] sm:$0xff]   ;;  %v1174_v12 = vld [vmem:[%s1251_s25 + $0x20] sm:$0xff]   ;;  %v1176_v14 = vld [vmem:[%s1251_s25 + $0x28] sm:$0xff]  }
  0x11   : > { %1125 = vmatmul.mubr.msk.bf16.vlgmr.msra.gmra.mxu1 %vm370_vm1, %v1169_v7  ;;  %1094 = vmatprep.mubr.msk.bf16.mxu0 %vm370_vm1, %v1170_v8  ;;  %v1173_v11 = vld [vmem:[%s1256_s28 + $0x18] sm:$0xff]   ;;  %v1175_v13 = vld [vmem:[%s1256_s28 + $0x20] sm:$0xff]   ;;  %v1177_v15 = vld [vmem:[%s1256_s28 + $0x28] sm:$0xff]  }
  0x12   : > { %1128 = vmatprep.mubr.msk.bf16.mxu1 %vm370_vm1, %v1171_v9  ;;  %v1178_v16 = vld [vmem:[%s1251_s25 + $0x30] sm:$0xff]   ;;  %v1180_v18 = vld [vmem:[%s1251_s25 + $0x38] sm:$0xff]   ;;  %v1182_v20 = vld [vmem:[%s1251_s25 + $0x40] sm:$0xff]  }
  0x13   : > { %v1179_v17 = vld [vmem:[%s1256_s28 + $0x30] sm:$0xff]   ;;  %v1181_v19 = vld [vmem:[%s1256_s28 + $0x38] sm:$0xff]   ;;  %v1183_v21 = vld [vmem:[%s1256_s28 + $0x40] sm:$0xff]  }
  0x14   : > { %v1184_v22 = vld [vmem:[%s1251_s25 + $0x48] sm:$0xff]   ;;  %v1186_v24 = vld [vmem:[%s1251_s25 + $0x50] sm:$0xff]   ;;  %v1188_v26 = vld [vmem:[%s1251_s25 + $0x58] sm:$0xff]  }
  0x15   : > { %v1185_v23 = vld [vmem:[%s1256_s28 + $0x48] sm:$0xff]   ;;  %v1187_v25 = vld [vmem:[%s1256_s28 + $0x50] sm:$0xff]   ;;  %v1189_v27 = vld [vmem:[%s1256_s28 + $0x58] sm:$0xff]  }
  0x16   : > { %v1190_v28 = vld [vmem:[%s1251_s25 + $0x60] sm:$0xff]   ;;  %v1192_v30 = vld [vmem:[%s1251_s25 + $0x68] sm:$0xff]   ;;  %v1194_v32 = vld [vmem:[%s1251_s25 + $0x70] sm:$0xff]  }
  0x17   : > { %v1191_v29 = vld [vmem:[%s1256_s28 + $0x60] sm:$0xff]   ;;  %v1193_v31 = vld [vmem:[%s1256_s28 + $0x68] sm:$0xff]   ;;  %v1195_v33 = vld [vmem:[%s1256_s28 + $0x70] sm:$0xff]  }
  0x18   : > { %1095 = vmatmul.mubr.msk.bf16.gmra.mxu0 %vm370_vm1, %v1172_v10  ;;  %v1196_v34 = vld [vmem:[%s1251_s25 + $0x78] sm:$0xff]  }
  0x19   : > { %1129 = vmatmul.mubr.msk.bf16.gmra.mxu1 %vm370_vm1, %v1173_v11  ;;  %1098 = vmatprep.mubr.msk.bf16.mxu0 %vm370_vm1, %v1174_v12  ;;  %v1197_v35 = vld [vmem:[%s1256_s28 + $0x78] sm:$0xff]  }
  0x1a   : > { %1132 = vmatprep.mubr.msk.bf16.mxu1 %vm370_vm1, %v1175_v13 }
  0x20   : > { %1099 = vmatmul.mubr.msk.bf16.gmra.mxu0 %vm370_vm1, %v1176_v14 }
  0x21   : > { %1133 = vmatmul.mubr.msk.bf16.gmra.mxu1 %vm370_vm1, %v1177_v15  ;;  %1102 = vmatprep.mubr.msk.bf16.mxu0 %vm370_vm1, %v1178_v16 }
  0x22   : > { %1136 = vmatprep.mubr.msk.bf16.mxu1 %vm370_vm1, %v1179_v17 }
  0x28   : > { %1103 = vmatmul.mubr.msk.bf16.gmra.mxu0 %vm370_vm1, %v1180_v18 }
  0x29   : > { %1137 = vmatmul.mubr.msk.bf16.gmra.mxu1 %vm370_vm1, %v1181_v19  ;;  %1106 = vmatprep.mubr.msk.bf16.mxu0 %vm370_vm1, %v1182_v20 }
  0x2a   : > { %1140 = vmatprep.mubr.msk.bf16.mxu1 %vm370_vm1, %v1183_v21 }
  0x30   : > { %1107 = vmatmul.mubr.msk.bf16.gmra.mxu0 %vm370_vm1, %v1184_v22 }
  0x31   : > { %1141 = vmatmul.mubr.msk.bf16.gmra.mxu1 %vm370_vm1, %v1185_v23  ;;  %1110 = vmatprep.mubr.msk.bf16.mxu0 %vm370_vm1, %v1186_v24 }
  0x32   : > { %1144 = vmatprep.mubr.msk.bf16.mxu1 %vm370_vm1, %v1187_v25 }
  0x38   : > { %1111 = vmatmul.mubr.msk.bf16.gmra.mxu0 %vm370_vm1, %v1188_v26 }
  0x39   : > { %1145 = vmatmul.mubr.msk.bf16.gmra.mxu1 %vm370_vm1, %v1189_v27  ;;  %1114 = vmatprep.mubr.msk.bf16.mxu0 %vm370_vm1, %v1190_v28 }
  0x3a   : > { %1148 = vmatprep.mubr.msk.bf16.mxu1 %vm370_vm1, %v1191_v29 }
  0x40   : > { %1115 = vmatmul.mubr.msk.bf16.gmra.mxu0 %vm370_vm1, %v1192_v30 }
  0x41   : > { %1149 = vmatmul.mubr.msk.bf16.gmra.mxu1 %vm370_vm1, %v1193_v31  ;;  %1118 = vmatprep.mubr.msk.bf16.mxu0 %vm370_vm1, %v1194_v32 }
  0x42   : > { %1152 = vmatprep.mubr.msk.bf16.mxu1 %vm370_vm1, %v1195_v33 }
  0x48   : > { %1119 = vmatmul.mubr.msk.bf16.gmra.mxu0 %vm370_vm1, %v1196_v34 }
  0x49   : > { %1153 = vmatmul.mubr.msk.bf16.gmra.mxu1 %vm370_vm1, %v1197_v35 }
  0xd0   : > { %v1092_v36 = vpop.f32.mrf.mxu0 }
  0xd1   : > { %v1126_v37 = vpop.f32.mrf.mxu1 }
  0xd2   : > { %v758_v38 = vadd.f32 %v1126_v37, %v1092_v36  ;;  %v457_v39 = vpop.f32.mrf.mxu0 }
  0xd3   : > { %v749_v40 = vpop.f32.mrf.mxu1 }
  0xd4   : > { %879 = vst.msk [vmem:[%s1326_s6 + $0x10] sm:$0xff] %vm876_vm2, %v758_v38  ;;  %v750_v41 = vadd.f32 %v749_v40, %v457_v39  ;;  %v1093_v42 = vpop.f32.mrf.mxu0 }
  0xd5   : > { %v1127_v43 = vpop.f32.mrf.mxu1 }
  0xd6   : > { %877 = vst.msk [vmem:[%s1326_s6] sm:$0xff] %vm876_vm2, %v750_v41  ;;  %v761_v44 = vadd.f32 %v1127_v43, %v1093_v42  ;;  %v460_v45 = vpop.f32.mrf.mxu0 }
  0xd7   : > { %v752_v46 = vpop.f32.mrf.mxu1 }
  0xd8   : > { %880 = vst.msk [vmem:[%s1326_s6 + $0x18] sm:$0xff] %vm876_vm2, %v761_v44  ;;  %v753_v47 = vadd.f32 %v752_v46, %v460_v45  ;;  %v1096_v48 = vpop.f32.mrf.mxu0 }
  0xd9   : > { %v1130_v49 = vpop.f32.mrf.mxu1 }
  0xda   : > { %878 = vst.msk [vmem:[%s1326_s6 + $0x8] sm:$0xff] %vm876_vm2, %v753_v47  ;;  %v774_v50 = vadd.f32 %v1130_v49, %v1096_v48  ;;  %v473_v51 = vpop.f32.mrf.mxu0 }
  0xdb   : > { %v765_v52 = vpop.f32.mrf.mxu1 }
  0xdc   : > { %883 = vst.msk [vmem:[%s1326_s6 + $0x30] sm:$0xff] %vm876_vm2, %v774_v50  ;;  %v766_v53 = vadd.f32 %v765_v52, %v473_v51  ;;  %v1097_v54 = vpop.f32.mrf.mxu0 }
  0xdd   : > { %v1131_v55 = vpop.f32.mrf.mxu1 }
  0xde   : > { %881 = vst.msk [vmem:[%s1326_s6 + $0x20] sm:$0xff] %vm876_vm2, %v766_v53  ;;  %v777_v56 = vadd.f32 %v1131_v55, %v1097_v54  ;;  %v476_v57 = vpop.f32.mrf.mxu0 }
  0xdf   : > { %v768_v58 = vpop.f32.mrf.mxu1 }
  0xe0   : > { %884 = vst.msk [vmem:[%s1326_s6 + $0x38] sm:$0xff] %vm876_vm2, %v777_v56  ;;  %v769_v59 = vadd.f32 %v768_v58, %v476_v57  ;;  %v1100_v60 = vpop.f32.mrf.mxu0 }
  0xe1   : > { %v1134_v61 = vpop.f32.mrf.mxu1 }
  0xe2   : > { %882 = vst.msk [vmem:[%s1326_s6 + $0x28] sm:$0xff] %vm876_vm2, %v769_v59  ;;  %v790_v62 = vadd.f32 %v1134_v61, %v1100_v60  ;;  %v489_v63 = vpop.f32.mrf.mxu0 }
  0xe3   : > { %v781_v0 = vpop.f32.mrf.mxu1 }
  0xe4   : > { %887 = vst.msk [vmem:[%s1326_s6 + $0x50] sm:$0xff] %vm876_vm2, %v790_v62  ;;  %v782_v1 = vadd.f32 %v781_v0, %v489_v63  ;;  %v1101_v2 = vpop.f32.mrf.mxu0 }
  0xe5   : > { %v1135_v3 = vpop.f32.mrf.mxu1 }
  0xe6   : > { %885 = vst.msk [vmem:[%s1326_s6 + $0x40] sm:$0xff] %vm876_vm2, %v782_v1  ;;  %v793_v4 = vadd.f32 %v1135_v3, %v1101_v2  ;;  %v492_v5 = vpop.f32.mrf.mxu0 }
  0xe7   : > { %v784_v6 = vpop.f32.mrf.mxu1 }
  0xe8   : > { %888 = vst.msk [vmem:[%s1326_s6 + $0x58] sm:$0xff] %vm876_vm2, %v793_v4  ;;  %v785_v7 = vadd.f32 %v784_v6, %v492_v5  ;;  %v1104_v8 = vpop.f32.mrf.mxu0 }
  0xe9   : > { %v1138_v9 = vpop.f32.mrf.mxu1 }
  0xea   : > { %886 = vst.msk [vmem:[%s1326_s6 + $0x48] sm:$0xff] %vm876_vm2, %v785_v7  ;;  %v806_v10 = vadd.f32 %v1138_v9, %v1104_v8  ;;  %v505_v11 = vpop.f32.mrf.mxu0 }
  0xeb   : > { %v797_v12 = vpop.f32.mrf.mxu1 }
  0xec   : > { %891 = vst.msk [vmem:[%s1326_s6 + $0x70] sm:$0xff] %vm876_vm2, %v806_v10  ;;  %v798_v13 = vadd.f32 %v797_v12, %v505_v11  ;;  %v1105_v14 = vpop.f32.mrf.mxu0 }
  0xed   : > { %v1139_v15 = vpop.f32.mrf.mxu1 }
  0xee   : > { %889 = vst.msk [vmem:[%s1326_s6 + $0x60] sm:$0xff] %vm876_vm2, %v798_v13  ;;  %v809_v16 = vadd.f32 %v1139_v15, %v1105_v14  ;;  %v508_v17 = vpop.f32.mrf.mxu0 }
  0xef   : > { %v800_v18 = vpop.f32.mrf.mxu1 }
  0xf0   : > { %892 = vst.msk [vmem:[%s1326_s6 + $0x78] sm:$0xff] %vm876_vm2, %v809_v16  ;;  %v801_v19 = vadd.f32 %v800_v18, %v508_v17  ;;  %v1108_v20 = vpop.f32.mrf.mxu0 }
  0xf1   : > { %v1142_v21 = vpop.f32.mrf.mxu1 }
  0xf2   : > { %890 = vst.msk [vmem:[%s1326_s6 + $0x68] sm:$0xff] %vm876_vm2, %v801_v19  ;;  %v822_v22 = vadd.f32 %v1142_v21, %v1108_v20  ;;  %v521_v23 = vpop.f32.mrf.mxu0 }
  0xf3   : > { %v813_v24 = vpop.f32.mrf.mxu1 }
  0xf4   : > { %895 = vst.msk [vmem:[%s1326_s6 + $0x90] sm:$0xff] %vm876_vm2, %v822_v22  ;;  %v814_v25 = vadd.f32 %v813_v24, %v521_v23  ;;  %v1109_v26 = vpop.f32.mrf.mxu0 }
  0xf5   : > { %v1143_v27 = vpop.f32.mrf.mxu1 }
  0xf6   : > { %893 = vst.msk [vmem:[%s1326_s6 + $0x80] sm:$0xff] %vm876_vm2, %v814_v25  ;;  %v825_v28 = vadd.f32 %v1143_v27, %v1109_v26  ;;  %v524_v29 = vpop.f32.mrf.mxu0 }
  0xf7   : > { %v816_v30 = vpop.f32.mrf.mxu1 }
  0xf8   : > { %896 = vst.msk [vmem:[%s1326_s6 + $0x98] sm:$0xff] %vm876_vm2, %v825_v28  ;;  %v817_v31 = vadd.f32 %v816_v30, %v524_v29  ;;  %v1112_v32 = vpop.f32.mrf.mxu0 }
  0xf9   : > { %v1146_v33 = vpop.f32.mrf.mxu1 }
  0xfa   : > { %894 = vst.msk [vmem:[%s1326_s6 + $0x88] sm:$0xff] %vm876_vm2, %v817_v31  ;;  %v838_v34 = vadd.f32 %v1146_v33, %v1112_v32  ;;  %v537_v35 = vpop.f32.mrf.mxu0 }
  0xfb   : > { %v829_v36 = vpop.f32.mrf.mxu1 }
  0xfc   : > { %899 = vst.msk [vmem:[%s1326_s6 + $0xb0] sm:$0xff] %vm876_vm2, %v838_v34  ;;  %v830_v37 = vadd.f32 %v829_v36, %v537_v35  ;;  %v1113_v38 = vpop.f32.mrf.mxu0 }
  0xfd   : > { %v1147_v39 = vpop.f32.mrf.mxu1 }
  0xfe   : > { %897 = vst.msk [vmem:[%s1326_s6 + $0xa0] sm:$0xff] %vm876_vm2, %v830_v37  ;;  %v841_v40 = vadd.f32 %v1147_v39, %v1113_v38  ;;  %v540_v41 = vpop.f32.mrf.mxu0 }
  0xff   : > { %v832_v42 = vpop.f32.mrf.mxu1 }
 0x100   : > { %900 = vst.msk [vmem:[%s1326_s6 + $0xb8] sm:$0xff] %vm876_vm2, %v841_v40  ;;  %v833_v43 = vadd.f32 %v832_v42, %v540_v41  ;;  %v1116_v44 = vpop.f32.mrf.mxu0 }
 0x101   : > { %v1150_v45 = vpop.f32.mrf.mxu1 }
 0x102   : > { %898 = vst.msk [vmem:[%s1326_s6 + $0xa8] sm:$0xff] %vm876_vm2, %v833_v43  ;;  %v854_v46 = vadd.f32 %v1150_v45, %v1116_v44  ;;  %v553_v47 = vpop.f32.mrf.mxu0 }
 0x103   : > { %v845_v48 = vpop.f32.mrf.mxu1 }
 0x104   : > { %903 = vst.msk [vmem:[%s1326_s6 + $0xd0] sm:$0xff] %vm876_vm2, %v854_v46  ;;  %v846_v49 = vadd.f32 %v845_v48, %v553_v47  ;;  %v1117_v50 = vpop.f32.mrf.mxu0 }
 0x105   : > { %v1151_v51 = vpop.f32.mrf.mxu1 }
 0x106   : > { %901 = vst.msk [vmem:[%s1326_s6 + $0xc0] sm:$0xff] %vm876_vm2, %v846_v49  ;;  %v857_v52 = vadd.f32 %v1151_v51, %v1117_v50  ;;  %v556_v53 = vpop.f32.mrf.mxu0 }
 0x107   : > { %v848_v54 = vpop.f32.mrf.mxu1 }
 0x108   : > { %904 = vst.msk [vmem:[%s1326_s6 + $0xd8] sm:$0xff] %vm876_vm2, %v857_v52  ;;  %v849_v55 = vadd.f32 %v848_v54, %v556_v53  ;;  %v1120_v56 = vpop.f32.mrf.mxu0 }
 0x109   : > { %v1154_v57 = vpop.f32.mrf.mxu1 }
 0x10a   : > { %902 = vst.msk [vmem:[%s1326_s6 + $0xc8] sm:$0xff] %vm876_vm2, %v849_v55  ;;  %v870_v58 = vadd.f32 %v1154_v57, %v1120_v56  ;;  %v569_v59 = vpop.f32.mrf.mxu0 }
 0x10b   : > { %v861_v60 = vpop.f32.mrf.mxu1 }
 0x10c   : > { %907 = vst.msk [vmem:[%s1326_s6 + $0xf0] sm:$0xff] %vm876_vm2, %v870_v58  ;;  %v862_v61 = vadd.f32 %v861_v60, %v569_v59  ;;  %v1121_v62 = vpop.f32.mrf.mxu0 }
 0x10d   : > { %v1155_v63 = vpop.f32.mrf.mxu1 }
 0x10e   : > { %905 = vst.msk [vmem:[%s1326_s6 + $0xe0] sm:$0xff] %vm876_vm2, %v862_v61  ;;  %v873_v0 = vadd.f32 %v1155_v63, %v1121_v62  ;;  %v572_v1 = vpop.f32.mrf.mxu0 }
 0x10f   : > { %v864_v2 = vpop.f32.mrf.mxu1 }
 0x110   : > { %908 = vst.msk [vmem:[%s1326_s6 + $0xf8] sm:$0xff] %vm876_vm2, %v873_v0  ;;  %v865_v3 = vadd.f32 %v864_v2, %v572_v1 }
 0x112   : > { %906 = vst.msk [vmem:[%s1326_s6 + $0xe8] sm:$0xff] %vm876_vm2, %v865_v3 }
 0x113 PF: > { %s14_s15 = sadd.s32 1, %s1204_s15  }
 0x114   : > { %p11_p4 = scmp.ge.s32.totalorder %s14_s15, 4  }
 0x116   :  { %13 = sbr.rel (!%p11_p4) target bundleno = 1 (0x1), region = 69 }

// kernel: ffc_act_forward.15
= control target key start
LH: loop header
LB: loop body
LE: loop exit
PB: predicated region body
PF: predicated region fallthrough
CT: control target
= control target key end

     0   :  { %s1832_s9 = smov 0   ;;  %s1834_s10 = smov 0   ;;  %s2072_s0 = inlined_call_operand.vmem [shape: bf16[2,512,4], index: 0, kind: input, shape index: {}]   ;;  %s2073_s1 = inlined_call_operand.vmem [shape: bf16[2,4,2], index: 1, kind: input, shape index: {}]   ;;  %s2074_s2 = inlined_call_operand.vmem [shape: bf16[2,512,2], index: 2, kind: output, shape index: {}]  }
   0x1   :  { %s1836_s11 = smov 0  }
   0x2 LB: > { %s24_s12 = sadd.s32 1, %s1811_s10  ;;  %p1432_p0 = scmp.ge.s32.totalorder %s1815_s11, 1  ;;  %s1815_s11 = sphi %s1836_s11, %s12_s11   ;;  %s1811_s10 = sphi %s1834_s10, %s2076_s10   ;;  %s1807_s9 = sphi %s1832_s9, %s2075_s9  }
   0x3   : > { %p26_p1 = scmp.ge.s32.totalorder %s24_s12, 2  ;;  %p142_p2 = scmp.lt.s32.totalorder %s1815_s11, 3 }
   0x5   : > { %s2078_s12 = smov (%p26_p1, %s24_s12), 0  ;;  %p143_p3 = pnand %p1432_p0, %p142_p2 }
   0x6   : > { %p177_p4 = scmp.lt.s32.totalorder (!%p143_p3), %s1807_s9, 1 }
   0x7   : > { %146 = sbr.rel (%p143_p3) target bundleno = 282 (0x11a), region = 28 }
   0xc   : > { %s2080_s9 = smov (!%p177_p4, %s1807_s9), 1  ;;  %vm523_vm0 = vcmask 1041408   ;;  %vm426_vm1 = vcmask 31744   ;;  %vm1264_vm4 = vcmask 11264  }
   0xd   : > { %s1568_s13 = sshll.u32 %s2080_s9, 8  ;;  %s1435_s14 = sshll.u32 %s2080_s9, 1 }
   0xe   : > { %s1859_s17 = scalar_lea.vmem %s2072_s0, %s1568_s13  ;;  %s189_s20 = scalar_lea.vmem %s2073_s1, %s1435_s14 }
   0xf   : > { %v265_v0 = vld [vmem:[%s189_s20] sm:$0x3]  ;;  %v1763_v4 = vld [vmem:[%s1859_s17 + $0x8] sm:$0xff]   ;;  %v1765_v6 = vld [vmem:[%s1859_s17 + $0x10] sm:$0xff]   ;;  %s1933_s23 = scalar_lea.vmem %s2074_s2, %s1568_s13 }
  0x10   : > { %1735 = vmatprep.subr.msk.bf16.mxu0 %vm523_vm0, %v265_v0  ;;  %1736 = vmatprep.subr.msk.bf16.mxu1 %vm523_vm0, %v265_v0  ;;  %v525_v1 = vsel %vm523_vm0, %v265_v0, 0  ;;  %v1761_v2 = vld [vmem:[%s1859_s17] sm:$0xff]   ;;  %v1764_v5 = vld [vmem:[%s1859_s17 + $0x88] sm:$0xff]   ;;  %v1766_v7 = vld [vmem:[%s1859_s17 + $0x90] sm:$0xff]  }
  0x11   : > { %1668 = vmatpush3.bf16.msra.mxu0 %v525_v1  ;;  %1734 = vmatpush3.bf16.msra.mxu1 %v525_v1  ;;  %v1762_v3 = vld [vmem:[%s1859_s17 + $0x80] sm:$0xff]   ;;  %v1767_v8 = vld [vmem:[%s1859_s17 + $0x18] sm:$0xff]   ;;  %v1771_v12 = vld [vmem:[%s1859_s17 + $0x28] sm:$0xff]  }
  0x12   : > { %1669 = vmatprep.mubr.msk.bf16.mxu0 %vm426_vm1, %v1761_v2  ;;  %1701 = vmatprep.mubr.msk.bf16.mxu1 %vm426_vm1, %v1762_v3  ;;  %v1768_v9 = vld [vmem:[%s1859_s17 + $0x98] sm:$0xff]   ;;  %v1769_v10 = vld [vmem:[%s1859_s17 + $0x20] sm:$0xff]   ;;  %v1772_v13 = vld [vmem:[%s1859_s17 + $0xa8] sm:$0xff]  }
  0x13   : > { %v1770_v11 = vld [vmem:[%s1859_s17 + $0xa0] sm:$0xff]   ;;  %v1773_v14 = vld [vmem:[%s1859_s17 + $0x30] sm:$0xff]   ;;  %v1775_v16 = vld [vmem:[%s1859_s17 + $0x38] sm:$0xff]  }
  0x14   : > { %1670 = vmatmul.mubr.msk.bf16.vlgmr.msra.gmra.mxu0 %vm426_vm1, %v1763_v4  ;;  %1702 = vmatmul.mubr.msk.bf16.vlgmr.msra.gmra.mxu1 %vm426_vm1, %v1764_v5  ;;  %v1774_v15 = vld [vmem:[%s1859_s17 + $0xb0] sm:$0xff]   ;;  %v1776_v17 = vld [vmem:[%s1859_s17 + $0xb8] sm:$0xff]   ;;  %v1777_v18 = vld [vmem:[%s1859_s17 + $0x40] sm:$0xff]  }
  0x15   : > { %1673 = vmatprep.mubr.msk.bf16.mxu0 %vm426_vm1, %v1765_v6  ;;  %1705 = vmatprep.mubr.msk.bf16.mxu1 %vm426_vm1, %v1766_v7  ;;  %v1778_v19 = vld [vmem:[%s1859_s17 + $0xc0] sm:$0xff]   ;;  %v1779_v20 = vld [vmem:[%s1859_s17 + $0x48] sm:$0xff]   ;;  %v1781_v22 = vld [vmem:[%s1859_s17 + $0x50] sm:$0xff]  }
  0x16   : > { %v1780_v21 = vld [vmem:[%s1859_s17 + $0xc8] sm:$0xff]   ;;  %v1782_v23 = vld [vmem:[%s1859_s17 + $0xd0] sm:$0xff]   ;;  %v1783_v24 = vld [vmem:[%s1859_s17 + $0x58] sm:$0xff]  }
  0x17   : > { %v1784_v25 = vld [vmem:[%s1859_s17 + $0xd8] sm:$0xff]   ;;  %v1785_v26 = vld [vmem:[%s1859_s17 + $0x60] sm:$0xff]   ;;  %v1787_v28 = vld [vmem:[%s1859_s17 + $0x68] sm:$0xff]  }
  0x18   : > { %v1786_v27 = vld [vmem:[%s1859_s17 + $0xe0] sm:$0xff]   ;;  %v1788_v29 = vld [vmem:[%s1859_s17 + $0xe8] sm:$0xff]   ;;  %v1789_v30 = vld [vmem:[%s1859_s17 + $0x70] sm:$0xff]  }
  0x19   : > { %v1790_v31 = vld [vmem:[%s1859_s17 + $0xf0] sm:$0xff]   ;;  %v1791_v32 = vld [vmem:[%s1859_s17 + $0x78] sm:$0xff]  }
  0x1a   : > { %v1792_v33 = vld [vmem:[%s1859_s17 + $0xf8] sm:$0xff]  }
  0x1c   : > { %1674 = vmatmul.mubr.msk.bf16.gmra.mxu0 %vm426_vm1, %v1767_v8  ;;  %1706 = vmatmul.mubr.msk.bf16.gmra.mxu1 %vm426_vm1, %v1768_v9 }
  0x1d   : > { %1677 = vmatprep.mubr.msk.bf16.mxu0 %vm426_vm1, %v1769_v10  ;;  %1709 = vmatprep.mubr.msk.bf16.mxu1 %vm426_vm1, %v1770_v11 }
  0x24   : > { %1678 = vmatmul.mubr.msk.bf16.gmra.mxu0 %vm426_vm1, %v1771_v12  ;;  %1710 = vmatmul.mubr.msk.bf16.gmra.mxu1 %vm426_vm1, %v1772_v13 }
  0x25   : > { %1681 = vmatprep.mubr.msk.bf16.mxu0 %vm426_vm1, %v1773_v14  ;;  %1713 = vmatprep.mubr.msk.bf16.mxu1 %vm426_vm1, %v1774_v15 }
  0x2c   : > { %1682 = vmatmul.mubr.msk.bf16.gmra.mxu0 %vm426_vm1, %v1775_v16  ;;  %1714 = vmatmul.mubr.msk.bf16.gmra.mxu1 %vm426_vm1, %v1776_v17 }
  0x2d   : > { %1685 = vmatprep.mubr.msk.bf16.mxu0 %vm426_vm1, %v1777_v18  ;;  %1717 = vmatprep.mubr.msk.bf16.mxu1 %vm426_vm1, %v1778_v19 }
  0x34   : > { %1686 = vmatmul.mubr.msk.bf16.gmra.mxu0 %vm426_vm1, %v1779_v20  ;;  %1718 = vmatmul.mubr.msk.bf16.gmra.mxu1 %vm426_vm1, %v1780_v21 }
  0x35   : > { %1689 = vmatprep.mubr.msk.bf16.mxu0 %vm426_vm1, %v1781_v22  ;;  %1721 = vmatprep.mubr.msk.bf16.mxu1 %vm426_vm1, %v1782_v23 }
  0x3c   : > { %1690 = vmatmul.mubr.msk.bf16.gmra.mxu0 %vm426_vm1, %v1783_v24  ;;  %1722 = vmatmul.mubr.msk.bf16.gmra.mxu1 %vm426_vm1, %v1784_v25 }
  0x3d   : > { %1693 = vmatprep.mubr.msk.bf16.mxu0 %vm426_vm1, %v1785_v26  ;;  %1725 = vmatprep.mubr.msk.bf16.mxu1 %vm426_vm1, %v1786_v27 }
  0x44   : > { %1694 = vmatmul.mubr.msk.bf16.gmra.mxu0 %vm426_vm1, %v1787_v28  ;;  %1726 = vmatmul.mubr.msk.bf16.gmra.mxu1 %vm426_vm1, %v1788_v29 }
  0x45   : > { %1697 = vmatprep.mubr.msk.bf16.mxu0 %vm426_vm1, %v1789_v30  ;;  %1729 = vmatprep.mubr.msk.bf16.mxu1 %vm426_vm1, %v1790_v31 }
  0x4c   : > { %1698 = vmatmul.mubr.msk.bf16.gmra.mxu0 %vm426_vm1, %v1791_v32  ;;  %1730 = vmatmul.mubr.msk.bf16.gmra.mxu1 %vm426_vm1, %v1792_v33 }
  0xd4   : > { %v1671_v34 = vpop.f32.mrf.mxu0  ;;  %v1703_v36 = vpop.f32.mrf.mxu1 }
  0xd5   : > { %vm818_vm2 = vcmp.ge.f32.partialorder %v1671_v34, 0.0  ;;  %v882_v35 = vmul.f32 0.05, %v1671_v34  ;;  %vm850_vm3 = vcmp.ge.f32.partialorder %v1703_v36, 0.0  ;;  %v914_v37 = vmul.f32 0.05, %v1703_v36 }
  0xd6   : > { %v561_v38 = vpop.f32.mrf.mxu0  ;;  %v689_v41 = vpop.f32.mrf.mxu1 }
  0xd7   : > { %v946_v39 = vsel %vm818_vm2, %v1671_v34, %v882_v35  ;;  %vm816_vm5 = vcmp.ge.f32.partialorder %v561_v38, 0.0  ;;  %v880_v40 = vmul.f32 0.05, %v561_v38  ;;  %v978_v43 = vsel %vm850_vm3, %v1703_v36, %v914_v37 }
  0xd8   : > { %v1572_v42 = vpack.c.bf16 %v946_v39, %v946_v39  ;;  %vm848_vm6 = vcmp.ge.f32.partialorder %v689_v41, 0.0  ;;  %v912_v44 = vmul.f32 0.05, %v689_v41  ;;  %v1672_v45 = vpop.f32.mrf.mxu0  ;;  %v1604_v46 = vpack.c.bf16 %v978_v43, %v978_v43  ;;  %v1704_v49 = vpop.f32.mrf.mxu1 }
  0xd9   : > { %v944_v47 = vsel %vm816_vm5, %v561_v38, %v880_v40  ;;  %vm819_vm7 = vcmp.ge.f32.partialorder %v1672_v45, 0.0  ;;  %v883_v48 = vmul.f32 0.05, %v1672_v45  ;;  %vm851_vm8 = vcmp.ge.f32.partialorder %v1704_v49, 0.0 }
  0xda   : > { %1267 = vst.msk [vmem:[%s1933_s23 + $0x8] sm:$0xf] %vm1264_vm4, %v1572_v42  ;;  %v1570_v50 = vpack.c.bf16 %v944_v47, %v944_v47  ;;  %v976_v51 = vsel %vm848_vm6, %v689_v41, %v912_v44  ;;  %v915_v52 = vmul.f32 0.05, %v1704_v49  ;;  %v564_v53 = vpop.f32.mrf.mxu0  ;;  %1299 = vst.msk [vmem:[%s1933_s23 + $0x88] sm:$0xf] %vm1264_vm4, %v1604_v46  ;;  %v692_v57 = vpop.f32.mrf.mxu1 }
  0xdb   : > { %v1602_v54 = vpack.c.bf16 %v976_v51, %v976_v51  ;;  %v947_v55 = vsel %vm819_vm7, %v1672_v45, %v883_v48  ;;  %vm817_vm9 = vcmp.ge.f32.partialorder %v564_v53, 0.0  ;;  %v881_v56 = vmul.f32 0.05, %v564_v53 }
  0xdc   : > { %1265 = vst.msk [vmem:[%s1933_s23] sm:$0xf] %vm1264_vm4, %v1570_v50  ;;  %v1573_v58 = vpack.c.bf16 %v947_v55, %v947_v55  ;;  %v979_v59 = vsel %vm851_vm8, %v1704_v49, %v915_v52  ;;  %vm849_vm10 = vcmp.ge.f32.partialorder %v692_v57, 0.0  ;;  %v913_v60 = vmul.f32 0.05, %v692_v57  ;;  %v1675_v61 = vpop.f32.mrf.mxu0  ;;  %v1707_v1 = vpop.f32.mrf.mxu1 }
  0xdd   : > { %1297 = vst.msk [vmem:[%s1933_s23 + $0x80] sm:$0xf] %vm1264_vm4, %v1602_v54  ;;  %v1605_v62 = vpack.c.bf16 %v979_v59, %v979_v59  ;;  %v945_v63 = vsel %vm817_vm9, %v564_v53, %v881_v56  ;;  %vm822_vm11 = vcmp.ge.f32.partialorder %v1675_v61, 0.0  ;;  %v886_v0 = vmul.f32 0.05, %v1675_v61 }
  0xde   : > { %1268 = vst.msk [vmem:[%s1933_s23 + $0xc] sm:$0xf] %vm1264_vm4, %v1573_v58  ;;  %v1571_v2 = vpack.c.bf16 %v945_v63, %v945_v63  ;;  %v977_v3 = vsel %vm849_vm10, %v692_v57, %v913_v60  ;;  %vm854_vm12 = vcmp.ge.f32.partialorder %v1707_v1, 0.0  ;;  %v918_v4 = vmul.f32 0.05, %v1707_v1  ;;  %v577_v5 = vpop.f32.mrf.mxu0  ;;  %v705_v9 = vpop.f32.mrf.mxu1 }
  0xdf   : > { %1300 = vst.msk [vmem:[%s1933_s23 + $0x8c] sm:$0xf] %vm1264_vm4, %v1605_v62  ;;  %v1603_v6 = vpack.c.bf16 %v977_v3, %v977_v3  ;;  %v950_v7 = vsel %vm822_vm11, %v1675_v61, %v886_v0  ;;  %vm820_vm13 = vcmp.ge.f32.partialorder %v577_v5, 0.0  ;;  %v884_v8 = vmul.f32 0.05, %v577_v5 }
  0xe0   : > { %1266 = vst.msk [vmem:[%s1933_s23 + $0x4] sm:$0xf] %vm1264_vm4, %v1571_v2  ;;  %v1576_v10 = vpack.c.bf16 %v950_v7, %v950_v7  ;;  %v982_v11 = vsel %vm854_vm12, %v1707_v1, %v918_v4  ;;  %vm852_vm14 = vcmp.ge.f32.partialorder %v705_v9, 0.0  ;;  %v916_v12 = vmul.f32 0.05, %v705_v9  ;;  %v1676_v13 = vpop.f32.mrf.mxu0  ;;  %v1708_v17 = vpop.f32.mrf.mxu1 }
  0xe1   : > { %1298 = vst.msk [vmem:[%s1933_s23 + $0x84] sm:$0xf] %vm1264_vm4, %v1603_v6  ;;  %v1608_v14 = vpack.c.bf16 %v982_v11, %v982_v11  ;;  %v948_v15 = vsel %vm820_vm13, %v577_v5, %v884_v8  ;;  %vm823_vm15 = vcmp.ge.f32.partialorder %v1676_v13, 0.0  ;;  %v887_v16 = vmul.f32 0.05, %v1676_v13 }
  0xe2   : > { %1271 = vst.msk [vmem:[%s1933_s23 + $0x18] sm:$0xf] %vm1264_vm4, %v1576_v10  ;;  %v1574_v18 = vpack.c.bf16 %v948_v15, %v948_v15  ;;  %v980_v19 = vsel %vm852_vm14, %v705_v9, %v916_v12  ;;  %vm855_vm0 = vcmp.ge.f32.partialorder %v1708_v17, 0.0  ;;  %v919_v20 = vmul.f32 0.05, %v1708_v17  ;;  %v580_v21 = vpop.f32.mrf.mxu0  ;;  %v708_v25 = vpop.f32.mrf.mxu1 }
  0xe3   : > { %1303 = vst.msk [vmem:[%s1933_s23 + $0x98] sm:$0xf] %vm1264_vm4, %v1608_v14  ;;  %v1606_v22 = vpack.c.bf16 %v980_v19, %v980_v19  ;;  %v951_v23 = vsel %vm823_vm15, %v1676_v13, %v887_v16  ;;  %vm821_vm1 = vcmp.ge.f32.partialorder %v580_v21, 0.0  ;;  %v885_v24 = vmul.f32 0.05, %v580_v21 }
  0xe4   : > { %1269 = vst.msk [vmem:[%s1933_s23 + $0x10] sm:$0xf] %vm1264_vm4, %v1574_v18  ;;  %v1577_v26 = vpack.c.bf16 %v951_v23, %v951_v23  ;;  %v983_v27 = vsel %vm855_vm0, %v1708_v17, %v919_v20  ;;  %vm853_vm2 = vcmp.ge.f32.partialorder %v708_v25, 0.0  ;;  %v917_v28 = vmul.f32 0.05, %v708_v25  ;;  %v1679_v29 = vpop.f32.mrf.mxu0  ;;  %v1711_v33 = vpop.f32.mrf.mxu1 }
  0xe5   : > { %1301 = vst.msk [vmem:[%s1933_s23 + $0x90] sm:$0xf] %vm1264_vm4, %v1606_v22  ;;  %v1609_v30 = vpack.c.bf16 %v983_v27, %v983_v27  ;;  %v949_v31 = vsel %vm821_vm1, %v580_v21, %v885_v24  ;;  %vm826_vm3 = vcmp.ge.f32.partialorder %v1679_v29, 0.0  ;;  %v890_v32 = vmul.f32 0.05, %v1679_v29 }
  0xe6   : > { %1272 = vst.msk [vmem:[%s1933_s23 + $0x1c] sm:$0xf] %vm1264_vm4, %v1577_v26  ;;  %v1575_v34 = vpack.c.bf16 %v949_v31, %v949_v31  ;;  %v981_v35 = vsel %vm853_vm2, %v708_v25, %v917_v28  ;;  %vm858_vm5 = vcmp.ge.f32.partialorder %v1711_v33, 0.0  ;;  %v922_v36 = vmul.f32 0.05, %v1711_v33  ;;  %v593_v37 = vpop.f32.mrf.mxu0  ;;  %v721_v41 = vpop.f32.mrf.mxu1 }
  0xe7   : > { %1304 = vst.msk [vmem:[%s1933_s23 + $0x9c] sm:$0xf] %vm1264_vm4, %v1609_v30  ;;  %v1607_v38 = vpack.c.bf16 %v981_v35, %v981_v35  ;;  %v954_v39 = vsel %vm826_vm3, %v1679_v29, %v890_v32  ;;  %vm824_vm6 = vcmp.ge.f32.partialorder %v593_v37, 0.0  ;;  %v888_v40 = vmul.f32 0.05, %v593_v37 }
  0xe8   : > { %1270 = vst.msk [vmem:[%s1933_s23 + $0x14] sm:$0xf] %vm1264_vm4, %v1575_v34  ;;  %v1580_v42 = vpack.c.bf16 %v954_v39, %v954_v39  ;;  %v986_v43 = vsel %vm858_vm5, %v1711_v33, %v922_v36  ;;  %vm856_vm7 = vcmp.ge.f32.partialorder %v721_v41, 0.0  ;;  %v920_v44 = vmul.f32 0.05, %v721_v41  ;;  %v1680_v45 = vpop.f32.mrf.mxu0  ;;  %v1712_v49 = vpop.f32.mrf.mxu1 }
  0xe9   : > { %1302 = vst.msk [vmem:[%s1933_s23 + $0x94] sm:$0xf] %vm1264_vm4, %v1607_v38  ;;  %v1612_v46 = vpack.c.bf16 %v986_v43, %v986_v43  ;;  %v952_v47 = vsel %vm824_vm6, %v593_v37, %v888_v40  ;;  %vm827_vm8 = vcmp.ge.f32.partialorder %v1680_v45, 0.0  ;;  %v891_v48 = vmul.f32 0.05, %v1680_v45 }
  0xea   : > { %1275 = vst.msk [vmem:[%s1933_s23 + $0x28] sm:$0xf] %vm1264_vm4, %v1580_v42  ;;  %v1578_v50 = vpack.c.bf16 %v952_v47, %v952_v47  ;;  %v984_v51 = vsel %vm856_vm7, %v721_v41, %v920_v44  ;;  %vm859_vm9 = vcmp.ge.f32.partialorder %v1712_v49, 0.0  ;;  %v923_v52 = vmul.f32 0.05, %v1712_v49  ;;  %v596_v53 = vpop.f32.mrf.mxu0  ;;  %v724_v57 = vpop.f32.mrf.mxu1 }
  0xeb   : > { %1307 = vst.msk [vmem:[%s1933_s23 + $0xa8] sm:$0xf] %vm1264_vm4, %v1612_v46  ;;  %v1610_v54 = vpack.c.bf16 %v984_v51, %v984_v51  ;;  %v955_v55 = vsel %vm827_vm8, %v1680_v45, %v891_v48  ;;  %vm825_vm10 = vcmp.ge.f32.partialorder %v596_v53, 0.0  ;;  %v889_v56 = vmul.f32 0.05, %v596_v53 }
  0xec   : > { %1273 = vst.msk [vmem:[%s1933_s23 + $0x20] sm:$0xf] %vm1264_vm4, %v1578_v50  ;;  %v1581_v58 = vpack.c.bf16 %v955_v55, %v955_v55  ;;  %v987_v59 = vsel %vm859_vm9, %v1712_v49, %v923_v52  ;;  %vm857_vm11 = vcmp.ge.f32.partialorder %v724_v57, 0.0  ;;  %v921_v60 = vmul.f32 0.05, %v724_v57  ;;  %v1683_v61 = vpop.f32.mrf.mxu0  ;;  %v1715_v1 = vpop.f32.mrf.mxu1 }
  0xed   : > { %1305 = vst.msk [vmem:[%s1933_s23 + $0xa0] sm:$0xf] %vm1264_vm4, %v1610_v54  ;;  %v1613_v62 = vpack.c.bf16 %v987_v59, %v987_v59  ;;  %v953_v63 = vsel %vm825_vm10, %v596_v53, %v889_v56  ;;  %vm830_vm12 = vcmp.ge.f32.partialorder %v1683_v61, 0.0  ;;  %v894_v0 = vmul.f32 0.05, %v1683_v61 }
  0xee   : > { %1276 = vst.msk [vmem:[%s1933_s23 + $0x2c] sm:$0xf] %vm1264_vm4, %v1581_v58  ;;  %v1579_v2 = vpack.c.bf16 %v953_v63, %v953_v63  ;;  %v985_v3 = vsel %vm857_vm11, %v724_v57, %v921_v60  ;;  %vm862_vm13 = vcmp.ge.f32.partialorder %v1715_v1, 0.0  ;;  %v926_v4 = vmul.f32 0.05, %v1715_v1  ;;  %v609_v5 = vpop.f32.mrf.mxu0  ;;  %v737_v9 = vpop.f32.mrf.mxu1 }
  0xef   : > { %1308 = vst.msk [vmem:[%s1933_s23 + $0xac] sm:$0xf] %vm1264_vm4, %v1613_v62  ;;  %v1611_v6 = vpack.c.bf16 %v985_v3, %v985_v3  ;;  %v958_v7 = vsel %vm830_vm12, %v1683_v61, %v894_v0  ;;  %vm828_vm14 = vcmp.ge.f32.partialorder %v609_v5, 0.0  ;;  %v892_v8 = vmul.f32 0.05, %v609_v5 }
  0xf0   : > { %1274 = vst.msk [vmem:[%s1933_s23 + $0x24] sm:$0xf] %vm1264_vm4, %v1579_v2  ;;  %v1584_v10 = vpack.c.bf16 %v958_v7, %v958_v7  ;;  %v990_v11 = vsel %vm862_vm13, %v1715_v1, %v926_v4  ;;  %vm860_vm15 = vcmp.ge.f32.partialorder %v737_v9, 0.0  ;;  %v924_v12 = vmul.f32 0.05, %v737_v9  ;;  %v1684_v13 = vpop.f32.mrf.mxu0  ;;  %v1716_v17 = vpop.f32.mrf.mxu1 }
  0xf1   : > { %1306 = vst.msk [vmem:[%s1933_s23 + $0xa4] sm:$0xf] %vm1264_vm4, %v1611_v6  ;;  %v1616_v14 = vpack.c.bf16 %v990_v11, %v990_v11  ;;  %v956_v15 = vsel %vm828_vm14, %v609_v5, %v892_v8  ;;  %vm831_vm0 = vcmp.ge.f32.partialorder %v1684_v13, 0.0  ;;  %v895_v16 = vmul.f32 0.05, %v1684_v13 }
  0xf2   : > { %1279 = vst.msk [vmem:[%s1933_s23 + $0x38] sm:$0xf] %vm1264_vm4, %v1584_v10  ;;  %v1582_v18 = vpack.c.bf16 %v956_v15, %v956_v15  ;;  %v988_v19 = vsel %vm860_vm15, %v737_v9, %v924_v12  ;;  %vm863_vm1 = vcmp.ge.f32.partialorder %v1716_v17, 0.0  ;;  %v927_v20 = vmul.f32 0.05, %v1716_v17  ;;  %v612_v21 = vpop.f32.mrf.mxu0  ;;  %v740_v25 = vpop.f32.mrf.mxu1 }
  0xf3   : > { %1311 = vst.msk [vmem:[%s1933_s23 + $0xb8] sm:$0xf] %vm1264_vm4, %v1616_v14  ;;  %v1614_v22 = vpack.c.bf16 %v988_v19, %v988_v19  ;;  %v959_v23 = vsel %vm831_vm0, %v1684_v13, %v895_v16  ;;  %vm829_vm2 = vcmp.ge.f32.partialorder %v612_v21, 0.0  ;;  %v893_v24 = vmul.f32 0.05, %v612_v21 }
  0xf4   : > { %1277 = vst.msk [vmem:[%s1933_s23 + $0x30] sm:$0xf] %vm1264_vm4, %v1582_v18  ;;  %v1585_v26 = vpack.c.bf16 %v959_v23, %v959_v23  ;;  %v991_v27 = vsel %vm863_vm1, %v1716_v17, %v927_v20  ;;  %vm861_vm3 = vcmp.ge.f32.partialorder %v740_v25, 0.0  ;;  %v925_v28 = vmul.f32 0.05, %v740_v25  ;;  %v1687_v29 = vpop.f32.mrf.mxu0  ;;  %v1719_v33 = vpop.f32.mrf.mxu1 }
  0xf5   : > { %1309 = vst.msk [vmem:[%s1933_s23 + $0xb0] sm:$0xf] %vm1264_vm4, %v1614_v22  ;;  %v1617_v30 = vpack.c.bf16 %v991_v27, %v991_v27  ;;  %v957_v31 = vsel %vm829_vm2, %v612_v21, %v893_v24  ;;  %vm834_vm5 = vcmp.ge.f32.partialorder %v1687_v29, 0.0  ;;  %v898_v32 = vmul.f32 0.05, %v1687_v29 }
  0xf6   : > { %1280 = vst.msk [vmem:[%s1933_s23 + $0x3c] sm:$0xf] %vm1264_vm4, %v1585_v26  ;;  %v1583_v34 = vpack.c.bf16 %v957_v31, %v957_v31  ;;  %v989_v35 = vsel %vm861_vm3, %v740_v25, %v925_v28  ;;  %vm866_vm6 = vcmp.ge.f32.partialorder %v1719_v33, 0.0  ;;  %v930_v36 = vmul.f32 0.05, %v1719_v33  ;;  %v625_v37 = vpop.f32.mrf.mxu0  ;;  %v753_v41 = vpop.f32.mrf.mxu1 }
  0xf7   : > { %1312 = vst.msk [vmem:[%s1933_s23 + $0xbc] sm:$0xf] %vm1264_vm4, %v1617_v30  ;;  %v1615_v38 = vpack.c.bf16 %v989_v35, %v989_v35  ;;  %v962_v39 = vsel %vm834_vm5, %v1687_v29, %v898_v32  ;;  %vm832_vm7 = vcmp.ge.f32.partialorder %v625_v37, 0.0  ;;  %v896_v40 = vmul.f32 0.05, %v625_v37 }
  0xf8   : > { %1278 = vst.msk [vmem:[%s1933_s23 + $0x34] sm:$0xf] %vm1264_vm4, %v1583_v34  ;;  %v1588_v42 = vpack.c.bf16 %v962_v39, %v962_v39  ;;  %v994_v43 = vsel %vm866_vm6, %v1719_v33, %v930_v36  ;;  %vm864_vm8 = vcmp.ge.f32.partialorder %v753_v41, 0.0  ;;  %v928_v44 = vmul.f32 0.05, %v753_v41  ;;  %v1688_v45 = vpop.f32.mrf.mxu0  ;;  %v1720_v49 = vpop.f32.mrf.mxu1 }
  0xf9   : > { %1310 = vst.msk [vmem:[%s1933_s23 + $0xb4] sm:$0xf] %vm1264_vm4, %v1615_v38  ;;  %v1620_v46 = vpack.c.bf16 %v994_v43, %v994_v43  ;;  %v960_v47 = vsel %vm832_vm7, %v625_v37, %v896_v40  ;;  %vm835_vm9 = vcmp.ge.f32.partialorder %v1688_v45, 0.0  ;;  %v899_v48 = vmul.f32 0.05, %v1688_v45 }
  0xfa   : > { %1283 = vst.msk [vmem:[%s1933_s23 + $0x48] sm:$0xf] %vm1264_vm4, %v1588_v42  ;;  %v1586_v50 = vpack.c.bf16 %v960_v47, %v960_v47  ;;  %v992_v51 = vsel %vm864_vm8, %v753_v41, %v928_v44  ;;  %vm867_vm10 = vcmp.ge.f32.partialorder %v1720_v49, 0.0  ;;  %v931_v52 = vmul.f32 0.05, %v1720_v49  ;;  %v628_v53 = vpop.f32.mrf.mxu0  ;;  %v756_v57 = vpop.f32.mrf.mxu1 }
  0xfb   : > { %1315 = vst.msk [vmem:[%s1933_s23 + $0xc8] sm:$0xf] %vm1264_vm4, %v1620_v46  ;;  %v1618_v54 = vpack.c.bf16 %v992_v51, %v992_v51  ;;  %v963_v55 = vsel %vm835_vm9, %v1688_v45, %v899_v48  ;;  %vm833_vm11 = vcmp.ge.f32.partialorder %v628_v53, 0.0  ;;  %v897_v56 = vmul.f32 0.05, %v628_v53 }
  0xfc   : > { %1281 = vst.msk [vmem:[%s1933_s23 + $0x40] sm:$0xf] %vm1264_vm4, %v1586_v50  ;;  %v1589_v58 = vpack.c.bf16 %v963_v55, %v963_v55  ;;  %v995_v59 = vsel %vm867_vm10, %v1720_v49, %v931_v52  ;;  %vm865_vm12 = vcmp.ge.f32.partialorder %v756_v57, 0.0  ;;  %v929_v60 = vmul.f32 0.05, %v756_v57  ;;  %v1691_v61 = vpop.f32.mrf.mxu0  ;;  %v1723_v1 = vpop.f32.mrf.mxu1 }
  0xfd   : > { %1313 = vst.msk [vmem:[%s1933_s23 + $0xc0] sm:$0xf] %vm1264_vm4, %v1618_v54  ;;  %v1621_v62 = vpack.c.bf16 %v995_v59, %v995_v59  ;;  %v961_v63 = vsel %vm833_vm11, %v628_v53, %v897_v56  ;;  %vm838_vm13 = vcmp.ge.f32.partialorder %v1691_v61, 0.0  ;;  %v902_v0 = vmul.f32 0.05, %v1691_v61 }
  0xfe   : > { %1284 = vst.msk [vmem:[%s1933_s23 + $0x4c] sm:$0xf] %vm1264_vm4, %v1589_v58  ;;  %v1587_v2 = vpack.c.bf16 %v961_v63, %v961_v63  ;;  %v993_v3 = vsel %vm865_vm12, %v756_v57, %v929_v60  ;;  %vm870_vm14 = vcmp.ge.f32.partialorder %v1723_v1, 0.0  ;;  %v934_v4 = vmul.f32 0.05, %v1723_v1  ;;  %v641_v5 = vpop.f32.mrf.mxu0  ;;  %v769_v9 = vpop.f32.mrf.mxu1 }
  0xff   : > { %1316 = vst.msk [vmem:[%s1933_s23 + $0xcc] sm:$0xf] %vm1264_vm4, %v1621_v62  ;;  %v1619_v6 = vpack.c.bf16 %v993_v3, %v993_v3  ;;  %v966_v7 = vsel %vm838_vm13, %v1691_v61, %v902_v0  ;;  %vm836_vm15 = vcmp.ge.f32.partialorder %v641_v5, 0.0  ;;  %v900_v8 = vmul.f32 0.05, %v641_v5 }
 0x100   : > { %1282 = vst.msk [vmem:[%s1933_s23 + $0x44] sm:$0xf] %vm1264_vm4, %v1587_v2  ;;  %v1592_v10 = vpack.c.bf16 %v966_v7, %v966_v7  ;;  %v998_v11 = vsel %vm870_vm14, %v1723_v1, %v934_v4  ;;  %vm868_vm0 = vcmp.ge.f32.partialorder %v769_v9, 0.0  ;;  %v932_v12 = vmul.f32 0.05, %v769_v9  ;;  %v1692_v13 = vpop.f32.mrf.mxu0  ;;  %v1724_v17 = vpop.f32.mrf.mxu1 }
 0x101   : > { %1314 = vst.msk [vmem:[%s1933_s23 + $0xc4] sm:$0xf] %vm1264_vm4, %v1619_v6  ;;  %v1624_v14 = vpack.c.bf16 %v998_v11, %v998_v11  ;;  %v964_v15 = vsel %vm836_vm15, %v641_v5, %v900_v8  ;;  %vm839_vm1 = vcmp.ge.f32.partialorder %v1692_v13, 0.0  ;;  %v903_v16 = vmul.f32 0.05, %v1692_v13 }
 0x102   : > { %1287 = vst.msk [vmem:[%s1933_s23 + $0x58] sm:$0xf] %vm1264_vm4, %v1592_v10  ;;  %v1590_v18 = vpack.c.bf16 %v964_v15, %v964_v15  ;;  %v996_v19 = vsel %vm868_vm0, %v769_v9, %v932_v12  ;;  %vm871_vm2 = vcmp.ge.f32.partialorder %v1724_v17, 0.0  ;;  %v935_v20 = vmul.f32 0.05, %v1724_v17  ;;  %v644_v21 = vpop.f32.mrf.mxu0  ;;  %v772_v25 = vpop.f32.mrf.mxu1 }
 0x103   : > { %1319 = vst.msk [vmem:[%s1933_s23 + $0xd8] sm:$0xf] %vm1264_vm4, %v1624_v14  ;;  %v1622_v22 = vpack.c.bf16 %v996_v19, %v996_v19  ;;  %v967_v23 = vsel %vm839_vm1, %v1692_v13, %v903_v16  ;;  %vm837_vm3 = vcmp.ge.f32.partialorder %v644_v21, 0.0  ;;  %v901_v24 = vmul.f32 0.05, %v644_v21 }
 0x104   : > { %1285 = vst.msk [vmem:[%s1933_s23 + $0x50] sm:$0xf] %vm1264_vm4, %v1590_v18  ;;  %v1593_v26 = vpack.c.bf16 %v967_v23, %v967_v23  ;;  %v999_v27 = vsel %vm871_vm2, %v1724_v17, %v935_v20  ;;  %vm869_vm5 = vcmp.ge.f32.partialorder %v772_v25, 0.0  ;;  %v933_v28 = vmul.f32 0.05, %v772_v25  ;;  %v1695_v29 = vpop.f32.mrf.mxu0  ;;  %v1727_v33 = vpop.f32.mrf.mxu1 }
 0x105   : > { %1317 = vst.msk [vmem:[%s1933_s23 + $0xd0] sm:$0xf] %vm1264_vm4, %v1622_v22  ;;  %v1625_v30 = vpack.c.bf16 %v999_v27, %v999_v27  ;;  %v965_v31 = vsel %vm837_vm3, %v644_v21, %v901_v24  ;;  %vm842_vm6 = vcmp.ge.f32.partialorder %v1695_v29, 0.0  ;;  %v906_v32 = vmul.f32 0.05, %v1695_v29 }
 0x106   : > { %1288 = vst.msk [vmem:[%s1933_s23 + $0x5c] sm:$0xf] %vm1264_vm4, %v1593_v26  ;;  %v1591_v34 = vpack.c.bf16 %v965_v31, %v965_v31  ;;  %v997_v35 = vsel %vm869_vm5, %v772_v25, %v933_v28  ;;  %vm874_vm7 = vcmp.ge.f32.partialorder %v1727_v33, 0.0  ;;  %v938_v36 = vmul.f32 0.05, %v1727_v33  ;;  %v657_v37 = vpop.f32.mrf.mxu0  ;;  %v785_v41 = vpop.f32.mrf.mxu1 }
 0x107   : > { %1320 = vst.msk [vmem:[%s1933_s23 + $0xdc] sm:$0xf] %vm1264_vm4, %v1625_v30  ;;  %v1623_v38 = vpack.c.bf16 %v997_v35, %v997_v35  ;;  %v970_v39 = vsel %vm842_vm6, %v1695_v29, %v906_v32  ;;  %vm840_vm8 = vcmp.ge.f32.partialorder %v657_v37, 0.0  ;;  %v904_v40 = vmul.f32 0.05, %v657_v37 }
 0x108   : > { %1286 = vst.msk [vmem:[%s1933_s23 + $0x54] sm:$0xf] %vm1264_vm4, %v1591_v34  ;;  %v1596_v42 = vpack.c.bf16 %v970_v39, %v970_v39  ;;  %v1002_v43 = vsel %vm874_vm7, %v1727_v33, %v938_v36  ;;  %vm872_vm9 = vcmp.ge.f32.partialorder %v785_v41, 0.0  ;;  %v936_v44 = vmul.f32 0.05, %v785_v41  ;;  %v1696_v45 = vpop.f32.mrf.mxu0  ;;  %v1728_v49 = vpop.f32.mrf.mxu1 }
 0x109   : > { %1318 = vst.msk [vmem:[%s1933_s23 + $0xd4] sm:$0xf] %vm1264_vm4, %v1623_v38  ;;  %v1628_v46 = vpack.c.bf16 %v1002_v43, %v1002_v43  ;;  %v968_v47 = vsel %vm840_vm8, %v657_v37, %v904_v40  ;;  %vm843_vm10 = vcmp.ge.f32.partialorder %v1696_v45, 0.0  ;;  %v907_v48 = vmul.f32 0.05, %v1696_v45 }
 0x10a   : > { %1291 = vst.msk [vmem:[%s1933_s23 + $0x68] sm:$0xf] %vm1264_vm4, %v1596_v42  ;;  %v1594_v50 = vpack.c.bf16 %v968_v47, %v968_v47  ;;  %v1000_v51 = vsel %vm872_vm9, %v785_v41, %v936_v44  ;;  %vm875_vm11 = vcmp.ge.f32.partialorder %v1728_v49, 0.0  ;;  %v939_v52 = vmul.f32 0.05, %v1728_v49  ;;  %v660_v53 = vpop.f32.mrf.mxu0  ;;  %v788_v57 = vpop.f32.mrf.mxu1 }
 0x10b   : > { %1323 = vst.msk [vmem:[%s1933_s23 + $0xe8] sm:$0xf] %vm1264_vm4, %v1628_v46  ;;  %v1626_v54 = vpack.c.bf16 %v1000_v51, %v1000_v51  ;;  %v971_v55 = vsel %vm843_vm10, %v1696_v45, %v907_v48  ;;  %vm841_vm12 = vcmp.ge.f32.partialorder %v660_v53, 0.0  ;;  %v905_v56 = vmul.f32 0.05, %v660_v53 }
 0x10c   : > { %1289 = vst.msk [vmem:[%s1933_s23 + $0x60] sm:$0xf] %vm1264_vm4, %v1594_v50  ;;  %v1597_v58 = vpack.c.bf16 %v971_v55, %v971_v55  ;;  %v1003_v59 = vsel %vm875_vm11, %v1728_v49, %v939_v52  ;;  %vm873_vm13 = vcmp.ge.f32.partialorder %v788_v57, 0.0  ;;  %v937_v60 = vmul.f32 0.05, %v788_v57  ;;  %v1699_v61 = vpop.f32.mrf.mxu0  ;;  %v1731_v1 = vpop.f32.mrf.mxu1 }
 0x10d   : > { %1321 = vst.msk [vmem:[%s1933_s23 + $0xe0] sm:$0xf] %vm1264_vm4, %v1626_v54  ;;  %v1629_v62 = vpack.c.bf16 %v1003_v59, %v1003_v59  ;;  %v969_v63 = vsel %vm841_vm12, %v660_v53, %v905_v56  ;;  %vm846_vm14 = vcmp.ge.f32.partialorder %v1699_v61, 0.0  ;;  %v910_v0 = vmul.f32 0.05, %v1699_v61 }
 0x10e   : > { %1292 = vst.msk [vmem:[%s1933_s23 + $0x6c] sm:$0xf] %vm1264_vm4, %v1597_v58  ;;  %v1595_v2 = vpack.c.bf16 %v969_v63, %v969_v63  ;;  %v1001_v3 = vsel %vm873_vm13, %v788_v57, %v937_v60  ;;  %vm878_vm15 = vcmp.ge.f32.partialorder %v1731_v1, 0.0  ;;  %v942_v4 = vmul.f32 0.05, %v1731_v1  ;;  %v673_v5 = vpop.f32.mrf.mxu0  ;;  %v801_v9 = vpop.f32.mrf.mxu1 }
 0x10f   : > { %1324 = vst.msk [vmem:[%s1933_s23 + $0xec] sm:$0xf] %vm1264_vm4, %v1629_v62  ;;  %v1627_v6 = vpack.c.bf16 %v1001_v3, %v1001_v3  ;;  %v974_v7 = vsel %vm846_vm14, %v1699_v61, %v910_v0  ;;  %vm844_vm0 = vcmp.ge.f32.partialorder %v673_v5, 0.0  ;;  %v908_v8 = vmul.f32 0.05, %v673_v5 }
 0x110   : > { %1290 = vst.msk [vmem:[%s1933_s23 + $0x64] sm:$0xf] %vm1264_vm4, %v1595_v2  ;;  %v1600_v10 = vpack.c.bf16 %v974_v7, %v974_v7  ;;  %v1006_v11 = vsel %vm878_vm15, %v1731_v1, %v942_v4  ;;  %vm876_vm1 = vcmp.ge.f32.partialorder %v801_v9, 0.0  ;;  %v940_v12 = vmul.f32 0.05, %v801_v9  ;;  %v1700_v13 = vpop.f32.mrf.mxu0  ;;  %v1732_v17 = vpop.f32.mrf.mxu1 }
 0x111   : > { %1322 = vst.msk [vmem:[%s1933_s23 + $0xe4] sm:$0xf] %vm1264_vm4, %v1627_v6  ;;  %v1632_v14 = vpack.c.bf16 %v1006_v11, %v1006_v11  ;;  %v972_v15 = vsel %vm844_vm0, %v673_v5, %v908_v8  ;;  %vm847_vm2 = vcmp.ge.f32.partialorder %v1700_v13, 0.0  ;;  %v911_v16 = vmul.f32 0.05, %v1700_v13 }
 0x112   : > { %1295 = vst.msk [vmem:[%s1933_s23 + $0x78] sm:$0xf] %vm1264_vm4, %v1600_v10  ;;  %v1598_v18 = vpack.c.bf16 %v972_v15, %v972_v15  ;;  %v1004_v19 = vsel %vm876_vm1, %v801_v9, %v940_v12  ;;  %vm879_vm3 = vcmp.ge.f32.partialorder %v1732_v17, 0.0  ;;  %v943_v20 = vmul.f32 0.05, %v1732_v17  ;;  %v676_v21 = vpop.f32.mrf.mxu0  ;;  %v804_v25 = vpop.f32.mrf.mxu1 }
 0x113   : > { %1327 = vst.msk [vmem:[%s1933_s23 + $0xf8] sm:$0xf] %vm1264_vm4, %v1632_v14  ;;  %v1630_v22 = vpack.c.bf16 %v1004_v19, %v1004_v19  ;;  %v975_v23 = vsel %vm847_vm2, %v1700_v13, %v911_v16  ;;  %vm845_vm5 = vcmp.ge.f32.partialorder %v676_v21, 0.0  ;;  %v909_v24 = vmul.f32 0.05, %v676_v21 }
 0x114   : > { %1293 = vst.msk [vmem:[%s1933_s23 + $0x70] sm:$0xf] %vm1264_vm4, %v1598_v18  ;;  %v1601_v26 = vpack.c.bf16 %v975_v23, %v975_v23  ;;  %v1007_v27 = vsel %vm879_vm3, %v1732_v17, %v943_v20  ;;  %vm877_vm6 = vcmp.ge.f32.partialorder %v804_v25, 0.0  ;;  %v941_v28 = vmul.f32 0.05, %v804_v25 }
 0x115   : > { %1325 = vst.msk [vmem:[%s1933_s23 + $0xf0] sm:$0xf] %vm1264_vm4, %v1630_v22  ;;  %v1633_v29 = vpack.c.bf16 %v1007_v27, %v1007_v27  ;;  %v973_v30 = vsel %vm845_vm5, %v676_v21, %v909_v24 }
 0x116   : > { %1296 = vst.msk [vmem:[%s1933_s23 + $0x7c] sm:$0xf] %vm1264_vm4, %v1601_v26  ;;  %v1599_v31 = vpack.c.bf16 %v973_v30, %v973_v30  ;;  %v1005_v32 = vsel %vm877_vm6, %v804_v25, %v941_v28 }
 0x117   : > { %1328 = vst.msk [vmem:[%s1933_s23 + $0xfc] sm:$0xf] %vm1264_vm4, %v1633_v29  ;;  %v1631_v33 = vpack.c.bf16 %v1005_v32, %v1005_v32 }
 0x118   : > { %1294 = vst.msk [vmem:[%s1933_s23 + $0x74] sm:$0xf] %vm1264_vm4, %v1599_v31 }
 0x119   : > { %1326 = vst.msk [vmem:[%s1933_s23 + $0xf4] sm:$0xf] %vm1264_vm4, %v1631_v33 }
 0x11a PF: > { %s12_s11 = sadd.s32 1, %s1815_s11   ;;  %s2075_s9 = smov %s1811_s10 }
 0x11b   : > { %p9_p5 = scmp.ge.s32.totalorder %s12_s11, 4   ;;  %s2076_s10 = smov %s2078_s12 }
 0x11d   :  { %11 = sbr.rel (!%p9_p5) target bundleno = 2 (0x2), region = 61 }

// kernel: ffc_act_forward.16
= control target key start
LH: loop header
LB: loop body
LE: loop exit
PB: predicated region body
PF: predicated region fallthrough
CT: control target
= control target key end

     0   :  { %s643_s12 = smov 0   ;;  %s645_s13 = smov 0   ;;  %s693_s0 = inlined_call_operand.vmem [shape: bf16[2,32,16], index: 0, kind: input, shape index: {}]   ;;  %s694_s1 = inlined_call_operand.vmem [shape: bf16[2,16,18], index: 1, kind: input, shape index: {}]   ;;  %s695_s2 = inlined_call_operand.vmem [shape: bf16[18,16], index: 2, kind: input, shape index: {}]   ;;  %s696_s3 = inlined_call_operand.vmem [shape: bf16[2,32,16], index: 3, kind: output, shape index: {}]  }
   0x1   :  { %s647_s14 = smov 0  }
   0x2 LB: > { %s25_s15 = sadd.s32 1, %s617_s13  ;;  %p519_p0 = scmp.ge.s32.totalorder %s621_s14, 1  ;;  %s621_s14 = sphi %s647_s14, %s13_s14   ;;  %s617_s13 = sphi %s645_s13, %s698_s13   ;;  %s613_s12 = sphi %s643_s12, %s697_s12  }
   0x3   : > { %p27_p1 = scmp.ge.s32.totalorder %s25_s15, 2  ;;  %p168_p2 = scmp.lt.s32.totalorder %s621_s14, 3 }
   0x5   : > { %s700_s15 = smov (%p27_p1, %s25_s15), 0  ;;  %p169_p3 = pnand %p519_p0, %p168_p2 }
   0x6   : > { %p206_p4 = scmp.lt.s32.totalorder (!%p169_p3), %s613_s12, 1 }
   0x7   : > { %172 = sbr.rel (%p169_p3) target bundleno = 427 (0x1ab), region = 32 }
   0xc   : > { %s702_s12 = smov (!%p206_p4, %s613_s12), 1  ;;  %vm253_vm0 = vcmask 130048   ;;  %v597_v3 = vld [vmem:[%s695_s2 + $0x8] ss:$0 sps:$4 sm:$0x11]   ;;  %vm342_vm1 = vcmask 1040384  }
   0xd   : > { %s542_s16 = sshll.u32 %s702_s12, 3  ;;  %s541_s17 = sshll.u32 %s702_s12, 4  ;;  %569 = vmatprep.subr.msk.bf16.mxu1 %vm342_vm1, %v597_v3  ;;  %v344_v4 = vsel %vm342_vm1, %v597_v3, 0  ;;  %v598_v5 = vld [vmem:[%s695_s2] sm:$0xff]   ;;  %vm335_vm6 = vcmask 146432   ;;  %vm411_vm7 = vcmask 125952  }
   0xe   : > { %s219_s20 = scalar_lea.vmem %s694_s1, %s542_s16  ;;  %s213_s23 = scalar_lea.vmem %s693_s0, %s541_s17  ;;  %562 = vmatpush3.bf16.msra.mxu1 %v344_v4 }
   0xf   : > { %v594_v0 = vld [vmem:[%s219_s20] sm:$0xff]   ;;  %v596_v2 = vld [vmem:[%s213_s23 + $0x8] sm:$0xff]   ;;  %563 = vmatprep.subr.bf16.mxu1 %v598_v5  ;;  %s228_s30 = scalar_lea.vmem %s696_s3, %s541_s17 }
  0x10   : > { %v595_v1 = vld [vmem:[%s213_s23] sm:$0xff]   ;;  %555 = vmatprep.subr.bf16.mxu0 %v594_v0 }
  0x11   : > { %556 = vmatpush3.bf16.msra.mxu0 %v594_v0  ;;  %557 = vmatprep.mubr.msk.bf16.mxu0 %vm253_vm0, %v595_v1 }
  0x12   : > { %564 = vmatpush3.bf16.msra.mxu1 %v598_v5 }
  0x14   : > { %558 = vmatmul.mubr.msk.bf16.vlgmr.msra.gmra.mxu0 %vm253_vm0, %v596_v2 }
  0xd4   : > { %v559_v6 = vpop.f32.mrf.mxu0 }
  0xd5   : > { %v315_v11 = vmul.f32 0.05, %v559_v6  ;;  %vm311_vm4 = vcmp.ge.f32.partialorder %v559_v6, 0.0 }
  0xd6   : > { %v294_v7 = vpop.f32.mrf.mxu0 }
  0xd7   : > { %v313_v9 = vmul.f32 0.05, %v294_v7  ;;  %vm309_vm3 = vcmp.ge.f32.partialorder %v294_v7, 0.0  ;;  %v319_v17 = vsel %vm311_vm4, %v559_v6, %v315_v11 }
  0xd8   : > { %v560_v8 = vpop.f32.mrf.mxu0 }
  0xd9   : > { %vm312_vm2 = vcmp.ge.f32.partialorder %v560_v8, 0.0  ;;  %v316_v10 = vmul.f32 0.05, %v560_v8  ;;  %v317_v16 = vsel %vm309_vm3, %v294_v7, %v313_v9 }
  0xda   : > { %v297_v12 = vpop.f32.mrf.mxu0 }
  0xdb   : > { %vm310_vm5 = vcmp.ge.f32.partialorder %v297_v12, 0.0  ;;  %v314_v13 = vmul.f32 0.05, %v297_v12  ;;  %v320_v14 = vsel %vm312_vm2, %v560_v8, %v316_v10 }
  0xdc   : > { %v322_v19 = vpack.c.bf16 %v320_v14, %v319_v17 }
  0xdd   : > { %v318_v15 = vsel %vm310_vm5, %v297_v12, %v314_v13 }
  0xde   : > { %v321_v18 = vpack.c.bf16 %v318_v15, %v317_v16 }
  0xe0   : > { %565 = vmatprep.mubr.msk.bf16.mxu1 %vm335_vm6, %v321_v18 }
  0xe1   : > { %566 = vmatmul.mubr.msk.bf16.vlgmr.msra.gmra.mxu1 %vm335_vm6, %v322_v19 }
 0x1a1   : > { %v567_v20 = vpop.f32.mrf.mxu1 }
 0x1a2   : > { %v546_v21 = vpack.c.bf16 %v567_v20, %v567_v20 }
 0x1a3   : > { %v380_v22 = vpop.f32.mrf.mxu1 }
 0x1a4   : > { %414 = vst.msk [vmem:[%s228_s30 + $0x8] sm:$0xf] %vm411_vm7, %v546_v21  ;;  %v544_v23 = vpack.c.bf16 %v380_v22, %v380_v22 }
 0x1a5   : > { %v568_v24 = vpop.f32.mrf.mxu1 }
 0x1a6   : > { %412 = vst.msk [vmem:[%s228_s30] sm:$0xf] %vm411_vm7, %v544_v23  ;;  %v547_v25 = vpack.c.bf16 %v568_v24, %v568_v24 }
 0x1a7   : > { %v383_v26 = vpop.f32.mrf.mxu1 }
 0x1a8   : > { %415 = vst.msk [vmem:[%s228_s30 + $0xc] sm:$0xf] %vm411_vm7, %v547_v25  ;;  %v545_v27 = vpack.c.bf16 %v383_v26, %v383_v26 }
 0x1aa   : > { %413 = vst.msk [vmem:[%s228_s30 + $0x4] sm:$0xf] %vm411_vm7, %v545_v27 }
 0x1ab PF: > { %s13_s14 = sadd.s32 1, %s621_s14   ;;  %s697_s12 = smov %s617_s13 }
 0x1ac   : > { %p10_p5 = scmp.ge.s32.totalorder %s13_s14, 4   ;;  %s698_s13 = smov %s700_s15 }
 0x1ae   :  { %12 = sbr.rel (!%p10_p5) target bundleno = 2 (0x2), region = 65 }

// kernel: squeeze.48
= control target key start
LH: loop header
LB: loop body
LE: loop exit
PB: predicated region body
PF: predicated region fallthrough
CT: control target
= control target key end

     0   :  { %s3014_s18 = smov 3  ;;  %s3016_s19 = smov 12  ;;  %vm1030_vm0 = vcmask 1043458   ;;  %vm1034_vm1 = vcmask 1045508   ;;  %vm1038_vm2 = vcmask 1047558   ;;  %vm1040_vm3 = vcmask 31744   ;;  %s3469_s0 = inlined_call_operand.vmem [shape: bf16[1,512,4], index: 0, kind: input, shape index: {}]   ;;  %s3470_s1 = inlined_call_operand.vmem [shape: bf16[32,64], index: 1, kind: output, shape index: {}]  }
   0x1   :  { %v2996_v0 = vld [vmem:[%s3469_s0 + $0x78] sm:$0xff]   ;;  %v2788_v1 = vld [vmem:[%s3469_s0 + $0x70] sm:$0xff]   ;;  %v2789_v2 = vld [vmem:[%s3469_s0 + $0x68] sm:$0xff]   ;;  %s3029_s26 = smov 48  ;;  %s3031_s27 = smov 192  ;;  %vm1125_vm4 = vcmask 523744  }
   0x2   :  { %v2700_v3 = vunpack.c.h.bf16 %v2996_v0  ;;  %v2703_v4 = vunpack.c.l.bf16 %v2788_v1  ;;  %v2704_v5 = vunpack.c.h.bf16 %v2788_v1  ;;  %v2707_v6 = vunpack.c.l.bf16 %v2789_v2  ;;  %v2790_v7 = vld [vmem:[%s3469_s0 + $0x60] sm:$0xff]   ;;  %v2791_v8 = vld [vmem:[%s3469_s0 + $0x58] sm:$0xff]   ;;  %v2792_v9 = vld [vmem:[%s3469_s0 + $0x50] sm:$0xff]   ;;  %s3048_s5 = smov 3  ;;  %s3066_s12 = smov 12 }
   0x3   :  { %v2708_v10 = vunpack.c.h.bf16 %v2789_v2  ;;  %v2711_v11 = vunpack.c.l.bf16 %v2790_v7  ;;  %v2712_v12 = vunpack.c.h.bf16 %v2790_v7  ;;  %v2715_v13 = vunpack.c.l.bf16 %v2791_v8  ;;  %v2793_v14 = vld [vmem:[%s3469_s0 + $0x48] sm:$0xff]   ;;  %v2794_v15 = vld [vmem:[%s3469_s0 + $0x40] sm:$0xff]   ;;  %v3027_v16 = vld [vmem:[%s3469_s0 + $0x38] sm:$0xff]   ;;  %s3068_s13 = smov 48  ;;  %s3077_s16 = smov 192 }
   0x4   :  { %533 = vst [vmem:[#allocation1 + $0xf8] sm:$0xff] %v2700_v3  ;;  %565 = vst [vmem:[#allocation1 + $0xe8] sm:$0xff] %v2704_v5  ;;  %v2716_v17 = vunpack.c.h.bf16 %v2791_v8  ;;  %v2719_v18 = vunpack.c.l.bf16 %v2792_v9  ;;  %v2720_v19 = vunpack.c.h.bf16 %v2792_v9  ;;  %v2723_v20 = vunpack.c.l.bf16 %v2793_v14  ;;  %v3036_v21 = vld [vmem:[%s3469_s0 + $0x30] sm:$0xff]   ;;  %v3041_v22 = vld [vmem:[%s3469_s0 + $0x28] sm:$0xff]   ;;  %s3079_s17 = smov 3  ;;  %s3094_s24 = smov 12 }
   0x5   :  { %v3046_v23 = vld [vmem:[%s3469_s0 + $0x20] sm:$0xff]   ;;  %581 = vst [vmem:[#allocation1 + $0xe0] sm:$0xff] %v2703_v4  ;;  %613 = vst [vmem:[#allocation1 + $0xd0] sm:$0xff] %v2707_v6  ;;  %v2724_v24 = vunpack.c.h.bf16 %v2793_v14  ;;  %v2727_v25 = vunpack.c.l.bf16 %v2794_v15  ;;  %v2728_v26 = vunpack.c.h.bf16 %v2794_v15  ;;  %v2732_v27 = vunpack.c.h.bf16 %v3027_v16  ;;  %v3054_v28 = vld [vmem:[%s3469_s0 + $0x18] sm:$0xff]   ;;  %s3096_s25 = smov 48  ;;  %s3117_s6 = smov 192 }
   0x6   :  { %597 = vst [vmem:[#allocation1 + $0xd8] sm:$0xff] %v2708_v10  ;;  %629 = vst [vmem:[#allocation1 + $0xc8] sm:$0xff] %v2712_v12  ;;  %v3059_v29 = vld [vmem:[%s3469_s0 + $0x10] sm:$0xff]   ;;  %v3064_v30 = vld [vmem:[%s3469_s0 + $0x8] sm:$0xff]   ;;  %v2736_v31 = vunpack.c.h.bf16 %v3036_v21  ;;  %v2740_v32 = vunpack.c.h.bf16 %v3041_v22  ;;  %v2744_v33 = vunpack.c.h.bf16 %v3046_v23  ;;  %v2748_v34 = vunpack.c.h.bf16 %v3054_v28  ;;  %s3137_s15 = smov 3  ;;  %s3139_s20 = smov 12 }
   0x7   :  { %645 = vst [vmem:[#allocation1 + $0xc0] sm:$0xff] %v2711_v11  ;;  %677 = vst [vmem:[#allocation1 + $0xb0] sm:$0xff] %v2715_v13  ;;  %v2758_v35 = vld [vmem:[%s3469_s0] sm:$0xff]   ;;  %v3084_v36 = vld [vmem:[%s3469_s0 + $0xf8] sm:$0xff]   ;;  %v2752_v38 = vunpack.c.h.bf16 %v3059_v29  ;;  %v2756_v39 = vunpack.c.h.bf16 %v3064_v30  ;;  %v2699_v41 = vunpack.c.l.bf16 %v2996_v0  ;;  %v2731_v45 = vunpack.c.l.bf16 %v3027_v16  ;;  %s3156_s2 = smov 48  ;;  %s3158_s3 = smov 192 }
   0x8   :  { %661 = vst [vmem:[#allocation1 + $0xb8] sm:$0xff] %v2716_v17  ;;  %693 = vst [vmem:[#allocation1 + $0xa8] sm:$0xff] %v2720_v19  ;;  %v3089_v37 = vld [vmem:[%s3469_s0 + $0xf0] sm:$0xff]   ;;  %v2760_v40 = vunpack.c.h.bf16 %v2758_v35  ;;  %v3101_v42 = vld [vmem:[%s3469_s0 + $0xe8] sm:$0xff]   ;;  %v2735_v46 = vunpack.c.l.bf16 %v3036_v21  ;;  %v2739_v47 = vunpack.c.l.bf16 %v3041_v22  ;;  %v2743_v48 = vunpack.c.l.bf16 %v3046_v23  ;;  %s3195_s28 = smov 12  ;;  %s3201_s29 = smov 48 }
   0x9   :  { %709 = vst [vmem:[#allocation1 + $0xa0] sm:$0xff] %v2719_v18  ;;  %741 = vst [vmem:[#allocation1 + $0x90] sm:$0xff] %v2723_v20  ;;  %v3106_v43 = vld [vmem:[%s3469_s0 + $0xe0] sm:$0xff]   ;;  %v3111_v44 = vld [vmem:[%s3469_s0 + $0xd8] sm:$0xff]   ;;  %v2747_v52 = vunpack.c.l.bf16 %v3054_v28  ;;  %v2751_v53 = vunpack.c.l.bf16 %v3059_v29  ;;  %v2755_v54 = vunpack.c.l.bf16 %v3064_v30  ;;  %v2759_v55 = vunpack.c.l.bf16 %v2758_v35  ;;  %s3203_s30 = smov 192  ;;  %s3209_s4 = smov 3 }
   0xa   :  { %725 = vst [vmem:[#allocation1 + $0x98] sm:$0xff] %v2724_v24  ;;  %757 = vst [vmem:[#allocation1 + $0x88] sm:$0xff] %v2728_v26  ;;  %v3122_v49 = vld [vmem:[%s3469_s0 + $0xd0] sm:$0xff]   ;;  %v3127_v50 = vld [vmem:[%s3469_s0 + $0xc8] sm:$0xff]   ;;  %v2636_v59 = vunpack.c.h.bf16 %v3084_v36  ;;  %v2640_v60 = vunpack.c.h.bf16 %v3089_v37  ;;  %v2644_v61 = vunpack.c.h.bf16 %v3101_v42  ;;  %v2648_v62 = vunpack.c.h.bf16 %v3106_v43  ;;  %s3211_s7 = smov 12  ;;  %s1356_s8 = smov 3 }
   0xb   :  { %789 = vst [vmem:[#allocation1 + $0x78] sm:$0xff] %v2732_v27  ;;  %773 = vst [vmem:[#allocation1 + $0x80] sm:$0xff] %v2727_v25  ;;  %v3132_v51 = vld [vmem:[%s3469_s0 + $0xc0] sm:$0xff]   ;;  %v3144_v56 = vld [vmem:[%s3469_s0 + $0xb8] sm:$0xff]   ;;  %v2652_v2 = vunpack.c.h.bf16 %v3111_v44  ;;  %v2656_v3 = vunpack.c.h.bf16 %v3122_v49  ;;  %v2660_v4 = vunpack.c.h.bf16 %v3127_v50  ;;  %v2635_v19 = vunpack.c.l.bf16 %v3084_v36  ;;  %s1359_s9 = smov 12  ;;  %s1364_s10 = smov 48 }
   0xc   :  { %821 = vst [vmem:[#allocation1 + $0x68] sm:$0xff] %v2736_v31  ;;  %853 = vst [vmem:[#allocation1 + $0x58] sm:$0xff] %v2740_v32  ;;  %v3149_v57 = vld [vmem:[%s3469_s0 + $0xb0] sm:$0xff]   ;;  %v3154_v58 = vld [vmem:[%s3469_s0 + $0xa8] sm:$0xff]   ;;  %v2664_v5 = vunpack.c.h.bf16 %v3132_v51  ;;  %v2668_v8 = vunpack.c.h.bf16 %v3144_v56  ;;  %v2639_v20 = vunpack.c.l.bf16 %v3089_v37  ;;  %v2643_v21 = vunpack.c.l.bf16 %v3101_v42  ;;  %s1369_s11 = smov 192  ;;  %s1288_s14 = smov 3 }
   0xd   :  { %885 = vst [vmem:[#allocation1 + $0x48] sm:$0xff] %v2744_v33  ;;  %917 = vst [vmem:[#allocation1 + $0x38] sm:$0xff] %v2748_v34  ;;  %v3167_v63 = vld [vmem:[%s3469_s0 + $0xa0] sm:$0xff]   ;;  %v3172_v0 = vld [vmem:[%s3469_s0 + $0x98] sm:$0xff]   ;;  %v2672_v9 = vunpack.c.h.bf16 %v3149_v57  ;;  %v2676_v10 = vunpack.c.h.bf16 %v3154_v58  ;;  %v2647_v22 = vunpack.c.l.bf16 %v3106_v43  ;;  %v2651_v27 = vunpack.c.l.bf16 %v3111_v44  ;;  %s1291_s21 = smov 12  ;;  %s1296_s22 = smov 48 }
   0xe   :  { %949 = vst [vmem:[#allocation1 + $0x28] sm:$0xff] %v2752_v38  ;;  %981 = vst [vmem:[#allocation1 + $0x18] sm:$0xff] %v2756_v39  ;;  %v3177_v1 = vld [vmem:[%s3469_s0 + $0x90] sm:$0xff]   ;;  %v3186_v6 = vld [vmem:[%s3469_s0 + $0x88] sm:$0xff]   ;;  %v2680_v11 = vunpack.c.h.bf16 %v3167_v63  ;;  %v2684_v12 = vunpack.c.h.bf16 %v3172_v0  ;;  %v2655_v28 = vunpack.c.l.bf16 %v3122_v49  ;;  %v2659_v29 = vunpack.c.l.bf16 %v3127_v50  ;;  %s1301_s23 = smov 192 }
   0xf   :  { %1012 = vst [vmem:[#allocation1 + $0x8] sm:$0xff] %v2760_v40  ;;  %549 = vst [vmem:[#allocation1 + $0xf0] sm:$0xff] %v2699_v41  ;;  %v3191_v7 = vld [vmem:[%s3469_s0 + $0x80] sm:$0xff]   ;;  %s3193_s0 = smov 3  ;;  %v2688_v13 = vunpack.c.h.bf16 %v3177_v1  ;;  %v2692_v14 = vunpack.c.h.bf16 %v3186_v6  ;;  %v2663_v35 = vunpack.c.l.bf16 %v3132_v51  ;;  %v2667_v36 = vunpack.c.l.bf16 %v3144_v56 }
  0x10   :  { %805 = vst [vmem:[#allocation1 + $0x70] sm:$0xff] %v2731_v45  ;;  %837 = vst [vmem:[#allocation1 + $0x60] sm:$0xff] %v2735_v46  ;;  %v2696_v15 = vunpack.c.h.bf16 %v3191_v7  ;;  %v2671_v42 = vunpack.c.l.bf16 %v3149_v57  ;;  %v2675_v43 = vunpack.c.l.bf16 %v3154_v58  ;;  %v2679_v49 = vunpack.c.l.bf16 %v3167_v63 }
  0x11   :  { %869 = vst [vmem:[#allocation1 + $0x50] sm:$0xff] %v2739_v47  ;;  %901 = vst [vmem:[#allocation1 + $0x40] sm:$0xff] %v2743_v48  ;;  %v1220_v16 = vld [vmem:[#allocation1 + $0x8e] ss:$16 sm:%s3048_s5]   ;;  %v1129_v25 = vld [vmem:[#allocation1 + $0x8f] ss:$16 sm:%s3137_s15]   ;;  %v2683_v50 = vunpack.c.l.bf16 %v3172_v0 }
  0x12   :  { %933 = vst [vmem:[#allocation1 + $0x30] sm:$0xff] %v2747_v52  ;;  %965 = vst [vmem:[#allocation1 + $0x20] sm:$0xff] %v2751_v53  ;;  %v1223_v17 = vld [vmem:[#allocation1 + $0x8e] ss:$16 sm:%s3066_s12]   ;;  %v1132_v26 = vld [vmem:[#allocation1 + $0x8f] ss:$16 sm:%s3139_s20]  }
  0x13   :  { %997 = vst [vmem:[#allocation1 + $0x10] sm:$0xff] %v2755_v54  ;;  %1025 = vst [vmem:[#allocation1] sm:$0xff] %v2759_v55  ;;  %v1228_v18 = vld [vmem:[#allocation1 + $0x8e] ss:$16 sm:%s3068_s13]   ;;  %v1225_v23 = vsel %vm1030_vm0, %v1223_v17, %v1220_v16  ;;  %v1134_v34 = vsel %vm1030_vm0, %v1132_v26, %v1129_v25  ;;  %v1137_v48 = vld [vmem:[#allocation1 + $0x8f] ss:$16 sm:%s3156_s2]   ;;  %v2687_v55 = vunpack.c.l.bf16 %v3177_v1 }
  0x14   :  { %21 = vst [vmem:[#allocation1 + $0x1f8] sm:$0xff] %v2636_v59  ;;  %53 = vst [vmem:[#allocation1 + $0x1e8] sm:$0xff] %v2640_v60  ;;  %v1233_v24 = vld [vmem:[#allocation1 + $0x8e] ss:$16 sm:%s3077_s16]   ;;  %v1230_v33 = vsel %vm1034_vm1, %v1228_v18, %v1225_v23  ;;  %v1139_v53 = vsel %vm1034_vm1, %v1137_v48, %v1134_v34  ;;  %v1142_v54 = vld [vmem:[#allocation1 + $0x8f] ss:$16 sm:%s3158_s3]  }
  0x15   :  { %85 = vst [vmem:[#allocation1 + $0x1d8] sm:$0xff] %v2644_v61  ;;  %117 = vst [vmem:[#allocation1 + $0x1c8] sm:$0xff] %v2648_v62  ;;  %v1235_v39 = vsel %vm1038_vm2, %v1233_v24, %v1230_v33  ;;  %v1144_v58 = vsel %vm1038_vm2, %v1142_v54, %v1139_v53  ;;  %v2691_v62 = vunpack.c.l.bf16 %v3186_v6  ;;  %s2968_s5 = smov 56   ;;  %s2969_s12 = smov 60   ;;  %vm1216_vm5 = vcmask 490944  }
  0x16   :  { %149 = vst [vmem:[#allocation1 + $0x1b8] sm:$0xff] %v2652_v2  ;;  %181 = vst [vmem:[#allocation1 + $0x1a8] sm:$0xff] %v2656_v3  ;;  %v1198_v30 = vld [vmem:[#allocation1 + $0xe] ss:$16 sm:%s3014_s18]   ;;  %v1107_v40 = vld [vmem:[#allocation1 + $0xf] ss:$16 sm:%s3079_s17]   ;;  %v2695_v2 = vunpack.c.l.bf16 %v3191_v7 }
  0x17   :  { %213 = vst [vmem:[#allocation1 + $0x198] sm:$0xff] %v2660_v4  ;;  %245 = vst [vmem:[#allocation1 + $0x188] sm:$0xff] %v2664_v5  ;;  %v1201_v31 = vld [vmem:[#allocation1 + $0xe] ss:$16 sm:%s3016_s19]   ;;  %v1110_v41 = vld [vmem:[#allocation1 + $0xf] ss:$16 sm:%s3094_s24]  }
  0x18   :  { %277 = vst [vmem:[#allocation1 + $0x178] sm:$0xff] %v2668_v8  ;;  %309 = vst [vmem:[#allocation1 + $0x168] sm:$0xff] %v2672_v9  ;;  %v1206_v32 = vld [vmem:[#allocation1 + $0xe] ss:$16 sm:%s3029_s26]   ;;  %v1203_v37 = vsel %vm1030_vm0, %v1201_v31, %v1198_v30  ;;  %v1112_v45 = vsel %vm1030_vm0, %v1110_v41, %v1107_v40  ;;  %v1115_v46 = vld [vmem:[#allocation1 + $0xf] ss:$16 sm:%s3096_s25]  }
  0x19   :  { %341 = vst [vmem:[#allocation1 + $0x158] sm:$0xff] %v2676_v10  ;;  %373 = vst [vmem:[#allocation1 + $0x148] sm:$0xff] %v2680_v11  ;;  %v1211_v38 = vld [vmem:[#allocation1 + $0xe] ss:$16 sm:%s3031_s27]   ;;  %v1208_v44 = vsel %vm1034_vm1, %v1206_v32, %v1203_v37  ;;  %v1120_v47 = vld [vmem:[#allocation1 + $0xf] ss:$16 sm:%s3117_s6]   ;;  %v1117_v52 = vsel %vm1034_vm1, %v1115_v46, %v1112_v45 }
  0x1a   :  { %405 = vst [vmem:[#allocation1 + $0x138] sm:$0xff] %v2684_v12  ;;  %437 = vst [vmem:[#allocation1 + $0x128] sm:$0xff] %v2688_v13  ;;  %v1213_v51 = vsel %vm1038_vm2, %v1211_v38, %v1208_v44  ;;  %s1273_s18 = smov 48  ;;  %s1278_s19 = smov 192  ;;  %v1122_v57 = vsel %vm1038_vm2, %v1120_v47, %v1117_v52  ;;  %v1289_v40 = vld [vmem:[#allocation1 + $0xd] ss:$16 sm:%s1288_s14]  }
  0x1b   :  { %469 = vst [vmem:[#allocation1 + $0x118] sm:$0xff] %v2692_v14  ;;  %501 = vst [vmem:[#allocation1 + $0x108] sm:$0xff] %v2696_v15  ;;  %v2828_v56 = vpack.i.bf16 %v1235_v39, %v1213_v51  ;;  %v2818_v63 = vpack.i.bf16 %v1144_v58, %v1122_v57  ;;  %s1151_s26 = smov 3  ;;  %s1154_s27 = smov 12  ;;  %v1302_v46 = vld [vmem:[#allocation1 + $0xd] ss:$16 sm:%s1301_s23]  }
  0x1c   :  { %37 = vst [vmem:[#allocation1 + $0x1f0] sm:$0xff] %v2635_v19  ;;  %69 = vst [vmem:[#allocation1 + $0x1e0] sm:$0xff] %v2639_v20  ;;  %s1159_s13 = smov 48  ;;  %s1164_s16 = smov 192  ;;  %vm1307_vm6 = vcmask 458144   ;;  %vm1398_vm7 = vcmask 425344  }
  0x1d   :  { %101 = vst [vmem:[#allocation1 + $0x1d0] sm:$0xff] %v2643_v21  ;;  %133 = vst [vmem:[#allocation1 + $0x1c0] sm:$0xff] %v2647_v22  ;;  %2829 = vrot.lane.b32.xlu1 %v2828_v56, %s2968_s5  ;;  %2819 = vrot.lane.b32.xlu0 %v2818_v63, %s2969_s12  ;;  %s1174_s17 = smov 3  ;;  %s1177_s24 = smov 12  ;;  %vm1489_vm8 = vcmask 392544   ;;  %vm1580_vm9 = vcmask 359744  }
  0x1e   :  { %165 = vst [vmem:[#allocation1 + $0x1b0] sm:$0xff] %v2651_v27  ;;  %197 = vst [vmem:[#allocation1 + $0x1a0] sm:$0xff] %v2655_v28  ;;  %v1266_v59 = vld [vmem:[#allocation1 + $0x18e] ss:$16 sm:%s3209_s4]   ;;  %v1175_v19 = vld [vmem:[#allocation1 + $0x18f] ss:$16 sm:%s1174_s17]  }
  0x1f   :  { %229 = vst [vmem:[#allocation1 + $0x190] sm:$0xff] %v2659_v29  ;;  %261 = vst [vmem:[#allocation1 + $0x180] sm:$0xff] %v2663_v35  ;;  %v1269_v60 = vld [vmem:[#allocation1 + $0x18e] ss:$16 sm:%s3211_s7]   ;;  %v1178_v20 = vld [vmem:[#allocation1 + $0x18f] ss:$16 sm:%s1177_s24]  }
  0x20   :  { %293 = vst [vmem:[#allocation1 + $0x170] sm:$0xff] %v2667_v36  ;;  %325 = vst [vmem:[#allocation1 + $0x160] sm:$0xff] %v2671_v42  ;;  %v1274_v61 = vld [vmem:[#allocation1 + $0x18e] ss:$16 sm:%s1273_s18]   ;;  %v1271_v0 = vsel %vm1030_vm0, %v1269_v60, %v1266_v59  ;;  %s1182_s25 = smov 48  ;;  %s1187_s6 = smov 192  ;;  %v1180_v22 = vsel %vm1030_vm0, %v1178_v20, %v1175_v19 }
  0x21   :  { %357 = vst [vmem:[#allocation1 + $0x150] sm:$0xff] %v2675_v43  ;;  %389 = vst [vmem:[#allocation1 + $0x140] sm:$0xff] %v2679_v49  ;;  %v1279_v1 = vld [vmem:[#allocation1 + $0x18e] ss:$16 sm:%s1278_s19]   ;;  %v1276_v6 = vsel %vm1034_vm1, %v1274_v61, %v1271_v0  ;;  %v1183_v23 = vld [vmem:[#allocation1 + $0x18f] ss:$16 sm:%s1182_s25]  }
  0x22   :  { %421 = vst [vmem:[#allocation1 + $0x130] sm:$0xff] %v2683_v50  ;;  %453 = vst [vmem:[#allocation1 + $0x120] sm:$0xff] %v2687_v55  ;;  %v1243_v3 = vld [vmem:[#allocation1 + $0x10e] ss:$16 sm:%s3193_s0]   ;;  %v1281_v9 = vsel %vm1038_vm2, %v1279_v1, %v1276_v6  ;;  %v1152_v10 = vld [vmem:[#allocation1 + $0x10f] ss:$16 sm:%s1151_s26]   ;;  %v1185_v25 = vsel %vm1034_vm1, %v1183_v23, %v1180_v22 }
  0x23   :  { %v1246_v4 = vld [vmem:[#allocation1 + $0x10e] ss:$16 sm:%s3195_s28]   ;;  %485 = vst [vmem:[#allocation1 + $0x110] sm:$0xff] %v2691_v62  ;;  %v1155_v11 = vld [vmem:[#allocation1 + $0x10f] ss:$16 sm:%s1154_s27]   ;;  %517 = vst [vmem:[#allocation1 + $0x100] sm:$0xff] %v2695_v2 }
  0x24   :  { %v1251_v5 = vld [vmem:[#allocation1 + $0x10e] ss:$16 sm:%s3201_s29]   ;;  %v1248_v7 = vsel %vm1030_vm0, %v1246_v4, %v1243_v3  ;;  %v1157_v13 = vsel %vm1030_vm0, %v1155_v11, %v1152_v10  ;;  %v1160_v15 = vld [vmem:[#allocation1 + $0x10f] ss:$16 sm:%s1159_s13]   ;;  %s1333_s15 = smov 3  ;;  %s1336_s20 = smov 12 }
  0x25   :  { %v1256_v8 = vld [vmem:[#allocation1 + $0x10e] ss:$16 sm:%s3203_s30]   ;;  %v1253_v12 = vsel %vm1034_vm1, %v1251_v5, %v1248_v7  ;;  %v1165_v16 = vld [vmem:[#allocation1 + $0x10f] ss:$16 sm:%s1164_s16]   ;;  %v1162_v18 = vsel %vm1034_vm1, %v1160_v15, %v1157_v13  ;;  %v1334_v26 = vld [vmem:[#allocation1 + $0x10d] ss:$16 sm:%s1333_s15]  }
  0x26   :  { %v1258_v14 = vsel %vm1038_vm2, %v1256_v8, %v1253_v12  ;;  %v1167_v21 = vsel %vm1038_vm2, %v1165_v16, %v1162_v18  ;;  %v1188_v24 = vld [vmem:[#allocation1 + $0x18f] ss:$16 sm:%s1187_s6]   ;;  %s1341_s2 = smov 48  ;;  %v1337_v28 = vld [vmem:[#allocation1 + $0x10d] ss:$16 sm:%s1336_s20]   ;;  %s1346_s3 = smov 192 }
  0x27   :  { %v2833_v17 = vpack.i.bf16 %v1281_v9, %v1258_v14  ;;  %v1190_v27 = vsel %vm1038_vm2, %v1188_v24, %v1185_v25  ;;  %v1342_v29 = vld [vmem:[#allocation1 + $0x10d] ss:$16 sm:%s1341_s2]   ;;  %v1339_v31 = vsel %vm1030_vm0, %v1337_v28, %v1334_v26  ;;  %s1310_s0 = smov 3  ;;  %s1313_s28 = smov 12  ;;  %vm1671_vm10 = vcmask 326944  }
  0x28   :  { %v2823_v30 = vpack.i.bf16 %v1190_v27, %v1167_v21  ;;  %v1347_v32 = vld [vmem:[#allocation1 + $0x10d] ss:$16 sm:%s1346_s3]   ;;  %v1344_v34 = vsel %vm1034_vm1, %v1342_v29, %v1339_v31  ;;  %s1318_s29 = smov 48  ;;  %s1323_s30 = smov 192  ;;  %vm1762_vm11 = vcmask 294144   ;;  %vm1853_vm12 = vcmask 261344  }
  0x29   :  { %2834 = vrot.lane.b32.xlu1 %v2833_v17, %s2968_s5  ;;  %v1357_v33 = vld [vmem:[#allocation1 + $0x18d] ss:$16 sm:%s1356_s8]   ;;  %v1349_v37 = vsel %vm1038_vm2, %v1347_v32, %v1344_v34  ;;  %s1424_s4 = smov 3  ;;  %s1427_s7 = smov 12  ;;  %vm1944_vm13 = vcmask 228544   ;;  %vm2035_vm14 = vcmask 195744  }
  0x2a   :  { %v1360_v35 = vld [vmem:[#allocation1 + $0x18d] ss:$16 sm:%s1359_s9]   ;;  %2824 = vrot.lane.b32.xlu0 %v2823_v30, %s2969_s12  ;;  %s2970_s18 = smov 52   ;;  %v1425_v56 = vld [vmem:[#allocation1 + $0x10c] ss:$16 sm:%s1424_s4]   ;;  %s1432_s19 = smov 48 }
  0x2b   :  { %v1365_v36 = vld [vmem:[#allocation1 + $0x18d] ss:$16 sm:%s1364_s10]   ;;  %v1362_v38 = vsel %vm1030_vm0, %v1360_v35, %v1357_v33  ;;  %v1428_v57 = vld [vmem:[#allocation1 + $0x10c] ss:$16 sm:%s1427_s7]   ;;  %s1437_s26 = smov 192  ;;  %s1447_s27 = smov 3 }
  0x2c   :  { %v1370_v39 = vld [vmem:[#allocation1 + $0x18d] ss:$16 sm:%s1369_s11]   ;;  %v1367_v41 = vsel %vm1034_vm1, %v1365_v36, %v1362_v38  ;;  %v1430_v59 = vsel %vm1030_vm0, %v1428_v57, %v1425_v56  ;;  %v1433_v60 = vld [vmem:[#allocation1 + $0x10c] ss:$16 sm:%s1432_s19]   ;;  %s1450_s5 = smov 12  ;;  %s1455_s12 = smov 48 }
  0x2d   :  { %v1292_v42 = vld [vmem:[#allocation1 + $0xd] ss:$16 sm:%s1291_s21]   ;;  %v1372_v44 = vsel %vm1038_vm2, %v1370_v39, %v1367_v41  ;;  %v1438_v61 = vld [vmem:[#allocation1 + $0x10c] ss:$16 sm:%s1437_s26]   ;;  %v1435_v63 = vsel %vm1034_vm1, %v1433_v60, %v1430_v59  ;;  %s1460_s13 = smov 192  ;;  %s1379_s16 = smov 3 }
  0x2e   :  { %v1297_v43 = vld [vmem:[#allocation1 + $0xd] ss:$16 sm:%s1296_s22]   ;;  %v1294_v45 = vsel %vm1030_vm0, %v1292_v42, %v1289_v40  ;;  %v2843_v48 = vpack.i.bf16 %v1372_v44, %v1349_v37  ;;  %v1448_v0 = vld [vmem:[#allocation1 + $0x18c] ss:$16 sm:%s1447_s27]   ;;  %v1440_v2 = vsel %vm1038_vm2, %v1438_v61, %v1435_v63  ;;  %s1382_s17 = smov 12  ;;  %s1387_s24 = smov 48 }
  0x2f   :  { %v1311_v47 = vld [vmem:[#allocation1 + $0x8d] ss:$16 sm:%s1310_s0]   ;;  %v1299_v49 = vsel %vm1034_vm1, %v1297_v43, %v1294_v45  ;;  %v1451_v1 = vld [vmem:[#allocation1 + $0x18c] ss:$16 sm:%s1450_s5]   ;;  %s1392_s25 = smov 192  ;;  %s1401_s6 = smov 3 }
  0x30   :  { %v1314_v50 = vld [vmem:[#allocation1 + $0x8d] ss:$16 sm:%s1313_s28]   ;;  %v1304_v52 = vsel %vm1038_vm2, %v1302_v46, %v1299_v49  ;;  %2844 = vrot.lane.b32.xlu1 %v2843_v48, %s2970_s18  ;;  %v1453_v3 = vsel %vm1030_vm0, %v1451_v1, %v1448_v0  ;;  %v1456_v4 = vld [vmem:[#allocation1 + $0x18c] ss:$16 sm:%s1455_s12]   ;;  %s1404_s15 = smov 12  ;;  %s1409_s20 = smov 48 }
  0x31   :  { %v1319_v51 = vld [vmem:[#allocation1 + $0x8d] ss:$16 sm:%s1318_s29]   ;;  %v1316_v53 = vsel %vm1030_vm0, %v1314_v50, %v1311_v47  ;;  %v1461_v5 = vld [vmem:[#allocation1 + $0x18c] ss:$16 sm:%s1460_s13]   ;;  %v1458_v6 = vsel %vm1034_vm1, %v1456_v4, %v1453_v3  ;;  %s1414_s2 = smov 192  ;;  %s1515_s3 = smov 3 }
  0x32   :  { %v1324_v54 = vld [vmem:[#allocation1 + $0x8d] ss:$16 sm:%s1323_s30]   ;;  %v1321_v55 = vsel %vm1034_vm1, %v1319_v51, %v1316_v53  ;;  %v1380_v7 = vld [vmem:[#allocation1 + $0xc] ss:$16 sm:%s1379_s16]   ;;  %v1463_v9 = vsel %vm1038_vm2, %v1461_v5, %v1458_v6  ;;  %s2971_s8 = smov 48   ;;  %s1518_s9 = smov 12 }
  0x33   :  { %v1326_v58 = vsel %vm1038_vm2, %v1324_v54, %v1321_v55  ;;  %v1383_v8 = vld [vmem:[#allocation1 + $0xc] ss:$16 sm:%s1382_s17]   ;;  %v2853_v13 = vpack.i.bf16 %v1463_v9, %v1440_v2  ;;  %v1516_v22 = vld [vmem:[#allocation1 + $0x10b] ss:$16 sm:%s1515_s3]   ;;  %s1523_s10 = smov 48  ;;  %s1528_s11 = smov 192 }
  0x34   :  { %v2838_v62 = vpack.i.bf16 %v1326_v58, %v1304_v52  ;;  %v1385_v10 = vsel %vm1030_vm0, %v1383_v8, %v1380_v7  ;;  %v1388_v11 = vld [vmem:[#allocation1 + $0xc] ss:$16 sm:%s1387_s24]   ;;  %v1519_v24 = vld [vmem:[#allocation1 + $0x10b] ss:$16 sm:%s1518_s9]   ;;  %s1538_s14 = smov 3  ;;  %s1541_s21 = smov 12 }
  0x35   :  { %v1393_v12 = vld [vmem:[#allocation1 + $0xc] ss:$16 sm:%s1392_s25]   ;;  %v1390_v14 = vsel %vm1034_vm1, %v1388_v11, %v1385_v10  ;;  %2854 = vrot.lane.b32.xlu1 %v2853_v13, %s2971_s8  ;;  %v1524_v25 = vld [vmem:[#allocation1 + $0x10b] ss:$16 sm:%s1523_s10]   ;;  %v1521_v27 = vsel %vm1030_vm0, %v1519_v24, %v1516_v22  ;;  %s1546_s22 = smov 48  ;;  %s1551_s23 = smov 192 }
  0x36   :  { %2839 = vrot.lane.b32.xlu0 %v2838_v62, %s2970_s18  ;;  %v1402_v15 = vld [vmem:[#allocation1 + $0x8c] ss:$16 sm:%s1401_s6]   ;;  %v1395_v17 = vsel %vm1038_vm2, %v1393_v12, %v1390_v14  ;;  %v1529_v28 = vld [vmem:[#allocation1 + $0x10b] ss:$16 sm:%s1528_s11]   ;;  %v1526_v30 = vsel %vm1034_vm1, %v1524_v25, %v1521_v27  ;;  %s1470_s0 = smov 3  ;;  %s1473_s28 = smov 12 }
  0x37   :  { %v1405_v16 = vld [vmem:[#allocation1 + $0x8c] ss:$16 sm:%s1404_s15]   ;;  %v1539_v29 = vld [vmem:[#allocation1 + $0x18b] ss:$16 sm:%s1538_s14]   ;;  %v1531_v33 = vsel %vm1038_vm2, %v1529_v28, %v1526_v30  ;;  %s1478_s29 = smov 48  ;;  %s1483_s30 = smov 192 }
  0x38   :  { %v1407_v18 = vsel %vm1030_vm0, %v1405_v16, %v1402_v15  ;;  %v1410_v19 = vld [vmem:[#allocation1 + $0x8c] ss:$16 sm:%s1409_s20]   ;;  %v1542_v31 = vld [vmem:[#allocation1 + $0x18b] ss:$16 sm:%s1541_s21]   ;;  %s1492_s4 = smov 3  ;;  %s1495_s7 = smov 12 }
  0x39   :  { %v1415_v20 = vld [vmem:[#allocation1 + $0x8c] ss:$16 sm:%s1414_s2]   ;;  %v1412_v21 = vsel %vm1034_vm1, %v1410_v19, %v1407_v18  ;;  %v1547_v32 = vld [vmem:[#allocation1 + $0x18b] ss:$16 sm:%s1546_s22]   ;;  %v1544_v34 = vsel %vm1030_vm0, %v1542_v31, %v1539_v29  ;;  %s1500_s18 = smov 48  ;;  %s1505_s19 = smov 192 }
  0x3a   :  { %v1417_v23 = vsel %vm1038_vm2, %v1415_v20, %v1412_v21  ;;  %v1552_v35 = vld [vmem:[#allocation1 + $0x18b] ss:$16 sm:%s1551_s23]   ;;  %v1549_v37 = vsel %vm1034_vm1, %v1547_v32, %v1544_v34  ;;  %s1606_s26 = smov 3  ;;  %s1609_s27 = smov 12  ;;  %vm2126_vm15 = vcmask 162944  }
  0x3b   :  { %v2848_v26 = vpack.i.bf16 %v1417_v23, %v1395_v17  ;;  %v1471_v36 = vld [vmem:[#allocation1 + $0xb] ss:$16 sm:%s1470_s0]   ;;  %v1554_v40 = vsel %vm1038_vm2, %v1552_v35, %v1549_v37  ;;  %s2972_s5 = smov 44   ;;  %v1607_v52 = vld [vmem:[#allocation1 + $0x10a] ss:$16 sm:%s1606_s26]   ;;  %s1614_s12 = smov 48 }
  0x3c   :  { %v1474_v38 = vld [vmem:[#allocation1 + $0xb] ss:$16 sm:%s1473_s28]   ;;  %v2863_v44 = vpack.i.bf16 %v1554_v40, %v1531_v33  ;;  %v1610_v53 = vld [vmem:[#allocation1 + $0x10a] ss:$16 sm:%s1609_s27]   ;;  %s1619_s13 = smov 192  ;;  %s1629_s16 = smov 3 }
  0x3d   :  { %2849 = vrot.lane.b32.xlu0 %v2848_v26, %s2971_s8  ;;  %v1479_v39 = vld [vmem:[#allocation1 + $0xb] ss:$16 sm:%s1478_s29]   ;;  %v1476_v41 = vsel %vm1030_vm0, %v1474_v38, %v1471_v36  ;;  %v1612_v55 = vsel %vm1030_vm0, %v1610_v53, %v1607_v52  ;;  %v1615_v56 = vld [vmem:[#allocation1 + $0x10a] ss:$16 sm:%s1614_s12]   ;;  %s1632_s17 = smov 12  ;;  %s1637_s24 = smov 48 }
  0x3e   :  { %v1484_v42 = vld [vmem:[#allocation1 + $0xb] ss:$16 sm:%s1483_s30]   ;;  %v1481_v45 = vsel %vm1034_vm1, %v1479_v39, %v1476_v41  ;;  %2864 = vrot.lane.b32.xlu1 %v2863_v44, %s2972_s5  ;;  %v1620_v57 = vld [vmem:[#allocation1 + $0x10a] ss:$16 sm:%s1619_s13]   ;;  %v1617_v59 = vsel %vm1034_vm1, %v1615_v56, %v1612_v55  ;;  %s1642_s25 = smov 192  ;;  %s1561_s6 = smov 3 }
  0x3f   :  { %v1493_v43 = vld [vmem:[#allocation1 + $0x8b] ss:$16 sm:%s1492_s4]   ;;  %v1486_v48 = vsel %vm1038_vm2, %v1484_v42, %v1481_v45  ;;  %v1630_v60 = vld [vmem:[#allocation1 + $0x18a] ss:$16 sm:%s1629_s16]   ;;  %v1622_v62 = vsel %vm1038_vm2, %v1620_v57, %v1617_v59  ;;  %s1564_s15 = smov 12  ;;  %s1569_s20 = smov 48 }
  0x40   :  { %v1496_v46 = vld [vmem:[#allocation1 + $0x8b] ss:$16 sm:%s1495_s7]   ;;  %v1633_v61 = vld [vmem:[#allocation1 + $0x18a] ss:$16 sm:%s1632_s17]   ;;  %s1574_s2 = smov 192  ;;  %s1583_s3 = smov 3 }
  0x41   :  { %v1501_v47 = vld [vmem:[#allocation1 + $0x8b] ss:$16 sm:%s1500_s18]   ;;  %v1498_v49 = vsel %vm1030_vm0, %v1496_v46, %v1493_v43  ;;  %v1635_v63 = vsel %vm1030_vm0, %v1633_v61, %v1630_v60  ;;  %v1638_v0 = vld [vmem:[#allocation1 + $0x18a] ss:$16 sm:%s1637_s24]   ;;  %s1586_s8 = smov 12  ;;  %s1591_s9 = smov 48 }
  0x42   :  { %v1506_v50 = vld [vmem:[#allocation1 + $0x8b] ss:$16 sm:%s1505_s19]   ;;  %v1503_v51 = vsel %vm1034_vm1, %v1501_v47, %v1498_v49  ;;  %v1643_v1 = vld [vmem:[#allocation1 + $0x18a] ss:$16 sm:%s1642_s25]   ;;  %v1640_v2 = vsel %vm1034_vm1, %v1638_v0, %v1635_v63  ;;  %s1596_s10 = smov 192  ;;  %s1697_s11 = smov 3 }
  0x43   :  { %v1508_v54 = vsel %vm1038_vm2, %v1506_v50, %v1503_v51  ;;  %v1562_v3 = vld [vmem:[#allocation1 + $0xa] ss:$16 sm:%s1561_s6]   ;;  %v1645_v5 = vsel %vm1038_vm2, %v1643_v1, %v1640_v2  ;;  %s2973_s14 = smov 40   ;;  %v1698_v18 = vld [vmem:[#allocation1 + $0x109] ss:$16 sm:%s1697_s11]   ;;  %s1700_s21 = smov 12 }
  0x44   :  { %v2858_v58 = vpack.i.bf16 %v1508_v54, %v1486_v48  ;;  %v1565_v4 = vld [vmem:[#allocation1 + $0xa] ss:$16 sm:%s1564_s15]   ;;  %v2873_v9 = vpack.i.bf16 %v1645_v5, %v1622_v62  ;;  %s1705_s22 = smov 48  ;;  %v1701_v20 = vld [vmem:[#allocation1 + $0x109] ss:$16 sm:%s1700_s21]   ;;  %s1710_s23 = smov 192 }
  0x45   :  { %v1567_v6 = vsel %vm1030_vm0, %v1565_v4, %v1562_v3  ;;  %v1570_v7 = vld [vmem:[#allocation1 + $0xa] ss:$16 sm:%s1569_s20]   ;;  %v1706_v21 = vld [vmem:[#allocation1 + $0x109] ss:$16 sm:%s1705_s22]   ;;  %s1720_s0 = smov 3  ;;  %v1703_v23 = vsel %vm1030_vm0, %v1701_v20, %v1698_v18  ;;  %s1723_s28 = smov 12 }
  0x46   :  { %2859 = vrot.lane.b32.xlu0 %v2858_v58, %s2972_s5  ;;  %v1575_v8 = vld [vmem:[#allocation1 + $0xa] ss:$16 sm:%s1574_s2]   ;;  %v1572_v10 = vsel %vm1034_vm1, %v1570_v7, %v1567_v6  ;;  %2874 = vrot.lane.b32.xlu1 %v2873_v9, %s2973_s14  ;;  %v1711_v24 = vld [vmem:[#allocation1 + $0x109] ss:$16 sm:%s1710_s23]   ;;  %s1728_s29 = smov 48  ;;  %v1708_v26 = vsel %vm1034_vm1, %v1706_v21, %v1703_v23  ;;  %s1733_s30 = smov 192 }
  0x47   :  { %v1584_v11 = vld [vmem:[#allocation1 + $0x8a] ss:$16 sm:%s1583_s3]   ;;  %v1577_v13 = vsel %vm1038_vm2, %v1575_v8, %v1572_v10  ;;  %v1721_v25 = vld [vmem:[#allocation1 + $0x189] ss:$16 sm:%s1720_s0]   ;;  %s1652_s4 = smov 3  ;;  %v1713_v29 = vsel %vm1038_vm2, %v1711_v24, %v1708_v26  ;;  %s1655_s7 = smov 12 }
  0x48   :  { %v1587_v12 = vld [vmem:[#allocation1 + $0x8a] ss:$16 sm:%s1586_s8]   ;;  %v1724_v27 = vld [vmem:[#allocation1 + $0x189] ss:$16 sm:%s1723_s28]   ;;  %s1660_s18 = smov 48  ;;  %s1665_s19 = smov 192 }
  0x49   :  { %v1589_v14 = vsel %vm1030_vm0, %v1587_v12, %v1584_v11  ;;  %v1592_v15 = vld [vmem:[#allocation1 + $0x8a] ss:$16 sm:%s1591_s9]   ;;  %v1729_v28 = vld [vmem:[#allocation1 + $0x189] ss:$16 sm:%s1728_s29]   ;;  %v1726_v30 = vsel %vm1030_vm0, %v1724_v27, %v1721_v25  ;;  %s1674_s26 = smov 3  ;;  %s1677_s27 = smov 12 }
  0x4a   :  { %v1597_v16 = vld [vmem:[#allocation1 + $0x8a] ss:$16 sm:%s1596_s10]   ;;  %v1594_v17 = vsel %vm1034_vm1, %v1592_v15, %v1589_v14  ;;  %v1734_v31 = vld [vmem:[#allocation1 + $0x189] ss:$16 sm:%s1733_s30]   ;;  %v1731_v33 = vsel %vm1034_vm1, %v1729_v28, %v1726_v30  ;;  %s1682_s5 = smov 48  ;;  %s1687_s12 = smov 192 }
  0x4b   :  { %v1599_v19 = vsel %vm1038_vm2, %v1597_v16, %v1594_v17  ;;  %v1653_v32 = vld [vmem:[#allocation1 + $0x9] ss:$16 sm:%s1652_s4]   ;;  %v1736_v36 = vsel %vm1038_vm2, %v1734_v31, %v1731_v33  ;;  %s1788_s13 = smov 3  ;;  %s1791_s16 = smov 12 }
  0x4c   :  { %v2868_v22 = vpack.i.bf16 %v1599_v19, %v1577_v13  ;;  %v1656_v34 = vld [vmem:[#allocation1 + $0x9] ss:$16 sm:%s1655_s7]   ;;  %v2883_v40 = vpack.i.bf16 %v1736_v36, %v1713_v29  ;;  %s2974_s17 = smov 36   ;;  %v1789_v48 = vld [vmem:[#allocation1 + $0x108] ss:$16 sm:%s1788_s13]   ;;  %s1796_s24 = smov 48 }
  0x4d   :  { %v1661_v35 = vld [vmem:[#allocation1 + $0x9] ss:$16 sm:%s1660_s18]   ;;  %v1658_v37 = vsel %vm1030_vm0, %v1656_v34, %v1653_v32  ;;  %v1792_v49 = vld [vmem:[#allocation1 + $0x108] ss:$16 sm:%s1791_s16]   ;;  %s1801_s25 = smov 192  ;;  %s1811_s6 = smov 3 }
  0x4e   :  { %2869 = vrot.lane.b32.xlu0 %v2868_v22, %s2973_s14  ;;  %v1666_v38 = vld [vmem:[#allocation1 + $0x9] ss:$16 sm:%s1665_s19]   ;;  %v1663_v41 = vsel %vm1034_vm1, %v1661_v35, %v1658_v37  ;;  %2884 = vrot.lane.b32.xlu1 %v2883_v40, %s2974_s17  ;;  %v1794_v51 = vsel %vm1030_vm0, %v1792_v49, %v1789_v48  ;;  %v1797_v52 = vld [vmem:[#allocation1 + $0x108] ss:$16 sm:%s1796_s24]   ;;  %s1814_s15 = smov 12  ;;  %s1819_s20 = smov 48 }
  0x4f   :  { %v1675_v39 = vld [vmem:[#allocation1 + $0x89] ss:$16 sm:%s1674_s26]   ;;  %v1668_v44 = vsel %vm1038_vm2, %v1666_v38, %v1663_v41  ;;  %v1802_v53 = vld [vmem:[#allocation1 + $0x108] ss:$16 sm:%s1801_s25]   ;;  %v1799_v55 = vsel %vm1034_vm1, %v1797_v52, %v1794_v51  ;;  %s1824_s2 = smov 192  ;;  %s1743_s3 = smov 3 }
  0x50   :  { %v1678_v42 = vld [vmem:[#allocation1 + $0x89] ss:$16 sm:%s1677_s27]   ;;  %v1812_v56 = vld [vmem:[#allocation1 + $0x188] ss:$16 sm:%s1811_s6]   ;;  %v1804_v58 = vsel %vm1038_vm2, %v1802_v53, %v1799_v55  ;;  %s1746_s8 = smov 12  ;;  %s1751_s9 = smov 48 }
  0x51   :  { %v1683_v43 = vld [vmem:[#allocation1 + $0x89] ss:$16 sm:%s1682_s5]   ;;  %v1680_v45 = vsel %vm1030_vm0, %v1678_v42, %v1675_v39  ;;  %v1815_v57 = vld [vmem:[#allocation1 + $0x188] ss:$16 sm:%s1814_s15]   ;;  %s1756_s10 = smov 192  ;;  %s1765_s11 = smov 3 }
  0x52   :  { %v1688_v46 = vld [vmem:[#allocation1 + $0x89] ss:$16 sm:%s1687_s12]   ;;  %v1685_v47 = vsel %vm1034_vm1, %v1683_v43, %v1680_v45  ;;  %v1817_v59 = vsel %vm1030_vm0, %v1815_v57, %v1812_v56  ;;  %v1820_v60 = vld [vmem:[#allocation1 + $0x188] ss:$16 sm:%s1819_s20]   ;;  %s1768_s14 = smov 12  ;;  %s1773_s21 = smov 48 }
  0x53   :  { %v1690_v50 = vsel %vm1038_vm2, %v1688_v46, %v1685_v47  ;;  %v1825_v61 = vld [vmem:[#allocation1 + $0x188] ss:$16 sm:%s1824_s2]   ;;  %v1822_v62 = vsel %vm1034_vm1, %v1820_v60, %v1817_v59  ;;  %s1778_s22 = smov 192  ;;  %s1834_s23 = smov 3 }
  0x54   :  { %v2878_v54 = vpack.i.bf16 %v1690_v50, %v1668_v44  ;;  %v1744_v63 = vld [vmem:[#allocation1 + $0x8] ss:$16 sm:%s1743_s3]   ;;  %v1827_v1 = vsel %vm1038_vm2, %v1825_v61, %v1822_v62  ;;  %s1837_s0 = smov 12  ;;  %s2975_s28 = smov 32   ;;  %v1835_v14 = vld [vmem:[#allocation1 + $0x7] ss:$16 sm:%s1834_s23]  }
  0x55   :  { %v1747_v0 = vld [vmem:[#allocation1 + $0x8] ss:$16 sm:%s1746_s8]   ;;  %v2893_v5 = vpack.i.bf16 %v1827_v1, %v1804_v58  ;;  %v1838_v15 = vld [vmem:[#allocation1 + $0x7] ss:$16 sm:%s1837_s0]   ;;  %s1842_s29 = smov 48  ;;  %s1847_s30 = smov 192 }
  0x56   :  { %2879 = vrot.lane.b32.xlu0 %v2878_v54, %s2974_s17  ;;  %v1749_v2 = vsel %vm1030_vm0, %v1747_v0, %v1744_v63  ;;  %v1752_v3 = vld [vmem:[#allocation1 + $0x8] ss:$16 sm:%s1751_s9]   ;;  %v1840_v17 = vsel %vm1030_vm0, %v1838_v15, %v1835_v14  ;;  %v1843_v18 = vld [vmem:[#allocation1 + $0x7] ss:$16 sm:%s1842_s29]   ;;  %s1856_s4 = smov 3  ;;  %s1859_s7 = smov 12 }
  0x57   :  { %v1757_v4 = vld [vmem:[#allocation1 + $0x8] ss:$16 sm:%s1756_s10]   ;;  %v1754_v6 = vsel %vm1034_vm1, %v1752_v3, %v1749_v2  ;;  %2894 = vrot.lane.b32.xlu1 %v2893_v5, %s2975_s28  ;;  %v1848_v19 = vld [vmem:[#allocation1 + $0x7] ss:$16 sm:%s1847_s30]   ;;  %v1845_v21 = vsel %vm1034_vm1, %v1843_v18, %v1840_v17  ;;  %s1864_s18 = smov 48  ;;  %s1869_s19 = smov 192 }
  0x58   :  { %v1766_v7 = vld [vmem:[#allocation1 + $0x88] ss:$16 sm:%s1765_s11]   ;;  %v1759_v9 = vsel %vm1038_vm2, %v1757_v4, %v1754_v6  ;;  %v1857_v22 = vld [vmem:[#allocation1 + $0x87] ss:$16 sm:%s1856_s4]   ;;  %s1879_s26 = smov 3  ;;  %v1850_v25 = vsel %vm1038_vm2, %v1848_v19, %v1845_v21  ;;  %s1882_s27 = smov 12 }
  0x59   :  { %v1769_v8 = vld [vmem:[#allocation1 + $0x88] ss:$16 sm:%s1768_s14]   ;;  %v1860_v23 = vld [vmem:[#allocation1 + $0x87] ss:$16 sm:%s1859_s7]   ;;  %s1887_s5 = smov 48  ;;  %s1892_s12 = smov 192 }
  0x5a   :  { %v1771_v10 = vsel %vm1030_vm0, %v1769_v8, %v1766_v7  ;;  %v1774_v11 = vld [vmem:[#allocation1 + $0x88] ss:$16 sm:%s1773_s21]   ;;  %v1865_v24 = vld [vmem:[#allocation1 + $0x87] ss:$16 sm:%s1864_s18]   ;;  %v1862_v26 = vsel %vm1030_vm0, %v1860_v23, %v1857_v22  ;;  %s1902_s13 = smov 3  ;;  %s1905_s16 = smov 12 }
  0x5b   :  { %v1779_v12 = vld [vmem:[#allocation1 + $0x88] ss:$16 sm:%s1778_s22]   ;;  %v1776_v13 = vsel %vm1034_vm1, %v1774_v11, %v1771_v10  ;;  %v1870_v27 = vld [vmem:[#allocation1 + $0x87] ss:$16 sm:%s1869_s19]   ;;  %v1867_v29 = vsel %vm1034_vm1, %v1865_v24, %v1862_v26  ;;  %s1910_s17 = smov 48  ;;  %s1915_s24 = smov 192 }
  0x5c   :  { %v1781_v16 = vsel %vm1038_vm2, %v1779_v12, %v1776_v13  ;;  %v1880_v28 = vld [vmem:[#allocation1 + $0x107] ss:$16 sm:%s1879_s26]   ;;  %v1872_v32 = vsel %vm1038_vm2, %v1870_v27, %v1867_v29  ;;  %s1925_s25 = smov 3  ;;  %s1928_s6 = smov 12 }
  0x5d   :  { %v2888_v20 = vpack.i.bf16 %v1781_v16, %v1759_v9  ;;  %v1883_v30 = vld [vmem:[#allocation1 + $0x107] ss:$16 sm:%s1882_s27]   ;;  %v2898_v36 = vpack.i.bf16 %v1872_v32, %v1850_v25  ;;  %v1926_v43 = vld [vmem:[#allocation1 + $0x6] ss:$16 sm:%s1925_s25]   ;;  %s1933_s15 = smov 48  ;;  %s2976_s20 = smov 28  }
  0x5e   :  { %v1888_v31 = vld [vmem:[#allocation1 + $0x107] ss:$16 sm:%s1887_s5]   ;;  %v1885_v33 = vsel %vm1030_vm0, %v1883_v30, %v1880_v28  ;;  %v1929_v45 = vld [vmem:[#allocation1 + $0x6] ss:$16 sm:%s1928_s6]   ;;  %s1938_s2 = smov 192  ;;  %s1947_s3 = smov 3 }
  0x5f   :  { %2889 = vrot.lane.b32.xlu0 %v2888_v20, %s2975_s28  ;;  %v1893_v34 = vld [vmem:[#allocation1 + $0x107] ss:$16 sm:%s1892_s12]   ;;  %v1890_v37 = vsel %vm1034_vm1, %v1888_v31, %v1885_v33  ;;  %v1934_v46 = vld [vmem:[#allocation1 + $0x6] ss:$16 sm:%s1933_s15]   ;;  %v1931_v48 = vsel %vm1030_vm0, %v1929_v45, %v1926_v43  ;;  %s1950_s8 = smov 12  ;;  %s1955_s9 = smov 48 }
  0x60   :  { %v1903_v35 = vld [vmem:[#allocation1 + $0x187] ss:$16 sm:%s1902_s13]   ;;  %v1895_v40 = vsel %vm1038_vm2, %v1893_v34, %v1890_v37  ;;  %v1939_v49 = vld [vmem:[#allocation1 + $0x6] ss:$16 sm:%s1938_s2]   ;;  %v1936_v51 = vsel %vm1034_vm1, %v1934_v46, %v1931_v48  ;;  %s1960_s10 = smov 192  ;;  %s1970_s11 = smov 3 }
  0x61   :  { %v1906_v38 = vld [vmem:[#allocation1 + $0x187] ss:$16 sm:%s1905_s16]   ;;  %v1948_v52 = vld [vmem:[#allocation1 + $0x86] ss:$16 sm:%s1947_s3]   ;;  %v1941_v54 = vsel %vm1038_vm2, %v1939_v49, %v1936_v51  ;;  %s1973_s14 = smov 12  ;;  %s1978_s21 = smov 48 }
  0x62   :  { %v1911_v39 = vld [vmem:[#allocation1 + $0x187] ss:$16 sm:%s1910_s17]   ;;  %v1908_v41 = vsel %vm1030_vm0, %v1906_v38, %v1903_v35  ;;  %v1951_v53 = vld [vmem:[#allocation1 + $0x86] ss:$16 sm:%s1950_s8]   ;;  %s1983_s22 = smov 192  ;;  %s1993_s23 = smov 3 }
  0x63   :  { %v1916_v42 = vld [vmem:[#allocation1 + $0x187] ss:$16 sm:%s1915_s24]   ;;  %2899 = vrot.lane.b32.xlu0 %v2898_v36, %s2976_s20  ;;  %v1913_v44 = vsel %vm1034_vm1, %v1911_v39, %v1908_v41  ;;  %v1953_v55 = vsel %vm1030_vm0, %v1951_v53, %v1948_v52  ;;  %v1956_v56 = vld [vmem:[#allocation1 + $0x86] ss:$16 sm:%s1955_s9]   ;;  %s1996_s0 = smov 12  ;;  %s2001_s28 = smov 48 }
  0x64   :  { %v1918_v47 = vsel %vm1038_vm2, %v1916_v42, %v1913_v44  ;;  %v1961_v57 = vld [vmem:[#allocation1 + $0x86] ss:$16 sm:%s1960_s10]   ;;  %v1958_v58 = vsel %vm1034_vm1, %v1956_v56, %v1953_v55  ;;  %s2006_s29 = smov 192  ;;  %s2016_s30 = smov 3 }
  0x65   :  { %v2903_v50 = vpack.i.bf16 %v1918_v47, %v1895_v40  ;;  %v1971_v59 = vld [vmem:[#allocation1 + $0x106] ss:$16 sm:%s1970_s11]   ;;  %v1963_v61 = vsel %vm1038_vm2, %v1961_v57, %v1958_v58  ;;  %s2019_s4 = smov 12  ;;  %s2977_s7 = smov 24   ;;  %v2017_v10 = vld [vmem:[#allocation1 + $0x5] ss:$16 sm:%s2016_s30]  }
  0x66   :  { %v1974_v60 = vld [vmem:[#allocation1 + $0x106] ss:$16 sm:%s1973_s14]   ;;  %v2908_v1 = vpack.i.bf16 %v1963_v61, %v1941_v54  ;;  %v2020_v11 = vld [vmem:[#allocation1 + $0x5] ss:$16 sm:%s2019_s4]   ;;  %s2024_s18 = smov 48  ;;  %s2029_s19 = smov 192 }
  0x67   :  { %2904 = vrot.lane.b32.xlu1 %v2903_v50, %s2976_s20  ;;  %v1976_v62 = vsel %vm1030_vm0, %v1974_v60, %v1971_v59  ;;  %v1979_v63 = vld [vmem:[#allocation1 + $0x106] ss:$16 sm:%s1978_s21]   ;;  %v2022_v13 = vsel %vm1030_vm0, %v2020_v11, %v2017_v10  ;;  %v2025_v14 = vld [vmem:[#allocation1 + $0x5] ss:$16 sm:%s2024_s18]   ;;  %s2038_s26 = smov 3  ;;  %s2041_s27 = smov 12 }
  0x68   :  { %v1984_v0 = vld [vmem:[#allocation1 + $0x106] ss:$16 sm:%s1983_s22]   ;;  %v1981_v2 = vsel %vm1034_vm1, %v1979_v63, %v1976_v62  ;;  %2909 = vrot.lane.b32.xlu0 %v2908_v1, %s2977_s7  ;;  %v2030_v15 = vld [vmem:[#allocation1 + $0x5] ss:$16 sm:%s2029_s19]   ;;  %v2027_v17 = vsel %vm1034_vm1, %v2025_v14, %v2022_v13  ;;  %s2046_s5 = smov 48  ;;  %s2051_s12 = smov 192 }
  0x69   :  { %v1994_v3 = vld [vmem:[#allocation1 + $0x186] ss:$16 sm:%s1993_s23]   ;;  %v1986_v5 = vsel %vm1038_vm2, %v1984_v0, %v1981_v2  ;;  %v2039_v18 = vld [vmem:[#allocation1 + $0x85] ss:$16 sm:%s2038_s26]   ;;  %s2061_s13 = smov 3  ;;  %v2032_v21 = vsel %vm1038_vm2, %v2030_v15, %v2027_v17  ;;  %s2064_s16 = smov 12 }
  0x6a   :  { %v1997_v4 = vld [vmem:[#allocation1 + $0x186] ss:$16 sm:%s1996_s0]   ;;  %v2042_v19 = vld [vmem:[#allocation1 + $0x85] ss:$16 sm:%s2041_s27]   ;;  %s2069_s17 = smov 48  ;;  %s2074_s24 = smov 192 }
  0x6b   :  { %v1999_v6 = vsel %vm1030_vm0, %v1997_v4, %v1994_v3  ;;  %v2002_v7 = vld [vmem:[#allocation1 + $0x186] ss:$16 sm:%s2001_s28]   ;;  %v2047_v20 = vld [vmem:[#allocation1 + $0x85] ss:$16 sm:%s2046_s5]   ;;  %v2044_v22 = vsel %vm1030_vm0, %v2042_v19, %v2039_v18  ;;  %s2084_s25 = smov 3  ;;  %s2087_s6 = smov 12 }
  0x6c   :  { %v2007_v8 = vld [vmem:[#allocation1 + $0x186] ss:$16 sm:%s2006_s29]   ;;  %v2004_v9 = vsel %vm1034_vm1, %v2002_v7, %v1999_v6  ;;  %v2052_v23 = vld [vmem:[#allocation1 + $0x85] ss:$16 sm:%s2051_s12]   ;;  %v2049_v25 = vsel %vm1034_vm1, %v2047_v20, %v2044_v22  ;;  %s2092_s15 = smov 48  ;;  %s2097_s20 = smov 192 }
  0x6d   :  { %v2009_v12 = vsel %vm1038_vm2, %v2007_v8, %v2004_v9  ;;  %v2062_v24 = vld [vmem:[#allocation1 + $0x105] ss:$16 sm:%s2061_s13]   ;;  %v2054_v28 = vsel %vm1038_vm2, %v2052_v23, %v2049_v25  ;;  %s2107_s2 = smov 3  ;;  %s2110_s3 = smov 12 }
  0x6e   :  { %v2913_v16 = vpack.i.bf16 %v2009_v12, %v1986_v5  ;;  %v2065_v26 = vld [vmem:[#allocation1 + $0x105] ss:$16 sm:%s2064_s16]   ;;  %v2918_v32 = vpack.i.bf16 %v2054_v28, %v2032_v21  ;;  %v2108_v39 = vld [vmem:[#allocation1 + $0x4] ss:$16 sm:%s2107_s2]   ;;  %s2115_s8 = smov 48  ;;  %s2978_s9 = smov 20  }
  0x6f   :  { %v2070_v27 = vld [vmem:[#allocation1 + $0x105] ss:$16 sm:%s2069_s17]   ;;  %v2067_v29 = vsel %vm1030_vm0, %v2065_v26, %v2062_v24  ;;  %v2111_v41 = vld [vmem:[#allocation1 + $0x4] ss:$16 sm:%s2110_s3]   ;;  %s2120_s10 = smov 192  ;;  %s2129_s11 = smov 3 }
  0x70   :  { %2914 = vrot.lane.b32.xlu1 %v2913_v16, %s2977_s7  ;;  %v2075_v30 = vld [vmem:[#allocation1 + $0x105] ss:$16 sm:%s2074_s24]   ;;  %v2072_v33 = vsel %vm1034_vm1, %v2070_v27, %v2067_v29  ;;  %2919 = vrot.lane.b32.xlu0 %v2918_v32, %s2978_s9  ;;  %v2116_v42 = vld [vmem:[#allocation1 + $0x4] ss:$16 sm:%s2115_s8]   ;;  %v2113_v44 = vsel %vm1030_vm0, %v2111_v41, %v2108_v39  ;;  %s2132_s14 = smov 12  ;;  %s2137_s21 = smov 48 }
  0x71   :  { %v2085_v31 = vld [vmem:[#allocation1 + $0x185] ss:$16 sm:%s2084_s25]   ;;  %v2077_v36 = vsel %vm1038_vm2, %v2075_v30, %v2072_v33  ;;  %v2121_v45 = vld [vmem:[#allocation1 + $0x4] ss:$16 sm:%s2120_s10]   ;;  %v2118_v47 = vsel %vm1034_vm1, %v2116_v42, %v2113_v44  ;;  %s2142_s22 = smov 192  ;;  %s2152_s23 = smov 3 }
  0x72   :  { %v2088_v34 = vld [vmem:[#allocation1 + $0x185] ss:$16 sm:%s2087_s6]   ;;  %v2130_v48 = vld [vmem:[#allocation1 + $0x84] ss:$16 sm:%s2129_s11]   ;;  %v2123_v50 = vsel %vm1038_vm2, %v2121_v45, %v2118_v47  ;;  %s2155_s0 = smov 12  ;;  %s2160_s28 = smov 48 }
  0x73   :  { %v2093_v35 = vld [vmem:[#allocation1 + $0x185] ss:$16 sm:%s2092_s15]   ;;  %v2090_v37 = vsel %vm1030_vm0, %v2088_v34, %v2085_v31  ;;  %v2133_v49 = vld [vmem:[#allocation1 + $0x84] ss:$16 sm:%s2132_s14]   ;;  %s2165_s29 = smov 192  ;;  %s2175_s30 = smov 3 }
  0x74   :  { %v2098_v38 = vld [vmem:[#allocation1 + $0x185] ss:$16 sm:%s2097_s20]   ;;  %v2095_v40 = vsel %vm1034_vm1, %v2093_v35, %v2090_v37  ;;  %v2135_v51 = vsel %vm1030_vm0, %v2133_v49, %v2130_v48  ;;  %v2138_v52 = vld [vmem:[#allocation1 + $0x84] ss:$16 sm:%s2137_s21]   ;;  %s2178_s4 = smov 12  ;;  %s2183_s7 = smov 48 }
  0x75   :  { %v2100_v43 = vsel %vm1038_vm2, %v2098_v38, %v2095_v40  ;;  %v2143_v53 = vld [vmem:[#allocation1 + $0x84] ss:$16 sm:%s2142_s22]   ;;  %v2140_v54 = vsel %vm1034_vm1, %v2138_v52, %v2135_v51  ;;  %s2188_s18 = smov 192  ;;  %s2198_s19 = smov 3 }
  0x76   :  { %v2923_v46 = vpack.i.bf16 %v2100_v43, %v2077_v36  ;;  %v2153_v55 = vld [vmem:[#allocation1 + $0x104] ss:$16 sm:%s2152_s23]   ;;  %v2145_v57 = vsel %vm1038_vm2, %v2143_v53, %v2140_v54  ;;  %s2201_s26 = smov 12  ;;  %s2979_s27 = smov 16   ;;  %v2199_v6 = vld [vmem:[#allocation1 + $0x3] ss:$16 sm:%s2198_s19]  }
  0x77   :  { %v2156_v56 = vld [vmem:[#allocation1 + $0x104] ss:$16 sm:%s2155_s0]   ;;  %v2928_v61 = vpack.i.bf16 %v2145_v57, %v2123_v50  ;;  %v2202_v7 = vld [vmem:[#allocation1 + $0x3] ss:$16 sm:%s2201_s26]   ;;  %s2206_s5 = smov 48  ;;  %s2211_s12 = smov 192 }
  0x78   :  { %2924 = vrot.lane.b32.xlu1 %v2923_v46, %s2978_s9  ;;  %v2158_v58 = vsel %vm1030_vm0, %v2156_v56, %v2153_v55  ;;  %v2161_v59 = vld [vmem:[#allocation1 + $0x104] ss:$16 sm:%s2160_s28]   ;;  %v2204_v9 = vsel %vm1030_vm0, %v2202_v7, %v2199_v6  ;;  %v2207_v10 = vld [vmem:[#allocation1 + $0x3] ss:$16 sm:%s2206_s5]   ;;  %s2220_s13 = smov 3  ;;  %s2223_s16 = smov 12 }
  0x79   :  { %v2166_v60 = vld [vmem:[#allocation1 + $0x104] ss:$16 sm:%s2165_s29]   ;;  %v2163_v62 = vsel %vm1034_vm1, %v2161_v59, %v2158_v58  ;;  %2929 = vrot.lane.b32.xlu0 %v2928_v61, %s2979_s27  ;;  %v2212_v11 = vld [vmem:[#allocation1 + $0x3] ss:$16 sm:%s2211_s12]   ;;  %v2209_v13 = vsel %vm1034_vm1, %v2207_v10, %v2204_v9  ;;  %s2228_s17 = smov 48  ;;  %s2233_s24 = smov 192 }
  0x7a   :  { %v2176_v63 = vld [vmem:[#allocation1 + $0x184] ss:$16 sm:%s2175_s30]   ;;  %v2168_v1 = vsel %vm1038_vm2, %v2166_v60, %v2163_v62  ;;  %v2221_v14 = vld [vmem:[#allocation1 + $0x83] ss:$16 sm:%s2220_s13]   ;;  %s2243_s25 = smov 3  ;;  %v2214_v17 = vsel %vm1038_vm2, %v2212_v11, %v2209_v13  ;;  %s2246_s6 = smov 12 }
  0x7b   :  { %v2179_v0 = vld [vmem:[#allocation1 + $0x184] ss:$16 sm:%s2178_s4]   ;;  %v2224_v15 = vld [vmem:[#allocation1 + $0x83] ss:$16 sm:%s2223_s16]   ;;  %s2251_s15 = smov 48  ;;  %s2256_s20 = smov 192 }
  0x7c   :  { %v2181_v2 = vsel %vm1030_vm0, %v2179_v0, %v2176_v63  ;;  %v2184_v3 = vld [vmem:[#allocation1 + $0x184] ss:$16 sm:%s2183_s7]   ;;  %v2229_v16 = vld [vmem:[#allocation1 + $0x83] ss:$16 sm:%s2228_s17]   ;;  %v2226_v18 = vsel %vm1030_vm0, %v2224_v15, %v2221_v14  ;;  %s2266_s2 = smov 3  ;;  %s2269_s3 = smov 12 }
  0x7d   :  { %v2189_v4 = vld [vmem:[#allocation1 + $0x184] ss:$16 sm:%s2188_s18]   ;;  %v2186_v5 = vsel %vm1034_vm1, %v2184_v3, %v2181_v2  ;;  %v2234_v19 = vld [vmem:[#allocation1 + $0x83] ss:$16 sm:%s2233_s24]   ;;  %v2231_v21 = vsel %vm1034_vm1, %v2229_v16, %v2226_v18  ;;  %s2274_s8 = smov 48  ;;  %s2279_s9 = smov 192 }
  0x7e   :  { %v2191_v8 = vsel %vm1038_vm2, %v2189_v4, %v2186_v5  ;;  %v2244_v20 = vld [vmem:[#allocation1 + $0x103] ss:$16 sm:%s2243_s25]   ;;  %v2236_v24 = vsel %vm1038_vm2, %v2234_v19, %v2231_v21  ;;  %s2289_s10 = smov 3  ;;  %s2292_s11 = smov 12 }
  0x7f   :  { %v2933_v12 = vpack.i.bf16 %v2191_v8, %v2168_v1  ;;  %v2247_v22 = vld [vmem:[#allocation1 + $0x103] ss:$16 sm:%s2246_s6]   ;;  %v2938_v28 = vpack.i.bf16 %v2236_v24, %v2214_v17  ;;  %v2290_v35 = vld [vmem:[#allocation1 + $0x2] ss:$16 sm:%s2289_s10]   ;;  %s2297_s14 = smov 48  ;;  %s2980_s21 = smov 12  }
  0x80   :  { %v2252_v23 = vld [vmem:[#allocation1 + $0x103] ss:$16 sm:%s2251_s15]   ;;  %v2249_v25 = vsel %vm1030_vm0, %v2247_v22, %v2244_v20  ;;  %v2293_v37 = vld [vmem:[#allocation1 + $0x2] ss:$16 sm:%s2292_s11]   ;;  %s2302_s22 = smov 192  ;;  %s2311_s23 = smov 3 }
  0x81   :  { %2934 = vrot.lane.b32.xlu1 %v2933_v12, %s2979_s27  ;;  %v2257_v26 = vld [vmem:[#allocation1 + $0x103] ss:$16 sm:%s2256_s20]   ;;  %v2254_v29 = vsel %vm1034_vm1, %v2252_v23, %v2249_v25  ;;  %2939 = vrot.lane.b32.xlu0 %v2938_v28, %s2980_s21  ;;  %v2298_v38 = vld [vmem:[#allocation1 + $0x2] ss:$16 sm:%s2297_s14]   ;;  %v2295_v40 = vsel %vm1030_vm0, %v2293_v37, %v2290_v35  ;;  %s2314_s0 = smov 12  ;;  %s2319_s28 = smov 48 }
  0x82   :  { %v2267_v27 = vld [vmem:[#allocation1 + $0x183] ss:$16 sm:%s2266_s2]   ;;  %v2259_v32 = vsel %vm1038_vm2, %v2257_v26, %v2254_v29  ;;  %v2303_v41 = vld [vmem:[#allocation1 + $0x2] ss:$16 sm:%s2302_s22]   ;;  %v2300_v43 = vsel %vm1034_vm1, %v2298_v38, %v2295_v40  ;;  %s2324_s29 = smov 192  ;;  %s2334_s30 = smov 3 }
  0x83   :  { %v2270_v30 = vld [vmem:[#allocation1 + $0x183] ss:$16 sm:%s2269_s3]   ;;  %v2312_v44 = vld [vmem:[#allocation1 + $0x82] ss:$16 sm:%s2311_s23]   ;;  %v2305_v46 = vsel %vm1038_vm2, %v2303_v41, %v2300_v43  ;;  %s2337_s4 = smov 12  ;;  %s2342_s7 = smov 48 }
  0x84   :  { %v2275_v31 = vld [vmem:[#allocation1 + $0x183] ss:$16 sm:%s2274_s8]   ;;  %v2272_v33 = vsel %vm1030_vm0, %v2270_v30, %v2267_v27  ;;  %v2315_v45 = vld [vmem:[#allocation1 + $0x82] ss:$16 sm:%s2314_s0]   ;;  %s2347_s18 = smov 192  ;;  %s2357_s19 = smov 3 }
  0x85   :  { %v2280_v34 = vld [vmem:[#allocation1 + $0x183] ss:$16 sm:%s2279_s9]   ;;  %v2277_v36 = vsel %vm1034_vm1, %v2275_v31, %v2272_v33  ;;  %v2317_v47 = vsel %vm1030_vm0, %v2315_v45, %v2312_v44  ;;  %v2320_v48 = vld [vmem:[#allocation1 + $0x82] ss:$16 sm:%s2319_s28]   ;;  %s2360_s26 = smov 12  ;;  %s2365_s27 = smov 48 }
  0x86   :  { %v2282_v39 = vsel %vm1038_vm2, %v2280_v34, %v2277_v36  ;;  %v2325_v49 = vld [vmem:[#allocation1 + $0x82] ss:$16 sm:%s2324_s29]   ;;  %v2322_v50 = vsel %vm1034_vm1, %v2320_v48, %v2317_v47  ;;  %s2370_s5 = smov 192  ;;  %s2380_s12 = smov 3 }
  0x87   :  { %v2943_v42 = vpack.i.bf16 %v2282_v39, %v2259_v32  ;;  %v2335_v51 = vld [vmem:[#allocation1 + $0x102] ss:$16 sm:%s2334_s30]   ;;  %v2327_v53 = vsel %vm1038_vm2, %v2325_v49, %v2322_v50  ;;  %s2383_s13 = smov 12  ;;  %s2981_s16 = smov 8   ;;  %v2381_v2 = vld [vmem:[#allocation1 + $0x1] ss:$16 sm:%s2380_s12]  }
  0x88   :  { %v2338_v52 = vld [vmem:[#allocation1 + $0x102] ss:$16 sm:%s2337_s4]   ;;  %v2948_v57 = vpack.i.bf16 %v2327_v53, %v2305_v46  ;;  %v2384_v3 = vld [vmem:[#allocation1 + $0x1] ss:$16 sm:%s2383_s13]   ;;  %s2388_s17 = smov 48  ;;  %s2393_s24 = smov 192 }
  0x89   :  { %2944 = vrot.lane.b32.xlu1 %v2943_v42, %s2980_s21  ;;  %v2340_v54 = vsel %vm1030_vm0, %v2338_v52, %v2335_v51  ;;  %v2343_v55 = vld [vmem:[#allocation1 + $0x102] ss:$16 sm:%s2342_s7]   ;;  %v2386_v5 = vsel %vm1030_vm0, %v2384_v3, %v2381_v2  ;;  %v2389_v6 = vld [vmem:[#allocation1 + $0x1] ss:$16 sm:%s2388_s17]   ;;  %s2402_s25 = smov 3  ;;  %s2405_s6 = smov 12 }
  0x8a   :  { %v2348_v56 = vld [vmem:[#allocation1 + $0x102] ss:$16 sm:%s2347_s18]   ;;  %v2345_v58 = vsel %vm1034_vm1, %v2343_v55, %v2340_v54  ;;  %2949 = vrot.lane.b32.xlu0 %v2948_v57, %s2981_s16  ;;  %v2394_v7 = vld [vmem:[#allocation1 + $0x1] ss:$16 sm:%s2393_s24]   ;;  %v2391_v9 = vsel %vm1034_vm1, %v2389_v6, %v2386_v5  ;;  %s2410_s15 = smov 48  ;;  %s2415_s20 = smov 192 }
  0x8b   :  { %v2358_v59 = vld [vmem:[#allocation1 + $0x182] ss:$16 sm:%s2357_s19]   ;;  %v2350_v61 = vsel %vm1038_vm2, %v2348_v56, %v2345_v58  ;;  %v2403_v10 = vld [vmem:[#allocation1 + $0x81] ss:$16 sm:%s2402_s25]   ;;  %s2425_s2 = smov 3  ;;  %v2396_v13 = vsel %vm1038_vm2, %v2394_v7, %v2391_v9  ;;  %s2428_s3 = smov 12 }
  0x8c   :  { %v2361_v60 = vld [vmem:[#allocation1 + $0x182] ss:$16 sm:%s2360_s26]   ;;  %v2406_v11 = vld [vmem:[#allocation1 + $0x81] ss:$16 sm:%s2405_s6]   ;;  %s2433_s8 = smov 48  ;;  %s2438_s9 = smov 192 }
  0x8d   :  { %v2363_v62 = vsel %vm1030_vm0, %v2361_v60, %v2358_v59  ;;  %v2366_v63 = vld [vmem:[#allocation1 + $0x182] ss:$16 sm:%s2365_s27]   ;;  %v2411_v12 = vld [vmem:[#allocation1 + $0x81] ss:$16 sm:%s2410_s15]   ;;  %v2408_v14 = vsel %vm1030_vm0, %v2406_v11, %v2403_v10  ;;  %s2448_s10 = smov 3  ;;  %s2451_s11 = smov 12 }
  0x8e   :  { %v2371_v0 = vld [vmem:[#allocation1 + $0x182] ss:$16 sm:%s2370_s5]   ;;  %v2368_v1 = vsel %vm1034_vm1, %v2366_v63, %v2363_v62  ;;  %v2416_v15 = vld [vmem:[#allocation1 + $0x81] ss:$16 sm:%s2415_s20]   ;;  %v2413_v17 = vsel %vm1034_vm1, %v2411_v12, %v2408_v14  ;;  %s2456_s14 = smov 48  ;;  %s2461_s21 = smov 192 }
  0x8f   :  { %v2373_v4 = vsel %vm1038_vm2, %v2371_v0, %v2368_v1  ;;  %v2426_v16 = vld [vmem:[#allocation1 + $0x101] ss:$16 sm:%s2425_s2]   ;;  %v2418_v20 = vsel %vm1038_vm2, %v2416_v15, %v2413_v17  ;;  %v3430_v24 = vpop.permute.xlu1 %2829  ;;  %s1026_s22 = smov 3  ;;  %v2820_v29 = vpop.permute.xlu0 %2819  ;;  %s1028_s23 = smov 12 }
  0x90   :  { %v2953_v8 = vpack.i.bf16 %v2373_v4, %v2350_v61  ;;  %v2429_v18 = vld [vmem:[#allocation1 + $0x101] ss:$16 sm:%s2428_s3]   ;;  %v2958_v25 = vpack.i.bf16 %v2418_v20, %v2396_v13  ;;  %v1027_v33 = vld [vmem:[#allocation1] ss:$16 sm:%s1026_s22]   ;;  %s1032_s0 = smov 48  ;;  %s2982_s28 = smov 4   ;;  %v2821_v40 = vunpack.i.l.bf16 %v2820_v29  ;;  %v2831_v43 = vunpack.i.l.bf16 %v3430_v24 }
  0x91   :  { %v2434_v19 = vld [vmem:[#allocation1 + $0x101] ss:$16 sm:%s2433_s8]   ;;  %v2431_v21 = vsel %vm1030_vm0, %v2429_v18, %v2426_v16  ;;  %v1029_v35 = vld [vmem:[#allocation1] ss:$16 sm:%s1028_s23]   ;;  %s1036_s29 = smov 192  ;;  %s1043_s30 = smov 3  ;;  %v2822_v48 = vunpack.i.h.bf16 %v2820_v29  ;;  %v2832_v53 = vunpack.i.h.bf16 %v3430_v24 }
  0x92   :  { %2954 = vrot.lane.b32.xlu1 %v2953_v8, %s2981_s16  ;;  %v2439_v22 = vld [vmem:[#allocation1 + $0x101] ss:$16 sm:%s2438_s9]   ;;  %v2436_v26 = vsel %vm1034_vm1, %v2434_v19, %v2431_v21  ;;  %2959 = vrot.lane.b32.xlu0 %v2958_v25, %s2982_s28  ;;  %v1033_v36 = vld [vmem:[#allocation1] ss:$16 sm:%s1032_s0]   ;;  %v1031_v38 = vsel %vm1030_vm0, %v1029_v35, %v1027_v33  ;;  %s1046_s4 = smov 12  ;;  %s1051_s7 = smov 48 }
  0x93   :  { %v2449_v23 = vld [vmem:[#allocation1 + $0x181] ss:$16 sm:%s2448_s10]   ;;  %v2441_v30 = vsel %vm1038_vm2, %v2439_v22, %v2436_v26  ;;  %v1037_v39 = vld [vmem:[#allocation1] ss:$16 sm:%s1036_s29]   ;;  %v1035_v44 = vsel %vm1034_vm1, %v1033_v36, %v1031_v38  ;;  %s1056_s18 = smov 192  ;;  %s1064_s19 = smov 3 }
  0x94   :  { %v2452_v27 = vld [vmem:[#allocation1 + $0x181] ss:$16 sm:%s2451_s11]   ;;  %v1044_v41 = vld [vmem:[#allocation1 + $0x80] ss:$16 sm:%s1043_s30]   ;;  %v1039_v47 = vsel %vm1038_vm2, %v1037_v39, %v1035_v44  ;;  %s1067_s26 = smov 12  ;;  %s1072_s27 = smov 48 }
  0x95   :  { %v2457_v28 = vld [vmem:[#allocation1 + $0x181] ss:$16 sm:%s2456_s14]   ;;  %v2454_v31 = vsel %vm1030_vm0, %v2452_v27, %v2449_v23  ;;  %v1047_v45 = vld [vmem:[#allocation1 + $0x80] ss:$16 sm:%s1046_s4]   ;;  %1041 = vst.msk [vmem:[#allocation0] sm:$0xff] %vm1040_vm3, %v1039_v47   ;;  %s1077_s5 = smov 192 }
  0x96   :  { %v2462_v32 = vld [vmem:[#allocation1 + $0x181] ss:$16 sm:%s2461_s21]   ;;  %v2459_v34 = vsel %vm1034_vm1, %v2457_v28, %v2454_v31  ;;  %v1052_v46 = vld [vmem:[#allocation1 + $0x80] ss:$16 sm:%s1051_s7]   ;;  %v1049_v49 = vsel %vm1030_vm0, %v1047_v45, %v1044_v41  ;;  %s1085_s12 = smov 3  ;;  %1126 = vst.msk [vmem:[#allocation0] sm:$0xff] %vm1125_vm4, %v2821_v40  }
  0x97   :  { %v2464_v37 = vsel %vm1038_vm2, %v2462_v32, %v2459_v34  ;;  %v1057_v50 = vld [vmem:[#allocation1 + $0x80] ss:$16 sm:%s1056_s18]   ;;  %v1054_v54 = vsel %vm1034_vm1, %v1052_v46, %v1049_v49  ;;  %s1088_s13 = smov 12  ;;  %s1093_s16 = smov 48  ;;  %1217 = vst.msk [vmem:[#allocation0] sm:$0xff] %vm1216_vm5, %v2831_v43  }
  0x98   :  { %v2963_v42 = vpack.i.bf16 %v2464_v37, %v2441_v30  ;;  %v1065_v52 = vld [vmem:[#allocation1 + $0x100] ss:$16 sm:%s1064_s19]   ;;  %v1059_v57 = vsel %vm1038_vm2, %v1057_v50, %v1054_v54  ;;  %s1098_s17 = smov 192 }
  0x99   :  { %v1068_v55 = vld [vmem:[#allocation1 + $0x100] ss:$16 sm:%s1067_s26]   ;;  %1062 = vst.msk [vmem:[#allocation0 + $0x8] sm:$0xff] %vm1040_vm3, %v1059_v57  }
  0x9a   :  { %2964 = vrot.lane.b32.xlu1 %v2963_v42, %s2982_s28  ;;  %v1073_v56 = vld [vmem:[#allocation1 + $0x100] ss:$16 sm:%s1072_s27]   ;;  %v1070_v58 = vsel %vm1030_vm0, %v1068_v55, %v1065_v52  ;;  %1149 = vst.msk [vmem:[#allocation0 + $0x8] sm:$0xff] %vm1125_vm4, %v2822_v48  }
  0x9b   :  { %v2835_v51 = vpop.permute.xlu1 %2834  ;;  %v1078_v59 = vld [vmem:[#allocation1 + $0x100] ss:$16 sm:%s1077_s5]   ;;  %v1075_v61 = vsel %vm1034_vm1, %v1073_v56, %v1070_v58  ;;  %1240 = vst.msk [vmem:[#allocation0 + $0x8] sm:$0xff] %vm1216_vm5, %v2832_v53  }
  0x9c   :  { %v1086_v60 = vld [vmem:[#allocation1 + $0x180] ss:$16 sm:%s1085_s12]   ;;  %v2836_v0 = vunpack.i.l.bf16 %v2835_v51  ;;  %v1080_v1 = vsel %vm1038_vm2, %v1078_v59, %v1075_v61  ;;  %v2825_v2 = vpop.permute.xlu0 %2824  ;;  %v2837_v5 = vunpack.i.h.bf16 %v2835_v51 }
  0x9d   :  { %v1089_v62 = vld [vmem:[#allocation1 + $0x180] ss:$16 sm:%s1088_s13]   ;;  %1083 = vst.msk [vmem:[#allocation0 + $0x10] sm:$0xff] %vm1040_vm3, %v1080_v1   ;;  %v2827_v6 = vunpack.i.h.bf16 %v2825_v2  ;;  %v2826_v7 = vunpack.i.l.bf16 %v2825_v2 }
  0x9e   :  { %v1094_v63 = vld [vmem:[#allocation1 + $0x180] ss:$16 sm:%s1093_s16]   ;;  %v1091_v3 = vsel %vm1030_vm0, %v1089_v62, %v1086_v60  ;;  %vm2217_vm0 = vcmask 130144  }
  0x9f   :  { %v1099_v4 = vld [vmem:[#allocation1 + $0x180] ss:$16 sm:%s1098_s17]   ;;  %v1096_v8 = vsel %vm1034_vm1, %v1094_v63, %v1091_v3  ;;  %1172 = vst.msk [vmem:[#allocation0 + $0x10] sm:$0xff] %vm1125_vm4, %v2826_v7   ;;  %vm2308_vm1 = vcmask 97344  }
  0xa0   :  { %v1101_v9 = vsel %vm1038_vm2, %v1099_v4, %v1096_v8  ;;  %1263 = vst.msk [vmem:[#allocation0 + $0x10] sm:$0xff] %vm1216_vm5, %v2836_v0   ;;  %vm2399_vm2 = vcmask 64544  }
  0xa1   :  { %1104 = vst.msk [vmem:[#allocation0 + $0x18] sm:$0xff] %vm1040_vm3, %v1101_v9  }
  0xa2   :  { %1195 = vst.msk [vmem:[#allocation0 + $0x18] sm:$0xff] %vm1125_vm4, %v2827_v6   ;;  %v2845_v10 = vpop.permute.xlu1 %2844 }
  0xa3   :  { %1286 = vst.msk [vmem:[#allocation0 + $0x18] sm:$0xff] %vm1216_vm5, %v2837_v5   ;;  %v2847_v11 = vunpack.i.h.bf16 %v2845_v10  ;;  %v2846_v12 = vunpack.i.l.bf16 %v2845_v10 }
  0xa5   :  { %1354 = vst.msk [vmem:[#allocation0 + $0x10] sm:$0xff] %vm1307_vm6, %v2846_v12   ;;  %1377 = vst.msk [vmem:[#allocation0 + $0x18] sm:$0xff] %vm1307_vm6, %v2847_v11  }
  0xa7   :  { %v2855_v16 = vpop.permute.xlu1 %2854 }
  0xa8   :  { %v2840_v13 = vpop.permute.xlu0 %2839  ;;  %v2857_v17 = vunpack.i.h.bf16 %v2855_v16  ;;  %v2856_v18 = vunpack.i.l.bf16 %v2855_v16 }
  0xa9   :  { %v2842_v14 = vunpack.i.h.bf16 %v2840_v13  ;;  %v2841_v15 = vunpack.i.l.bf16 %v2840_v13 }
  0xaa   :  { %1445 = vst.msk [vmem:[#allocation0 + $0x10] sm:$0xff] %vm1398_vm7, %v2856_v18   ;;  %1468 = vst.msk [vmem:[#allocation0 + $0x18] sm:$0xff] %vm1398_vm7, %v2857_v17  }
  0xab   :  { %1331 = vst.msk [vmem:[#allocation0 + $0x8] sm:$0xff] %vm1307_vm6, %v2842_v14   ;;  %1308 = vst.msk [vmem:[#allocation0] sm:$0xff] %vm1307_vm6, %v2841_v15  }
  0xaf   :  { %v2850_v19 = vpop.permute.xlu0 %2849 }
  0xb0   :  { %v2852_v20 = vunpack.i.h.bf16 %v2850_v19  ;;  %v2851_v21 = vunpack.i.l.bf16 %v2850_v19  ;;  %v2865_v22 = vpop.permute.xlu1 %2864 }
  0xb1   :  { %v2867_v23 = vunpack.i.h.bf16 %v2865_v22  ;;  %v2866_v24 = vunpack.i.l.bf16 %v2865_v22 }
  0xb2   :  { %1399 = vst.msk [vmem:[#allocation0] sm:$0xff] %vm1398_vm7, %v2851_v21   ;;  %1422 = vst.msk [vmem:[#allocation0 + $0x8] sm:$0xff] %vm1398_vm7, %v2852_v20  }
  0xb3   :  { %1536 = vst.msk [vmem:[#allocation0 + $0x10] sm:$0xff] %vm1489_vm8, %v2866_v24   ;;  %1559 = vst.msk [vmem:[#allocation0 + $0x18] sm:$0xff] %vm1489_vm8, %v2867_v23  }
  0xb8   :  { %v2860_v25 = vpop.permute.xlu0 %2859  ;;  %v2875_v28 = vpop.permute.xlu1 %2874 }
  0xb9   :  { %v2862_v26 = vunpack.i.h.bf16 %v2860_v25  ;;  %v2861_v27 = vunpack.i.l.bf16 %v2860_v25  ;;  %v2877_v29 = vunpack.i.h.bf16 %v2875_v28  ;;  %v2876_v30 = vunpack.i.l.bf16 %v2875_v28 }
  0xbb   :  { %1490 = vst.msk [vmem:[#allocation0] sm:$0xff] %vm1489_vm8, %v2861_v27   ;;  %1513 = vst.msk [vmem:[#allocation0 + $0x8] sm:$0xff] %vm1489_vm8, %v2862_v26  }
  0xbc   :  { %1627 = vst.msk [vmem:[#allocation0 + $0x10] sm:$0xff] %vm1580_vm9, %v2876_v30   ;;  %1650 = vst.msk [vmem:[#allocation0 + $0x18] sm:$0xff] %vm1580_vm9, %v2877_v29  }
  0xc0   :  { %v2870_v31 = vpop.permute.xlu0 %2869  ;;  %v2885_v34 = vpop.permute.xlu1 %2884 }
  0xc1   :  { %v2872_v32 = vunpack.i.h.bf16 %v2870_v31  ;;  %v2871_v33 = vunpack.i.l.bf16 %v2870_v31  ;;  %v2887_v35 = vunpack.i.h.bf16 %v2885_v34  ;;  %v2886_v36 = vunpack.i.l.bf16 %v2885_v34 }
  0xc3   :  { %1581 = vst.msk [vmem:[#allocation0] sm:$0xff] %vm1580_vm9, %v2871_v33   ;;  %1604 = vst.msk [vmem:[#allocation0 + $0x8] sm:$0xff] %vm1580_vm9, %v2872_v32  }
  0xc4   :  { %1718 = vst.msk [vmem:[#allocation0 + $0x10] sm:$0xff] %vm1671_vm10, %v2886_v36   ;;  %1741 = vst.msk [vmem:[#allocation0 + $0x18] sm:$0xff] %vm1671_vm10, %v2887_v35  }
  0xc8   :  { %v2880_v37 = vpop.permute.xlu0 %2879 }
  0xc9   :  { %v2882_v38 = vunpack.i.h.bf16 %v2880_v37  ;;  %v2881_v39 = vunpack.i.l.bf16 %v2880_v37  ;;  %v2895_v40 = vpop.permute.xlu1 %2894 }
  0xca   :  { %v2897_v41 = vunpack.i.h.bf16 %v2895_v40  ;;  %v2896_v42 = vunpack.i.l.bf16 %v2895_v40 }
  0xcb   :  { %1672 = vst.msk [vmem:[#allocation0] sm:$0xff] %vm1671_vm10, %v2881_v39   ;;  %1695 = vst.msk [vmem:[#allocation0 + $0x8] sm:$0xff] %vm1671_vm10, %v2882_v38  }
  0xcc   :  { %1809 = vst.msk [vmem:[#allocation0 + $0x10] sm:$0xff] %vm1762_vm11, %v2896_v42   ;;  %1832 = vst.msk [vmem:[#allocation0 + $0x18] sm:$0xff] %vm1762_vm11, %v2897_v41  }
  0xd1   :  { %v2890_v43 = vpop.permute.xlu0 %2889 }
  0xd2   :  { %v2892_v44 = vunpack.i.h.bf16 %v2890_v43  ;;  %v2891_v45 = vunpack.i.l.bf16 %v2890_v43 }
  0xd4   :  { %1763 = vst.msk [vmem:[#allocation0] sm:$0xff] %vm1762_vm11, %v2891_v45   ;;  %1786 = vst.msk [vmem:[#allocation0 + $0x8] sm:$0xff] %vm1762_vm11, %v2892_v44  }
  0xd5   :  { %v2900_v46 = vpop.permute.xlu0 %2899 }
  0xd6   :  { %v2902_v47 = vunpack.i.h.bf16 %v2900_v46  ;;  %v2901_v48 = vunpack.i.l.bf16 %v2900_v46 }
  0xd8   :  { %1854 = vst.msk [vmem:[#allocation0] sm:$0xff] %vm1853_vm12, %v2901_v48   ;;  %1877 = vst.msk [vmem:[#allocation0 + $0x8] sm:$0xff] %vm1853_vm12, %v2902_v47  }
  0xd9   :  { %v2905_v49 = vpop.permute.xlu1 %2904 }
  0xda   :  { %v2907_v50 = vunpack.i.h.bf16 %v2905_v49  ;;  %v2906_v51 = vunpack.i.l.bf16 %v2905_v49  ;;  %v2910_v52 = vpop.permute.xlu0 %2909 }
  0xdb   :  { %v2912_v53 = vunpack.i.h.bf16 %v2910_v52  ;;  %v2911_v54 = vunpack.i.l.bf16 %v2910_v52 }
  0xdc   :  { %1900 = vst.msk [vmem:[#allocation0 + $0x10] sm:$0xff] %vm1853_vm12, %v2906_v51   ;;  %1923 = vst.msk [vmem:[#allocation0 + $0x18] sm:$0xff] %vm1853_vm12, %v2907_v50  }
  0xdd   :  { %1945 = vst.msk [vmem:[#allocation0] sm:$0xff] %vm1944_vm13, %v2911_v54   ;;  %1968 = vst.msk [vmem:[#allocation0 + $0x8] sm:$0xff] %vm1944_vm13, %v2912_v53  }
  0xe2   :  { %v2915_v55 = vpop.permute.xlu1 %2914  ;;  %v2920_v58 = vpop.permute.xlu0 %2919 }
  0xe3   :  { %v2917_v56 = vunpack.i.h.bf16 %v2915_v55  ;;  %v2916_v57 = vunpack.i.l.bf16 %v2915_v55  ;;  %v2922_v59 = vunpack.i.h.bf16 %v2920_v58  ;;  %v2921_v60 = vunpack.i.l.bf16 %v2920_v58 }
  0xe5   :  { %1991 = vst.msk [vmem:[#allocation0 + $0x10] sm:$0xff] %vm1944_vm13, %v2916_v57   ;;  %2014 = vst.msk [vmem:[#allocation0 + $0x18] sm:$0xff] %vm1944_vm13, %v2917_v56  }
  0xe6   :  { %2036 = vst.msk [vmem:[#allocation0] sm:$0xff] %vm2035_vm14, %v2921_v60   ;;  %2059 = vst.msk [vmem:[#allocation0 + $0x8] sm:$0xff] %vm2035_vm14, %v2922_v59  }
  0xea   :  { %v2925_v61 = vpop.permute.xlu1 %2924 }
  0xeb   :  { %v2927_v62 = vunpack.i.h.bf16 %v2925_v61  ;;  %v2926_v63 = vunpack.i.l.bf16 %v2925_v61  ;;  %v2930_v0 = vpop.permute.xlu0 %2929 }
  0xec   :  { %v2932_v1 = vunpack.i.h.bf16 %v2930_v0  ;;  %v2931_v2 = vunpack.i.l.bf16 %v2930_v0 }
  0xed   :  { %2082 = vst.msk [vmem:[#allocation0 + $0x10] sm:$0xff] %vm2035_vm14, %v2926_v63   ;;  %2105 = vst.msk [vmem:[#allocation0 + $0x18] sm:$0xff] %vm2035_vm14, %v2927_v62  }
  0xee   :  { %2127 = vst.msk [vmem:[#allocation0] sm:$0xff] %vm2126_vm15, %v2931_v2   ;;  %2150 = vst.msk [vmem:[#allocation0 + $0x8] sm:$0xff] %vm2126_vm15, %v2932_v1  }
  0xf3   :  { %v2935_v3 = vpop.permute.xlu1 %2934  ;;  %v2940_v6 = vpop.permute.xlu0 %2939 }
  0xf4   :  { %v2937_v4 = vunpack.i.h.bf16 %v2935_v3  ;;  %v2936_v5 = vunpack.i.l.bf16 %v2935_v3  ;;  %v2942_v7 = vunpack.i.h.bf16 %v2940_v6  ;;  %v2941_v8 = vunpack.i.l.bf16 %v2940_v6 }
  0xf6   :  { %2173 = vst.msk [vmem:[#allocation0 + $0x10] sm:$0xff] %vm2126_vm15, %v2936_v5   ;;  %2196 = vst.msk [vmem:[#allocation0 + $0x18] sm:$0xff] %vm2126_vm15, %v2937_v4  }
  0xf7   :  { %2218 = vst.msk [vmem:[#allocation0] sm:$0xff] %vm2217_vm0, %v2941_v8   ;;  %2241 = vst.msk [vmem:[#allocation0 + $0x8] sm:$0xff] %vm2217_vm0, %v2942_v7  }
  0xfb   :  { %v2945_v9 = vpop.permute.xlu1 %2944 }
  0xfc   :  { %v2947_v10 = vunpack.i.h.bf16 %v2945_v9  ;;  %v2946_v11 = vunpack.i.l.bf16 %v2945_v9  ;;  %v2950_v12 = vpop.permute.xlu0 %2949 }
  0xfd   :  { %v2952_v13 = vunpack.i.h.bf16 %v2950_v12  ;;  %v2951_v14 = vunpack.i.l.bf16 %v2950_v12 }
  0xfe   :  { %2264 = vst.msk [vmem:[#allocation0 + $0x10] sm:$0xff] %vm2217_vm0, %v2946_v11   ;;  %2287 = vst.msk [vmem:[#allocation0 + $0x18] sm:$0xff] %vm2217_vm0, %v2947_v10  }
  0xff   :  { %2309 = vst.msk [vmem:[#allocation0] sm:$0xff] %vm2308_vm1, %v2951_v14   ;;  %2332 = vst.msk [vmem:[#allocation0 + $0x8] sm:$0xff] %vm2308_vm1, %v2952_v13  }
 0x104   :  { %v2955_v15 = vpop.permute.xlu1 %2954  ;;  %v2960_v18 = vpop.permute.xlu0 %2959 }
 0x105   :  { %v2957_v16 = vunpack.i.h.bf16 %v2955_v15  ;;  %v2956_v17 = vunpack.i.l.bf16 %v2955_v15  ;;  %v2962_v19 = vunpack.i.h.bf16 %v2960_v18  ;;  %v2961_v20 = vunpack.i.l.bf16 %v2960_v18 }
 0x107   :  { %2355 = vst.msk [vmem:[#allocation0 + $0x10] sm:$0xff] %vm2308_vm1, %v2956_v17   ;;  %2378 = vst.msk [vmem:[#allocation0 + $0x18] sm:$0xff] %vm2308_vm1, %v2957_v16  }
 0x108   :  { %2400 = vst.msk [vmem:[#allocation0] sm:$0xff] %vm2399_vm2, %v2961_v20   ;;  %2423 = vst.msk [vmem:[#allocation0 + $0x8] sm:$0xff] %vm2399_vm2, %v2962_v19  }
 0x10c   :  { %v2965_v21 = vpop.permute.xlu1 %2964 }
 0x10d   :  { %v2967_v22 = vunpack.i.h.bf16 %v2965_v21  ;;  %v2966_v23 = vunpack.i.l.bf16 %v2965_v21 }
 0x10f   :  { %2446 = vst.msk [vmem:[#allocation0 + $0x10] sm:$0xff] %vm2399_vm2, %v2966_v23   ;;  %2469 = vst.msk [vmem:[#allocation0 + $0x18] sm:$0xff] %vm2399_vm2, %v2967_v22   ;;  %v2475_v24 = vld [vmem:[#allocation0] sm:$0xff]  ;;  %v2481_v25 = vld [vmem:[#allocation0 + $0x8] sm:$0xff] }
 0x110   :  { %v2764_v26 = vpack.c.bf16 %v2481_v25, %v2475_v24 }
 0x112   :  { %2765 = vst [vmem:[%s3470_s1] sm:$0xff] %v2764_v26  }
 0x116   :  { %v2488_v27 = vld [vmem:[#allocation0 + $0x10] sm:$0xff]  ;;  %v2496_v28 = vld [vmem:[#allocation0 + $0x18] sm:$0xff] }
 0x117   :  { %v2769_v29 = vpack.c.bf16 %v2496_v28, %v2488_v27 }
 0x119   :  { %2802 = vst [vmem:[%s3470_s1 + $0x8] sm:$0xff] %v2769_v29  }

// kernel: ffc_act_forward.18
= control target key start
LH: loop header
LB: loop body
LE: loop exit
PB: predicated region body
PF: predicated region fallthrough
CT: control target
= control target key end

     0   :  { %s2104_s12 = smov 0   ;;  %s2106_s13 = smov 0   ;;  %s2378_s0 = inlined_call_operand.vmem [shape: bf16[2,512,2], index: 0, kind: input, shape index: {}]   ;;  %s2379_s1 = inlined_call_operand.vmem [shape: bf16[2,512,2], index: 1, kind: input, shape index: {}]   ;;  %s2380_s2 = inlined_call_operand.vmem [shape: bf16[2,2,4], index: 2, kind: input, shape index: {}]   ;;  %s2381_s3 = inlined_call_operand.vmem [shape: bf16[2,512,4], index: 3, kind: output, shape index: {}]  }
   0x1   :  { %s2108_s14 = smov 0  }
   0x2 LB: > { %s25_s15 = sadd.s32 1, %s2078_s13  ;;  %p1443_p0 = scmp.ge.s32.totalorder %s2082_s14, 1  ;;  %s2082_s14 = sphi %s2108_s14, %s13_s14   ;;  %s2078_s13 = sphi %s2106_s13, %s2383_s13   ;;  %s2074_s12 = sphi %s2104_s12, %s2382_s12  }
   0x3   : > { %p27_p1 = scmp.ge.s32.totalorder %s25_s15, 2  ;;  %p183_p2 = scmp.lt.s32.totalorder %s2082_s14, 3 }
   0x5   : > { %s2385_s15 = smov (%p27_p1, %s25_s15), 0  ;;  %p184_p3 = pnand %p1443_p0, %p183_p2 }
   0x6   : > { %p228_p4 = scmp.lt.s32.totalorder (!%p184_p3), %s2074_s12, 1 }
   0x7   : > { %187 = sbr.rel (%p184_p3) target bundleno = 285 (0x11d), region = 32 }
   0xc   : > { %s2387_s12 = smov (!%p228_p4, %s2074_s12), 1  ;;  %vm711_vm0 = vcmask 1040384   ;;  %vm614_vm1 = vcmask 15360   ;;  %vm1260_vm2 = vcmask 27648  }
   0xd   : > { %s2122_s16 = sshll.u32 %s2387_s12, 8  ;;  %s249_s19 = scalar_lea.vmem %s2380_s2, %s2387_s12 }
   0xe   : > { %s2131_s22 = scalar_lea.vmem %s2378_s0, %s2122_s16  ;;  %s2137_s25 = scalar_lea.vmem %s2379_s1, %s2122_s16  ;;  %v613_v0 = vld [vmem:[%s249_s19] sm:$0x1] }
   0xf   : > { %2034 = vmatprep.subr.msk.bf16.mxu0 %vm711_vm0, %v613_v0  ;;  %2035 = vmatprep.subr.msk.bf16.mxu1 %vm711_vm0, %v613_v0  ;;  %v713_v1 = vsel %vm711_vm0, %v613_v0, 0  ;;  %v1616_v2 = vld [vmem:[%s2131_s22] sm:$0xff]   ;;  %v1871_v10 = vld [vmem:[%s2131_s22 + $0x8] sm:$0xff]   ;;  %v1872_v26 = vld [vmem:[%s2131_s22 + $0x10] sm:$0xff]   ;;  %s2239_s28 = scalar_lea.vmem %s2381_s3, %s2122_s16 }
  0x10   : > { %v1744_v3 = vld [vmem:[%s2137_s25] sm:$0xff]   ;;  %1967 = vmatpush3.bf16.msra.mxu0 %v713_v1  ;;  %2033 = vmatpush3.bf16.msra.mxu1 %v713_v1  ;;  %v1617_v5 = vunpack.c.l.bf16 %v1616_v2  ;;  %v1618_v6 = vunpack.c.h.bf16 %v1616_v2  ;;  %v1902_v11 = vld [vmem:[%s2137_s25 + $0x8] sm:$0xff]   ;;  %v1621_v20 = vunpack.c.l.bf16 %v1871_v10  ;;  %v1622_v21 = vunpack.c.h.bf16 %v1871_v10  ;;  %v1903_v27 = vld [vmem:[%s2137_s25 + $0x10] sm:$0xff]  }
  0x11   : > { %v1886_v4 = vld [vmem:[%s2131_s22 + $0x80] sm:$0xff]   ;;  %v1745_v7 = vunpack.c.l.bf16 %v1744_v3  ;;  %v1746_v8 = vunpack.c.h.bf16 %v1744_v3  ;;  %v1887_v16 = vld [vmem:[%s2131_s22 + $0x88] sm:$0xff]   ;;  %v1749_v24 = vunpack.c.l.bf16 %v1902_v11  ;;  %v1750_v25 = vunpack.c.h.bf16 %v1902_v11  ;;  %v1888_v32 = vld [vmem:[%s2131_s22 + $0x90] sm:$0xff]  }
  0x12   : > { %v1917_v9 = vld [vmem:[%s2137_s25 + $0x80] sm:$0xff]   ;;  %v1681_v12 = vunpack.c.l.bf16 %v1886_v4  ;;  %v1682_v13 = vunpack.c.h.bf16 %v1886_v4  ;;  %v1918_v17 = vld [vmem:[%s2137_s25 + $0x88] sm:$0xff]   ;;  %v1685_v29 = vunpack.c.l.bf16 %v1887_v16  ;;  %v1686_v30 = vunpack.c.h.bf16 %v1887_v16  ;;  %v1919_v37 = vld [vmem:[%s2137_s25 + $0x90] sm:$0xff]  }
  0x13   : > { %v1809_v14 = vunpack.c.l.bf16 %v1917_v9  ;;  %v1810_v15 = vunpack.c.h.bf16 %v1917_v9  ;;  %v517_v18 = vadd.f32 %v1745_v7, %v1617_v5  ;;  %v518_v19 = vadd.f32 %v1746_v8, %v1618_v6  ;;  %v1873_v42 = vld [vmem:[%s2131_s22 + $0x18] sm:$0xff]   ;;  %v1874_v62 = vld [vmem:[%s2131_s22 + $0x20] sm:$0xff]  }
  0x14   : > { %v1813_v31 = vunpack.c.l.bf16 %v1918_v17  ;;  %v519_v34 = vadd.f32 %v1749_v24, %v1621_v20  ;;  %v520_v35 = vadd.f32 %v1750_v25, %v1622_v21  ;;  %v1814_v36 = vunpack.c.h.bf16 %v1918_v17  ;;  %v1904_v47 = vld [vmem:[%s2137_s25 + $0x18] sm:$0xff]   ;;  %v1905_v63 = vld [vmem:[%s2137_s25 + $0x20] sm:$0xff]   ;;  %v1891_v24 = vld [vmem:[%s2131_s22 + $0xa8] sm:$0xff]  }
  0x15   : > { %v549_v22 = vadd.f32 %v1809_v14, %v1681_v12  ;;  %v550_v23 = vadd.f32 %v1810_v15, %v1682_v13  ;;  %v581_v28 = vpack.c.bf16 %v518_v19, %v517_v18  ;;  %v1625_v39 = vunpack.c.l.bf16 %v1872_v26  ;;  %v1889_v52 = vld [vmem:[%s2131_s22 + $0x98] sm:$0xff]   ;;  %v1890_v4 = vld [vmem:[%s2131_s22 + $0xa0] sm:$0xff]   ;;  %v1875_v14 = vld [vmem:[%s2131_s22 + $0x28] sm:$0xff]  }
  0x16   : > { %v551_v38 = vadd.f32 %v1813_v31, %v1685_v29  ;;  %v1626_v40 = vunpack.c.h.bf16 %v1872_v26  ;;  %v1753_v41 = vunpack.c.l.bf16 %v1903_v27  ;;  %v582_v43 = vpack.c.bf16 %v520_v35, %v519_v34  ;;  %v1920_v53 = vld [vmem:[%s2137_s25 + $0x98] sm:$0xff]   ;;  %v1921_v9 = vld [vmem:[%s2137_s25 + $0xa0] sm:$0xff]   ;;  %v1906_v19 = vld [vmem:[%s2137_s25 + $0x28] sm:$0xff]  }
  0x17   : > { %v597_v33 = vpack.c.bf16 %v550_v23, %v549_v22  ;;  %1968 = vmatprep.mubr.msk.bf16.mxu0 %vm614_vm1, %v581_v28  ;;  %v552_v44 = vadd.f32 %v1814_v36, %v1686_v30  ;;  %v1754_v45 = vunpack.c.h.bf16 %v1903_v27  ;;  %v1689_v46 = vunpack.c.l.bf16 %v1888_v32  ;;  %v1922_v25 = vld [vmem:[%s2137_s25 + $0xa8] sm:$0xff]   ;;  %v1876_v34 = vld [vmem:[%s2131_s22 + $0x30] sm:$0xff]  }
  0x18   : > { %v521_v48 = vadd.f32 %v1753_v41, %v1625_v39  ;;  %v1690_v49 = vunpack.c.h.bf16 %v1888_v32  ;;  %v1817_v50 = vunpack.c.l.bf16 %v1919_v37  ;;  %v1818_v51 = vunpack.c.h.bf16 %v1919_v37  ;;  %1969 = vmatmul.mubr.msk.bf16.vlgmr.msra.gmra.mxu0 %vm614_vm1, %v582_v43  ;;  %v1907_v35 = vld [vmem:[%s2137_s25 + $0x30] sm:$0xff]  }
  0x19   : > { %2000 = vmatprep.mubr.msk.bf16.mxu1 %vm614_vm1, %v597_v33  ;;  %v598_v54 = vpack.c.bf16 %v552_v44, %v551_v38  ;;  %v522_v55 = vadd.f32 %v1754_v45, %v1626_v40  ;;  %v1629_v56 = vunpack.c.l.bf16 %v1873_v42  ;;  %v1630_v57 = vunpack.c.h.bf16 %v1873_v42  ;;  %v1892_v40 = vld [vmem:[%s2131_s22 + $0xb0] sm:$0xff]  }
  0x1a   : > { %v553_v58 = vadd.f32 %v1817_v50, %v1689_v46  ;;  %v554_v59 = vadd.f32 %v1818_v51, %v1690_v49  ;;  %v1757_v60 = vunpack.c.l.bf16 %v1904_v47  ;;  %v1758_v61 = vunpack.c.h.bf16 %v1904_v47  ;;  %v1923_v45 = vld [vmem:[%s2137_s25 + $0xb0] sm:$0xff]   ;;  %v1877_v50 = vld [vmem:[%s2131_s22 + $0x38] sm:$0xff]  }
  0x1b   : > { %2001 = vmatmul.mubr.msk.bf16.vlgmr.msra.gmra.mxu1 %vm614_vm1, %v598_v54  ;;  %v583_v0 = vpack.c.bf16 %v522_v55, %v521_v48  ;;  %v1693_v1 = vunpack.c.l.bf16 %v1889_v52  ;;  %v1694_v2 = vunpack.c.h.bf16 %v1889_v52  ;;  %v1821_v3 = vunpack.c.l.bf16 %v1920_v53  ;;  %v1908_v55 = vld [vmem:[%s2137_s25 + $0x38] sm:$0xff]  }
  0x1c   : > { %v599_v5 = vpack.c.bf16 %v554_v59, %v553_v58  ;;  %v523_v6 = vadd.f32 %v1757_v60, %v1629_v56  ;;  %v524_v7 = vadd.f32 %v1758_v61, %v1630_v57  ;;  %v1822_v8 = vunpack.c.h.bf16 %v1920_v53  ;;  %v1893_v60 = vld [vmem:[%s2131_s22 + $0xb8] sm:$0xff]  }
  0x1d   : > { %1972 = vmatprep.mubr.msk.bf16.mxu0 %vm614_vm1, %v583_v0  ;;  %v555_v10 = vadd.f32 %v1821_v3, %v1693_v1  ;;  %v1633_v11 = vunpack.c.l.bf16 %v1874_v62  ;;  %v1634_v12 = vunpack.c.h.bf16 %v1874_v62  ;;  %v1761_v13 = vunpack.c.l.bf16 %v1905_v63  ;;  %v1924_v61 = vld [vmem:[%s2137_s25 + $0xb8] sm:$0xff]  }
  0x1e   : > { %2004 = vmatprep.mubr.msk.bf16.mxu1 %vm614_vm1, %v599_v5  ;;  %v584_v15 = vpack.c.bf16 %v524_v7, %v523_v6  ;;  %v556_v16 = vadd.f32 %v1822_v8, %v1694_v2  ;;  %v1762_v17 = vunpack.c.h.bf16 %v1905_v63  ;;  %v1697_v18 = vunpack.c.l.bf16 %v1890_v4  ;;  %v1878_v6 = vld [vmem:[%s2131_s22 + $0x40] sm:$0xff]  }
  0x1f   : > { %v525_v20 = vadd.f32 %v1761_v13, %v1633_v11  ;;  %v1698_v21 = vunpack.c.h.bf16 %v1890_v4  ;;  %v1825_v22 = vunpack.c.l.bf16 %v1921_v9  ;;  %v1826_v23 = vunpack.c.h.bf16 %v1921_v9  ;;  %v1909_v7 = vld [vmem:[%s2137_s25 + $0x40] sm:$0xff]  }
  0x20   : > { %v600_v26 = vpack.c.bf16 %v556_v16, %v555_v10  ;;  %v526_v27 = vadd.f32 %v1762_v17, %v1634_v12  ;;  %v1637_v28 = vunpack.c.l.bf16 %v1875_v14  ;;  %v1638_v29 = vunpack.c.h.bf16 %v1875_v14  ;;  %1973 = vmatmul.mubr.msk.bf16.gmra.mxu0 %vm614_vm1, %v584_v15  ;;  %v1894_v12 = vld [vmem:[%s2131_s22 + $0xc0] sm:$0xff]  }
  0x21   : > { %v557_v30 = vadd.f32 %v1825_v22, %v1697_v18  ;;  %v558_v31 = vadd.f32 %v1826_v23, %v1698_v21  ;;  %v1765_v32 = vunpack.c.l.bf16 %v1906_v19  ;;  %v1766_v33 = vunpack.c.h.bf16 %v1906_v19  ;;  %v1925_v17 = vld [vmem:[%s2137_s25 + $0xc0] sm:$0xff]   ;;  %v1879_v22 = vld [vmem:[%s2131_s22 + $0x48] sm:$0xff]  }
  0x22   : > { %v585_v36 = vpack.c.bf16 %v526_v27, %v525_v20  ;;  %v1701_v37 = vunpack.c.l.bf16 %v1891_v24  ;;  %v1702_v38 = vunpack.c.h.bf16 %v1891_v24  ;;  %v1829_v39 = vunpack.c.l.bf16 %v1922_v25  ;;  %v1910_v27 = vld [vmem:[%s2137_s25 + $0x48] sm:$0xff]  }
  0x23   : > { %2005 = vmatmul.mubr.msk.bf16.gmra.mxu1 %vm614_vm1, %v600_v26  ;;  %v601_v41 = vpack.c.bf16 %v558_v31, %v557_v30  ;;  %v527_v42 = vadd.f32 %v1765_v32, %v1637_v28  ;;  %v528_v43 = vadd.f32 %v1766_v33, %v1638_v29  ;;  %v1830_v44 = vunpack.c.h.bf16 %v1922_v25  ;;  %v1895_v32 = vld [vmem:[%s2131_s22 + $0xc8] sm:$0xff]  }
  0x24   : > { %1976 = vmatprep.mubr.msk.bf16.mxu0 %vm614_vm1, %v585_v36  ;;  %v559_v46 = vadd.f32 %v1829_v39, %v1701_v37  ;;  %v1641_v47 = vunpack.c.l.bf16 %v1876_v34  ;;  %v1642_v48 = vunpack.c.h.bf16 %v1876_v34  ;;  %v1769_v49 = vunpack.c.l.bf16 %v1907_v35  ;;  %v1926_v33 = vld [vmem:[%s2137_s25 + $0xc8] sm:$0xff]  }
  0x25   : > { %2008 = vmatprep.mubr.msk.bf16.mxu1 %vm614_vm1, %v601_v41  ;;  %v586_v51 = vpack.c.bf16 %v528_v43, %v527_v42  ;;  %v560_v52 = vadd.f32 %v1830_v44, %v1702_v38  ;;  %v1770_v53 = vunpack.c.h.bf16 %v1907_v35  ;;  %v1705_v54 = vunpack.c.l.bf16 %v1892_v40  ;;  %v1880_v42 = vld [vmem:[%s2131_s22 + $0x50] sm:$0xff]  }
  0x26   : > { %v529_v56 = vadd.f32 %v1769_v49, %v1641_v47  ;;  %v1706_v57 = vunpack.c.h.bf16 %v1892_v40  ;;  %v1833_v58 = vunpack.c.l.bf16 %v1923_v45  ;;  %v1834_v59 = vunpack.c.h.bf16 %v1923_v45  ;;  %v1911_v43 = vld [vmem:[%s2137_s25 + $0x50] sm:$0xff]  }
  0x27   : > { %v602_v62 = vpack.c.bf16 %v560_v52, %v559_v46  ;;  %v530_v63 = vadd.f32 %v1770_v53, %v1642_v48  ;;  %v1645_v0 = vunpack.c.l.bf16 %v1877_v50  ;;  %v1646_v1 = vunpack.c.h.bf16 %v1877_v50  ;;  %v1896_v48 = vld [vmem:[%s2131_s22 + $0xd0] sm:$0xff]  }
  0x28   : > { %v561_v2 = vadd.f32 %v1833_v58, %v1705_v54  ;;  %v562_v3 = vadd.f32 %v1834_v59, %v1706_v57  ;;  %v1773_v4 = vunpack.c.l.bf16 %v1908_v55  ;;  %v1774_v5 = vunpack.c.h.bf16 %v1908_v55  ;;  %1977 = vmatmul.mubr.msk.bf16.gmra.mxu0 %vm614_vm1, %v586_v51  ;;  %v1927_v53 = vld [vmem:[%s2137_s25 + $0xd0] sm:$0xff]   ;;  %v1881_v58 = vld [vmem:[%s2131_s22 + $0x58] sm:$0xff]  }
  0x29   : > { %v587_v8 = vpack.c.bf16 %v530_v63, %v529_v56  ;;  %v1709_v9 = vunpack.c.l.bf16 %v1893_v60  ;;  %v1710_v10 = vunpack.c.h.bf16 %v1893_v60  ;;  %v1837_v11 = vunpack.c.l.bf16 %v1924_v61  ;;  %v1912_v63 = vld [vmem:[%s2137_s25 + $0x58] sm:$0xff]  }
  0x2a   : > { %v603_v13 = vpack.c.bf16 %v562_v3, %v561_v2  ;;  %v531_v14 = vadd.f32 %v1773_v4, %v1645_v0  ;;  %v532_v15 = vadd.f32 %v1774_v5, %v1646_v1  ;;  %v1838_v16 = vunpack.c.h.bf16 %v1924_v61  ;;  %v1897_v4 = vld [vmem:[%s2131_s22 + $0xd8] sm:$0xff]  }
  0x2b   : > { %2009 = vmatmul.mubr.msk.bf16.gmra.mxu1 %vm614_vm1, %v602_v62  ;;  %1980 = vmatprep.mubr.msk.bf16.mxu0 %vm614_vm1, %v587_v8  ;;  %v563_v18 = vadd.f32 %v1837_v11, %v1709_v9  ;;  %v1649_v19 = vunpack.c.l.bf16 %v1878_v6  ;;  %v1650_v20 = vunpack.c.h.bf16 %v1878_v6  ;;  %v1777_v21 = vunpack.c.l.bf16 %v1909_v7  ;;  %v1928_v5 = vld [vmem:[%s2137_s25 + $0xd8] sm:$0xff]  }
  0x2c   : > { %2012 = vmatprep.mubr.msk.bf16.mxu1 %vm614_vm1, %v603_v13  ;;  %v588_v23 = vpack.c.bf16 %v532_v15, %v531_v14  ;;  %v564_v24 = vadd.f32 %v1838_v16, %v1710_v10  ;;  %v1778_v25 = vunpack.c.h.bf16 %v1909_v7  ;;  %v1713_v26 = vunpack.c.l.bf16 %v1894_v12  ;;  %v1882_v14 = vld [vmem:[%s2131_s22 + $0x60] sm:$0xff]  }
  0x2d   : > { %v533_v28 = vadd.f32 %v1777_v21, %v1649_v19  ;;  %v1714_v29 = vunpack.c.h.bf16 %v1894_v12  ;;  %v1841_v30 = vunpack.c.l.bf16 %v1925_v17  ;;  %v1842_v31 = vunpack.c.h.bf16 %v1925_v17  ;;  %v1913_v15 = vld [vmem:[%s2137_s25 + $0x60] sm:$0xff]  }
  0x2e   : > { %v604_v34 = vpack.c.bf16 %v564_v24, %v563_v18  ;;  %v534_v35 = vadd.f32 %v1778_v25, %v1650_v20  ;;  %v1653_v36 = vunpack.c.l.bf16 %v1879_v22  ;;  %v1654_v37 = vunpack.c.h.bf16 %v1879_v22  ;;  %v1898_v20 = vld [vmem:[%s2131_s22 + $0xe0] sm:$0xff]  }
  0x2f   : > { %v565_v38 = vadd.f32 %v1841_v30, %v1713_v26  ;;  %v566_v39 = vadd.f32 %v1842_v31, %v1714_v29  ;;  %v1781_v40 = vunpack.c.l.bf16 %v1910_v27  ;;  %v1782_v41 = vunpack.c.h.bf16 %v1910_v27  ;;  %v1929_v25 = vld [vmem:[%s2137_s25 + $0xe0] sm:$0xff]   ;;  %v1883_v29 = vld [vmem:[%s2131_s22 + $0x68] sm:$0xff]  }
  0x30   : > { %v589_v44 = vpack.c.bf16 %v534_v35, %v533_v28  ;;  %v1717_v45 = vunpack.c.l.bf16 %v1895_v32  ;;  %v1718_v46 = vunpack.c.h.bf16 %v1895_v32  ;;  %v1845_v47 = vunpack.c.l.bf16 %v1926_v33  ;;  %1981 = vmatmul.mubr.msk.bf16.gmra.mxu0 %vm614_vm1, %v588_v23 }
  0x31   : > { %v605_v49 = vpack.c.bf16 %v566_v39, %v565_v38  ;;  %v535_v50 = vadd.f32 %v1781_v40, %v1653_v36  ;;  %v536_v51 = vadd.f32 %v1782_v41, %v1654_v37  ;;  %v1846_v52 = vunpack.c.h.bf16 %v1926_v33  ;;  %v1899_v39 = vld [vmem:[%s2131_s22 + $0xe8] sm:$0xff]  }
  0x32   : > { %1984 = vmatprep.mubr.msk.bf16.mxu0 %vm614_vm1, %v589_v44  ;;  %v567_v54 = vadd.f32 %v1845_v47, %v1717_v45  ;;  %v1657_v55 = vunpack.c.l.bf16 %v1880_v42  ;;  %v1658_v56 = vunpack.c.h.bf16 %v1880_v42  ;;  %v1785_v57 = vunpack.c.l.bf16 %v1911_v43  ;;  %v1930_v40 = vld [vmem:[%s2137_s25 + $0xe8] sm:$0xff]  }
  0x33   : > { %2013 = vmatmul.mubr.msk.bf16.gmra.mxu1 %vm614_vm1, %v604_v34  ;;  %v590_v59 = vpack.c.bf16 %v536_v51, %v535_v50  ;;  %v568_v60 = vadd.f32 %v1846_v52, %v1718_v46  ;;  %v1786_v61 = vunpack.c.h.bf16 %v1911_v43  ;;  %v1721_v62 = vunpack.c.l.bf16 %v1896_v48  ;;  %v1914_v34 = vld [vmem:[%s2137_s25 + $0x68] sm:$0xff]   ;;  %v1915_v50 = vld [vmem:[%s2137_s25 + $0x70] sm:$0xff]  }
  0x34   : > { %2016 = vmatprep.mubr.msk.bf16.mxu1 %vm614_vm1, %v605_v49  ;;  %v537_v0 = vadd.f32 %v1785_v57, %v1657_v55  ;;  %v1722_v1 = vunpack.c.h.bf16 %v1896_v48  ;;  %v1849_v2 = vunpack.c.l.bf16 %v1927_v53  ;;  %v1850_v3 = vunpack.c.h.bf16 %v1927_v53  ;;  %v1884_v49 = vld [vmem:[%s2131_s22 + $0x70] sm:$0xff]  }
  0x35   : > { %v606_v6 = vpack.c.bf16 %v568_v60, %v567_v54  ;;  %v538_v7 = vadd.f32 %v1786_v61, %v1658_v56  ;;  %v1661_v8 = vunpack.c.l.bf16 %v1881_v58  ;;  %v1662_v9 = vunpack.c.h.bf16 %v1881_v58  ;;  %v1900_v55 = vld [vmem:[%s2131_s22 + $0xf0] sm:$0xff]  }
  0x36   : > { %v569_v10 = vadd.f32 %v1849_v2, %v1721_v62  ;;  %v570_v11 = vadd.f32 %v1850_v3, %v1722_v1  ;;  %v1789_v12 = vunpack.c.l.bf16 %v1912_v63  ;;  %v1790_v13 = vunpack.c.h.bf16 %v1912_v63  ;;  %v1931_v60 = vld [vmem:[%s2137_s25 + $0xf0] sm:$0xff]  }
  0x37   : > { %v591_v16 = vpack.c.bf16 %v538_v7, %v537_v0  ;;  %v1725_v17 = vunpack.c.l.bf16 %v1897_v4  ;;  %v1726_v18 = vunpack.c.h.bf16 %v1897_v4  ;;  %v1853_v19 = vunpack.c.l.bf16 %v1928_v5 }
  0x38   : > { %v607_v21 = vpack.c.bf16 %v570_v11, %v569_v10  ;;  %v539_v22 = vadd.f32 %v1789_v12, %v1661_v8  ;;  %v540_v23 = vadd.f32 %v1790_v13, %v1662_v9  ;;  %v1854_v24 = vunpack.c.h.bf16 %v1928_v5  ;;  %1985 = vmatmul.mubr.msk.bf16.gmra.mxu0 %vm614_vm1, %v590_v59  ;;  %v1885_v9 = vld [vmem:[%s2131_s22 + $0x78] sm:$0xff]  }
  0x39   : > { %v1665_v26 = vunpack.c.l.bf16 %v1882_v14  ;;  %v1666_v27 = vunpack.c.h.bf16 %v1882_v14  ;;  %v1793_v28 = vunpack.c.l.bf16 %v1913_v15  ;;  %1988 = vmatprep.mubr.msk.bf16.mxu0 %vm614_vm1, %v591_v16  ;;  %v571_v30 = vadd.f32 %v1853_v19, %v1725_v17  ;;  %v1916_v10 = vld [vmem:[%s2137_s25 + $0x78] sm:$0xff]  }
  0x3a   : > { %v572_v31 = vadd.f32 %v1854_v24, %v1726_v18  ;;  %v1794_v32 = vunpack.c.h.bf16 %v1913_v15  ;;  %v1729_v33 = vunpack.c.l.bf16 %v1898_v20  ;;  %v1730_v36 = vunpack.c.h.bf16 %v1898_v20  ;;  %v1901_v15 = vld [vmem:[%s2131_s22 + $0xf8] sm:$0xff]  }
  0x3b   : > { %2017 = vmatmul.mubr.msk.bf16.gmra.mxu1 %vm614_vm1, %v606_v6  ;;  %v541_v35 = vadd.f32 %v1793_v28, %v1665_v26  ;;  %v1857_v37 = vunpack.c.l.bf16 %v1929_v25  ;;  %v1858_v38 = vunpack.c.h.bf16 %v1929_v25  ;;  %v592_v41 = vpack.c.bf16 %v540_v23, %v539_v22  ;;  %v1932_v16 = vld [vmem:[%s2137_s25 + $0xf8] sm:$0xff]  }
  0x3c   : > { %2020 = vmatprep.mubr.msk.bf16.mxu1 %vm614_vm1, %v607_v21  ;;  %v542_v42 = vadd.f32 %v1794_v32, %v1666_v27  ;;  %v1669_v43 = vunpack.c.l.bf16 %v1883_v29  ;;  %v1670_v44 = vunpack.c.h.bf16 %v1883_v29  ;;  %v1797_v47 = vunpack.c.l.bf16 %v1914_v34 }
  0x3d   : > { %v573_v45 = vadd.f32 %v1857_v37, %v1729_v33  ;;  %v574_v46 = vadd.f32 %v1858_v38, %v1730_v36  ;;  %v1798_v48 = vunpack.c.h.bf16 %v1914_v34  ;;  %v1733_v52 = vunpack.c.l.bf16 %v1899_v39 }
  0x3e   : > { %v593_v51 = vpack.c.bf16 %v542_v42, %v541_v35  ;;  %v1734_v53 = vunpack.c.h.bf16 %v1899_v39  ;;  %v1861_v54 = vunpack.c.l.bf16 %v1930_v40  ;;  %v608_v56 = vpack.c.bf16 %v572_v31, %v571_v30 }
  0x3f   : > { %v609_v57 = vpack.c.bf16 %v574_v46, %v573_v45  ;;  %v543_v58 = vadd.f32 %v1797_v47, %v1669_v43  ;;  %v1862_v59 = vunpack.c.h.bf16 %v1930_v40  ;;  %v544_v61 = vadd.f32 %v1798_v48, %v1670_v44 }
  0x40   : > { %v1673_v62 = vunpack.c.l.bf16 %v1884_v49  ;;  %v1674_v63 = vunpack.c.h.bf16 %v1884_v49  ;;  %v1801_v0 = vunpack.c.l.bf16 %v1915_v50  ;;  %1989 = vmatmul.mubr.msk.bf16.gmra.mxu0 %vm614_vm1, %v592_v41  ;;  %v575_v1 = vadd.f32 %v1861_v54, %v1733_v52 }
  0x41   : > { %v576_v2 = vadd.f32 %v1862_v59, %v1734_v53  ;;  %v1802_v3 = vunpack.c.h.bf16 %v1915_v50  ;;  %v1737_v4 = vunpack.c.l.bf16 %v1900_v55  ;;  %1992 = vmatprep.mubr.msk.bf16.mxu0 %vm614_vm1, %v593_v51  ;;  %v1738_v6 = vunpack.c.h.bf16 %v1900_v55 }
  0x42   : > { %v545_v5 = vadd.f32 %v1801_v0, %v1673_v62  ;;  %v1865_v7 = vunpack.c.l.bf16 %v1931_v60  ;;  %v1866_v8 = vunpack.c.h.bf16 %v1931_v60  ;;  %v594_v12 = vpack.c.bf16 %v544_v61, %v543_v58 }
  0x43   : > { %2021 = vmatmul.mubr.msk.bf16.gmra.mxu1 %vm614_vm1, %v608_v56  ;;  %v546_v11 = vadd.f32 %v1802_v3, %v1674_v63  ;;  %v1677_v17 = vunpack.c.l.bf16 %v1885_v9  ;;  %v1678_v18 = vunpack.c.h.bf16 %v1885_v9  ;;  %v1805_v19 = vunpack.c.l.bf16 %v1916_v10 }
  0x44   : > { %2024 = vmatprep.mubr.msk.bf16.mxu1 %vm614_vm1, %v609_v57  ;;  %v577_v13 = vadd.f32 %v1865_v7, %v1737_v4  ;;  %v578_v14 = vadd.f32 %v1866_v8, %v1738_v6  ;;  %v1806_v20 = vunpack.c.h.bf16 %v1916_v10  ;;  %v610_v21 = vpack.c.bf16 %v576_v2, %v575_v1 }
  0x45   : > { %v595_v22 = vpack.c.bf16 %v546_v11, %v545_v5  ;;  %v1741_v23 = vunpack.c.l.bf16 %v1901_v15  ;;  %v1742_v24 = vunpack.c.h.bf16 %v1901_v15  ;;  %v1869_v25 = vunpack.c.l.bf16 %v1932_v16 }
  0x46   : > { %v1870_v26 = vunpack.c.h.bf16 %v1932_v16  ;;  %v611_v27 = vpack.c.bf16 %v578_v14, %v577_v13  ;;  %v547_v28 = vadd.f32 %v1805_v19, %v1677_v17  ;;  %v548_v29 = vadd.f32 %v1806_v20, %v1678_v18 }
  0x47   : > { %v579_v30 = vadd.f32 %v1869_v25, %v1741_v23 }
  0x48   : > { %1993 = vmatmul.mubr.msk.bf16.gmra.mxu0 %vm614_vm1, %v594_v12  ;;  %v580_v31 = vadd.f32 %v1870_v26, %v1742_v24  ;;  %v596_v32 = vpack.c.bf16 %v548_v29, %v547_v28 }
  0x49   : > { %1996 = vmatprep.mubr.msk.bf16.mxu0 %vm614_vm1, %v595_v22 }
  0x4a   : > { %v612_v33 = vpack.c.bf16 %v580_v31, %v579_v30 }
  0x4b   : > { %2025 = vmatmul.mubr.msk.bf16.gmra.mxu1 %vm614_vm1, %v610_v21 }
  0x4c   : > { %2028 = vmatprep.mubr.msk.bf16.mxu1 %vm614_vm1, %v611_v27 }
  0x50   : > { %1997 = vmatmul.mubr.msk.bf16.gmra.mxu0 %vm614_vm1, %v596_v32 }
  0x53   : > { %2029 = vmatmul.mubr.msk.bf16.gmra.mxu1 %vm614_vm1, %v612_v33 }
  0xd8   : > { %v1970_v34 = vpop.f32.mrf.mxu0 }
  0xd9   : > { %v1553_v35 = vpack.c.bf16 %v1970_v34, %v1970_v34 }
  0xda   : > { %v749_v37 = vpop.f32.mrf.mxu0 }
  0xdb   : > { %v2002_v36 = vpop.f32.mrf.mxu1  ;;  %1263 = vst.msk [vmem:[%s2239_s28 + $0x8] sm:$0xf] %vm1260_vm2, %v1553_v35  ;;  %v1551_v39 = vpack.c.bf16 %v749_v37, %v749_v37 }
  0xdc   : > { %v1585_v38 = vpack.c.bf16 %v2002_v36, %v2002_v36  ;;  %v1971_v41 = vpop.f32.mrf.mxu0 }
  0xdd   : > { %v877_v40 = vpop.f32.mrf.mxu1  ;;  %1261 = vst.msk [vmem:[%s2239_s28] sm:$0xf] %vm1260_vm2, %v1551_v39  ;;  %v1554_v43 = vpack.c.bf16 %v1971_v41, %v1971_v41 }
  0xde   : > { %1295 = vst.msk [vmem:[%s2239_s28 + $0x88] sm:$0xf] %vm1260_vm2, %v1585_v38  ;;  %v1583_v42 = vpack.c.bf16 %v877_v40, %v877_v40  ;;  %v752_v45 = vpop.f32.mrf.mxu0 }
  0xdf   : > { %v2003_v44 = vpop.f32.mrf.mxu1  ;;  %1264 = vst.msk [vmem:[%s2239_s28 + $0xc] sm:$0xf] %vm1260_vm2, %v1554_v43  ;;  %v1552_v47 = vpack.c.bf16 %v752_v45, %v752_v45 }
  0xe0   : > { %1293 = vst.msk [vmem:[%s2239_s28 + $0x80] sm:$0xf] %vm1260_vm2, %v1583_v42  ;;  %v1586_v46 = vpack.c.bf16 %v2003_v44, %v2003_v44  ;;  %v1974_v49 = vpop.f32.mrf.mxu0 }
  0xe1   : > { %v880_v48 = vpop.f32.mrf.mxu1  ;;  %1262 = vst.msk [vmem:[%s2239_s28 + $0x4] sm:$0xf] %vm1260_vm2, %v1552_v47  ;;  %v1557_v51 = vpack.c.bf16 %v1974_v49, %v1974_v49 }
  0xe2   : > { %1296 = vst.msk [vmem:[%s2239_s28 + $0x8c] sm:$0xf] %vm1260_vm2, %v1586_v46  ;;  %v1584_v50 = vpack.c.bf16 %v880_v48, %v880_v48  ;;  %v765_v53 = vpop.f32.mrf.mxu0 }
  0xe3   : > { %v2006_v52 = vpop.f32.mrf.mxu1  ;;  %1267 = vst.msk [vmem:[%s2239_s28 + $0x18] sm:$0xf] %vm1260_vm2, %v1557_v51  ;;  %v1555_v55 = vpack.c.bf16 %v765_v53, %v765_v53 }
  0xe4   : > { %1294 = vst.msk [vmem:[%s2239_s28 + $0x84] sm:$0xf] %vm1260_vm2, %v1584_v50  ;;  %v1589_v54 = vpack.c.bf16 %v2006_v52, %v2006_v52  ;;  %v1975_v57 = vpop.f32.mrf.mxu0 }
  0xe5   : > { %v893_v56 = vpop.f32.mrf.mxu1  ;;  %1265 = vst.msk [vmem:[%s2239_s28 + $0x10] sm:$0xf] %vm1260_vm2, %v1555_v55  ;;  %v1558_v59 = vpack.c.bf16 %v1975_v57, %v1975_v57 }
  0xe6   : > { %1299 = vst.msk [vmem:[%s2239_s28 + $0x98] sm:$0xf] %vm1260_vm2, %v1589_v54  ;;  %v1587_v58 = vpack.c.bf16 %v893_v56, %v893_v56  ;;  %v768_v61 = vpop.f32.mrf.mxu0 }
  0xe7   : > { %v2007_v60 = vpop.f32.mrf.mxu1  ;;  %1268 = vst.msk [vmem:[%s2239_s28 + $0x1c] sm:$0xf] %vm1260_vm2, %v1558_v59  ;;  %v1556_v63 = vpack.c.bf16 %v768_v61, %v768_v61 }
  0xe8   : > { %1297 = vst.msk [vmem:[%s2239_s28 + $0x90] sm:$0xf] %vm1260_vm2, %v1587_v58  ;;  %v1590_v62 = vpack.c.bf16 %v2007_v60, %v2007_v60  ;;  %v1978_v1 = vpop.f32.mrf.mxu0 }
  0xe9   : > { %v896_v0 = vpop.f32.mrf.mxu1  ;;  %1266 = vst.msk [vmem:[%s2239_s28 + $0x14] sm:$0xf] %vm1260_vm2, %v1556_v63  ;;  %v1561_v3 = vpack.c.bf16 %v1978_v1, %v1978_v1 }
  0xea   : > { %1300 = vst.msk [vmem:[%s2239_s28 + $0x9c] sm:$0xf] %vm1260_vm2, %v1590_v62  ;;  %v1588_v2 = vpack.c.bf16 %v896_v0, %v896_v0  ;;  %v781_v5 = vpop.f32.mrf.mxu0 }
  0xeb   : > { %v2010_v4 = vpop.f32.mrf.mxu1  ;;  %1271 = vst.msk [vmem:[%s2239_s28 + $0x28] sm:$0xf] %vm1260_vm2, %v1561_v3  ;;  %v1559_v7 = vpack.c.bf16 %v781_v5, %v781_v5 }
  0xec   : > { %1298 = vst.msk [vmem:[%s2239_s28 + $0x94] sm:$0xf] %vm1260_vm2, %v1588_v2  ;;  %v1593_v6 = vpack.c.bf16 %v2010_v4, %v2010_v4  ;;  %v1979_v9 = vpop.f32.mrf.mxu0 }
  0xed   : > { %v909_v8 = vpop.f32.mrf.mxu1  ;;  %1269 = vst.msk [vmem:[%s2239_s28 + $0x20] sm:$0xf] %vm1260_vm2, %v1559_v7  ;;  %v1562_v11 = vpack.c.bf16 %v1979_v9, %v1979_v9 }
  0xee   : > { %1303 = vst.msk [vmem:[%s2239_s28 + $0xa8] sm:$0xf] %vm1260_vm2, %v1593_v6  ;;  %v1591_v10 = vpack.c.bf16 %v909_v8, %v909_v8  ;;  %v784_v13 = vpop.f32.mrf.mxu0 }
  0xef   : > { %v2011_v12 = vpop.f32.mrf.mxu1  ;;  %1272 = vst.msk [vmem:[%s2239_s28 + $0x2c] sm:$0xf] %vm1260_vm2, %v1562_v11  ;;  %v1560_v15 = vpack.c.bf16 %v784_v13, %v784_v13 }
  0xf0   : > { %1301 = vst.msk [vmem:[%s2239_s28 + $0xa0] sm:$0xf] %vm1260_vm2, %v1591_v10  ;;  %v1594_v14 = vpack.c.bf16 %v2011_v12, %v2011_v12  ;;  %v1982_v17 = vpop.f32.mrf.mxu0 }
  0xf1   : > { %v912_v16 = vpop.f32.mrf.mxu1  ;;  %1270 = vst.msk [vmem:[%s2239_s28 + $0x24] sm:$0xf] %vm1260_vm2, %v1560_v15  ;;  %v1565_v19 = vpack.c.bf16 %v1982_v17, %v1982_v17 }
  0xf2   : > { %1304 = vst.msk [vmem:[%s2239_s28 + $0xac] sm:$0xf] %vm1260_vm2, %v1594_v14  ;;  %v1592_v18 = vpack.c.bf16 %v912_v16, %v912_v16  ;;  %v797_v21 = vpop.f32.mrf.mxu0 }
  0xf3   : > { %v2014_v20 = vpop.f32.mrf.mxu1  ;;  %1275 = vst.msk [vmem:[%s2239_s28 + $0x38] sm:$0xf] %vm1260_vm2, %v1565_v19  ;;  %v1563_v23 = vpack.c.bf16 %v797_v21, %v797_v21 }
  0xf4   : > { %1302 = vst.msk [vmem:[%s2239_s28 + $0xa4] sm:$0xf] %vm1260_vm2, %v1592_v18  ;;  %v1597_v22 = vpack.c.bf16 %v2014_v20, %v2014_v20  ;;  %v1983_v25 = vpop.f32.mrf.mxu0 }
  0xf5   : > { %v925_v24 = vpop.f32.mrf.mxu1  ;;  %1273 = vst.msk [vmem:[%s2239_s28 + $0x30] sm:$0xf] %vm1260_vm2, %v1563_v23  ;;  %v1566_v27 = vpack.c.bf16 %v1983_v25, %v1983_v25 }
  0xf6   : > { %1307 = vst.msk [vmem:[%s2239_s28 + $0xb8] sm:$0xf] %vm1260_vm2, %v1597_v22  ;;  %v1595_v26 = vpack.c.bf16 %v925_v24, %v925_v24  ;;  %v800_v29 = vpop.f32.mrf.mxu0 }
  0xf7   : > { %v2015_v28 = vpop.f32.mrf.mxu1  ;;  %1276 = vst.msk [vmem:[%s2239_s28 + $0x3c] sm:$0xf] %vm1260_vm2, %v1566_v27  ;;  %v1564_v31 = vpack.c.bf16 %v800_v29, %v800_v29 }
  0xf8   : > { %1305 = vst.msk [vmem:[%s2239_s28 + $0xb0] sm:$0xf] %vm1260_vm2, %v1595_v26  ;;  %v1598_v30 = vpack.c.bf16 %v2015_v28, %v2015_v28  ;;  %v1986_v33 = vpop.f32.mrf.mxu0 }
  0xf9   : > { %v928_v32 = vpop.f32.mrf.mxu1  ;;  %1274 = vst.msk [vmem:[%s2239_s28 + $0x34] sm:$0xf] %vm1260_vm2, %v1564_v31  ;;  %v1569_v35 = vpack.c.bf16 %v1986_v33, %v1986_v33 }
  0xfa   : > { %1308 = vst.msk [vmem:[%s2239_s28 + $0xbc] sm:$0xf] %vm1260_vm2, %v1598_v30  ;;  %v1596_v34 = vpack.c.bf16 %v928_v32, %v928_v32  ;;  %v813_v37 = vpop.f32.mrf.mxu0 }
  0xfb   : > { %v2018_v36 = vpop.f32.mrf.mxu1  ;;  %1279 = vst.msk [vmem:[%s2239_s28 + $0x48] sm:$0xf] %vm1260_vm2, %v1569_v35  ;;  %v1567_v39 = vpack.c.bf16 %v813_v37, %v813_v37 }
  0xfc   : > { %1306 = vst.msk [vmem:[%s2239_s28 + $0xb4] sm:$0xf] %vm1260_vm2, %v1596_v34  ;;  %v1601_v38 = vpack.c.bf16 %v2018_v36, %v2018_v36  ;;  %v1987_v41 = vpop.f32.mrf.mxu0 }
  0xfd   : > { %v941_v40 = vpop.f32.mrf.mxu1  ;;  %1277 = vst.msk [vmem:[%s2239_s28 + $0x40] sm:$0xf] %vm1260_vm2, %v1567_v39  ;;  %v1570_v43 = vpack.c.bf16 %v1987_v41, %v1987_v41 }
  0xfe   : > { %1311 = vst.msk [vmem:[%s2239_s28 + $0xc8] sm:$0xf] %vm1260_vm2, %v1601_v38  ;;  %v1599_v42 = vpack.c.bf16 %v941_v40, %v941_v40  ;;  %v816_v45 = vpop.f32.mrf.mxu0 }
  0xff   : > { %v2019_v44 = vpop.f32.mrf.mxu1  ;;  %1280 = vst.msk [vmem:[%s2239_s28 + $0x4c] sm:$0xf] %vm1260_vm2, %v1570_v43  ;;  %v1568_v47 = vpack.c.bf16 %v816_v45, %v816_v45 }
 0x100   : > { %1309 = vst.msk [vmem:[%s2239_s28 + $0xc0] sm:$0xf] %vm1260_vm2, %v1599_v42  ;;  %v1602_v46 = vpack.c.bf16 %v2019_v44, %v2019_v44  ;;  %v1990_v49 = vpop.f32.mrf.mxu0 }
 0x101   : > { %v944_v48 = vpop.f32.mrf.mxu1  ;;  %1278 = vst.msk [vmem:[%s2239_s28 + $0x44] sm:$0xf] %vm1260_vm2, %v1568_v47  ;;  %v1573_v51 = vpack.c.bf16 %v1990_v49, %v1990_v49 }
 0x102   : > { %1312 = vst.msk [vmem:[%s2239_s28 + $0xcc] sm:$0xf] %vm1260_vm2, %v1602_v46  ;;  %v1600_v50 = vpack.c.bf16 %v944_v48, %v944_v48  ;;  %v829_v53 = vpop.f32.mrf.mxu0 }
 0x103   : > { %v2022_v52 = vpop.f32.mrf.mxu1  ;;  %1283 = vst.msk [vmem:[%s2239_s28 + $0x58] sm:$0xf] %vm1260_vm2, %v1573_v51  ;;  %v1571_v55 = vpack.c.bf16 %v829_v53, %v829_v53 }
 0x104   : > { %1310 = vst.msk [vmem:[%s2239_s28 + $0xc4] sm:$0xf] %vm1260_vm2, %v1600_v50  ;;  %v1605_v54 = vpack.c.bf16 %v2022_v52, %v2022_v52  ;;  %v1991_v57 = vpop.f32.mrf.mxu0 }
 0x105   : > { %v957_v56 = vpop.f32.mrf.mxu1  ;;  %1281 = vst.msk [vmem:[%s2239_s28 + $0x50] sm:$0xf] %vm1260_vm2, %v1571_v55  ;;  %v1574_v59 = vpack.c.bf16 %v1991_v57, %v1991_v57 }
 0x106   : > { %1315 = vst.msk [vmem:[%s2239_s28 + $0xd8] sm:$0xf] %vm1260_vm2, %v1605_v54  ;;  %v1603_v58 = vpack.c.bf16 %v957_v56, %v957_v56  ;;  %v832_v61 = vpop.f32.mrf.mxu0 }
 0x107   : > { %v2023_v60 = vpop.f32.mrf.mxu1  ;;  %1284 = vst.msk [vmem:[%s2239_s28 + $0x5c] sm:$0xf] %vm1260_vm2, %v1574_v59  ;;  %v1572_v63 = vpack.c.bf16 %v832_v61, %v832_v61 }
 0x108   : > { %1313 = vst.msk [vmem:[%s2239_s28 + $0xd0] sm:$0xf] %vm1260_vm2, %v1603_v58  ;;  %v1606_v62 = vpack.c.bf16 %v2023_v60, %v2023_v60  ;;  %v1994_v1 = vpop.f32.mrf.mxu0 }
 0x109   : > { %v960_v0 = vpop.f32.mrf.mxu1  ;;  %1282 = vst.msk [vmem:[%s2239_s28 + $0x54] sm:$0xf] %vm1260_vm2, %v1572_v63  ;;  %v1577_v3 = vpack.c.bf16 %v1994_v1, %v1994_v1 }
 0x10a   : > { %1316 = vst.msk [vmem:[%s2239_s28 + $0xdc] sm:$0xf] %vm1260_vm2, %v1606_v62  ;;  %v1604_v2 = vpack.c.bf16 %v960_v0, %v960_v0  ;;  %v845_v5 = vpop.f32.mrf.mxu0 }
 0x10b   : > { %v2026_v4 = vpop.f32.mrf.mxu1  ;;  %1287 = vst.msk [vmem:[%s2239_s28 + $0x68] sm:$0xf] %vm1260_vm2, %v1577_v3  ;;  %v1575_v7 = vpack.c.bf16 %v845_v5, %v845_v5 }
 0x10c   : > { %1314 = vst.msk [vmem:[%s2239_s28 + $0xd4] sm:$0xf] %vm1260_vm2, %v1604_v2  ;;  %v1609_v6 = vpack.c.bf16 %v2026_v4, %v2026_v4  ;;  %v1995_v9 = vpop.f32.mrf.mxu0 }
 0x10d   : > { %v973_v8 = vpop.f32.mrf.mxu1  ;;  %1285 = vst.msk [vmem:[%s2239_s28 + $0x60] sm:$0xf] %vm1260_vm2, %v1575_v7  ;;  %v1578_v11 = vpack.c.bf16 %v1995_v9, %v1995_v9 }
 0x10e   : > { %1319 = vst.msk [vmem:[%s2239_s28 + $0xe8] sm:$0xf] %vm1260_vm2, %v1609_v6  ;;  %v1607_v10 = vpack.c.bf16 %v973_v8, %v973_v8  ;;  %v848_v13 = vpop.f32.mrf.mxu0 }
 0x10f   : > { %v2027_v12 = vpop.f32.mrf.mxu1  ;;  %1288 = vst.msk [vmem:[%s2239_s28 + $0x6c] sm:$0xf] %vm1260_vm2, %v1578_v11  ;;  %v1576_v15 = vpack.c.bf16 %v848_v13, %v848_v13 }
 0x110   : > { %1317 = vst.msk [vmem:[%s2239_s28 + $0xe0] sm:$0xf] %vm1260_vm2, %v1607_v10  ;;  %v1610_v14 = vpack.c.bf16 %v2027_v12, %v2027_v12  ;;  %v1998_v17 = vpop.f32.mrf.mxu0 }
 0x111   : > { %v976_v16 = vpop.f32.mrf.mxu1  ;;  %1286 = vst.msk [vmem:[%s2239_s28 + $0x64] sm:$0xf] %vm1260_vm2, %v1576_v15  ;;  %v1581_v19 = vpack.c.bf16 %v1998_v17, %v1998_v17 }
 0x112   : > { %1320 = vst.msk [vmem:[%s2239_s28 + $0xec] sm:$0xf] %vm1260_vm2, %v1610_v14  ;;  %v1608_v18 = vpack.c.bf16 %v976_v16, %v976_v16  ;;  %v861_v21 = vpop.f32.mrf.mxu0 }
 0x113   : > { %v2030_v20 = vpop.f32.mrf.mxu1  ;;  %1291 = vst.msk [vmem:[%s2239_s28 + $0x78] sm:$0xf] %vm1260_vm2, %v1581_v19  ;;  %v1579_v23 = vpack.c.bf16 %v861_v21, %v861_v21 }
 0x114   : > { %1318 = vst.msk [vmem:[%s2239_s28 + $0xe4] sm:$0xf] %vm1260_vm2, %v1608_v18  ;;  %v1613_v22 = vpack.c.bf16 %v2030_v20, %v2030_v20  ;;  %v1999_v25 = vpop.f32.mrf.mxu0 }
 0x115   : > { %v989_v24 = vpop.f32.mrf.mxu1  ;;  %1289 = vst.msk [vmem:[%s2239_s28 + $0x70] sm:$0xf] %vm1260_vm2, %v1579_v23  ;;  %v1582_v27 = vpack.c.bf16 %v1999_v25, %v1999_v25 }
 0x116   : > { %1323 = vst.msk [vmem:[%s2239_s28 + $0xf8] sm:$0xf] %vm1260_vm2, %v1613_v22  ;;  %v1611_v26 = vpack.c.bf16 %v989_v24, %v989_v24  ;;  %v864_v29 = vpop.f32.mrf.mxu0 }
 0x117   : > { %v2031_v28 = vpop.f32.mrf.mxu1  ;;  %1292 = vst.msk [vmem:[%s2239_s28 + $0x7c] sm:$0xf] %vm1260_vm2, %v1582_v27  ;;  %v1580_v31 = vpack.c.bf16 %v864_v29, %v864_v29 }
 0x118   : > { %1321 = vst.msk [vmem:[%s2239_s28 + $0xf0] sm:$0xf] %vm1260_vm2, %v1611_v26  ;;  %v1614_v30 = vpack.c.bf16 %v2031_v28, %v2031_v28 }
 0x119   : > { %v992_v32 = vpop.f32.mrf.mxu1  ;;  %1290 = vst.msk [vmem:[%s2239_s28 + $0x74] sm:$0xf] %vm1260_vm2, %v1580_v31 }
 0x11a   : > { %1324 = vst.msk [vmem:[%s2239_s28 + $0xfc] sm:$0xf] %vm1260_vm2, %v1614_v30  ;;  %v1612_v33 = vpack.c.bf16 %v992_v32, %v992_v32 }
 0x11c   : > { %1322 = vst.msk [vmem:[%s2239_s28 + $0xf4] sm:$0xf] %vm1260_vm2, %v1612_v33 }
 0x11d PF: > { %s13_s14 = sadd.s32 1, %s2082_s14   ;;  %s2382_s12 = smov %s2078_s13 }
 0x11e   : > { %p10_p5 = scmp.ge.s32.totalorder %s13_s14, 4   ;;  %s2383_s13 = smov %s2385_s15 }
 0x120   :  { %12 = sbr.rel (!%p10_p5) target bundleno = 2 (0x2), region = 68 }

// kernel: ffc_act_forward.11
= control target key start
LH: loop header
LB: loop body
LE: loop exit
PB: predicated region body
PF: predicated region fallthrough
CT: control target
= control target key end

     0   :  { %s1871_s9 = smov 0   ;;  %s1873_s10 = smov 0   ;;  %s2111_s0 = inlined_call_operand.vmem [shape: bf16[2,512,36], index: 0, kind: input, shape index: {}]   ;;  %s2112_s1 = inlined_call_operand.vmem [shape: bf16[2,36,2], index: 1, kind: input, shape index: {}]   ;;  %s2113_s2 = inlined_call_operand.vmem [shape: bf16[2,512,2], index: 2, kind: output, shape index: {}]  }
   0x1   :  { %s1875_s11 = smov 0  }
   0x2 LB: > { %s24_s12 = sadd.s32 1, %s1850_s10  ;;  %p1454_p0 = scmp.ge.s32.totalorder %s1854_s11, 1  ;;  %s1854_s11 = sphi %s1875_s11, %s12_s11   ;;  %s1850_s10 = sphi %s1873_s10, %s2115_s10   ;;  %s1846_s9 = sphi %s1871_s9, %s2114_s9  }
   0x3   : > { %p26_p1 = scmp.ge.s32.totalorder %s24_s12, 2  ;;  %p143_p2 = scmp.lt.s32.totalorder %s1854_s11, 3 }
   0x5   : > { %s2117_s12 = smov (%p26_p1, %s24_s12), 0  ;;  %p144_p3 = pnand %p1454_p0, %p143_p2 }
   0x6   : > { %p179_p4 = scmp.lt.s32.totalorder (!%p144_p3), %s1846_s9, 1 }
   0x7   : > { %147 = sbr.rel (%p144_p3) target bundleno = 291 (0x123), region = 28 }
   0xc   : > { %s2119_s9 = smov (!%p179_p4, %s1846_s9), 1  ;;  %vm448_vm0 = vcmask 293888   ;;  %vm545_vm1 = vcmask 1041408   ;;  %vm1286_vm4 = vcmask 11264  }
   0xd   : > { %s1593_s13 = sshll.u32 %s2119_s9, 8  ;;  %s1772_s14 = smul.u32 20, %s2119_s9 }
   0xe   : > { %s1898_s17 = scalar_lea.vmem %s2111_s0, %s1593_s13  ;;  %s1972_s23 = scalar_lea.vmem %s2113_s2, %s1593_s13 }
   0xf   : > { %s192_s20 = scalar_lea.vmem %s2112_s1, %s1772_s14  ;;  %v1800_v0 = vld [vmem:[%s1898_s17] sm:$0xff]   ;;  %v1802_v6 = vld [vmem:[%s1898_s17 + $0x8] sm:$0xff]   ;;  %v1804_v8 = vld [vmem:[%s1898_s17 + $0x10] sm:$0xff]  }
  0x10   : > { %v1797_v1 = vld [vmem:[%s192_s20 + $0x10] ss:$0 sps:$4 sm:$0x33]   ;;  %v1798_v2 = vld [vmem:[%s192_s20 + $0x8] sm:$0xff]   ;;  %1700 = vmatprep.mubr.msk.bf16.mxu0 %vm448_vm0, %v1800_v0  ;;  %v1801_v4 = vld [vmem:[%s1898_s17 + $0x80] sm:$0xff]  }
  0x11   : > { %1770 = vmatprep.subr.msk.bf16.mxu0 %vm545_vm1, %v1797_v1  ;;  %1771 = vmatprep.subr.msk.bf16.mxu1 %vm545_vm1, %v1797_v1  ;;  %v547_v3 = vsel %vm545_vm1, %v1797_v1, 0  ;;  %v1799_v5 = vld [vmem:[%s192_s20] sm:$0xff]   ;;  %v1803_v7 = vld [vmem:[%s1898_s17 + $0x88] sm:$0xff]   ;;  %v1805_v9 = vld [vmem:[%s1898_s17 + $0x90] sm:$0xff]  }
  0x12   : > { %1695 = vmatpush3.bf16.msra.mxu0 %v547_v3  ;;  %1767 = vmatpush3.bf16.msra.mxu1 %v547_v3  ;;  %v1806_v10 = vld [vmem:[%s1898_s17 + $0x18] sm:$0xff]   ;;  %v1808_v12 = vld [vmem:[%s1898_s17 + $0x20] sm:$0xff]   ;;  %v1810_v14 = vld [vmem:[%s1898_s17 + $0x28] sm:$0xff]  }
  0x13   : > { %1696 = vmatprep.subr.bf16.mxu0 %v1798_v2  ;;  %1765 = vmatprep.subr.bf16.mxu1 %v1798_v2  ;;  %v1807_v11 = vld [vmem:[%s1898_s17 + $0x98] sm:$0xff]   ;;  %v1809_v13 = vld [vmem:[%s1898_s17 + $0xa0] sm:$0xff]   ;;  %v1811_v15 = vld [vmem:[%s1898_s17 + $0xa8] sm:$0xff]  }
  0x14   : > { %1732 = vmatprep.mubr.msk.bf16.mxu1 %vm448_vm0, %v1801_v4  ;;  %v1812_v16 = vld [vmem:[%s1898_s17 + $0x30] sm:$0xff]   ;;  %v1814_v18 = vld [vmem:[%s1898_s17 + $0x38] sm:$0xff]   ;;  %v1816_v20 = vld [vmem:[%s1898_s17 + $0x40] sm:$0xff]  }
  0x15   : > { %v1813_v17 = vld [vmem:[%s1898_s17 + $0xb0] sm:$0xff]   ;;  %v1815_v19 = vld [vmem:[%s1898_s17 + $0xb8] sm:$0xff]   ;;  %v1817_v21 = vld [vmem:[%s1898_s17 + $0xc0] sm:$0xff]  }
  0x16   : > { %1697 = vmatpush3.bf16.msra.mxu0 %v1798_v2  ;;  %1768 = vmatpush3.bf16.msra.mxu1 %v1798_v2  ;;  %v1818_v22 = vld [vmem:[%s1898_s17 + $0x48] sm:$0xff]   ;;  %v1820_v24 = vld [vmem:[%s1898_s17 + $0x50] sm:$0xff]   ;;  %v1822_v26 = vld [vmem:[%s1898_s17 + $0x58] sm:$0xff]  }
  0x17   : > { %1698 = vmatprep.subr.bf16.mxu0 %v1799_v5  ;;  %1766 = vmatprep.subr.bf16.mxu1 %v1799_v5  ;;  %v1819_v23 = vld [vmem:[%s1898_s17 + $0xc8] sm:$0xff]   ;;  %v1821_v25 = vld [vmem:[%s1898_s17 + $0xd0] sm:$0xff]   ;;  %v1823_v27 = vld [vmem:[%s1898_s17 + $0xd8] sm:$0xff]  }
  0x18   : > { %v1824_v28 = vld [vmem:[%s1898_s17 + $0x60] sm:$0xff]   ;;  %v1826_v30 = vld [vmem:[%s1898_s17 + $0x68] sm:$0xff]   ;;  %v1828_v32 = vld [vmem:[%s1898_s17 + $0x70] sm:$0xff]  }
  0x19   : > { %v1825_v29 = vld [vmem:[%s1898_s17 + $0xe0] sm:$0xff]   ;;  %v1827_v31 = vld [vmem:[%s1898_s17 + $0xe8] sm:$0xff]   ;;  %v1829_v33 = vld [vmem:[%s1898_s17 + $0xf0] sm:$0xff]  }
  0x1a   : > { %1699 = vmatpush3.bf16.msra.mxu0 %v1799_v5  ;;  %1769 = vmatpush3.bf16.msra.mxu1 %v1799_v5  ;;  %v1830_v34 = vld [vmem:[%s1898_s17 + $0x78] sm:$0xff]  }
  0x1b   : > { %v1831_v35 = vld [vmem:[%s1898_s17 + $0xf8] sm:$0xff]  }
  0x1d   : > { %1701 = vmatmul.mubr.msk.bf16.vlgmr.msra.gmra.mxu0 %vm448_vm0, %v1802_v6  ;;  %1733 = vmatmul.mubr.msk.bf16.vlgmr.msra.gmra.mxu1 %vm448_vm0, %v1803_v7 }
  0x1e   : > { %1704 = vmatprep.mubr.msk.bf16.mxu0 %vm448_vm0, %v1804_v8  ;;  %1736 = vmatprep.mubr.msk.bf16.mxu1 %vm448_vm0, %v1805_v9 }
  0x25   : > { %1705 = vmatmul.mubr.msk.bf16.gmra.mxu0 %vm448_vm0, %v1806_v10  ;;  %1737 = vmatmul.mubr.msk.bf16.gmra.mxu1 %vm448_vm0, %v1807_v11 }
  0x26   : > { %1708 = vmatprep.mubr.msk.bf16.mxu0 %vm448_vm0, %v1808_v12  ;;  %1740 = vmatprep.mubr.msk.bf16.mxu1 %vm448_vm0, %v1809_v13 }
  0x2d   : > { %1709 = vmatmul.mubr.msk.bf16.gmra.mxu0 %vm448_vm0, %v1810_v14  ;;  %1741 = vmatmul.mubr.msk.bf16.gmra.mxu1 %vm448_vm0, %v1811_v15 }
  0x2e   : > { %1712 = vmatprep.mubr.msk.bf16.mxu0 %vm448_vm0, %v1812_v16  ;;  %1744 = vmatprep.mubr.msk.bf16.mxu1 %vm448_vm0, %v1813_v17 }
  0x35   : > { %1713 = vmatmul.mubr.msk.bf16.gmra.mxu0 %vm448_vm0, %v1814_v18  ;;  %1745 = vmatmul.mubr.msk.bf16.gmra.mxu1 %vm448_vm0, %v1815_v19 }
  0x36   : > { %1716 = vmatprep.mubr.msk.bf16.mxu0 %vm448_vm0, %v1816_v20  ;;  %1748 = vmatprep.mubr.msk.bf16.mxu1 %vm448_vm0, %v1817_v21 }
  0x3d   : > { %1717 = vmatmul.mubr.msk.bf16.gmra.mxu0 %vm448_vm0, %v1818_v22  ;;  %1749 = vmatmul.mubr.msk.bf16.gmra.mxu1 %vm448_vm0, %v1819_v23 }
  0x3e   : > { %1720 = vmatprep.mubr.msk.bf16.mxu0 %vm448_vm0, %v1820_v24  ;;  %1752 = vmatprep.mubr.msk.bf16.mxu1 %vm448_vm0, %v1821_v25 }
  0x45   : > { %1721 = vmatmul.mubr.msk.bf16.gmra.mxu0 %vm448_vm0, %v1822_v26  ;;  %1753 = vmatmul.mubr.msk.bf16.gmra.mxu1 %vm448_vm0, %v1823_v27 }
  0x46   : > { %1724 = vmatprep.mubr.msk.bf16.mxu0 %vm448_vm0, %v1824_v28  ;;  %1756 = vmatprep.mubr.msk.bf16.mxu1 %vm448_vm0, %v1825_v29 }
  0x4d   : > { %1725 = vmatmul.mubr.msk.bf16.gmra.mxu0 %vm448_vm0, %v1826_v30  ;;  %1757 = vmatmul.mubr.msk.bf16.gmra.mxu1 %vm448_vm0, %v1827_v31 }
  0x4e   : > { %1728 = vmatprep.mubr.msk.bf16.mxu0 %vm448_vm0, %v1828_v32  ;;  %1760 = vmatprep.mubr.msk.bf16.mxu1 %vm448_vm0, %v1829_v33 }
  0x55   : > { %1729 = vmatmul.mubr.msk.bf16.gmra.mxu0 %vm448_vm0, %v1830_v34  ;;  %1761 = vmatmul.mubr.msk.bf16.gmra.mxu1 %vm448_vm0, %v1831_v35 }
  0xdd   : > { %v1702_v36 = vpop.f32.mrf.mxu0  ;;  %v1734_v37 = vpop.f32.mrf.mxu1 }
  0xde   : > { %vm840_vm2 = vcmp.ge.f32.partialorder %v1702_v36, 0.0  ;;  %v904_v38 = vmul.f32 0.05, %v1702_v36  ;;  %vm872_vm3 = vcmp.ge.f32.partialorder %v1734_v37, 0.0  ;;  %v936_v39 = vmul.f32 0.05, %v1734_v37 }
  0xdf   : > { %v583_v40 = vpop.f32.mrf.mxu0  ;;  %v711_v41 = vpop.f32.mrf.mxu1 }
  0xe0   : > { %v968_v42 = vsel %vm840_vm2, %v1702_v36, %v904_v38  ;;  %v1000_v43 = vsel %vm872_vm3, %v1734_v37, %v936_v39  ;;  %vm838_vm5 = vcmp.ge.f32.partialorder %v583_v40, 0.0  ;;  %v902_v44 = vmul.f32 0.05, %v583_v40 }
  0xe1   : > { %v1597_v45 = vpack.c.bf16 %v968_v42, %v968_v42  ;;  %v1629_v46 = vpack.c.bf16 %v1000_v43, %v1000_v43  ;;  %vm870_vm6 = vcmp.ge.f32.partialorder %v711_v41, 0.0  ;;  %v934_v47 = vmul.f32 0.05, %v711_v41  ;;  %v1703_v48 = vpop.f32.mrf.mxu0  ;;  %v1735_v49 = vpop.f32.mrf.mxu1 }
  0xe2   : > { %v966_v50 = vsel %vm838_vm5, %v583_v40, %v902_v44  ;;  %vm841_vm7 = vcmp.ge.f32.partialorder %v1703_v48, 0.0  ;;  %v905_v51 = vmul.f32 0.05, %v1703_v48  ;;  %vm873_vm8 = vcmp.ge.f32.partialorder %v1735_v49, 0.0 }
  0xe3   : > { %1289 = vst.msk [vmem:[%s1972_s23 + $0x8] sm:$0xf] %vm1286_vm4, %v1597_v45  ;;  %1321 = vst.msk [vmem:[%s1972_s23 + $0x88] sm:$0xf] %vm1286_vm4, %v1629_v46  ;;  %v1595_v52 = vpack.c.bf16 %v966_v50, %v966_v50  ;;  %v998_v53 = vsel %vm870_vm6, %v711_v41, %v934_v47  ;;  %v937_v54 = vmul.f32 0.05, %v1735_v49  ;;  %v586_v55 = vpop.f32.mrf.mxu0  ;;  %v714_v56 = vpop.f32.mrf.mxu1 }
  0xe4   : > { %v1627_v57 = vpack.c.bf16 %v998_v53, %v998_v53  ;;  %v969_v58 = vsel %vm841_vm7, %v1703_v48, %v905_v51  ;;  %vm839_vm9 = vcmp.ge.f32.partialorder %v586_v55, 0.0  ;;  %v903_v59 = vmul.f32 0.05, %v586_v55 }
  0xe5   : > { %1287 = vst.msk [vmem:[%s1972_s23] sm:$0xf] %vm1286_vm4, %v1595_v52  ;;  %v1598_v60 = vpack.c.bf16 %v969_v58, %v969_v58  ;;  %v1001_v61 = vsel %vm873_vm8, %v1735_v49, %v937_v54  ;;  %vm871_vm10 = vcmp.ge.f32.partialorder %v714_v56, 0.0  ;;  %v935_v62 = vmul.f32 0.05, %v714_v56  ;;  %v1706_v63 = vpop.f32.mrf.mxu0  ;;  %v1738_v0 = vpop.f32.mrf.mxu1 }
  0xe6   : > { %1319 = vst.msk [vmem:[%s1972_s23 + $0x80] sm:$0xf] %vm1286_vm4, %v1627_v57  ;;  %v1630_v1 = vpack.c.bf16 %v1001_v61, %v1001_v61  ;;  %v967_v2 = vsel %vm839_vm9, %v586_v55, %v903_v59  ;;  %vm844_vm11 = vcmp.ge.f32.partialorder %v1706_v63, 0.0  ;;  %v908_v3 = vmul.f32 0.05, %v1706_v63 }
  0xe7   : > { %1290 = vst.msk [vmem:[%s1972_s23 + $0xc] sm:$0xf] %vm1286_vm4, %v1598_v60  ;;  %v1596_v4 = vpack.c.bf16 %v967_v2, %v967_v2  ;;  %v999_v5 = vsel %vm871_vm10, %v714_v56, %v935_v62  ;;  %vm876_vm12 = vcmp.ge.f32.partialorder %v1738_v0, 0.0  ;;  %v940_v6 = vmul.f32 0.05, %v1738_v0  ;;  %v599_v7 = vpop.f32.mrf.mxu0  ;;  %v727_v8 = vpop.f32.mrf.mxu1 }
  0xe8   : > { %1322 = vst.msk [vmem:[%s1972_s23 + $0x8c] sm:$0xf] %vm1286_vm4, %v1630_v1  ;;  %v1628_v9 = vpack.c.bf16 %v999_v5, %v999_v5  ;;  %v972_v10 = vsel %vm844_vm11, %v1706_v63, %v908_v3  ;;  %vm842_vm13 = vcmp.ge.f32.partialorder %v599_v7, 0.0  ;;  %v906_v11 = vmul.f32 0.05, %v599_v7 }
  0xe9   : > { %1288 = vst.msk [vmem:[%s1972_s23 + $0x4] sm:$0xf] %vm1286_vm4, %v1596_v4  ;;  %v1601_v12 = vpack.c.bf16 %v972_v10, %v972_v10  ;;  %v1004_v13 = vsel %vm876_vm12, %v1738_v0, %v940_v6  ;;  %vm874_vm14 = vcmp.ge.f32.partialorder %v727_v8, 0.0  ;;  %v938_v14 = vmul.f32 0.05, %v727_v8  ;;  %v1707_v15 = vpop.f32.mrf.mxu0  ;;  %v1739_v16 = vpop.f32.mrf.mxu1 }
  0xea   : > { %1320 = vst.msk [vmem:[%s1972_s23 + $0x84] sm:$0xf] %vm1286_vm4, %v1628_v9  ;;  %v1633_v17 = vpack.c.bf16 %v1004_v13, %v1004_v13  ;;  %v970_v18 = vsel %vm842_vm13, %v599_v7, %v906_v11  ;;  %vm845_vm15 = vcmp.ge.f32.partialorder %v1707_v15, 0.0  ;;  %v909_v19 = vmul.f32 0.05, %v1707_v15 }
  0xeb   : > { %1293 = vst.msk [vmem:[%s1972_s23 + $0x18] sm:$0xf] %vm1286_vm4, %v1601_v12  ;;  %v1599_v20 = vpack.c.bf16 %v970_v18, %v970_v18  ;;  %v1002_v21 = vsel %vm874_vm14, %v727_v8, %v938_v14  ;;  %vm877_vm0 = vcmp.ge.f32.partialorder %v1739_v16, 0.0  ;;  %v941_v22 = vmul.f32 0.05, %v1739_v16  ;;  %v602_v23 = vpop.f32.mrf.mxu0  ;;  %v730_v24 = vpop.f32.mrf.mxu1 }
  0xec   : > { %1325 = vst.msk [vmem:[%s1972_s23 + $0x98] sm:$0xf] %vm1286_vm4, %v1633_v17  ;;  %v1631_v25 = vpack.c.bf16 %v1002_v21, %v1002_v21  ;;  %v973_v26 = vsel %vm845_vm15, %v1707_v15, %v909_v19  ;;  %vm843_vm1 = vcmp.ge.f32.partialorder %v602_v23, 0.0  ;;  %v907_v27 = vmul.f32 0.05, %v602_v23 }
  0xed   : > { %1291 = vst.msk [vmem:[%s1972_s23 + $0x10] sm:$0xf] %vm1286_vm4, %v1599_v20  ;;  %v1602_v28 = vpack.c.bf16 %v973_v26, %v973_v26  ;;  %v1005_v29 = vsel %vm877_vm0, %v1739_v16, %v941_v22  ;;  %vm875_vm2 = vcmp.ge.f32.partialorder %v730_v24, 0.0  ;;  %v939_v30 = vmul.f32 0.05, %v730_v24  ;;  %v1710_v31 = vpop.f32.mrf.mxu0  ;;  %v1742_v32 = vpop.f32.mrf.mxu1 }
  0xee   : > { %1323 = vst.msk [vmem:[%s1972_s23 + $0x90] sm:$0xf] %vm1286_vm4, %v1631_v25  ;;  %v1634_v33 = vpack.c.bf16 %v1005_v29, %v1005_v29  ;;  %v971_v34 = vsel %vm843_vm1, %v602_v23, %v907_v27  ;;  %vm848_vm3 = vcmp.ge.f32.partialorder %v1710_v31, 0.0  ;;  %v912_v35 = vmul.f32 0.05, %v1710_v31 }
  0xef   : > { %1294 = vst.msk [vmem:[%s1972_s23 + $0x1c] sm:$0xf] %vm1286_vm4, %v1602_v28  ;;  %v1600_v36 = vpack.c.bf16 %v971_v34, %v971_v34  ;;  %v1003_v37 = vsel %vm875_vm2, %v730_v24, %v939_v30  ;;  %vm880_vm5 = vcmp.ge.f32.partialorder %v1742_v32, 0.0  ;;  %v944_v38 = vmul.f32 0.05, %v1742_v32  ;;  %v615_v39 = vpop.f32.mrf.mxu0  ;;  %v743_v40 = vpop.f32.mrf.mxu1 }
  0xf0   : > { %1326 = vst.msk [vmem:[%s1972_s23 + $0x9c] sm:$0xf] %vm1286_vm4, %v1634_v33  ;;  %v1632_v41 = vpack.c.bf16 %v1003_v37, %v1003_v37  ;;  %v976_v42 = vsel %vm848_vm3, %v1710_v31, %v912_v35  ;;  %vm846_vm6 = vcmp.ge.f32.partialorder %v615_v39, 0.0  ;;  %v910_v43 = vmul.f32 0.05, %v615_v39 }
  0xf1   : > { %1292 = vst.msk [vmem:[%s1972_s23 + $0x14] sm:$0xf] %vm1286_vm4, %v1600_v36  ;;  %v1605_v44 = vpack.c.bf16 %v976_v42, %v976_v42  ;;  %v1008_v45 = vsel %vm880_vm5, %v1742_v32, %v944_v38  ;;  %vm878_vm7 = vcmp.ge.f32.partialorder %v743_v40, 0.0  ;;  %v942_v46 = vmul.f32 0.05, %v743_v40  ;;  %v1711_v47 = vpop.f32.mrf.mxu0  ;;  %v1743_v48 = vpop.f32.mrf.mxu1 }
  0xf2   : > { %1324 = vst.msk [vmem:[%s1972_s23 + $0x94] sm:$0xf] %vm1286_vm4, %v1632_v41  ;;  %v1637_v49 = vpack.c.bf16 %v1008_v45, %v1008_v45  ;;  %v974_v50 = vsel %vm846_vm6, %v615_v39, %v910_v43  ;;  %vm849_vm8 = vcmp.ge.f32.partialorder %v1711_v47, 0.0  ;;  %v913_v51 = vmul.f32 0.05, %v1711_v47 }
  0xf3   : > { %1297 = vst.msk [vmem:[%s1972_s23 + $0x28] sm:$0xf] %vm1286_vm4, %v1605_v44  ;;  %v1603_v52 = vpack.c.bf16 %v974_v50, %v974_v50  ;;  %v1006_v53 = vsel %vm878_vm7, %v743_v40, %v942_v46  ;;  %vm881_vm9 = vcmp.ge.f32.partialorder %v1743_v48, 0.0  ;;  %v945_v54 = vmul.f32 0.05, %v1743_v48  ;;  %v618_v55 = vpop.f32.mrf.mxu0  ;;  %v746_v56 = vpop.f32.mrf.mxu1 }
  0xf4   : > { %1329 = vst.msk [vmem:[%s1972_s23 + $0xa8] sm:$0xf] %vm1286_vm4, %v1637_v49  ;;  %v1635_v57 = vpack.c.bf16 %v1006_v53, %v1006_v53  ;;  %v977_v58 = vsel %vm849_vm8, %v1711_v47, %v913_v51  ;;  %vm847_vm10 = vcmp.ge.f32.partialorder %v618_v55, 0.0  ;;  %v911_v59 = vmul.f32 0.05, %v618_v55 }
  0xf5   : > { %1295 = vst.msk [vmem:[%s1972_s23 + $0x20] sm:$0xf] %vm1286_vm4, %v1603_v52  ;;  %v1606_v60 = vpack.c.bf16 %v977_v58, %v977_v58  ;;  %v1009_v61 = vsel %vm881_vm9, %v1743_v48, %v945_v54  ;;  %vm879_vm11 = vcmp.ge.f32.partialorder %v746_v56, 0.0  ;;  %v943_v62 = vmul.f32 0.05, %v746_v56  ;;  %v1714_v63 = vpop.f32.mrf.mxu0  ;;  %v1746_v0 = vpop.f32.mrf.mxu1 }
  0xf6   : > { %1327 = vst.msk [vmem:[%s1972_s23 + $0xa0] sm:$0xf] %vm1286_vm4, %v1635_v57  ;;  %v1638_v1 = vpack.c.bf16 %v1009_v61, %v1009_v61  ;;  %v975_v2 = vsel %vm847_vm10, %v618_v55, %v911_v59  ;;  %vm852_vm12 = vcmp.ge.f32.partialorder %v1714_v63, 0.0  ;;  %v916_v3 = vmul.f32 0.05, %v1714_v63 }
  0xf7   : > { %1298 = vst.msk [vmem:[%s1972_s23 + $0x2c] sm:$0xf] %vm1286_vm4, %v1606_v60  ;;  %v1604_v4 = vpack.c.bf16 %v975_v2, %v975_v2  ;;  %v1007_v5 = vsel %vm879_vm11, %v746_v56, %v943_v62  ;;  %vm884_vm13 = vcmp.ge.f32.partialorder %v1746_v0, 0.0  ;;  %v948_v6 = vmul.f32 0.05, %v1746_v0  ;;  %v631_v7 = vpop.f32.mrf.mxu0  ;;  %v759_v8 = vpop.f32.mrf.mxu1 }
  0xf8   : > { %1330 = vst.msk [vmem:[%s1972_s23 + $0xac] sm:$0xf] %vm1286_vm4, %v1638_v1  ;;  %v1636_v9 = vpack.c.bf16 %v1007_v5, %v1007_v5  ;;  %v980_v10 = vsel %vm852_vm12, %v1714_v63, %v916_v3  ;;  %vm850_vm14 = vcmp.ge.f32.partialorder %v631_v7, 0.0  ;;  %v914_v11 = vmul.f32 0.05, %v631_v7 }
  0xf9   : > { %1296 = vst.msk [vmem:[%s1972_s23 + $0x24] sm:$0xf] %vm1286_vm4, %v1604_v4  ;;  %v1609_v12 = vpack.c.bf16 %v980_v10, %v980_v10  ;;  %v1012_v13 = vsel %vm884_vm13, %v1746_v0, %v948_v6  ;;  %vm882_vm15 = vcmp.ge.f32.partialorder %v759_v8, 0.0  ;;  %v946_v14 = vmul.f32 0.05, %v759_v8  ;;  %v1715_v15 = vpop.f32.mrf.mxu0  ;;  %v1747_v16 = vpop.f32.mrf.mxu1 }
  0xfa   : > { %1328 = vst.msk [vmem:[%s1972_s23 + $0xa4] sm:$0xf] %vm1286_vm4, %v1636_v9  ;;  %v1641_v17 = vpack.c.bf16 %v1012_v13, %v1012_v13  ;;  %v978_v18 = vsel %vm850_vm14, %v631_v7, %v914_v11  ;;  %vm853_vm0 = vcmp.ge.f32.partialorder %v1715_v15, 0.0  ;;  %v917_v19 = vmul.f32 0.05, %v1715_v15 }
  0xfb   : > { %1301 = vst.msk [vmem:[%s1972_s23 + $0x38] sm:$0xf] %vm1286_vm4, %v1609_v12  ;;  %v1607_v20 = vpack.c.bf16 %v978_v18, %v978_v18  ;;  %v1010_v21 = vsel %vm882_vm15, %v759_v8, %v946_v14  ;;  %vm885_vm1 = vcmp.ge.f32.partialorder %v1747_v16, 0.0  ;;  %v949_v22 = vmul.f32 0.05, %v1747_v16  ;;  %v634_v23 = vpop.f32.mrf.mxu0  ;;  %v762_v24 = vpop.f32.mrf.mxu1 }
  0xfc   : > { %1333 = vst.msk [vmem:[%s1972_s23 + $0xb8] sm:$0xf] %vm1286_vm4, %v1641_v17  ;;  %v1639_v25 = vpack.c.bf16 %v1010_v21, %v1010_v21  ;;  %v981_v26 = vsel %vm853_vm0, %v1715_v15, %v917_v19  ;;  %vm851_vm2 = vcmp.ge.f32.partialorder %v634_v23, 0.0  ;;  %v915_v27 = vmul.f32 0.05, %v634_v23 }
  0xfd   : > { %1299 = vst.msk [vmem:[%s1972_s23 + $0x30] sm:$0xf] %vm1286_vm4, %v1607_v20  ;;  %v1610_v28 = vpack.c.bf16 %v981_v26, %v981_v26  ;;  %v1013_v29 = vsel %vm885_vm1, %v1747_v16, %v949_v22  ;;  %vm883_vm3 = vcmp.ge.f32.partialorder %v762_v24, 0.0  ;;  %v947_v30 = vmul.f32 0.05, %v762_v24  ;;  %v1718_v31 = vpop.f32.mrf.mxu0  ;;  %v1750_v32 = vpop.f32.mrf.mxu1 }
  0xfe   : > { %1331 = vst.msk [vmem:[%s1972_s23 + $0xb0] sm:$0xf] %vm1286_vm4, %v1639_v25  ;;  %v1642_v33 = vpack.c.bf16 %v1013_v29, %v1013_v29  ;;  %v979_v34 = vsel %vm851_vm2, %v634_v23, %v915_v27  ;;  %vm856_vm5 = vcmp.ge.f32.partialorder %v1718_v31, 0.0  ;;  %v920_v35 = vmul.f32 0.05, %v1718_v31 }
  0xff   : > { %1302 = vst.msk [vmem:[%s1972_s23 + $0x3c] sm:$0xf] %vm1286_vm4, %v1610_v28  ;;  %v1608_v36 = vpack.c.bf16 %v979_v34, %v979_v34  ;;  %v1011_v37 = vsel %vm883_vm3, %v762_v24, %v947_v30  ;;  %vm888_vm6 = vcmp.ge.f32.partialorder %v1750_v32, 0.0  ;;  %v952_v38 = vmul.f32 0.05, %v1750_v32  ;;  %v647_v39 = vpop.f32.mrf.mxu0  ;;  %v775_v40 = vpop.f32.mrf.mxu1 }
 0x100   : > { %1334 = vst.msk [vmem:[%s1972_s23 + $0xbc] sm:$0xf] %vm1286_vm4, %v1642_v33  ;;  %v1640_v41 = vpack.c.bf16 %v1011_v37, %v1011_v37  ;;  %v984_v42 = vsel %vm856_vm5, %v1718_v31, %v920_v35  ;;  %vm854_vm7 = vcmp.ge.f32.partialorder %v647_v39, 0.0  ;;  %v918_v43 = vmul.f32 0.05, %v647_v39 }
 0x101   : > { %1300 = vst.msk [vmem:[%s1972_s23 + $0x34] sm:$0xf] %vm1286_vm4, %v1608_v36  ;;  %v1613_v44 = vpack.c.bf16 %v984_v42, %v984_v42  ;;  %v1016_v45 = vsel %vm888_vm6, %v1750_v32, %v952_v38  ;;  %vm886_vm8 = vcmp.ge.f32.partialorder %v775_v40, 0.0  ;;  %v950_v46 = vmul.f32 0.05, %v775_v40  ;;  %v1719_v47 = vpop.f32.mrf.mxu0  ;;  %v1751_v48 = vpop.f32.mrf.mxu1 }
 0x102   : > { %1332 = vst.msk [vmem:[%s1972_s23 + $0xb4] sm:$0xf] %vm1286_vm4, %v1640_v41  ;;  %v1645_v49 = vpack.c.bf16 %v1016_v45, %v1016_v45  ;;  %v982_v50 = vsel %vm854_vm7, %v647_v39, %v918_v43  ;;  %vm857_vm9 = vcmp.ge.f32.partialorder %v1719_v47, 0.0  ;;  %v921_v51 = vmul.f32 0.05, %v1719_v47 }
 0x103   : > { %1305 = vst.msk [vmem:[%s1972_s23 + $0x48] sm:$0xf] %vm1286_vm4, %v1613_v44  ;;  %v1611_v52 = vpack.c.bf16 %v982_v50, %v982_v50  ;;  %v1014_v53 = vsel %vm886_vm8, %v775_v40, %v950_v46  ;;  %vm889_vm10 = vcmp.ge.f32.partialorder %v1751_v48, 0.0  ;;  %v953_v54 = vmul.f32 0.05, %v1751_v48  ;;  %v650_v55 = vpop.f32.mrf.mxu0  ;;  %v778_v56 = vpop.f32.mrf.mxu1 }
 0x104   : > { %1337 = vst.msk [vmem:[%s1972_s23 + $0xc8] sm:$0xf] %vm1286_vm4, %v1645_v49  ;;  %v1643_v57 = vpack.c.bf16 %v1014_v53, %v1014_v53  ;;  %v985_v58 = vsel %vm857_vm9, %v1719_v47, %v921_v51  ;;  %vm855_vm11 = vcmp.ge.f32.partialorder %v650_v55, 0.0  ;;  %v919_v59 = vmul.f32 0.05, %v650_v55 }
 0x105   : > { %1303 = vst.msk [vmem:[%s1972_s23 + $0x40] sm:$0xf] %vm1286_vm4, %v1611_v52  ;;  %v1614_v60 = vpack.c.bf16 %v985_v58, %v985_v58  ;;  %v1017_v61 = vsel %vm889_vm10, %v1751_v48, %v953_v54  ;;  %vm887_vm12 = vcmp.ge.f32.partialorder %v778_v56, 0.0  ;;  %v951_v62 = vmul.f32 0.05, %v778_v56  ;;  %v1722_v63 = vpop.f32.mrf.mxu0  ;;  %v1754_v0 = vpop.f32.mrf.mxu1 }
 0x106   : > { %1335 = vst.msk [vmem:[%s1972_s23 + $0xc0] sm:$0xf] %vm1286_vm4, %v1643_v57  ;;  %v1646_v1 = vpack.c.bf16 %v1017_v61, %v1017_v61  ;;  %v983_v2 = vsel %vm855_vm11, %v650_v55, %v919_v59  ;;  %vm860_vm13 = vcmp.ge.f32.partialorder %v1722_v63, 0.0  ;;  %v924_v3 = vmul.f32 0.05, %v1722_v63 }
 0x107   : > { %1306 = vst.msk [vmem:[%s1972_s23 + $0x4c] sm:$0xf] %vm1286_vm4, %v1614_v60  ;;  %v1612_v4 = vpack.c.bf16 %v983_v2, %v983_v2  ;;  %v1015_v5 = vsel %vm887_vm12, %v778_v56, %v951_v62  ;;  %vm892_vm14 = vcmp.ge.f32.partialorder %v1754_v0, 0.0  ;;  %v956_v6 = vmul.f32 0.05, %v1754_v0  ;;  %v663_v7 = vpop.f32.mrf.mxu0  ;;  %v791_v8 = vpop.f32.mrf.mxu1 }
 0x108   : > { %1338 = vst.msk [vmem:[%s1972_s23 + $0xcc] sm:$0xf] %vm1286_vm4, %v1646_v1  ;;  %v1644_v9 = vpack.c.bf16 %v1015_v5, %v1015_v5  ;;  %v988_v10 = vsel %vm860_vm13, %v1722_v63, %v924_v3  ;;  %vm858_vm15 = vcmp.ge.f32.partialorder %v663_v7, 0.0  ;;  %v922_v11 = vmul.f32 0.05, %v663_v7 }
 0x109   : > { %1304 = vst.msk [vmem:[%s1972_s23 + $0x44] sm:$0xf] %vm1286_vm4, %v1612_v4  ;;  %v1617_v12 = vpack.c.bf16 %v988_v10, %v988_v10  ;;  %v1020_v13 = vsel %vm892_vm14, %v1754_v0, %v956_v6  ;;  %vm890_vm0 = vcmp.ge.f32.partialorder %v791_v8, 0.0  ;;  %v954_v14 = vmul.f32 0.05, %v791_v8  ;;  %v1723_v15 = vpop.f32.mrf.mxu0  ;;  %v1755_v16 = vpop.f32.mrf.mxu1 }
 0x10a   : > { %1336 = vst.msk [vmem:[%s1972_s23 + $0xc4] sm:$0xf] %vm1286_vm4, %v1644_v9  ;;  %v1649_v17 = vpack.c.bf16 %v1020_v13, %v1020_v13  ;;  %v986_v18 = vsel %vm858_vm15, %v663_v7, %v922_v11  ;;  %vm861_vm1 = vcmp.ge.f32.partialorder %v1723_v15, 0.0  ;;  %v925_v19 = vmul.f32 0.05, %v1723_v15 }
 0x10b   : > { %1309 = vst.msk [vmem:[%s1972_s23 + $0x58] sm:$0xf] %vm1286_vm4, %v1617_v12  ;;  %v1615_v20 = vpack.c.bf16 %v986_v18, %v986_v18  ;;  %v1018_v21 = vsel %vm890_vm0, %v791_v8, %v954_v14  ;;  %vm893_vm2 = vcmp.ge.f32.partialorder %v1755_v16, 0.0  ;;  %v957_v22 = vmul.f32 0.05, %v1755_v16  ;;  %v666_v23 = vpop.f32.mrf.mxu0  ;;  %v794_v24 = vpop.f32.mrf.mxu1 }
 0x10c   : > { %1341 = vst.msk [vmem:[%s1972_s23 + $0xd8] sm:$0xf] %vm1286_vm4, %v1649_v17  ;;  %v1647_v25 = vpack.c.bf16 %v1018_v21, %v1018_v21  ;;  %v989_v26 = vsel %vm861_vm1, %v1723_v15, %v925_v19  ;;  %vm859_vm3 = vcmp.ge.f32.partialorder %v666_v23, 0.0  ;;  %v923_v27 = vmul.f32 0.05, %v666_v23 }
 0x10d   : > { %1307 = vst.msk [vmem:[%s1972_s23 + $0x50] sm:$0xf] %vm1286_vm4, %v1615_v20  ;;  %v1618_v28 = vpack.c.bf16 %v989_v26, %v989_v26  ;;  %v1021_v29 = vsel %vm893_vm2, %v1755_v16, %v957_v22  ;;  %vm891_vm5 = vcmp.ge.f32.partialorder %v794_v24, 0.0  ;;  %v955_v30 = vmul.f32 0.05, %v794_v24  ;;  %v1726_v31 = vpop.f32.mrf.mxu0  ;;  %v1758_v32 = vpop.f32.mrf.mxu1 }
 0x10e   : > { %1339 = vst.msk [vmem:[%s1972_s23 + $0xd0] sm:$0xf] %vm1286_vm4, %v1647_v25  ;;  %v1650_v33 = vpack.c.bf16 %v1021_v29, %v1021_v29  ;;  %v987_v34 = vsel %vm859_vm3, %v666_v23, %v923_v27  ;;  %vm864_vm6 = vcmp.ge.f32.partialorder %v1726_v31, 0.0  ;;  %v928_v35 = vmul.f32 0.05, %v1726_v31 }
 0x10f   : > { %1310 = vst.msk [vmem:[%s1972_s23 + $0x5c] sm:$0xf] %vm1286_vm4, %v1618_v28  ;;  %v1616_v36 = vpack.c.bf16 %v987_v34, %v987_v34  ;;  %v1019_v37 = vsel %vm891_vm5, %v794_v24, %v955_v30  ;;  %vm896_vm7 = vcmp.ge.f32.partialorder %v1758_v32, 0.0  ;;  %v960_v38 = vmul.f32 0.05, %v1758_v32  ;;  %v679_v39 = vpop.f32.mrf.mxu0  ;;  %v807_v40 = vpop.f32.mrf.mxu1 }
 0x110   : > { %1342 = vst.msk [vmem:[%s1972_s23 + $0xdc] sm:$0xf] %vm1286_vm4, %v1650_v33  ;;  %v1648_v41 = vpack.c.bf16 %v1019_v37, %v1019_v37  ;;  %v992_v42 = vsel %vm864_vm6, %v1726_v31, %v928_v35  ;;  %vm862_vm8 = vcmp.ge.f32.partialorder %v679_v39, 0.0  ;;  %v926_v43 = vmul.f32 0.05, %v679_v39 }
 0x111   : > { %1308 = vst.msk [vmem:[%s1972_s23 + $0x54] sm:$0xf] %vm1286_vm4, %v1616_v36  ;;  %v1621_v44 = vpack.c.bf16 %v992_v42, %v992_v42  ;;  %v1024_v45 = vsel %vm896_vm7, %v1758_v32, %v960_v38  ;;  %vm894_vm9 = vcmp.ge.f32.partialorder %v807_v40, 0.0  ;;  %v958_v46 = vmul.f32 0.05, %v807_v40  ;;  %v1727_v47 = vpop.f32.mrf.mxu0  ;;  %v1759_v48 = vpop.f32.mrf.mxu1 }
 0x112   : > { %1340 = vst.msk [vmem:[%s1972_s23 + $0xd4] sm:$0xf] %vm1286_vm4, %v1648_v41  ;;  %v1653_v49 = vpack.c.bf16 %v1024_v45, %v1024_v45  ;;  %v990_v50 = vsel %vm862_vm8, %v679_v39, %v926_v43  ;;  %vm865_vm10 = vcmp.ge.f32.partialorder %v1727_v47, 0.0  ;;  %v929_v51 = vmul.f32 0.05, %v1727_v47 }
 0x113   : > { %1313 = vst.msk [vmem:[%s1972_s23 + $0x68] sm:$0xf] %vm1286_vm4, %v1621_v44  ;;  %v1619_v52 = vpack.c.bf16 %v990_v50, %v990_v50  ;;  %v1022_v53 = vsel %vm894_vm9, %v807_v40, %v958_v46  ;;  %vm897_vm11 = vcmp.ge.f32.partialorder %v1759_v48, 0.0  ;;  %v961_v54 = vmul.f32 0.05, %v1759_v48  ;;  %v682_v55 = vpop.f32.mrf.mxu0  ;;  %v810_v56 = vpop.f32.mrf.mxu1 }
 0x114   : > { %1345 = vst.msk [vmem:[%s1972_s23 + $0xe8] sm:$0xf] %vm1286_vm4, %v1653_v49  ;;  %v1651_v57 = vpack.c.bf16 %v1022_v53, %v1022_v53  ;;  %v993_v58 = vsel %vm865_vm10, %v1727_v47, %v929_v51  ;;  %vm863_vm12 = vcmp.ge.f32.partialorder %v682_v55, 0.0  ;;  %v927_v59 = vmul.f32 0.05, %v682_v55 }
 0x115   : > { %1311 = vst.msk [vmem:[%s1972_s23 + $0x60] sm:$0xf] %vm1286_vm4, %v1619_v52  ;;  %v1622_v60 = vpack.c.bf16 %v993_v58, %v993_v58  ;;  %v1025_v61 = vsel %vm897_vm11, %v1759_v48, %v961_v54  ;;  %vm895_vm13 = vcmp.ge.f32.partialorder %v810_v56, 0.0  ;;  %v959_v62 = vmul.f32 0.05, %v810_v56  ;;  %v1730_v63 = vpop.f32.mrf.mxu0  ;;  %v1762_v0 = vpop.f32.mrf.mxu1 }
 0x116   : > { %1343 = vst.msk [vmem:[%s1972_s23 + $0xe0] sm:$0xf] %vm1286_vm4, %v1651_v57  ;;  %v1654_v1 = vpack.c.bf16 %v1025_v61, %v1025_v61  ;;  %v991_v2 = vsel %vm863_vm12, %v682_v55, %v927_v59  ;;  %vm868_vm14 = vcmp.ge.f32.partialorder %v1730_v63, 0.0  ;;  %v932_v3 = vmul.f32 0.05, %v1730_v63 }
 0x117   : > { %1314 = vst.msk [vmem:[%s1972_s23 + $0x6c] sm:$0xf] %vm1286_vm4, %v1622_v60  ;;  %v1620_v4 = vpack.c.bf16 %v991_v2, %v991_v2  ;;  %v1023_v5 = vsel %vm895_vm13, %v810_v56, %v959_v62  ;;  %vm900_vm15 = vcmp.ge.f32.partialorder %v1762_v0, 0.0  ;;  %v964_v6 = vmul.f32 0.05, %v1762_v0  ;;  %v695_v7 = vpop.f32.mrf.mxu0  ;;  %v823_v8 = vpop.f32.mrf.mxu1 }
 0x118   : > { %1346 = vst.msk [vmem:[%s1972_s23 + $0xec] sm:$0xf] %vm1286_vm4, %v1654_v1  ;;  %v1652_v9 = vpack.c.bf16 %v1023_v5, %v1023_v5  ;;  %v996_v10 = vsel %vm868_vm14, %v1730_v63, %v932_v3  ;;  %vm866_vm0 = vcmp.ge.f32.partialorder %v695_v7, 0.0  ;;  %v930_v11 = vmul.f32 0.05, %v695_v7 }
 0x119   : > { %1312 = vst.msk [vmem:[%s1972_s23 + $0x64] sm:$0xf] %vm1286_vm4, %v1620_v4  ;;  %v1625_v12 = vpack.c.bf16 %v996_v10, %v996_v10  ;;  %v1028_v13 = vsel %vm900_vm15, %v1762_v0, %v964_v6  ;;  %vm898_vm1 = vcmp.ge.f32.partialorder %v823_v8, 0.0  ;;  %v962_v14 = vmul.f32 0.05, %v823_v8  ;;  %v1731_v15 = vpop.f32.mrf.mxu0  ;;  %v1763_v16 = vpop.f32.mrf.mxu1 }
 0x11a   : > { %1344 = vst.msk [vmem:[%s1972_s23 + $0xe4] sm:$0xf] %vm1286_vm4, %v1652_v9  ;;  %v1657_v17 = vpack.c.bf16 %v1028_v13, %v1028_v13  ;;  %v994_v18 = vsel %vm866_vm0, %v695_v7, %v930_v11  ;;  %vm869_vm2 = vcmp.ge.f32.partialorder %v1731_v15, 0.0  ;;  %v933_v19 = vmul.f32 0.05, %v1731_v15 }
 0x11b   : > { %1317 = vst.msk [vmem:[%s1972_s23 + $0x78] sm:$0xf] %vm1286_vm4, %v1625_v12  ;;  %v1623_v20 = vpack.c.bf16 %v994_v18, %v994_v18  ;;  %v1026_v21 = vsel %vm898_vm1, %v823_v8, %v962_v14  ;;  %vm901_vm3 = vcmp.ge.f32.partialorder %v1763_v16, 0.0  ;;  %v965_v22 = vmul.f32 0.05, %v1763_v16  ;;  %v698_v23 = vpop.f32.mrf.mxu0  ;;  %v826_v24 = vpop.f32.mrf.mxu1 }
 0x11c   : > { %1349 = vst.msk [vmem:[%s1972_s23 + $0xf8] sm:$0xf] %vm1286_vm4, %v1657_v17  ;;  %v1655_v25 = vpack.c.bf16 %v1026_v21, %v1026_v21  ;;  %v997_v26 = vsel %vm869_vm2, %v1731_v15, %v933_v19  ;;  %vm867_vm5 = vcmp.ge.f32.partialorder %v698_v23, 0.0  ;;  %v931_v27 = vmul.f32 0.05, %v698_v23 }
 0x11d   : > { %1315 = vst.msk [vmem:[%s1972_s23 + $0x70] sm:$0xf] %vm1286_vm4, %v1623_v20  ;;  %v1626_v28 = vpack.c.bf16 %v997_v26, %v997_v26  ;;  %v1029_v29 = vsel %vm901_vm3, %v1763_v16, %v965_v22  ;;  %vm899_vm6 = vcmp.ge.f32.partialorder %v826_v24, 0.0  ;;  %v963_v30 = vmul.f32 0.05, %v826_v24 }
 0x11e   : > { %1347 = vst.msk [vmem:[%s1972_s23 + $0xf0] sm:$0xf] %vm1286_vm4, %v1655_v25  ;;  %v1658_v31 = vpack.c.bf16 %v1029_v29, %v1029_v29  ;;  %v995_v32 = vsel %vm867_vm5, %v698_v23, %v931_v27 }
 0x11f   : > { %1318 = vst.msk [vmem:[%s1972_s23 + $0x7c] sm:$0xf] %vm1286_vm4, %v1626_v28  ;;  %v1624_v33 = vpack.c.bf16 %v995_v32, %v995_v32  ;;  %v1027_v34 = vsel %vm899_vm6, %v826_v24, %v963_v30 }
 0x120   : > { %1350 = vst.msk [vmem:[%s1972_s23 + $0xfc] sm:$0xf] %vm1286_vm4, %v1658_v31  ;;  %v1656_v35 = vpack.c.bf16 %v1027_v34, %v1027_v34 }
 0x121   : > { %1316 = vst.msk [vmem:[%s1972_s23 + $0x74] sm:$0xf] %vm1286_vm4, %v1624_v33 }
 0x122   : > { %1348 = vst.msk [vmem:[%s1972_s23 + $0xf4] sm:$0xf] %vm1286_vm4, %v1656_v35 }
 0x123 PF: > { %s12_s11 = sadd.s32 1, %s1854_s11   ;;  %s2114_s9 = smov %s1850_s10 }
 0x124   : > { %p9_p5 = scmp.ge.s32.totalorder %s12_s11, 4   ;;  %s2115_s10 = smov %s2117_s12 }
 0x126   :  { %11 = sbr.rel (!%p9_p5) target bundleno = 2 (0x2), region = 61 }

// kernel: ffc_act_forward.13
= control target key start
LH: loop header
LB: loop body
LE: loop exit
PB: predicated region body
PF: predicated region fallthrough
CT: control target
= control target key end

     0   :  { %s1848_s9 = smov 0   ;;  %s1850_s10 = smov 0   ;;  %s2088_s0 = inlined_call_operand.vmem [shape: bf16[2,512,9], index: 0, kind: input, shape index: {}]   ;;  %s2089_s1 = inlined_call_operand.vmem [shape: bf16[2,9,1], index: 1, kind: input, shape index: {}]   ;;  %s2090_s2 = inlined_call_operand.vmem [shape: bf16[2,512,1], index: 2, kind: output, shape index: {}]  }
   0x1   :  { %s1852_s11 = smov 0  }
   0x2 LB: > { %s24_s12 = sadd.s32 1, %s1826_s10  ;;  %p1444_p0 = scmp.ge.s32.totalorder %s1830_s11, 1  ;;  %s1830_s11 = sphi %s1852_s11, %s12_s11   ;;  %s1826_s10 = sphi %s1850_s10, %s2092_s10   ;;  %s1822_s9 = sphi %s1848_s9, %s2091_s9  }
   0x3   : > { %p26_p1 = scmp.ge.s32.totalorder %s24_s12, 2  ;;  %p143_p2 = scmp.lt.s32.totalorder %s1830_s11, 3 }
   0x5   : > { %s2094_s12 = smov (%p26_p1, %s24_s12), 0  ;;  %p144_p3 = pnand %p1444_p0, %p143_p2 }
   0x6   : > { %p179_p4 = scmp.lt.s32.totalorder (!%p144_p3), %s1822_s9, 1 }
   0x7   : > { %147 = sbr.rel (%p144_p3) target bundleno = 284 (0x11c), region = 28 }
   0xc   : > { %vm532_vm0 = vcmask 1043456   ;;  %s2096_s9 = smov (!%p179_p4, %s1822_s9), 1  ;;  %vm533_vm1 = vcmask 1044480   ;;  %v1832_v0 = vmov 65535   ;;  %vm435_vm2 = vcmask 72704  }
   0xd   : > { %v534_v1 = vsel %vm532_vm0, 4294967295, %v1832_v0  ;;  %s1582_s13 = sshll.u32 %s2096_s9, 8  ;;  %s1583_s14 = sshll.u32 %s2096_s9, 3  ;;  %vm1276_vm5 = vcmask 3072  }
   0xe   : > { %s1875_s17 = scalar_lea.vmem %s2088_s0, %s1582_s13  ;;  %s192_s20 = scalar_lea.vmem %s2089_s1, %s1583_s14  ;;  %v535_v2 = vsel %vm533_vm1, %v534_v1, 0 }
   0xf   : > { %v1775_v3 = vld [vmem:[%s192_s20] sm:$0x1f]   ;;  %v1778_v7 = vld [vmem:[%s1875_s17 + $0x8] sm:$0xff]   ;;  %v1780_v9 = vld [vmem:[%s1875_s17 + $0x10] sm:$0xff]   ;;  %s1949_s23 = scalar_lea.vmem %s2090_s2, %s1582_s13 }
  0x10   : > { %v1776_v4 = vld [vmem:[%s1875_s17] sm:$0xff]   ;;  %v537_v5 = vand.u32 %v1775_v3, %v535_v2  ;;  %v1779_v8 = vld [vmem:[%s1875_s17 + $0x88] sm:$0xff]   ;;  %v1781_v10 = vld [vmem:[%s1875_s17 + $0x90] sm:$0xff]  }
  0x11   : > { %v1777_v6 = vld [vmem:[%s1875_s17 + $0x80] sm:$0xff]   ;;  %1684 = vmatprep.mubr.msk.bf16.mxu0 %vm435_vm2, %v1776_v4  ;;  %v1782_v11 = vld [vmem:[%s1875_s17 + $0x18] sm:$0xff]   ;;  %v1786_v15 = vld [vmem:[%s1875_s17 + $0x28] sm:$0xff]  }
  0x12   : > { %1682 = vmatprep.subr.bf16.mxu0 %v537_v5  ;;  %1748 = vmatprep.subr.bf16.mxu1 %v537_v5  ;;  %v1783_v12 = vld [vmem:[%s1875_s17 + $0x98] sm:$0xff]   ;;  %v1784_v13 = vld [vmem:[%s1875_s17 + $0x20] sm:$0xff]   ;;  %v1787_v16 = vld [vmem:[%s1875_s17 + $0xa8] sm:$0xff]  }
  0x13   : > { %1683 = vmatpush3.bf16.msra.mxu0 %v537_v5  ;;  %1749 = vmatpush3.bf16.msra.mxu1 %v537_v5  ;;  %v1785_v14 = vld [vmem:[%s1875_s17 + $0xa0] sm:$0xff]   ;;  %v1788_v17 = vld [vmem:[%s1875_s17 + $0x30] sm:$0xff]   ;;  %v1790_v19 = vld [vmem:[%s1875_s17 + $0x38] sm:$0xff]  }
  0x14   : > { %1716 = vmatprep.mubr.msk.bf16.mxu1 %vm435_vm2, %v1777_v6  ;;  %v1789_v18 = vld [vmem:[%s1875_s17 + $0xb0] sm:$0xff]   ;;  %v1791_v20 = vld [vmem:[%s1875_s17 + $0xb8] sm:$0xff]   ;;  %v1792_v21 = vld [vmem:[%s1875_s17 + $0x40] sm:$0xff]  }
  0x15   : > { %v1793_v22 = vld [vmem:[%s1875_s17 + $0xc0] sm:$0xff]   ;;  %v1794_v23 = vld [vmem:[%s1875_s17 + $0x48] sm:$0xff]   ;;  %v1796_v25 = vld [vmem:[%s1875_s17 + $0x50] sm:$0xff]  }
  0x16   : > { %1685 = vmatmul.mubr.msk.bf16.vlgmr.msra.gmra.mxu0 %vm435_vm2, %v1778_v7  ;;  %1717 = vmatmul.mubr.msk.bf16.vlgmr.msra.gmra.mxu1 %vm435_vm2, %v1779_v8  ;;  %v1795_v24 = vld [vmem:[%s1875_s17 + $0xc8] sm:$0xff]   ;;  %v1797_v26 = vld [vmem:[%s1875_s17 + $0xd0] sm:$0xff]   ;;  %v1798_v27 = vld [vmem:[%s1875_s17 + $0x58] sm:$0xff]  }
  0x17   : > { %1688 = vmatprep.mubr.msk.bf16.mxu0 %vm435_vm2, %v1780_v9  ;;  %1720 = vmatprep.mubr.msk.bf16.mxu1 %vm435_vm2, %v1781_v10  ;;  %v1799_v28 = vld [vmem:[%s1875_s17 + $0xd8] sm:$0xff]   ;;  %v1800_v29 = vld [vmem:[%s1875_s17 + $0x60] sm:$0xff]   ;;  %v1802_v31 = vld [vmem:[%s1875_s17 + $0x68] sm:$0xff]  }
  0x18   : > { %v1801_v30 = vld [vmem:[%s1875_s17 + $0xe0] sm:$0xff]   ;;  %v1803_v32 = vld [vmem:[%s1875_s17 + $0xe8] sm:$0xff]   ;;  %v1804_v33 = vld [vmem:[%s1875_s17 + $0x70] sm:$0xff]  }
  0x19   : > { %v1805_v34 = vld [vmem:[%s1875_s17 + $0xf0] sm:$0xff]   ;;  %v1806_v35 = vld [vmem:[%s1875_s17 + $0x78] sm:$0xff]  }
  0x1a   : > { %v1807_v36 = vld [vmem:[%s1875_s17 + $0xf8] sm:$0xff]  }
  0x1e   : > { %1689 = vmatmul.mubr.msk.bf16.gmra.mxu0 %vm435_vm2, %v1782_v11  ;;  %1721 = vmatmul.mubr.msk.bf16.gmra.mxu1 %vm435_vm2, %v1783_v12 }
  0x1f   : > { %1692 = vmatprep.mubr.msk.bf16.mxu0 %vm435_vm2, %v1784_v13  ;;  %1724 = vmatprep.mubr.msk.bf16.mxu1 %vm435_vm2, %v1785_v14 }
  0x26   : > { %1693 = vmatmul.mubr.msk.bf16.gmra.mxu0 %vm435_vm2, %v1786_v15  ;;  %1725 = vmatmul.mubr.msk.bf16.gmra.mxu1 %vm435_vm2, %v1787_v16 }
  0x27   : > { %1696 = vmatprep.mubr.msk.bf16.mxu0 %vm435_vm2, %v1788_v17  ;;  %1728 = vmatprep.mubr.msk.bf16.mxu1 %vm435_vm2, %v1789_v18 }
  0x2e   : > { %1697 = vmatmul.mubr.msk.bf16.gmra.mxu0 %vm435_vm2, %v1790_v19  ;;  %1729 = vmatmul.mubr.msk.bf16.gmra.mxu1 %vm435_vm2, %v1791_v20 }
  0x2f   : > { %1700 = vmatprep.mubr.msk.bf16.mxu0 %vm435_vm2, %v1792_v21  ;;  %1732 = vmatprep.mubr.msk.bf16.mxu1 %vm435_vm2, %v1793_v22 }
  0x36   : > { %1701 = vmatmul.mubr.msk.bf16.gmra.mxu0 %vm435_vm2, %v1794_v23  ;;  %1733 = vmatmul.mubr.msk.bf16.gmra.mxu1 %vm435_vm2, %v1795_v24 }
  0x37   : > { %1704 = vmatprep.mubr.msk.bf16.mxu0 %vm435_vm2, %v1796_v25  ;;  %1736 = vmatprep.mubr.msk.bf16.mxu1 %vm435_vm2, %v1797_v26 }
  0x3e   : > { %1705 = vmatmul.mubr.msk.bf16.gmra.mxu0 %vm435_vm2, %v1798_v27  ;;  %1737 = vmatmul.mubr.msk.bf16.gmra.mxu1 %vm435_vm2, %v1799_v28 }
  0x3f   : > { %1708 = vmatprep.mubr.msk.bf16.mxu0 %vm435_vm2, %v1800_v29  ;;  %1740 = vmatprep.mubr.msk.bf16.mxu1 %vm435_vm2, %v1801_v30 }
  0x46   : > { %1709 = vmatmul.mubr.msk.bf16.gmra.mxu0 %vm435_vm2, %v1802_v31  ;;  %1741 = vmatmul.mubr.msk.bf16.gmra.mxu1 %vm435_vm2, %v1803_v32 }
  0x47   : > { %1712 = vmatprep.mubr.msk.bf16.mxu0 %vm435_vm2, %v1804_v33  ;;  %1744 = vmatprep.mubr.msk.bf16.mxu1 %vm435_vm2, %v1805_v34 }
  0x4e   : > { %1713 = vmatmul.mubr.msk.bf16.gmra.mxu0 %vm435_vm2, %v1806_v35  ;;  %1745 = vmatmul.mubr.msk.bf16.gmra.mxu1 %vm435_vm2, %v1807_v36 }
  0xd6   : > { %v1686_v37 = vpop.f32.mrf.mxu0  ;;  %v1718_v38 = vpop.f32.mrf.mxu1 }
  0xd7   : > { %vm830_vm3 = vcmp.ge.f32.partialorder %v1686_v37, 0.0  ;;  %v894_v39 = vmul.f32 0.05, %v1686_v37  ;;  %vm862_vm4 = vcmp.ge.f32.partialorder %v1718_v38, 0.0  ;;  %v926_v40 = vmul.f32 0.05, %v1718_v38 }
  0xd8   : > { %v573_v41 = vpop.f32.mrf.mxu0  ;;  %v701_v42 = vpop.f32.mrf.mxu1 }
  0xd9   : > { %v958_v43 = vsel %vm830_vm3, %v1686_v37, %v894_v39  ;;  %v990_v44 = vsel %vm862_vm4, %v1718_v38, %v926_v40  ;;  %vm828_vm6 = vcmp.ge.f32.partialorder %v573_v41, 0.0  ;;  %v892_v45 = vmul.f32 0.05, %v573_v41 }
  0xda   : > { %v1587_v46 = vpack.c.bf16 %v958_v43, %v958_v43  ;;  %v1619_v47 = vpack.c.bf16 %v990_v44, %v990_v44  ;;  %vm860_vm7 = vcmp.ge.f32.partialorder %v701_v42, 0.0  ;;  %v924_v48 = vmul.f32 0.05, %v701_v42  ;;  %v1687_v49 = vpop.f32.mrf.mxu0  ;;  %v1719_v50 = vpop.f32.mrf.mxu1 }
  0xdb   : > { %v956_v51 = vsel %vm828_vm6, %v573_v41, %v892_v45  ;;  %vm831_vm8 = vcmp.ge.f32.partialorder %v1687_v49, 0.0  ;;  %v895_v52 = vmul.f32 0.05, %v1687_v49  ;;  %vm863_vm9 = vcmp.ge.f32.partialorder %v1719_v50, 0.0 }
  0xdc   : > { %1279 = vst.msk [vmem:[%s1949_s23 + $0x8] sm:$0xf] %vm1276_vm5, %v1587_v46  ;;  %1311 = vst.msk [vmem:[%s1949_s23 + $0x88] sm:$0xf] %vm1276_vm5, %v1619_v47  ;;  %v1585_v53 = vpack.c.bf16 %v956_v51, %v956_v51  ;;  %v988_v54 = vsel %vm860_vm7, %v701_v42, %v924_v48  ;;  %v927_v55 = vmul.f32 0.05, %v1719_v50  ;;  %v576_v56 = vpop.f32.mrf.mxu0  ;;  %v704_v57 = vpop.f32.mrf.mxu1 }
  0xdd   : > { %v1617_v58 = vpack.c.bf16 %v988_v54, %v988_v54  ;;  %v959_v59 = vsel %vm831_vm8, %v1687_v49, %v895_v52  ;;  %vm829_vm10 = vcmp.ge.f32.partialorder %v576_v56, 0.0  ;;  %v893_v60 = vmul.f32 0.05, %v576_v56 }
  0xde   : > { %1277 = vst.msk [vmem:[%s1949_s23] sm:$0xf] %vm1276_vm5, %v1585_v53  ;;  %v1588_v61 = vpack.c.bf16 %v959_v59, %v959_v59  ;;  %v991_v62 = vsel %vm863_vm9, %v1719_v50, %v927_v55  ;;  %vm861_vm11 = vcmp.ge.f32.partialorder %v704_v57, 0.0  ;;  %v925_v63 = vmul.f32 0.05, %v704_v57  ;;  %v1690_v0 = vpop.f32.mrf.mxu0  ;;  %v1722_v1 = vpop.f32.mrf.mxu1 }
  0xdf   : > { %1309 = vst.msk [vmem:[%s1949_s23 + $0x80] sm:$0xf] %vm1276_vm5, %v1617_v58  ;;  %v1620_v2 = vpack.c.bf16 %v991_v62, %v991_v62  ;;  %v957_v3 = vsel %vm829_vm10, %v576_v56, %v893_v60  ;;  %vm834_vm12 = vcmp.ge.f32.partialorder %v1690_v0, 0.0  ;;  %v898_v4 = vmul.f32 0.05, %v1690_v0 }
  0xe0   : > { %1280 = vst.msk [vmem:[%s1949_s23 + $0xc] sm:$0xf] %vm1276_vm5, %v1588_v61  ;;  %v1586_v5 = vpack.c.bf16 %v957_v3, %v957_v3  ;;  %v989_v6 = vsel %vm861_vm11, %v704_v57, %v925_v63  ;;  %vm866_vm13 = vcmp.ge.f32.partialorder %v1722_v1, 0.0  ;;  %v930_v7 = vmul.f32 0.05, %v1722_v1  ;;  %v589_v8 = vpop.f32.mrf.mxu0  ;;  %v717_v9 = vpop.f32.mrf.mxu1 }
  0xe1   : > { %1312 = vst.msk [vmem:[%s1949_s23 + $0x8c] sm:$0xf] %vm1276_vm5, %v1620_v2  ;;  %v1618_v10 = vpack.c.bf16 %v989_v6, %v989_v6  ;;  %v962_v11 = vsel %vm834_vm12, %v1690_v0, %v898_v4  ;;  %vm832_vm14 = vcmp.ge.f32.partialorder %v589_v8, 0.0  ;;  %v896_v12 = vmul.f32 0.05, %v589_v8 }
  0xe2   : > { %1278 = vst.msk [vmem:[%s1949_s23 + $0x4] sm:$0xf] %vm1276_vm5, %v1586_v5  ;;  %v1591_v13 = vpack.c.bf16 %v962_v11, %v962_v11  ;;  %v994_v14 = vsel %vm866_vm13, %v1722_v1, %v930_v7  ;;  %vm864_vm15 = vcmp.ge.f32.partialorder %v717_v9, 0.0  ;;  %v928_v15 = vmul.f32 0.05, %v717_v9  ;;  %v1691_v16 = vpop.f32.mrf.mxu0  ;;  %v1723_v17 = vpop.f32.mrf.mxu1 }
  0xe3   : > { %1310 = vst.msk [vmem:[%s1949_s23 + $0x84] sm:$0xf] %vm1276_vm5, %v1618_v10  ;;  %v1623_v18 = vpack.c.bf16 %v994_v14, %v994_v14  ;;  %v960_v19 = vsel %vm832_vm14, %v589_v8, %v896_v12  ;;  %vm835_vm0 = vcmp.ge.f32.partialorder %v1691_v16, 0.0  ;;  %v899_v20 = vmul.f32 0.05, %v1691_v16 }
  0xe4   : > { %1283 = vst.msk [vmem:[%s1949_s23 + $0x18] sm:$0xf] %vm1276_vm5, %v1591_v13  ;;  %v1589_v21 = vpack.c.bf16 %v960_v19, %v960_v19  ;;  %v992_v22 = vsel %vm864_vm15, %v717_v9, %v928_v15  ;;  %vm867_vm1 = vcmp.ge.f32.partialorder %v1723_v17, 0.0  ;;  %v931_v23 = vmul.f32 0.05, %v1723_v17  ;;  %v592_v24 = vpop.f32.mrf.mxu0  ;;  %v720_v25 = vpop.f32.mrf.mxu1 }
  0xe5   : > { %1315 = vst.msk [vmem:[%s1949_s23 + $0x98] sm:$0xf] %vm1276_vm5, %v1623_v18  ;;  %v1621_v26 = vpack.c.bf16 %v992_v22, %v992_v22  ;;  %v963_v27 = vsel %vm835_vm0, %v1691_v16, %v899_v20  ;;  %vm833_vm2 = vcmp.ge.f32.partialorder %v592_v24, 0.0  ;;  %v897_v28 = vmul.f32 0.05, %v592_v24 }
  0xe6   : > { %1281 = vst.msk [vmem:[%s1949_s23 + $0x10] sm:$0xf] %vm1276_vm5, %v1589_v21  ;;  %v1592_v29 = vpack.c.bf16 %v963_v27, %v963_v27  ;;  %v995_v30 = vsel %vm867_vm1, %v1723_v17, %v931_v23  ;;  %vm865_vm3 = vcmp.ge.f32.partialorder %v720_v25, 0.0  ;;  %v929_v31 = vmul.f32 0.05, %v720_v25  ;;  %v1694_v32 = vpop.f32.mrf.mxu0  ;;  %v1726_v33 = vpop.f32.mrf.mxu1 }
  0xe7   : > { %1313 = vst.msk [vmem:[%s1949_s23 + $0x90] sm:$0xf] %vm1276_vm5, %v1621_v26  ;;  %v1624_v34 = vpack.c.bf16 %v995_v30, %v995_v30  ;;  %v961_v35 = vsel %vm833_vm2, %v592_v24, %v897_v28  ;;  %vm838_vm4 = vcmp.ge.f32.partialorder %v1694_v32, 0.0  ;;  %v902_v36 = vmul.f32 0.05, %v1694_v32 }
  0xe8   : > { %1284 = vst.msk [vmem:[%s1949_s23 + $0x1c] sm:$0xf] %vm1276_vm5, %v1592_v29  ;;  %v1590_v37 = vpack.c.bf16 %v961_v35, %v961_v35  ;;  %v993_v38 = vsel %vm865_vm3, %v720_v25, %v929_v31  ;;  %vm870_vm6 = vcmp.ge.f32.partialorder %v1726_v33, 0.0  ;;  %v934_v39 = vmul.f32 0.05, %v1726_v33  ;;  %v605_v40 = vpop.f32.mrf.mxu0  ;;  %v733_v41 = vpop.f32.mrf.mxu1 }
  0xe9   : > { %1316 = vst.msk [vmem:[%s1949_s23 + $0x9c] sm:$0xf] %vm1276_vm5, %v1624_v34  ;;  %v1622_v42 = vpack.c.bf16 %v993_v38, %v993_v38  ;;  %v966_v43 = vsel %vm838_vm4, %v1694_v32, %v902_v36  ;;  %vm836_vm7 = vcmp.ge.f32.partialorder %v605_v40, 0.0  ;;  %v900_v44 = vmul.f32 0.05, %v605_v40 }
  0xea   : > { %1282 = vst.msk [vmem:[%s1949_s23 + $0x14] sm:$0xf] %vm1276_vm5, %v1590_v37  ;;  %v1595_v45 = vpack.c.bf16 %v966_v43, %v966_v43  ;;  %v998_v46 = vsel %vm870_vm6, %v1726_v33, %v934_v39  ;;  %vm868_vm8 = vcmp.ge.f32.partialorder %v733_v41, 0.0  ;;  %v932_v47 = vmul.f32 0.05, %v733_v41  ;;  %v1695_v48 = vpop.f32.mrf.mxu0  ;;  %v1727_v49 = vpop.f32.mrf.mxu1 }
  0xeb   : > { %1314 = vst.msk [vmem:[%s1949_s23 + $0x94] sm:$0xf] %vm1276_vm5, %v1622_v42  ;;  %v1627_v50 = vpack.c.bf16 %v998_v46, %v998_v46  ;;  %v964_v51 = vsel %vm836_vm7, %v605_v40, %v900_v44  ;;  %vm839_vm9 = vcmp.ge.f32.partialorder %v1695_v48, 0.0  ;;  %v903_v52 = vmul.f32 0.05, %v1695_v48 }
  0xec   : > { %1287 = vst.msk [vmem:[%s1949_s23 + $0x28] sm:$0xf] %vm1276_vm5, %v1595_v45  ;;  %v1593_v53 = vpack.c.bf16 %v964_v51, %v964_v51  ;;  %v996_v54 = vsel %vm868_vm8, %v733_v41, %v932_v47  ;;  %vm871_vm10 = vcmp.ge.f32.partialorder %v1727_v49, 0.0  ;;  %v935_v55 = vmul.f32 0.05, %v1727_v49  ;;  %v608_v56 = vpop.f32.mrf.mxu0  ;;  %v736_v57 = vpop.f32.mrf.mxu1 }
  0xed   : > { %1319 = vst.msk [vmem:[%s1949_s23 + $0xa8] sm:$0xf] %vm1276_vm5, %v1627_v50  ;;  %v1625_v58 = vpack.c.bf16 %v996_v54, %v996_v54  ;;  %v967_v59 = vsel %vm839_vm9, %v1695_v48, %v903_v52  ;;  %vm837_vm11 = vcmp.ge.f32.partialorder %v608_v56, 0.0  ;;  %v901_v60 = vmul.f32 0.05, %v608_v56 }
  0xee   : > { %1285 = vst.msk [vmem:[%s1949_s23 + $0x20] sm:$0xf] %vm1276_vm5, %v1593_v53  ;;  %v1596_v61 = vpack.c.bf16 %v967_v59, %v967_v59  ;;  %v999_v62 = vsel %vm871_vm10, %v1727_v49, %v935_v55  ;;  %vm869_vm12 = vcmp.ge.f32.partialorder %v736_v57, 0.0  ;;  %v933_v63 = vmul.f32 0.05, %v736_v57  ;;  %v1698_v0 = vpop.f32.mrf.mxu0  ;;  %v1730_v1 = vpop.f32.mrf.mxu1 }
  0xef   : > { %1317 = vst.msk [vmem:[%s1949_s23 + $0xa0] sm:$0xf] %vm1276_vm5, %v1625_v58  ;;  %v1628_v2 = vpack.c.bf16 %v999_v62, %v999_v62  ;;  %v965_v3 = vsel %vm837_vm11, %v608_v56, %v901_v60  ;;  %vm842_vm13 = vcmp.ge.f32.partialorder %v1698_v0, 0.0  ;;  %v906_v4 = vmul.f32 0.05, %v1698_v0 }
  0xf0   : > { %1288 = vst.msk [vmem:[%s1949_s23 + $0x2c] sm:$0xf] %vm1276_vm5, %v1596_v61  ;;  %v1594_v5 = vpack.c.bf16 %v965_v3, %v965_v3  ;;  %v997_v6 = vsel %vm869_vm12, %v736_v57, %v933_v63  ;;  %vm874_vm14 = vcmp.ge.f32.partialorder %v1730_v1, 0.0  ;;  %v938_v7 = vmul.f32 0.05, %v1730_v1  ;;  %v621_v8 = vpop.f32.mrf.mxu0  ;;  %v749_v9 = vpop.f32.mrf.mxu1 }
  0xf1   : > { %1320 = vst.msk [vmem:[%s1949_s23 + $0xac] sm:$0xf] %vm1276_vm5, %v1628_v2  ;;  %v1626_v10 = vpack.c.bf16 %v997_v6, %v997_v6  ;;  %v970_v11 = vsel %vm842_vm13, %v1698_v0, %v906_v4  ;;  %vm840_vm15 = vcmp.ge.f32.partialorder %v621_v8, 0.0  ;;  %v904_v12 = vmul.f32 0.05, %v621_v8 }
  0xf2   : > { %1286 = vst.msk [vmem:[%s1949_s23 + $0x24] sm:$0xf] %vm1276_vm5, %v1594_v5  ;;  %v1599_v13 = vpack.c.bf16 %v970_v11, %v970_v11  ;;  %v1002_v14 = vsel %vm874_vm14, %v1730_v1, %v938_v7  ;;  %vm872_vm0 = vcmp.ge.f32.partialorder %v749_v9, 0.0  ;;  %v936_v15 = vmul.f32 0.05, %v749_v9  ;;  %v1699_v16 = vpop.f32.mrf.mxu0  ;;  %v1731_v17 = vpop.f32.mrf.mxu1 }
  0xf3   : > { %1318 = vst.msk [vmem:[%s1949_s23 + $0xa4] sm:$0xf] %vm1276_vm5, %v1626_v10  ;;  %v1631_v18 = vpack.c.bf16 %v1002_v14, %v1002_v14  ;;  %v968_v19 = vsel %vm840_vm15, %v621_v8, %v904_v12  ;;  %vm843_vm1 = vcmp.ge.f32.partialorder %v1699_v16, 0.0  ;;  %v907_v20 = vmul.f32 0.05, %v1699_v16 }
  0xf4   : > { %1291 = vst.msk [vmem:[%s1949_s23 + $0x38] sm:$0xf] %vm1276_vm5, %v1599_v13  ;;  %v1597_v21 = vpack.c.bf16 %v968_v19, %v968_v19  ;;  %v1000_v22 = vsel %vm872_vm0, %v749_v9, %v936_v15  ;;  %vm875_vm2 = vcmp.ge.f32.partialorder %v1731_v17, 0.0  ;;  %v939_v23 = vmul.f32 0.05, %v1731_v17  ;;  %v624_v24 = vpop.f32.mrf.mxu0  ;;  %v752_v25 = vpop.f32.mrf.mxu1 }
  0xf5   : > { %1323 = vst.msk [vmem:[%s1949_s23 + $0xb8] sm:$0xf] %vm1276_vm5, %v1631_v18  ;;  %v1629_v26 = vpack.c.bf16 %v1000_v22, %v1000_v22  ;;  %v971_v27 = vsel %vm843_vm1, %v1699_v16, %v907_v20  ;;  %vm841_vm3 = vcmp.ge.f32.partialorder %v624_v24, 0.0  ;;  %v905_v28 = vmul.f32 0.05, %v624_v24 }
  0xf6   : > { %1289 = vst.msk [vmem:[%s1949_s23 + $0x30] sm:$0xf] %vm1276_vm5, %v1597_v21  ;;  %v1600_v29 = vpack.c.bf16 %v971_v27, %v971_v27  ;;  %v1003_v30 = vsel %vm875_vm2, %v1731_v17, %v939_v23  ;;  %vm873_vm4 = vcmp.ge.f32.partialorder %v752_v25, 0.0  ;;  %v937_v31 = vmul.f32 0.05, %v752_v25  ;;  %v1702_v32 = vpop.f32.mrf.mxu0  ;;  %v1734_v33 = vpop.f32.mrf.mxu1 }
  0xf7   : > { %1321 = vst.msk [vmem:[%s1949_s23 + $0xb0] sm:$0xf] %vm1276_vm5, %v1629_v26  ;;  %v1632_v34 = vpack.c.bf16 %v1003_v30, %v1003_v30  ;;  %v969_v35 = vsel %vm841_vm3, %v624_v24, %v905_v28  ;;  %vm846_vm6 = vcmp.ge.f32.partialorder %v1702_v32, 0.0  ;;  %v910_v36 = vmul.f32 0.05, %v1702_v32 }
  0xf8   : > { %1292 = vst.msk [vmem:[%s1949_s23 + $0x3c] sm:$0xf] %vm1276_vm5, %v1600_v29  ;;  %v1598_v37 = vpack.c.bf16 %v969_v35, %v969_v35  ;;  %v1001_v38 = vsel %vm873_vm4, %v752_v25, %v937_v31  ;;  %vm878_vm7 = vcmp.ge.f32.partialorder %v1734_v33, 0.0  ;;  %v942_v39 = vmul.f32 0.05, %v1734_v33  ;;  %v637_v40 = vpop.f32.mrf.mxu0  ;;  %v765_v41 = vpop.f32.mrf.mxu1 }
  0xf9   : > { %1324 = vst.msk [vmem:[%s1949_s23 + $0xbc] sm:$0xf] %vm1276_vm5, %v1632_v34  ;;  %v1630_v42 = vpack.c.bf16 %v1001_v38, %v1001_v38  ;;  %v974_v43 = vsel %vm846_vm6, %v1702_v32, %v910_v36  ;;  %vm844_vm8 = vcmp.ge.f32.partialorder %v637_v40, 0.0  ;;  %v908_v44 = vmul.f32 0.05, %v637_v40 }
  0xfa   : > { %1290 = vst.msk [vmem:[%s1949_s23 + $0x34] sm:$0xf] %vm1276_vm5, %v1598_v37  ;;  %v1603_v45 = vpack.c.bf16 %v974_v43, %v974_v43  ;;  %v1006_v46 = vsel %vm878_vm7, %v1734_v33, %v942_v39  ;;  %vm876_vm9 = vcmp.ge.f32.partialorder %v765_v41, 0.0  ;;  %v940_v47 = vmul.f32 0.05, %v765_v41  ;;  %v1703_v48 = vpop.f32.mrf.mxu0  ;;  %v1735_v49 = vpop.f32.mrf.mxu1 }
  0xfb   : > { %1322 = vst.msk [vmem:[%s1949_s23 + $0xb4] sm:$0xf] %vm1276_vm5, %v1630_v42  ;;  %v1635_v50 = vpack.c.bf16 %v1006_v46, %v1006_v46  ;;  %v972_v51 = vsel %vm844_vm8, %v637_v40, %v908_v44  ;;  %vm847_vm10 = vcmp.ge.f32.partialorder %v1703_v48, 0.0  ;;  %v911_v52 = vmul.f32 0.05, %v1703_v48 }
  0xfc   : > { %1295 = vst.msk [vmem:[%s1949_s23 + $0x48] sm:$0xf] %vm1276_vm5, %v1603_v45  ;;  %v1601_v53 = vpack.c.bf16 %v972_v51, %v972_v51  ;;  %v1004_v54 = vsel %vm876_vm9, %v765_v41, %v940_v47  ;;  %vm879_vm11 = vcmp.ge.f32.partialorder %v1735_v49, 0.0  ;;  %v943_v55 = vmul.f32 0.05, %v1735_v49  ;;  %v640_v56 = vpop.f32.mrf.mxu0  ;;  %v768_v57 = vpop.f32.mrf.mxu1 }
  0xfd   : > { %1327 = vst.msk [vmem:[%s1949_s23 + $0xc8] sm:$0xf] %vm1276_vm5, %v1635_v50  ;;  %v1633_v58 = vpack.c.bf16 %v1004_v54, %v1004_v54  ;;  %v975_v59 = vsel %vm847_vm10, %v1703_v48, %v911_v52  ;;  %vm845_vm12 = vcmp.ge.f32.partialorder %v640_v56, 0.0  ;;  %v909_v60 = vmul.f32 0.05, %v640_v56 }
  0xfe   : > { %1293 = vst.msk [vmem:[%s1949_s23 + $0x40] sm:$0xf] %vm1276_vm5, %v1601_v53  ;;  %v1604_v61 = vpack.c.bf16 %v975_v59, %v975_v59  ;;  %v1007_v62 = vsel %vm879_vm11, %v1735_v49, %v943_v55  ;;  %vm877_vm13 = vcmp.ge.f32.partialorder %v768_v57, 0.0  ;;  %v941_v63 = vmul.f32 0.05, %v768_v57  ;;  %v1706_v0 = vpop.f32.mrf.mxu0  ;;  %v1738_v1 = vpop.f32.mrf.mxu1 }
  0xff   : > { %1325 = vst.msk [vmem:[%s1949_s23 + $0xc0] sm:$0xf] %vm1276_vm5, %v1633_v58  ;;  %v1636_v2 = vpack.c.bf16 %v1007_v62, %v1007_v62  ;;  %v973_v3 = vsel %vm845_vm12, %v640_v56, %v909_v60  ;;  %vm850_vm14 = vcmp.ge.f32.partialorder %v1706_v0, 0.0  ;;  %v914_v4 = vmul.f32 0.05, %v1706_v0 }
 0x100   : > { %1296 = vst.msk [vmem:[%s1949_s23 + $0x4c] sm:$0xf] %vm1276_vm5, %v1604_v61  ;;  %v1602_v5 = vpack.c.bf16 %v973_v3, %v973_v3  ;;  %v1005_v6 = vsel %vm877_vm13, %v768_v57, %v941_v63  ;;  %vm882_vm15 = vcmp.ge.f32.partialorder %v1738_v1, 0.0  ;;  %v946_v7 = vmul.f32 0.05, %v1738_v1  ;;  %v653_v8 = vpop.f32.mrf.mxu0  ;;  %v781_v9 = vpop.f32.mrf.mxu1 }
 0x101   : > { %1328 = vst.msk [vmem:[%s1949_s23 + $0xcc] sm:$0xf] %vm1276_vm5, %v1636_v2  ;;  %v1634_v10 = vpack.c.bf16 %v1005_v6, %v1005_v6  ;;  %v978_v11 = vsel %vm850_vm14, %v1706_v0, %v914_v4  ;;  %vm848_vm0 = vcmp.ge.f32.partialorder %v653_v8, 0.0  ;;  %v912_v12 = vmul.f32 0.05, %v653_v8 }
 0x102   : > { %1294 = vst.msk [vmem:[%s1949_s23 + $0x44] sm:$0xf] %vm1276_vm5, %v1602_v5  ;;  %v1607_v13 = vpack.c.bf16 %v978_v11, %v978_v11  ;;  %v1010_v14 = vsel %vm882_vm15, %v1738_v1, %v946_v7  ;;  %vm880_vm1 = vcmp.ge.f32.partialorder %v781_v9, 0.0  ;;  %v944_v15 = vmul.f32 0.05, %v781_v9  ;;  %v1707_v16 = vpop.f32.mrf.mxu0  ;;  %v1739_v17 = vpop.f32.mrf.mxu1 }
 0x103   : > { %1326 = vst.msk [vmem:[%s1949_s23 + $0xc4] sm:$0xf] %vm1276_vm5, %v1634_v10  ;;  %v1639_v18 = vpack.c.bf16 %v1010_v14, %v1010_v14  ;;  %v976_v19 = vsel %vm848_vm0, %v653_v8, %v912_v12  ;;  %vm851_vm2 = vcmp.ge.f32.partialorder %v1707_v16, 0.0  ;;  %v915_v20 = vmul.f32 0.05, %v1707_v16 }
 0x104   : > { %1299 = vst.msk [vmem:[%s1949_s23 + $0x58] sm:$0xf] %vm1276_vm5, %v1607_v13  ;;  %v1605_v21 = vpack.c.bf16 %v976_v19, %v976_v19  ;;  %v1008_v22 = vsel %vm880_vm1, %v781_v9, %v944_v15  ;;  %vm883_vm3 = vcmp.ge.f32.partialorder %v1739_v17, 0.0  ;;  %v947_v23 = vmul.f32 0.05, %v1739_v17  ;;  %v656_v24 = vpop.f32.mrf.mxu0  ;;  %v784_v25 = vpop.f32.mrf.mxu1 }
 0x105   : > { %1331 = vst.msk [vmem:[%s1949_s23 + $0xd8] sm:$0xf] %vm1276_vm5, %v1639_v18  ;;  %v1637_v26 = vpack.c.bf16 %v1008_v22, %v1008_v22  ;;  %v979_v27 = vsel %vm851_vm2, %v1707_v16, %v915_v20  ;;  %vm849_vm4 = vcmp.ge.f32.partialorder %v656_v24, 0.0  ;;  %v913_v28 = vmul.f32 0.05, %v656_v24 }
 0x106   : > { %1297 = vst.msk [vmem:[%s1949_s23 + $0x50] sm:$0xf] %vm1276_vm5, %v1605_v21  ;;  %v1608_v29 = vpack.c.bf16 %v979_v27, %v979_v27  ;;  %v1011_v30 = vsel %vm883_vm3, %v1739_v17, %v947_v23  ;;  %vm881_vm6 = vcmp.ge.f32.partialorder %v784_v25, 0.0  ;;  %v945_v31 = vmul.f32 0.05, %v784_v25  ;;  %v1710_v32 = vpop.f32.mrf.mxu0  ;;  %v1742_v33 = vpop.f32.mrf.mxu1 }
 0x107   : > { %1329 = vst.msk [vmem:[%s1949_s23 + $0xd0] sm:$0xf] %vm1276_vm5, %v1637_v26  ;;  %v1640_v34 = vpack.c.bf16 %v1011_v30, %v1011_v30  ;;  %v977_v35 = vsel %vm849_vm4, %v656_v24, %v913_v28  ;;  %vm854_vm7 = vcmp.ge.f32.partialorder %v1710_v32, 0.0  ;;  %v918_v36 = vmul.f32 0.05, %v1710_v32 }
 0x108   : > { %1300 = vst.msk [vmem:[%s1949_s23 + $0x5c] sm:$0xf] %vm1276_vm5, %v1608_v29  ;;  %v1606_v37 = vpack.c.bf16 %v977_v35, %v977_v35  ;;  %v1009_v38 = vsel %vm881_vm6, %v784_v25, %v945_v31  ;;  %vm886_vm8 = vcmp.ge.f32.partialorder %v1742_v33, 0.0  ;;  %v950_v39 = vmul.f32 0.05, %v1742_v33  ;;  %v669_v40 = vpop.f32.mrf.mxu0  ;;  %v797_v41 = vpop.f32.mrf.mxu1 }
 0x109   : > { %1332 = vst.msk [vmem:[%s1949_s23 + $0xdc] sm:$0xf] %vm1276_vm5, %v1640_v34  ;;  %v1638_v42 = vpack.c.bf16 %v1009_v38, %v1009_v38  ;;  %v982_v43 = vsel %vm854_vm7, %v1710_v32, %v918_v36  ;;  %vm852_vm9 = vcmp.ge.f32.partialorder %v669_v40, 0.0  ;;  %v916_v44 = vmul.f32 0.05, %v669_v40 }
 0x10a   : > { %1298 = vst.msk [vmem:[%s1949_s23 + $0x54] sm:$0xf] %vm1276_vm5, %v1606_v37  ;;  %v1611_v45 = vpack.c.bf16 %v982_v43, %v982_v43  ;;  %v1014_v46 = vsel %vm886_vm8, %v1742_v33, %v950_v39  ;;  %vm884_vm10 = vcmp.ge.f32.partialorder %v797_v41, 0.0  ;;  %v948_v47 = vmul.f32 0.05, %v797_v41  ;;  %v1711_v48 = vpop.f32.mrf.mxu0  ;;  %v1743_v49 = vpop.f32.mrf.mxu1 }
 0x10b   : > { %1330 = vst.msk [vmem:[%s1949_s23 + $0xd4] sm:$0xf] %vm1276_vm5, %v1638_v42  ;;  %v1643_v50 = vpack.c.bf16 %v1014_v46, %v1014_v46  ;;  %v980_v51 = vsel %vm852_vm9, %v669_v40, %v916_v44  ;;  %vm855_vm11 = vcmp.ge.f32.partialorder %v1711_v48, 0.0  ;;  %v919_v52 = vmul.f32 0.05, %v1711_v48 }
 0x10c   : > { %1303 = vst.msk [vmem:[%s1949_s23 + $0x68] sm:$0xf] %vm1276_vm5, %v1611_v45  ;;  %v1609_v53 = vpack.c.bf16 %v980_v51, %v980_v51  ;;  %v1012_v54 = vsel %vm884_vm10, %v797_v41, %v948_v47  ;;  %vm887_vm12 = vcmp.ge.f32.partialorder %v1743_v49, 0.0  ;;  %v951_v55 = vmul.f32 0.05, %v1743_v49  ;;  %v672_v56 = vpop.f32.mrf.mxu0  ;;  %v800_v57 = vpop.f32.mrf.mxu1 }
 0x10d   : > { %1335 = vst.msk [vmem:[%s1949_s23 + $0xe8] sm:$0xf] %vm1276_vm5, %v1643_v50  ;;  %v1641_v58 = vpack.c.bf16 %v1012_v54, %v1012_v54  ;;  %v983_v59 = vsel %vm855_vm11, %v1711_v48, %v919_v52  ;;  %vm853_vm13 = vcmp.ge.f32.partialorder %v672_v56, 0.0  ;;  %v917_v60 = vmul.f32 0.05, %v672_v56 }
 0x10e   : > { %1301 = vst.msk [vmem:[%s1949_s23 + $0x60] sm:$0xf] %vm1276_vm5, %v1609_v53  ;;  %v1612_v61 = vpack.c.bf16 %v983_v59, %v983_v59  ;;  %v1015_v62 = vsel %vm887_vm12, %v1743_v49, %v951_v55  ;;  %vm885_vm14 = vcmp.ge.f32.partialorder %v800_v57, 0.0  ;;  %v949_v63 = vmul.f32 0.05, %v800_v57  ;;  %v1714_v0 = vpop.f32.mrf.mxu0  ;;  %v1746_v1 = vpop.f32.mrf.mxu1 }
 0x10f   : > { %1333 = vst.msk [vmem:[%s1949_s23 + $0xe0] sm:$0xf] %vm1276_vm5, %v1641_v58  ;;  %v1644_v2 = vpack.c.bf16 %v1015_v62, %v1015_v62  ;;  %v981_v3 = vsel %vm853_vm13, %v672_v56, %v917_v60  ;;  %vm858_vm15 = vcmp.ge.f32.partialorder %v1714_v0, 0.0  ;;  %v922_v4 = vmul.f32 0.05, %v1714_v0 }
 0x110   : > { %1304 = vst.msk [vmem:[%s1949_s23 + $0x6c] sm:$0xf] %vm1276_vm5, %v1612_v61  ;;  %v1610_v5 = vpack.c.bf16 %v981_v3, %v981_v3  ;;  %v1013_v6 = vsel %vm885_vm14, %v800_v57, %v949_v63  ;;  %vm890_vm0 = vcmp.ge.f32.partialorder %v1746_v1, 0.0  ;;  %v954_v7 = vmul.f32 0.05, %v1746_v1  ;;  %v685_v8 = vpop.f32.mrf.mxu0  ;;  %v813_v9 = vpop.f32.mrf.mxu1 }
 0x111   : > { %1336 = vst.msk [vmem:[%s1949_s23 + $0xec] sm:$0xf] %vm1276_vm5, %v1644_v2  ;;  %v1642_v10 = vpack.c.bf16 %v1013_v6, %v1013_v6  ;;  %v986_v11 = vsel %vm858_vm15, %v1714_v0, %v922_v4  ;;  %vm856_vm1 = vcmp.ge.f32.partialorder %v685_v8, 0.0  ;;  %v920_v12 = vmul.f32 0.05, %v685_v8 }
 0x112   : > { %1302 = vst.msk [vmem:[%s1949_s23 + $0x64] sm:$0xf] %vm1276_vm5, %v1610_v5  ;;  %v1615_v13 = vpack.c.bf16 %v986_v11, %v986_v11  ;;  %v1018_v14 = vsel %vm890_vm0, %v1746_v1, %v954_v7  ;;  %vm888_vm2 = vcmp.ge.f32.partialorder %v813_v9, 0.0  ;;  %v952_v15 = vmul.f32 0.05, %v813_v9  ;;  %v1715_v16 = vpop.f32.mrf.mxu0  ;;  %v1747_v17 = vpop.f32.mrf.mxu1 }
 0x113   : > { %1334 = vst.msk [vmem:[%s1949_s23 + $0xe4] sm:$0xf] %vm1276_vm5, %v1642_v10  ;;  %v1647_v18 = vpack.c.bf16 %v1018_v14, %v1018_v14  ;;  %v984_v19 = vsel %vm856_vm1, %v685_v8, %v920_v12  ;;  %vm859_vm3 = vcmp.ge.f32.partialorder %v1715_v16, 0.0  ;;  %v923_v20 = vmul.f32 0.05, %v1715_v16 }
 0x114   : > { %1307 = vst.msk [vmem:[%s1949_s23 + $0x78] sm:$0xf] %vm1276_vm5, %v1615_v13  ;;  %v1613_v21 = vpack.c.bf16 %v984_v19, %v984_v19  ;;  %v1016_v22 = vsel %vm888_vm2, %v813_v9, %v952_v15  ;;  %vm891_vm4 = vcmp.ge.f32.partialorder %v1747_v17, 0.0  ;;  %v955_v23 = vmul.f32 0.05, %v1747_v17  ;;  %v688_v24 = vpop.f32.mrf.mxu0  ;;  %v816_v25 = vpop.f32.mrf.mxu1 }
 0x115   : > { %1339 = vst.msk [vmem:[%s1949_s23 + $0xf8] sm:$0xf] %vm1276_vm5, %v1647_v18  ;;  %v1645_v26 = vpack.c.bf16 %v1016_v22, %v1016_v22  ;;  %v987_v27 = vsel %vm859_vm3, %v1715_v16, %v923_v20  ;;  %vm857_vm6 = vcmp.ge.f32.partialorder %v688_v24, 0.0  ;;  %v921_v28 = vmul.f32 0.05, %v688_v24 }
 0x116   : > { %1305 = vst.msk [vmem:[%s1949_s23 + $0x70] sm:$0xf] %vm1276_vm5, %v1613_v21  ;;  %v1616_v29 = vpack.c.bf16 %v987_v27, %v987_v27  ;;  %v1019_v30 = vsel %vm891_vm4, %v1747_v17, %v955_v23  ;;  %vm889_vm7 = vcmp.ge.f32.partialorder %v816_v25, 0.0  ;;  %v953_v31 = vmul.f32 0.05, %v816_v25 }
 0x117   : > { %1337 = vst.msk [vmem:[%s1949_s23 + $0xf0] sm:$0xf] %vm1276_vm5, %v1645_v26  ;;  %v1648_v32 = vpack.c.bf16 %v1019_v30, %v1019_v30  ;;  %v985_v33 = vsel %vm857_vm6, %v688_v24, %v921_v28 }
 0x118   : > { %1308 = vst.msk [vmem:[%s1949_s23 + $0x7c] sm:$0xf] %vm1276_vm5, %v1616_v29  ;;  %v1614_v34 = vpack.c.bf16 %v985_v33, %v985_v33  ;;  %v1017_v35 = vsel %vm889_vm7, %v816_v25, %v953_v31 }
 0x119   : > { %1340 = vst.msk [vmem:[%s1949_s23 + $0xfc] sm:$0xf] %vm1276_vm5, %v1648_v32  ;;  %v1646_v36 = vpack.c.bf16 %v1017_v35, %v1017_v35 }
 0x11a   : > { %1306 = vst.msk [vmem:[%s1949_s23 + $0x74] sm:$0xf] %vm1276_vm5, %v1614_v34 }
 0x11b   : > { %1338 = vst.msk [vmem:[%s1949_s23 + $0xf4] sm:$0xf] %vm1276_vm5, %v1646_v36 }
 0x11c PF: > { %s12_s11 = sadd.s32 1, %s1830_s11   ;;  %s2091_s9 = smov %s1826_s10 }
 0x11d   : > { %p9_p5 = scmp.ge.s32.totalorder %s12_s11, 4   ;;  %s2092_s10 = smov %s2094_s12 }
 0x11f   :  { %11 = sbr.rel (!%p9_p5) target bundleno = 2 (0x2), region = 61 }

// kernel: ffc_act_forward.12
= control target key start
LH: loop header
LB: loop body
LE: loop exit
PB: predicated region body
PF: predicated region fallthrough
CT: control target
= control target key end

     0   :  { %s1848_s9 = smov 0   ;;  %s1850_s10 = smov 0   ;;  %s2088_s0 = inlined_call_operand.vmem [shape: bf16[2,512,9], index: 0, kind: input, shape index: {}]   ;;  %s2089_s1 = inlined_call_operand.vmem [shape: bf16[2,9,2], index: 1, kind: input, shape index: {}]   ;;  %s2090_s2 = inlined_call_operand.vmem [shape: bf16[2,512,2], index: 2, kind: output, shape index: {}]  }
   0x1   :  { %s1852_s11 = smov 0  }
   0x2 LB: > { %s24_s12 = sadd.s32 1, %s1826_s10  ;;  %p1444_p0 = scmp.ge.s32.totalorder %s1830_s11, 1  ;;  %s1830_s11 = sphi %s1852_s11, %s12_s11   ;;  %s1826_s10 = sphi %s1850_s10, %s2092_s10   ;;  %s1822_s9 = sphi %s1848_s9, %s2091_s9  }
   0x3   : > { %p26_p1 = scmp.ge.s32.totalorder %s24_s12, 2  ;;  %p143_p2 = scmp.lt.s32.totalorder %s1830_s11, 3 }
   0x5   : > { %s2094_s12 = smov (%p26_p1, %s24_s12), 0  ;;  %p144_p3 = pnand %p1444_p0, %p143_p2 }
   0x6   : > { %p179_p4 = scmp.lt.s32.totalorder (!%p144_p3), %s1822_s9, 1 }
   0x7   : > { %147 = sbr.rel (%p144_p3) target bundleno = 284 (0x11c), region = 28 }
   0xc   : > { %vm532_vm0 = vcmask 1043456   ;;  %s2096_s9 = smov (!%p179_p4, %s1822_s9), 1  ;;  %vm533_vm1 = vcmask 1044480   ;;  %v1832_v0 = vmov 65535   ;;  %vm435_vm2 = vcmask 72704  }
   0xd   : > { %v534_v1 = vsel %vm532_vm0, 4294967295, %v1832_v0  ;;  %s1582_s13 = sshll.u32 %s2096_s9, 8  ;;  %s1583_s14 = sshll.u32 %s2096_s9, 3  ;;  %vm1276_vm5 = vcmask 11264  }
   0xe   : > { %s1875_s17 = scalar_lea.vmem %s2088_s0, %s1582_s13  ;;  %s192_s20 = scalar_lea.vmem %s2089_s1, %s1583_s14  ;;  %v535_v2 = vsel %vm533_vm1, %v534_v1, 0 }
   0xf   : > { %v1775_v3 = vld [vmem:[%s192_s20] sm:$0x1f]   ;;  %v1778_v7 = vld [vmem:[%s1875_s17 + $0x8] sm:$0xff]   ;;  %v1780_v9 = vld [vmem:[%s1875_s17 + $0x10] sm:$0xff]   ;;  %s1949_s23 = scalar_lea.vmem %s2090_s2, %s1582_s13 }
  0x10   : > { %v1776_v4 = vld [vmem:[%s1875_s17] sm:$0xff]   ;;  %v537_v5 = vand.u32 %v1775_v3, %v535_v2  ;;  %v1779_v8 = vld [vmem:[%s1875_s17 + $0x88] sm:$0xff]   ;;  %v1781_v10 = vld [vmem:[%s1875_s17 + $0x90] sm:$0xff]  }
  0x11   : > { %v1777_v6 = vld [vmem:[%s1875_s17 + $0x80] sm:$0xff]   ;;  %1684 = vmatprep.mubr.msk.bf16.mxu0 %vm435_vm2, %v1776_v4  ;;  %v1782_v11 = vld [vmem:[%s1875_s17 + $0x18] sm:$0xff]   ;;  %v1786_v15 = vld [vmem:[%s1875_s17 + $0x28] sm:$0xff]  }
  0x12   : > { %1682 = vmatprep.subr.bf16.mxu0 %v537_v5  ;;  %1748 = vmatprep.subr.bf16.mxu1 %v537_v5  ;;  %v1783_v12 = vld [vmem:[%s1875_s17 + $0x98] sm:$0xff]   ;;  %v1784_v13 = vld [vmem:[%s1875_s17 + $0x20] sm:$0xff]   ;;  %v1787_v16 = vld [vmem:[%s1875_s17 + $0xa8] sm:$0xff]  }
  0x13   : > { %1683 = vmatpush3.bf16.msra.mxu0 %v537_v5  ;;  %1749 = vmatpush3.bf16.msra.mxu1 %v537_v5  ;;  %v1785_v14 = vld [vmem:[%s1875_s17 + $0xa0] sm:$0xff]   ;;  %v1788_v17 = vld [vmem:[%s1875_s17 + $0x30] sm:$0xff]   ;;  %v1790_v19 = vld [vmem:[%s1875_s17 + $0x38] sm:$0xff]  }
  0x14   : > { %1716 = vmatprep.mubr.msk.bf16.mxu1 %vm435_vm2, %v1777_v6  ;;  %v1789_v18 = vld [vmem:[%s1875_s17 + $0xb0] sm:$0xff]   ;;  %v1791_v20 = vld [vmem:[%s1875_s17 + $0xb8] sm:$0xff]   ;;  %v1792_v21 = vld [vmem:[%s1875_s17 + $0x40] sm:$0xff]  }
  0x15   : > { %v1793_v22 = vld [vmem:[%s1875_s17 + $0xc0] sm:$0xff]   ;;  %v1794_v23 = vld [vmem:[%s1875_s17 + $0x48] sm:$0xff]   ;;  %v1796_v25 = vld [vmem:[%s1875_s17 + $0x50] sm:$0xff]  }
  0x16   : > { %1685 = vmatmul.mubr.msk.bf16.vlgmr.msra.gmra.mxu0 %vm435_vm2, %v1778_v7  ;;  %1717 = vmatmul.mubr.msk.bf16.vlgmr.msra.gmra.mxu1 %vm435_vm2, %v1779_v8  ;;  %v1795_v24 = vld [vmem:[%s1875_s17 + $0xc8] sm:$0xff]   ;;  %v1797_v26 = vld [vmem:[%s1875_s17 + $0xd0] sm:$0xff]   ;;  %v1798_v27 = vld [vmem:[%s1875_s17 + $0x58] sm:$0xff]  }
  0x17   : > { %1688 = vmatprep.mubr.msk.bf16.mxu0 %vm435_vm2, %v1780_v9  ;;  %1720 = vmatprep.mubr.msk.bf16.mxu1 %vm435_vm2, %v1781_v10  ;;  %v1799_v28 = vld [vmem:[%s1875_s17 + $0xd8] sm:$0xff]   ;;  %v1800_v29 = vld [vmem:[%s1875_s17 + $0x60] sm:$0xff]   ;;  %v1802_v31 = vld [vmem:[%s1875_s17 + $0x68] sm:$0xff]  }
  0x18   : > { %v1801_v30 = vld [vmem:[%s1875_s17 + $0xe0] sm:$0xff]   ;;  %v1803_v32 = vld [vmem:[%s1875_s17 + $0xe8] sm:$0xff]   ;;  %v1804_v33 = vld [vmem:[%s1875_s17 + $0x70] sm:$0xff]  }
  0x19   : > { %v1805_v34 = vld [vmem:[%s1875_s17 + $0xf0] sm:$0xff]   ;;  %v1806_v35 = vld [vmem:[%s1875_s17 + $0x78] sm:$0xff]  }
  0x1a   : > { %v1807_v36 = vld [vmem:[%s1875_s17 + $0xf8] sm:$0xff]  }
  0x1e   : > { %1689 = vmatmul.mubr.msk.bf16.gmra.mxu0 %vm435_vm2, %v1782_v11  ;;  %1721 = vmatmul.mubr.msk.bf16.gmra.mxu1 %vm435_vm2, %v1783_v12 }
  0x1f   : > { %1692 = vmatprep.mubr.msk.bf16.mxu0 %vm435_vm2, %v1784_v13  ;;  %1724 = vmatprep.mubr.msk.bf16.mxu1 %vm435_vm2, %v1785_v14 }
  0x26   : > { %1693 = vmatmul.mubr.msk.bf16.gmra.mxu0 %vm435_vm2, %v1786_v15  ;;  %1725 = vmatmul.mubr.msk.bf16.gmra.mxu1 %vm435_vm2, %v1787_v16 }
  0x27   : > { %1696 = vmatprep.mubr.msk.bf16.mxu0 %vm435_vm2, %v1788_v17  ;;  %1728 = vmatprep.mubr.msk.bf16.mxu1 %vm435_vm2, %v1789_v18 }
  0x2e   : > { %1697 = vmatmul.mubr.msk.bf16.gmra.mxu0 %vm435_vm2, %v1790_v19  ;;  %1729 = vmatmul.mubr.msk.bf16.gmra.mxu1 %vm435_vm2, %v1791_v20 }
  0x2f   : > { %1700 = vmatprep.mubr.msk.bf16.mxu0 %vm435_vm2, %v1792_v21  ;;  %1732 = vmatprep.mubr.msk.bf16.mxu1 %vm435_vm2, %v1793_v22 }
  0x36   : > { %1701 = vmatmul.mubr.msk.bf16.gmra.mxu0 %vm435_vm2, %v1794_v23  ;;  %1733 = vmatmul.mubr.msk.bf16.gmra.mxu1 %vm435_vm2, %v1795_v24 }
  0x37   : > { %1704 = vmatprep.mubr.msk.bf16.mxu0 %vm435_vm2, %v1796_v25  ;;  %1736 = vmatprep.mubr.msk.bf16.mxu1 %vm435_vm2, %v1797_v26 }
  0x3e   : > { %1705 = vmatmul.mubr.msk.bf16.gmra.mxu0 %vm435_vm2, %v1798_v27  ;;  %1737 = vmatmul.mubr.msk.bf16.gmra.mxu1 %vm435_vm2, %v1799_v28 }
  0x3f   : > { %1708 = vmatprep.mubr.msk.bf16.mxu0 %vm435_vm2, %v1800_v29  ;;  %1740 = vmatprep.mubr.msk.bf16.mxu1 %vm435_vm2, %v1801_v30 }
  0x46   : > { %1709 = vmatmul.mubr.msk.bf16.gmra.mxu0 %vm435_vm2, %v1802_v31  ;;  %1741 = vmatmul.mubr.msk.bf16.gmra.mxu1 %vm435_vm2, %v1803_v32 }
  0x47   : > { %1712 = vmatprep.mubr.msk.bf16.mxu0 %vm435_vm2, %v1804_v33  ;;  %1744 = vmatprep.mubr.msk.bf16.mxu1 %vm435_vm2, %v1805_v34 }
  0x4e   : > { %1713 = vmatmul.mubr.msk.bf16.gmra.mxu0 %vm435_vm2, %v1806_v35  ;;  %1745 = vmatmul.mubr.msk.bf16.gmra.mxu1 %vm435_vm2, %v1807_v36 }
  0xd6   : > { %v1686_v37 = vpop.f32.mrf.mxu0  ;;  %v1718_v38 = vpop.f32.mrf.mxu1 }
  0xd7   : > { %vm830_vm3 = vcmp.ge.f32.partialorder %v1686_v37, 0.0  ;;  %v894_v39 = vmul.f32 0.05, %v1686_v37  ;;  %vm862_vm4 = vcmp.ge.f32.partialorder %v1718_v38, 0.0  ;;  %v926_v40 = vmul.f32 0.05, %v1718_v38 }
  0xd8   : > { %v573_v41 = vpop.f32.mrf.mxu0  ;;  %v701_v42 = vpop.f32.mrf.mxu1 }
  0xd9   : > { %v958_v43 = vsel %vm830_vm3, %v1686_v37, %v894_v39  ;;  %v990_v44 = vsel %vm862_vm4, %v1718_v38, %v926_v40  ;;  %vm828_vm6 = vcmp.ge.f32.partialorder %v573_v41, 0.0  ;;  %v892_v45 = vmul.f32 0.05, %v573_v41 }
  0xda   : > { %v1587_v46 = vpack.c.bf16 %v958_v43, %v958_v43  ;;  %v1619_v47 = vpack.c.bf16 %v990_v44, %v990_v44  ;;  %vm860_vm7 = vcmp.ge.f32.partialorder %v701_v42, 0.0  ;;  %v924_v48 = vmul.f32 0.05, %v701_v42  ;;  %v1687_v49 = vpop.f32.mrf.mxu0  ;;  %v1719_v50 = vpop.f32.mrf.mxu1 }
  0xdb   : > { %v956_v51 = vsel %vm828_vm6, %v573_v41, %v892_v45  ;;  %vm831_vm8 = vcmp.ge.f32.partialorder %v1687_v49, 0.0  ;;  %v895_v52 = vmul.f32 0.05, %v1687_v49  ;;  %vm863_vm9 = vcmp.ge.f32.partialorder %v1719_v50, 0.0 }
  0xdc   : > { %1279 = vst.msk [vmem:[%s1949_s23 + $0x8] sm:$0xf] %vm1276_vm5, %v1587_v46  ;;  %1311 = vst.msk [vmem:[%s1949_s23 + $0x88] sm:$0xf] %vm1276_vm5, %v1619_v47  ;;  %v1585_v53 = vpack.c.bf16 %v956_v51, %v956_v51  ;;  %v988_v54 = vsel %vm860_vm7, %v701_v42, %v924_v48  ;;  %v927_v55 = vmul.f32 0.05, %v1719_v50  ;;  %v576_v56 = vpop.f32.mrf.mxu0  ;;  %v704_v57 = vpop.f32.mrf.mxu1 }
  0xdd   : > { %v1617_v58 = vpack.c.bf16 %v988_v54, %v988_v54  ;;  %v959_v59 = vsel %vm831_vm8, %v1687_v49, %v895_v52  ;;  %vm829_vm10 = vcmp.ge.f32.partialorder %v576_v56, 0.0  ;;  %v893_v60 = vmul.f32 0.05, %v576_v56 }
  0xde   : > { %1277 = vst.msk [vmem:[%s1949_s23] sm:$0xf] %vm1276_vm5, %v1585_v53  ;;  %v1588_v61 = vpack.c.bf16 %v959_v59, %v959_v59  ;;  %v991_v62 = vsel %vm863_vm9, %v1719_v50, %v927_v55  ;;  %vm861_vm11 = vcmp.ge.f32.partialorder %v704_v57, 0.0  ;;  %v925_v63 = vmul.f32 0.05, %v704_v57  ;;  %v1690_v0 = vpop.f32.mrf.mxu0  ;;  %v1722_v1 = vpop.f32.mrf.mxu1 }
  0xdf   : > { %1309 = vst.msk [vmem:[%s1949_s23 + $0x80] sm:$0xf] %vm1276_vm5, %v1617_v58  ;;  %v1620_v2 = vpack.c.bf16 %v991_v62, %v991_v62  ;;  %v957_v3 = vsel %vm829_vm10, %v576_v56, %v893_v60  ;;  %vm834_vm12 = vcmp.ge.f32.partialorder %v1690_v0, 0.0  ;;  %v898_v4 = vmul.f32 0.05, %v1690_v0 }
  0xe0   : > { %1280 = vst.msk [vmem:[%s1949_s23 + $0xc] sm:$0xf] %vm1276_vm5, %v1588_v61  ;;  %v1586_v5 = vpack.c.bf16 %v957_v3, %v957_v3  ;;  %v989_v6 = vsel %vm861_vm11, %v704_v57, %v925_v63  ;;  %vm866_vm13 = vcmp.ge.f32.partialorder %v1722_v1, 0.0  ;;  %v930_v7 = vmul.f32 0.05, %v1722_v1  ;;  %v589_v8 = vpop.f32.mrf.mxu0  ;;  %v717_v9 = vpop.f32.mrf.mxu1 }
  0xe1   : > { %1312 = vst.msk [vmem:[%s1949_s23 + $0x8c] sm:$0xf] %vm1276_vm5, %v1620_v2  ;;  %v1618_v10 = vpack.c.bf16 %v989_v6, %v989_v6  ;;  %v962_v11 = vsel %vm834_vm12, %v1690_v0, %v898_v4  ;;  %vm832_vm14 = vcmp.ge.f32.partialorder %v589_v8, 0.0  ;;  %v896_v12 = vmul.f32 0.05, %v589_v8 }
  0xe2   : > { %1278 = vst.msk [vmem:[%s1949_s23 + $0x4] sm:$0xf] %vm1276_vm5, %v1586_v5  ;;  %v1591_v13 = vpack.c.bf16 %v962_v11, %v962_v11  ;;  %v994_v14 = vsel %vm866_vm13, %v1722_v1, %v930_v7  ;;  %vm864_vm15 = vcmp.ge.f32.partialorder %v717_v9, 0.0  ;;  %v928_v15 = vmul.f32 0.05, %v717_v9  ;;  %v1691_v16 = vpop.f32.mrf.mxu0  ;;  %v1723_v17 = vpop.f32.mrf.mxu1 }
  0xe3   : > { %1310 = vst.msk [vmem:[%s1949_s23 + $0x84] sm:$0xf] %vm1276_vm5, %v1618_v10  ;;  %v1623_v18 = vpack.c.bf16 %v994_v14, %v994_v14  ;;  %v960_v19 = vsel %vm832_vm14, %v589_v8, %v896_v12  ;;  %vm835_vm0 = vcmp.ge.f32.partialorder %v1691_v16, 0.0  ;;  %v899_v20 = vmul.f32 0.05, %v1691_v16 }
  0xe4   : > { %1283 = vst.msk [vmem:[%s1949_s23 + $0x18] sm:$0xf] %vm1276_vm5, %v1591_v13  ;;  %v1589_v21 = vpack.c.bf16 %v960_v19, %v960_v19  ;;  %v992_v22 = vsel %vm864_vm15, %v717_v9, %v928_v15  ;;  %vm867_vm1 = vcmp.ge.f32.partialorder %v1723_v17, 0.0  ;;  %v931_v23 = vmul.f32 0.05, %v1723_v17  ;;  %v592_v24 = vpop.f32.mrf.mxu0  ;;  %v720_v25 = vpop.f32.mrf.mxu1 }
  0xe5   : > { %1315 = vst.msk [vmem:[%s1949_s23 + $0x98] sm:$0xf] %vm1276_vm5, %v1623_v18  ;;  %v1621_v26 = vpack.c.bf16 %v992_v22, %v992_v22  ;;  %v963_v27 = vsel %vm835_vm0, %v1691_v16, %v899_v20  ;;  %vm833_vm2 = vcmp.ge.f32.partialorder %v592_v24, 0.0  ;;  %v897_v28 = vmul.f32 0.05, %v592_v24 }
  0xe6   : > { %1281 = vst.msk [vmem:[%s1949_s23 + $0x10] sm:$0xf] %vm1276_vm5, %v1589_v21  ;;  %v1592_v29 = vpack.c.bf16 %v963_v27, %v963_v27  ;;  %v995_v30 = vsel %vm867_vm1, %v1723_v17, %v931_v23  ;;  %vm865_vm3 = vcmp.ge.f32.partialorder %v720_v25, 0.0  ;;  %v929_v31 = vmul.f32 0.05, %v720_v25  ;;  %v1694_v32 = vpop.f32.mrf.mxu0  ;;  %v1726_v33 = vpop.f32.mrf.mxu1 }
  0xe7   : > { %1313 = vst.msk [vmem:[%s1949_s23 + $0x90] sm:$0xf] %vm1276_vm5, %v1621_v26  ;;  %v1624_v34 = vpack.c.bf16 %v995_v30, %v995_v30  ;;  %v961_v35 = vsel %vm833_vm2, %v592_v24, %v897_v28  ;;  %vm838_vm4 = vcmp.ge.f32.partialorder %v1694_v32, 0.0  ;;  %v902_v36 = vmul.f32 0.05, %v1694_v32 }
  0xe8   : > { %1284 = vst.msk [vmem:[%s1949_s23 + $0x1c] sm:$0xf] %vm1276_vm5, %v1592_v29  ;;  %v1590_v37 = vpack.c.bf16 %v961_v35, %v961_v35  ;;  %v993_v38 = vsel %vm865_vm3, %v720_v25, %v929_v31  ;;  %vm870_vm6 = vcmp.ge.f32.partialorder %v1726_v33, 0.0  ;;  %v934_v39 = vmul.f32 0.05, %v1726_v33  ;;  %v605_v40 = vpop.f32.mrf.mxu0  ;;  %v733_v41 = vpop.f32.mrf.mxu1 }
  0xe9   : > { %1316 = vst.msk [vmem:[%s1949_s23 + $0x9c] sm:$0xf] %vm1276_vm5, %v1624_v34  ;;  %v1622_v42 = vpack.c.bf16 %v993_v38, %v993_v38  ;;  %v966_v43 = vsel %vm838_vm4, %v1694_v32, %v902_v36  ;;  %vm836_vm7 = vcmp.ge.f32.partialorder %v605_v40, 0.0  ;;  %v900_v44 = vmul.f32 0.05, %v605_v40 }
  0xea   : > { %1282 = vst.msk [vmem:[%s1949_s23 + $0x14] sm:$0xf] %vm1276_vm5, %v1590_v37  ;;  %v1595_v45 = vpack.c.bf16 %v966_v43, %v966_v43  ;;  %v998_v46 = vsel %vm870_vm6, %v1726_v33, %v934_v39  ;;  %vm868_vm8 = vcmp.ge.f32.partialorder %v733_v41, 0.0  ;;  %v932_v47 = vmul.f32 0.05, %v733_v41  ;;  %v1695_v48 = vpop.f32.mrf.mxu0  ;;  %v1727_v49 = vpop.f32.mrf.mxu1 }
  0xeb   : > { %1314 = vst.msk [vmem:[%s1949_s23 + $0x94] sm:$0xf] %vm1276_vm5, %v1622_v42  ;;  %v1627_v50 = vpack.c.bf16 %v998_v46, %v998_v46  ;;  %v964_v51 = vsel %vm836_vm7, %v605_v40, %v900_v44  ;;  %vm839_vm9 = vcmp.ge.f32.partialorder %v1695_v48, 0.0  ;;  %v903_v52 = vmul.f32 0.05, %v1695_v48 }
  0xec   : > { %1287 = vst.msk [vmem:[%s1949_s23 + $0x28] sm:$0xf] %vm1276_vm5, %v1595_v45  ;;  %v1593_v53 = vpack.c.bf16 %v964_v51, %v964_v51  ;;  %v996_v54 = vsel %vm868_vm8, %v733_v41, %v932_v47  ;;  %vm871_vm10 = vcmp.ge.f32.partialorder %v1727_v49, 0.0  ;;  %v935_v55 = vmul.f32 0.05, %v1727_v49  ;;  %v608_v56 = vpop.f32.mrf.mxu0  ;;  %v736_v57 = vpop.f32.mrf.mxu1 }
  0xed   : > { %1319 = vst.msk [vmem:[%s1949_s23 + $0xa8] sm:$0xf] %vm1276_vm5, %v1627_v50  ;;  %v1625_v58 = vpack.c.bf16 %v996_v54, %v996_v54  ;;  %v967_v59 = vsel %vm839_vm9, %v1695_v48, %v903_v52  ;;  %vm837_vm11 = vcmp.ge.f32.partialorder %v608_v56, 0.0  ;;  %v901_v60 = vmul.f32 0.05, %v608_v56 }
  0xee   : > { %1285 = vst.msk [vmem:[%s1949_s23 + $0x20] sm:$0xf] %vm1276_vm5, %v1593_v53  ;;  %v1596_v61 = vpack.c.bf16 %v967_v59, %v967_v59  ;;  %v999_v62 = vsel %vm871_vm10, %v1727_v49, %v935_v55  ;;  %vm869_vm12 = vcmp.ge.f32.partialorder %v736_v57, 0.0  ;;  %v933_v63 = vmul.f32 0.05, %v736_v57  ;;  %v1698_v0 = vpop.f32.mrf.mxu0  ;;  %v1730_v1 = vpop.f32.mrf.mxu1 }
  0xef   : > { %1317 = vst.msk [vmem:[%s1949_s23 + $0xa0] sm:$0xf] %vm1276_vm5, %v1625_v58  ;;  %v1628_v2 = vpack.c.bf16 %v999_v62, %v999_v62  ;;  %v965_v3 = vsel %vm837_vm11, %v608_v56, %v901_v60  ;;  %vm842_vm13 = vcmp.ge.f32.partialorder %v1698_v0, 0.0  ;;  %v906_v4 = vmul.f32 0.05, %v1698_v0 }
  0xf0   : > { %1288 = vst.msk [vmem:[%s1949_s23 + $0x2c] sm:$0xf] %vm1276_vm5, %v1596_v61  ;;  %v1594_v5 = vpack.c.bf16 %v965_v3, %v965_v3  ;;  %v997_v6 = vsel %vm869_vm12, %v736_v57, %v933_v63  ;;  %vm874_vm14 = vcmp.ge.f32.partialorder %v1730_v1, 0.0  ;;  %v938_v7 = vmul.f32 0.05, %v1730_v1  ;;  %v621_v8 = vpop.f32.mrf.mxu0  ;;  %v749_v9 = vpop.f32.mrf.mxu1 }
  0xf1   : > { %1320 = vst.msk [vmem:[%s1949_s23 + $0xac] sm:$0xf] %vm1276_vm5, %v1628_v2  ;;  %v1626_v10 = vpack.c.bf16 %v997_v6, %v997_v6  ;;  %v970_v11 = vsel %vm842_vm13, %v1698_v0, %v906_v4  ;;  %vm840_vm15 = vcmp.ge.f32.partialorder %v621_v8, 0.0  ;;  %v904_v12 = vmul.f32 0.05, %v621_v8 }
  0xf2   : > { %1286 = vst.msk [vmem:[%s1949_s23 + $0x24] sm:$0xf] %vm1276_vm5, %v1594_v5  ;;  %v1599_v13 = vpack.c.bf16 %v970_v11, %v970_v11  ;;  %v1002_v14 = vsel %vm874_vm14, %v1730_v1, %v938_v7  ;;  %vm872_vm0 = vcmp.ge.f32.partialorder %v749_v9, 0.0  ;;  %v936_v15 = vmul.f32 0.05, %v749_v9  ;;  %v1699_v16 = vpop.f32.mrf.mxu0  ;;  %v1731_v17 = vpop.f32.mrf.mxu1 }
  0xf3   : > { %1318 = vst.msk [vmem:[%s1949_s23 + $0xa4] sm:$0xf] %vm1276_vm5, %v1626_v10  ;;  %v1631_v18 = vpack.c.bf16 %v1002_v14, %v1002_v14  ;;  %v968_v19 = vsel %vm840_vm15, %v621_v8, %v904_v12  ;;  %vm843_vm1 = vcmp.ge.f32.partialorder %v1699_v16, 0.0  ;;  %v907_v20 = vmul.f32 0.05, %v1699_v16 }
  0xf4   : > { %1291 = vst.msk [vmem:[%s1949_s23 + $0x38] sm:$0xf] %vm1276_vm5, %v1599_v13  ;;  %v1597_v21 = vpack.c.bf16 %v968_v19, %v968_v19  ;;  %v1000_v22 = vsel %vm872_vm0, %v749_v9, %v936_v15  ;;  %vm875_vm2 = vcmp.ge.f32.partialorder %v1731_v17, 0.0  ;;  %v939_v23 = vmul.f32 0.05, %v1731_v17  ;;  %v624_v24 = vpop.f32.mrf.mxu0  ;;  %v752_v25 = vpop.f32.mrf.mxu1 }
  0xf5   : > { %1323 = vst.msk [vmem:[%s1949_s23 + $0xb8] sm:$0xf] %vm1276_vm5, %v1631_v18  ;;  %v1629_v26 = vpack.c.bf16 %v1000_v22, %v1000_v22  ;;  %v971_v27 = vsel %vm843_vm1, %v1699_v16, %v907_v20  ;;  %vm841_vm3 = vcmp.ge.f32.partialorder %v624_v24, 0.0  ;;  %v905_v28 = vmul.f32 0.05, %v624_v24 }
  0xf6   : > { %1289 = vst.msk [vmem:[%s1949_s23 + $0x30] sm:$0xf] %vm1276_vm5, %v1597_v21  ;;  %v1600_v29 = vpack.c.bf16 %v971_v27, %v971_v27  ;;  %v1003_v30 = vsel %vm875_vm2, %v1731_v17, %v939_v23  ;;  %vm873_vm4 = vcmp.ge.f32.partialorder %v752_v25, 0.0  ;;  %v937_v31 = vmul.f32 0.05, %v752_v25  ;;  %v1702_v32 = vpop.f32.mrf.mxu0  ;;  %v1734_v33 = vpop.f32.mrf.mxu1 }
  0xf7   : > { %1321 = vst.msk [vmem:[%s1949_s23 + $0xb0] sm:$0xf] %vm1276_vm5, %v1629_v26  ;;  %v1632_v34 = vpack.c.bf16 %v1003_v30, %v1003_v30  ;;  %v969_v35 = vsel %vm841_vm3, %v624_v24, %v905_v28  ;;  %vm846_vm6 = vcmp.ge.f32.partialorder %v1702_v32, 0.0  ;;  %v910_v36 = vmul.f32 0.05, %v1702_v32 }
  0xf8   : > { %1292 = vst.msk [vmem:[%s1949_s23 + $0x3c] sm:$0xf] %vm1276_vm5, %v1600_v29  ;;  %v1598_v37 = vpack.c.bf16 %v969_v35, %v969_v35  ;;  %v1001_v38 = vsel %vm873_vm4, %v752_v25, %v937_v31  ;;  %vm878_vm7 = vcmp.ge.f32.partialorder %v1734_v33, 0.0  ;;  %v942_v39 = vmul.f32 0.05, %v1734_v33  ;;  %v637_v40 = vpop.f32.mrf.mxu0  ;;  %v765_v41 = vpop.f32.mrf.mxu1 }
  0xf9   : > { %1324 = vst.msk [vmem:[%s1949_s23 + $0xbc] sm:$0xf] %vm1276_vm5, %v1632_v34  ;;  %v1630_v42 = vpack.c.bf16 %v1001_v38, %v1001_v38  ;;  %v974_v43 = vsel %vm846_vm6, %v1702_v32, %v910_v36  ;;  %vm844_vm8 = vcmp.ge.f32.partialorder %v637_v40, 0.0  ;;  %v908_v44 = vmul.f32 0.05, %v637_v40 }
  0xfa   : > { %1290 = vst.msk [vmem:[%s1949_s23 + $0x34] sm:$0xf] %vm1276_vm5, %v1598_v37  ;;  %v1603_v45 = vpack.c.bf16 %v974_v43, %v974_v43  ;;  %v1006_v46 = vsel %vm878_vm7, %v1734_v33, %v942_v39  ;;  %vm876_vm9 = vcmp.ge.f32.partialorder %v765_v41, 0.0  ;;  %v940_v47 = vmul.f32 0.05, %v765_v41  ;;  %v1703_v48 = vpop.f32.mrf.mxu0  ;;  %v1735_v49 = vpop.f32.mrf.mxu1 }
  0xfb   : > { %1322 = vst.msk [vmem:[%s1949_s23 + $0xb4] sm:$0xf] %vm1276_vm5, %v1630_v42  ;;  %v1635_v50 = vpack.c.bf16 %v1006_v46, %v1006_v46  ;;  %v972_v51 = vsel %vm844_vm8, %v637_v40, %v908_v44  ;;  %vm847_vm10 = vcmp.ge.f32.partialorder %v1703_v48, 0.0  ;;  %v911_v52 = vmul.f32 0.05, %v1703_v48 }
  0xfc   : > { %1295 = vst.msk [vmem:[%s1949_s23 + $0x48] sm:$0xf] %vm1276_vm5, %v1603_v45  ;;  %v1601_v53 = vpack.c.bf16 %v972_v51, %v972_v51  ;;  %v1004_v54 = vsel %vm876_vm9, %v765_v41, %v940_v47  ;;  %vm879_vm11 = vcmp.ge.f32.partialorder %v1735_v49, 0.0  ;;  %v943_v55 = vmul.f32 0.05, %v1735_v49  ;;  %v640_v56 = vpop.f32.mrf.mxu0  ;;  %v768_v57 = vpop.f32.mrf.mxu1 }
  0xfd   : > { %1327 = vst.msk [vmem:[%s1949_s23 + $0xc8] sm:$0xf] %vm1276_vm5, %v1635_v50  ;;  %v1633_v58 = vpack.c.bf16 %v1004_v54, %v1004_v54  ;;  %v975_v59 = vsel %vm847_vm10, %v1703_v48, %v911_v52  ;;  %vm845_vm12 = vcmp.ge.f32.partialorder %v640_v56, 0.0  ;;  %v909_v60 = vmul.f32 0.05, %v640_v56 }
  0xfe   : > { %1293 = vst.msk [vmem:[%s1949_s23 + $0x40] sm:$0xf] %vm1276_vm5, %v1601_v53  ;;  %v1604_v61 = vpack.c.bf16 %v975_v59, %v975_v59  ;;  %v1007_v62 = vsel %vm879_vm11, %v1735_v49, %v943_v55  ;;  %vm877_vm13 = vcmp.ge.f32.partialorder %v768_v57, 0.0  ;;  %v941_v63 = vmul.f32 0.05, %v768_v57  ;;  %v1706_v0 = vpop.f32.mrf.mxu0  ;;  %v1738_v1 = vpop.f32.mrf.mxu1 }
  0xff   : > { %1325 = vst.msk [vmem:[%s1949_s23 + $0xc0] sm:$0xf] %vm1276_vm5, %v1633_v58  ;;  %v1636_v2 = vpack.c.bf16 %v1007_v62, %v1007_v62  ;;  %v973_v3 = vsel %vm845_vm12, %v640_v56, %v909_v60  ;;  %vm850_vm14 = vcmp.ge.f32.partialorder %v1706_v0, 0.0  ;;  %v914_v4 = vmul.f32 0.05, %v1706_v0 }
 0x100   : > { %1296 = vst.msk [vmem:[%s1949_s23 + $0x4c] sm:$0xf] %vm1276_vm5, %v1604_v61  ;;  %v1602_v5 = vpack.c.bf16 %v973_v3, %v973_v3  ;;  %v1005_v6 = vsel %vm877_vm13, %v768_v57, %v941_v63  ;;  %vm882_vm15 = vcmp.ge.f32.partialorder %v1738_v1, 0.0  ;;  %v946_v7 = vmul.f32 0.05, %v1738_v1  ;;  %v653_v8 = vpop.f32.mrf.mxu0  ;;  %v781_v9 = vpop.f32.mrf.mxu1 }
 0x101   : > { %1328 = vst.msk [vmem:[%s1949_s23 + $0xcc] sm:$0xf] %vm1276_vm5, %v1636_v2  ;;  %v1634_v10 = vpack.c.bf16 %v1005_v6, %v1005_v6  ;;  %v978_v11 = vsel %vm850_vm14, %v1706_v0, %v914_v4  ;;  %vm848_vm0 = vcmp.ge.f32.partialorder %v653_v8, 0.0  ;;  %v912_v12 = vmul.f32 0.05, %v653_v8 }
 0x102   : > { %1294 = vst.msk [vmem:[%s1949_s23 + $0x44] sm:$0xf] %vm1276_vm5, %v1602_v5  ;;  %v1607_v13 = vpack.c.bf16 %v978_v11, %v978_v11  ;;  %v1010_v14 = vsel %vm882_vm15, %v1738_v1, %v946_v7  ;;  %vm880_vm1 = vcmp.ge.f32.partialorder %v781_v9, 0.0  ;;  %v944_v15 = vmul.f32 0.05, %v781_v9  ;;  %v1707_v16 = vpop.f32.mrf.mxu0  ;;  %v1739_v17 = vpop.f32.mrf.mxu1 }
 0x103   : > { %1326 = vst.msk [vmem:[%s1949_s23 + $0xc4] sm:$0xf] %vm1276_vm5, %v1634_v10  ;;  %v1639_v18 = vpack.c.bf16 %v1010_v14, %v1010_v14  ;;  %v976_v19 = vsel %vm848_vm0, %v653_v8, %v912_v12  ;;  %vm851_vm2 = vcmp.ge.f32.partialorder %v1707_v16, 0.0  ;;  %v915_v20 = vmul.f32 0.05, %v1707_v16 }
 0x104   : > { %1299 = vst.msk [vmem:[%s1949_s23 + $0x58] sm:$0xf] %vm1276_vm5, %v1607_v13  ;;  %v1605_v21 = vpack.c.bf16 %v976_v19, %v976_v19  ;;  %v1008_v22 = vsel %vm880_vm1, %v781_v9, %v944_v15  ;;  %vm883_vm3 = vcmp.ge.f32.partialorder %v1739_v17, 0.0  ;;  %v947_v23 = vmul.f32 0.05, %v1739_v17  ;;  %v656_v24 = vpop.f32.mrf.mxu0  ;;  %v784_v25 = vpop.f32.mrf.mxu1 }
 0x105   : > { %1331 = vst.msk [vmem:[%s1949_s23 + $0xd8] sm:$0xf] %vm1276_vm5, %v1639_v18  ;;  %v1637_v26 = vpack.c.bf16 %v1008_v22, %v1008_v22  ;;  %v979_v27 = vsel %vm851_vm2, %v1707_v16, %v915_v20  ;;  %vm849_vm4 = vcmp.ge.f32.partialorder %v656_v24, 0.0  ;;  %v913_v28 = vmul.f32 0.05, %v656_v24 }
 0x106   : > { %1297 = vst.msk [vmem:[%s1949_s23 + $0x50] sm:$0xf] %vm1276_vm5, %v1605_v21  ;;  %v1608_v29 = vpack.c.bf16 %v979_v27, %v979_v27  ;;  %v1011_v30 = vsel %vm883_vm3, %v1739_v17, %v947_v23  ;;  %vm881_vm6 = vcmp.ge.f32.partialorder %v784_v25, 0.0  ;;  %v945_v31 = vmul.f32 0.05, %v784_v25  ;;  %v1710_v32 = vpop.f32.mrf.mxu0  ;;  %v1742_v33 = vpop.f32.mrf.mxu1 }
 0x107   : > { %1329 = vst.msk [vmem:[%s1949_s23 + $0xd0] sm:$0xf] %vm1276_vm5, %v1637_v26  ;;  %v1640_v34 = vpack.c.bf16 %v1011_v30, %v1011_v30  ;;  %v977_v35 = vsel %vm849_vm4, %v656_v24, %v913_v28  ;;  %vm854_vm7 = vcmp.ge.f32.partialorder %v1710_v32, 0.0  ;;  %v918_v36 = vmul.f32 0.05, %v1710_v32 }
 0x108   : > { %1300 = vst.msk [vmem:[%s1949_s23 + $0x5c] sm:$0xf] %vm1276_vm5, %v1608_v29  ;;  %v1606_v37 = vpack.c.bf16 %v977_v35, %v977_v35  ;;  %v1009_v38 = vsel %vm881_vm6, %v784_v25, %v945_v31  ;;  %vm886_vm8 = vcmp.ge.f32.partialorder %v1742_v33, 0.0  ;;  %v950_v39 = vmul.f32 0.05, %v1742_v33  ;;  %v669_v40 = vpop.f32.mrf.mxu0  ;;  %v797_v41 = vpop.f32.mrf.mxu1 }
 0x109   : > { %1332 = vst.msk [vmem:[%s1949_s23 + $0xdc] sm:$0xf] %vm1276_vm5, %v1640_v34  ;;  %v1638_v42 = vpack.c.bf16 %v1009_v38, %v1009_v38  ;;  %v982_v43 = vsel %vm854_vm7, %v1710_v32, %v918_v36  ;;  %vm852_vm9 = vcmp.ge.f32.partialorder %v669_v40, 0.0  ;;  %v916_v44 = vmul.f32 0.05, %v669_v40 }
 0x10a   : > { %1298 = vst.msk [vmem:[%s1949_s23 + $0x54] sm:$0xf] %vm1276_vm5, %v1606_v37  ;;  %v1611_v45 = vpack.c.bf16 %v982_v43, %v982_v43  ;;  %v1014_v46 = vsel %vm886_vm8, %v1742_v33, %v950_v39  ;;  %vm884_vm10 = vcmp.ge.f32.partialorder %v797_v41, 0.0  ;;  %v948_v47 = vmul.f32 0.05, %v797_v41  ;;  %v1711_v48 = vpop.f32.mrf.mxu0  ;;  %v1743_v49 = vpop.f32.mrf.mxu1 }
 0x10b   : > { %1330 = vst.msk [vmem:[%s1949_s23 + $0xd4] sm:$0xf] %vm1276_vm5, %v1638_v42  ;;  %v1643_v50 = vpack.c.bf16 %v1014_v46, %v1014_v46  ;;  %v980_v51 = vsel %vm852_vm9, %v669_v40, %v916_v44  ;;  %vm855_vm11 = vcmp.ge.f32.partialorder %v1711_v48, 0.0  ;;  %v919_v52 = vmul.f32 0.05, %v1711_v48 }
 0x10c   : > { %1303 = vst.msk [vmem:[%s1949_s23 + $0x68] sm:$0xf] %vm1276_vm5, %v1611_v45  ;;  %v1609_v53 = vpack.c.bf16 %v980_v51, %v980_v51  ;;  %v1012_v54 = vsel %vm884_vm10, %v797_v41, %v948_v47  ;;  %vm887_vm12 = vcmp.ge.f32.partialorder %v1743_v49, 0.0  ;;  %v951_v55 = vmul.f32 0.05, %v1743_v49  ;;  %v672_v56 = vpop.f32.mrf.mxu0  ;;  %v800_v57 = vpop.f32.mrf.mxu1 }
 0x10d   : > { %1335 = vst.msk [vmem:[%s1949_s23 + $0xe8] sm:$0xf] %vm1276_vm5, %v1643_v50  ;;  %v1641_v58 = vpack.c.bf16 %v1012_v54, %v1012_v54  ;;  %v983_v59 = vsel %vm855_vm11, %v1711_v48, %v919_v52  ;;  %vm853_vm13 = vcmp.ge.f32.partialorder %v672_v56, 0.0  ;;  %v917_v60 = vmul.f32 0.05, %v672_v56 }
 0x10e   : > { %1301 = vst.msk [vmem:[%s1949_s23 + $0x60] sm:$0xf] %vm1276_vm5, %v1609_v53  ;;  %v1612_v61 = vpack.c.bf16 %v983_v59, %v983_v59  ;;  %v1015_v62 = vsel %vm887_vm12, %v1743_v49, %v951_v55  ;;  %vm885_vm14 = vcmp.ge.f32.partialorder %v800_v57, 0.0  ;;  %v949_v63 = vmul.f32 0.05, %v800_v57  ;;  %v1714_v0 = vpop.f32.mrf.mxu0  ;;  %v1746_v1 = vpop.f32.mrf.mxu1 }
 0x10f   : > { %1333 = vst.msk [vmem:[%s1949_s23 + $0xe0] sm:$0xf] %vm1276_vm5, %v1641_v58  ;;  %v1644_v2 = vpack.c.bf16 %v1015_v62, %v1015_v62  ;;  %v981_v3 = vsel %vm853_vm13, %v672_v56, %v917_v60  ;;  %vm858_vm15 = vcmp.ge.f32.partialorder %v1714_v0, 0.0  ;;  %v922_v4 = vmul.f32 0.05, %v1714_v0 }
 0x110   : > { %1304 = vst.msk [vmem:[%s1949_s23 + $0x6c] sm:$0xf] %vm1276_vm5, %v1612_v61  ;;  %v1610_v5 = vpack.c.bf16 %v981_v3, %v981_v3  ;;  %v1013_v6 = vsel %vm885_vm14, %v800_v57, %v949_v63  ;;  %vm890_vm0 = vcmp.ge.f32.partialorder %v1746_v1, 0.0  ;;  %v954_v7 = vmul.f32 0.05, %v1746_v1  ;;  %v685_v8 = vpop.f32.mrf.mxu0  ;;  %v813_v9 = vpop.f32.mrf.mxu1 }
 0x111   : > { %1336 = vst.msk [vmem:[%s1949_s23 + $0xec] sm:$0xf] %vm1276_vm5, %v1644_v2  ;;  %v1642_v10 = vpack.c.bf16 %v1013_v6, %v1013_v6  ;;  %v986_v11 = vsel %vm858_vm15, %v1714_v0, %v922_v4  ;;  %vm856_vm1 = vcmp.ge.f32.partialorder %v685_v8, 0.0  ;;  %v920_v12 = vmul.f32 0.05, %v685_v8 }
 0x112   : > { %1302 = vst.msk [vmem:[%s1949_s23 + $0x64] sm:$0xf] %vm1276_vm5, %v1610_v5  ;;  %v1615_v13 = vpack.c.bf16 %v986_v11, %v986_v11  ;;  %v1018_v14 = vsel %vm890_vm0, %v1746_v1, %v954_v7  ;;  %vm888_vm2 = vcmp.ge.f32.partialorder %v813_v9, 0.0  ;;  %v952_v15 = vmul.f32 0.05, %v813_v9  ;;  %v1715_v16 = vpop.f32.mrf.mxu0  ;;  %v1747_v17 = vpop.f32.mrf.mxu1 }
 0x113   : > { %1334 = vst.msk [vmem:[%s1949_s23 + $0xe4] sm:$0xf] %vm1276_vm5, %v1642_v10  ;;  %v1647_v18 = vpack.c.bf16 %v1018_v14, %v1018_v14  ;;  %v984_v19 = vsel %vm856_vm1, %v685_v8, %v920_v12  ;;  %vm859_vm3 = vcmp.ge.f32.partialorder %v1715_v16, 0.0  ;;  %v923_v20 = vmul.f32 0.05, %v1715_v16 }
 0x114   : > { %1307 = vst.msk [vmem:[%s1949_s23 + $0x78] sm:$0xf] %vm1276_vm5, %v1615_v13  ;;  %v1613_v21 = vpack.c.bf16 %v984_v19, %v984_v19  ;;  %v1016_v22 = vsel %vm888_vm2, %v813_v9, %v952_v15  ;;  %vm891_vm4 = vcmp.ge.f32.partialorder %v1747_v17, 0.0  ;;  %v955_v23 = vmul.f32 0.05, %v1747_v17  ;;  %v688_v24 = vpop.f32.mrf.mxu0  ;;  %v816_v25 = vpop.f32.mrf.mxu1 }
 0x115   : > { %1339 = vst.msk [vmem:[%s1949_s23 + $0xf8] sm:$0xf] %vm1276_vm5, %v1647_v18  ;;  %v1645_v26 = vpack.c.bf16 %v1016_v22, %v1016_v22  ;;  %v987_v27 = vsel %vm859_vm3, %v1715_v16, %v923_v20  ;;  %vm857_vm6 = vcmp.ge.f32.partialorder %v688_v24, 0.0  ;;  %v921_v28 = vmul.f32 0.05, %v688_v24 }
 0x116   : > { %1305 = vst.msk [vmem:[%s1949_s23 + $0x70] sm:$0xf] %vm1276_vm5, %v1613_v21  ;;  %v1616_v29 = vpack.c.bf16 %v987_v27, %v987_v27  ;;  %v1019_v30 = vsel %vm891_vm4, %v1747_v17, %v955_v23  ;;  %vm889_vm7 = vcmp.ge.f32.partialorder %v816_v25, 0.0  ;;  %v953_v31 = vmul.f32 0.05, %v816_v25 }
 0x117   : > { %1337 = vst.msk [vmem:[%s1949_s23 + $0xf0] sm:$0xf] %vm1276_vm5, %v1645_v26  ;;  %v1648_v32 = vpack.c.bf16 %v1019_v30, %v1019_v30  ;;  %v985_v33 = vsel %vm857_vm6, %v688_v24, %v921_v28 }
 0x118   : > { %1308 = vst.msk [vmem:[%s1949_s23 + $0x7c] sm:$0xf] %vm1276_vm5, %v1616_v29  ;;  %v1614_v34 = vpack.c.bf16 %v985_v33, %v985_v33  ;;  %v1017_v35 = vsel %vm889_vm7, %v816_v25, %v953_v31 }
 0x119   : > { %1340 = vst.msk [vmem:[%s1949_s23 + $0xfc] sm:$0xf] %vm1276_vm5, %v1648_v32  ;;  %v1646_v36 = vpack.c.bf16 %v1017_v35, %v1017_v35 }
 0x11a   : > { %1306 = vst.msk [vmem:[%s1949_s23 + $0x74] sm:$0xf] %vm1276_vm5, %v1614_v34 }
 0x11b   : > { %1338 = vst.msk [vmem:[%s1949_s23 + $0xf4] sm:$0xf] %vm1276_vm5, %v1646_v36 }
 0x11c PF: > { %s12_s11 = sadd.s32 1, %s1830_s11   ;;  %s2091_s9 = smov %s1826_s10 }
 0x11d   : > { %p9_p5 = scmp.ge.s32.totalorder %s12_s11, 4   ;;  %s2092_s10 = smov %s2094_s12 }
 0x11f   :  { %11 = sbr.rel (!%p9_p5) target bundleno = 2 (0x2), region = 61 }

// kernel: ffc_act_forward.14
= control target key start
LH: loop header
LB: loop body
LE: loop exit
PB: predicated region body
PF: predicated region fallthrough
CT: control target
= control target key end

     0   :  { %s2047_s12 = smov 0   ;;  %s2049_s13 = smov 0   ;;  %s2417_s0 = inlined_call_operand.vmem [shape: bf16[2,512,27], index: 0, kind: input, shape index: {}]   ;;  %s2418_s1 = inlined_call_operand.vmem [shape: bf16[2,27,4], index: 1, kind: input, shape index: {}]   ;;  %s2419_s2 = inlined_call_operand.vmem [shape: bf16[2,512,4], index: 2, kind: input, shape index: {}]   ;;  %s2420_s3 = inlined_call_operand.vmem [shape: bf16[2,512,4], index: 3, kind: output, shape index: {}]  }
   0x1   :  { %s2051_s14 = smov 0  }
   0x2 LB: > { %s25_s15 = sadd.s32 1, %s2020_s13  ;;  %p1469_p0 = scmp.ge.s32.totalorder %s2024_s14, 1  ;;  %s2024_s14 = sphi %s2051_s14, %s13_s14   ;;  %s2020_s13 = sphi %s2049_s13, %s2422_s13   ;;  %s2016_s12 = sphi %s2047_s12, %s2421_s12  }
   0x3   : > { %p27_p1 = scmp.ge.s32.totalorder %s25_s15, 2  ;;  %p185_p2 = scmp.lt.s32.totalorder %s2024_s14, 3 }
   0x5   : > { %s2424_s15 = smov (%p27_p1, %s25_s15), 0  ;;  %p186_p3 = pnand %p1469_p0, %p185_p2 }
   0x6   : > { %p232_p4 = scmp.lt.s32.totalorder (!%p186_p3), %s2016_s12, 1 }
   0x7   : > { %189 = sbr.rel (%p186_p3) target bundleno = 286 (0x11e), region = 32 }
   0xc   : > { %vm731_vm0 = vcmask 1044480   ;;  %s2426_s12 = smov (!%p232_p4, %s2016_s12), 1  ;;  %vm732_vm1 = vcmask 1045504   ;;  %v2026_v0 = vmov 65535   ;;  %vm634_vm2 = vcmask 220160  }
   0xd   : > { %v733_v1 = vsel %vm731_vm0, 4294967295, %v2026_v0  ;;  %s2065_s16 = sshll.u32 %s2426_s12, 8  ;;  %s1611_s17 = sshll.u32 %s2426_s12, 4  ;;  %vm1283_vm3 = vcmask 27648  }
   0xe   : > { %s245_s20 = scalar_lea.vmem %s2418_s1, %s1611_s17  ;;  %v734_v2 = vsel %vm732_vm1, %v733_v1, 0  ;;  %s2074_s23 = scalar_lea.vmem %s2417_s0, %s2065_s16 }
   0xf   : > { %v1968_v3 = vld [vmem:[%s245_s20 + $0x8] sm:$0x3f]   ;;  %v1969_v4 = vld [vmem:[%s245_s20] sm:$0xff]   ;;  %v1974_v10 = vld [vmem:[%s2074_s23 + $0x10] sm:$0xff]   ;;  %s2144_s26 = scalar_lea.vmem %s2419_s2, %s2065_s16  ;;  %s2160_s29 = scalar_lea.vmem %s2420_s3, %s2065_s16 }
  0x10   : > { %v736_v5 = vand.u32 %v1968_v3, %v734_v2  ;;  %v1970_v6 = vld [vmem:[%s2074_s23] sm:$0xff]   ;;  %v1972_v8 = vld [vmem:[%s2074_s23 + $0x8] sm:$0xff]   ;;  %v1975_v11 = vld [vmem:[%s2074_s23 + $0x90] sm:$0xff]  }
  0x11   : > { %v1971_v7 = vld [vmem:[%s2074_s23 + $0x80] sm:$0xff]   ;;  %1875 = vmatprep.mubr.msk.bf16.mxu0 %vm634_vm2, %v1970_v6  ;;  %v1973_v9 = vld [vmem:[%s2074_s23 + $0x88] sm:$0xff]   ;;  %v1976_v12 = vld [vmem:[%s2074_s23 + $0x18] sm:$0xff]  }
  0x12   : > { %1871 = vmatprep.subr.bf16.mxu0 %v736_v5  ;;  %1939 = vmatprep.subr.bf16.mxu1 %v736_v5  ;;  %v1977_v13 = vld [vmem:[%s2074_s23 + $0x98] sm:$0xff]   ;;  %v1978_v14 = vld [vmem:[%s2074_s23 + $0x20] sm:$0xff]   ;;  %v1980_v16 = vld [vmem:[%s2074_s23 + $0x28] sm:$0xff]  }
  0x13   : > { %1872 = vmatpush3.bf16.msra.mxu0 %v736_v5  ;;  %1941 = vmatpush3.bf16.msra.mxu1 %v736_v5  ;;  %v1979_v15 = vld [vmem:[%s2074_s23 + $0xa0] sm:$0xff]   ;;  %v1981_v17 = vld [vmem:[%s2074_s23 + $0xa8] sm:$0xff]   ;;  %v1982_v18 = vld [vmem:[%s2074_s23 + $0x30] sm:$0xff]  }
  0x14   : > { %1873 = vmatprep.subr.bf16.mxu0 %v1969_v4  ;;  %1940 = vmatprep.subr.bf16.mxu1 %v1969_v4  ;;  %v1983_v19 = vld [vmem:[%s2074_s23 + $0xb0] sm:$0xff]   ;;  %v1984_v20 = vld [vmem:[%s2074_s23 + $0x38] sm:$0xff]   ;;  %v1986_v22 = vld [vmem:[%s2074_s23 + $0x40] sm:$0xff]  }
  0x15   : > { %1907 = vmatprep.mubr.msk.bf16.mxu1 %vm634_vm2, %v1971_v7  ;;  %v1985_v21 = vld [vmem:[%s2074_s23 + $0xb8] sm:$0xff]   ;;  %v1987_v23 = vld [vmem:[%s2074_s23 + $0xc0] sm:$0xff]   ;;  %v1988_v24 = vld [vmem:[%s2074_s23 + $0x48] sm:$0xff]  }
  0x16   : > { %v1989_v25 = vld [vmem:[%s2074_s23 + $0xc8] sm:$0xff]   ;;  %v1990_v26 = vld [vmem:[%s2074_s23 + $0x50] sm:$0xff]   ;;  %v1992_v28 = vld [vmem:[%s2074_s23 + $0x58] sm:$0xff]  }
  0x17   : > { %1874 = vmatpush3.bf16.msra.mxu0 %v1969_v4  ;;  %1942 = vmatpush3.bf16.msra.mxu1 %v1969_v4  ;;  %v1991_v27 = vld [vmem:[%s2074_s23 + $0xd0] sm:$0xff]   ;;  %v1993_v29 = vld [vmem:[%s2074_s23 + $0xd8] sm:$0xff]   ;;  %v1994_v30 = vld [vmem:[%s2074_s23 + $0x60] sm:$0xff]  }
  0x18   : > { %v1995_v31 = vld [vmem:[%s2074_s23 + $0xe0] sm:$0xff]   ;;  %v1996_v32 = vld [vmem:[%s2074_s23 + $0x68] sm:$0xff]   ;;  %v1998_v34 = vld [vmem:[%s2074_s23 + $0x70] sm:$0xff]  }
  0x19   : > { %v1997_v33 = vld [vmem:[%s2074_s23 + $0xe8] sm:$0xff]   ;;  %v1999_v35 = vld [vmem:[%s2074_s23 + $0xf0] sm:$0xff]   ;;  %v2000_v36 = vld [vmem:[%s2074_s23 + $0x78] sm:$0xff]  }
  0x1a   : > { %1876 = vmatmul.mubr.msk.bf16.vlgmr.msra.gmra.mxu0 %vm634_vm2, %v1972_v8  ;;  %1908 = vmatmul.mubr.msk.bf16.vlgmr.msra.gmra.mxu1 %vm634_vm2, %v1973_v9  ;;  %v2001_v37 = vld [vmem:[%s2074_s23 + $0xf8] sm:$0xff]   ;;  %v1806_v38 = vld [vmem:[%s2144_s26 + $0x8] sm:$0xff]   ;;  %v1679_v40 = vld [vmem:[%s2144_s26] sm:$0xff]  }
  0x1b   : > { %1879 = vmatprep.mubr.msk.bf16.mxu0 %vm634_vm2, %v1974_v10  ;;  %1911 = vmatprep.mubr.msk.bf16.mxu1 %vm634_vm2, %v1975_v11  ;;  %v1822_v39 = vld [vmem:[%s2144_s26 + $0x88] sm:$0xff]   ;;  %v1821_v41 = vld [vmem:[%s2144_s26 + $0x80] sm:$0xff]   ;;  %v1684_v42 = vunpack.c.l.bf16 %v1806_v38  ;;  %v1680_v44 = vunpack.c.l.bf16 %v1679_v40  ;;  %v1685_v50 = vunpack.c.h.bf16 %v1806_v38  ;;  %v2151_v52 = vld [vmem:[%s2144_s26 + $0x18] sm:$0xff]   ;;  %v1681_v56 = vunpack.c.h.bf16 %v1679_v40 }
  0x1c   : > { %v1748_v43 = vunpack.c.l.bf16 %v1822_v39  ;;  %v1744_v45 = vunpack.c.l.bf16 %v1821_v41  ;;  %v1749_v51 = vunpack.c.h.bf16 %v1822_v39  ;;  %v2154_v53 = vld [vmem:[%s2144_s26 + $0x98] sm:$0xff]   ;;  %v1745_v57 = vunpack.c.h.bf16 %v1821_v41  ;;  %v2163_v62 = vld [vmem:[%s2144_s26 + $0x10] sm:$0xff]  }
  0x1d   : > { %v2166_v63 = vld [vmem:[%s2144_s26 + $0x90] sm:$0xff]   ;;  %v1692_v2 = vunpack.c.l.bf16 %v2151_v52  ;;  %v1756_v3 = vunpack.c.l.bf16 %v2154_v53  ;;  %v1688_v10 = vunpack.c.l.bf16 %v2163_v62 }
  0x1e   : > { %v1752_v11 = vunpack.c.l.bf16 %v2166_v63 }
  0x22   : > { %1880 = vmatmul.mubr.msk.bf16.gmra.mxu0 %vm634_vm2, %v1976_v12  ;;  %1912 = vmatmul.mubr.msk.bf16.gmra.mxu1 %vm634_vm2, %v1977_v13 }
  0x23   : > { %1883 = vmatprep.mubr.msk.bf16.mxu0 %vm634_vm2, %v1978_v14  ;;  %1915 = vmatprep.mubr.msk.bf16.mxu1 %vm634_vm2, %v1979_v15 }
  0x2a   : > { %1884 = vmatmul.mubr.msk.bf16.gmra.mxu0 %vm634_vm2, %v1980_v16  ;;  %1916 = vmatmul.mubr.msk.bf16.gmra.mxu1 %vm634_vm2, %v1981_v17 }
  0x2b   : > { %1887 = vmatprep.mubr.msk.bf16.mxu0 %vm634_vm2, %v1982_v18  ;;  %1919 = vmatprep.mubr.msk.bf16.mxu1 %vm634_vm2, %v1983_v19  ;;  %v1693_v18 = vunpack.c.h.bf16 %v2151_v52  ;;  %v1757_v19 = vunpack.c.h.bf16 %v2154_v53 }
  0x32   : > { %1888 = vmatmul.mubr.msk.bf16.gmra.mxu0 %vm634_vm2, %v1984_v20  ;;  %1920 = vmatmul.mubr.msk.bf16.gmra.mxu1 %vm634_vm2, %v1985_v21 }
  0x33   : > { %1891 = vmatprep.mubr.msk.bf16.mxu0 %vm634_vm2, %v1986_v22  ;;  %1923 = vmatprep.mubr.msk.bf16.mxu1 %vm634_vm2, %v1987_v23 }
  0x3a   : > { %1892 = vmatmul.mubr.msk.bf16.gmra.mxu0 %vm634_vm2, %v1988_v24  ;;  %1924 = vmatmul.mubr.msk.bf16.gmra.mxu1 %vm634_vm2, %v1989_v25  ;;  %v2187_v24 = vld [vmem:[%s2144_s26 + $0x28] sm:$0xff]  }
  0x3b   : > { %1895 = vmatprep.mubr.msk.bf16.mxu0 %vm634_vm2, %v1990_v26  ;;  %1927 = vmatprep.mubr.msk.bf16.mxu1 %vm634_vm2, %v1991_v27  ;;  %v2190_v25 = vld [vmem:[%s2144_s26 + $0xa8] sm:$0xff]   ;;  %v1700_v38 = vunpack.c.l.bf16 %v2187_v24 }
  0x3c   : > { %v1764_v39 = vunpack.c.l.bf16 %v2190_v25 }
  0x42   : > { %1896 = vmatmul.mubr.msk.bf16.gmra.mxu0 %vm634_vm2, %v1992_v28  ;;  %1928 = vmatmul.mubr.msk.bf16.gmra.mxu1 %vm634_vm2, %v1993_v29  ;;  %v1689_v28 = vunpack.c.h.bf16 %v2163_v62  ;;  %v1753_v29 = vunpack.c.h.bf16 %v2166_v63 }
  0x43   : > { %1899 = vmatprep.mubr.msk.bf16.mxu0 %vm634_vm2, %v1994_v30  ;;  %1931 = vmatprep.mubr.msk.bf16.mxu1 %vm634_vm2, %v1995_v31 }
  0x4a   : > { %1900 = vmatmul.mubr.msk.bf16.gmra.mxu0 %vm634_vm2, %v1996_v32  ;;  %1932 = vmatmul.mubr.msk.bf16.gmra.mxu1 %vm634_vm2, %v1997_v33 }
  0x4b   : > { %1903 = vmatprep.mubr.msk.bf16.mxu0 %vm634_vm2, %v1998_v34  ;;  %1935 = vmatprep.mubr.msk.bf16.mxu1 %vm634_vm2, %v1999_v35  ;;  %v2199_v34 = vld [vmem:[%s2144_s26 + $0x20] sm:$0xff]  }
  0x4c   : > { %v2202_v35 = vld [vmem:[%s2144_s26 + $0xa0] sm:$0xff]  }
  0x52   : > { %1904 = vmatmul.mubr.msk.bf16.gmra.mxu0 %vm634_vm2, %v2000_v36  ;;  %1936 = vmatmul.mubr.msk.bf16.gmra.mxu1 %vm634_vm2, %v2001_v37 }
  0xda   : > { %v1877_v46 = vpop.f32.mrf.mxu0  ;;  %v1909_v47 = vpop.f32.mrf.mxu1 }
  0xdb   : > { %v781_v48 = vadd.f32 %v1877_v46, %v1684_v42  ;;  %v909_v49 = vadd.f32 %v1909_v47, %v1748_v43  ;;  %v1696_v46 = vunpack.c.l.bf16 %v2199_v34  ;;  %v1760_v47 = vunpack.c.l.bf16 %v2202_v35 }
  0xdc   : > { %v772_v54 = vpop.f32.mrf.mxu0  ;;  %v900_v55 = vpop.f32.mrf.mxu1 }
  0xdd   : > { %v1616_v58 = vpack.c.bf16 %v781_v48, %v781_v48  ;;  %v1648_v59 = vpack.c.bf16 %v909_v49, %v909_v49  ;;  %v773_v60 = vadd.f32 %v1680_v44, %v772_v54  ;;  %v901_v61 = vadd.f32 %v1744_v45, %v900_v55 }
  0xde   : > { %v1878_v0 = vpop.f32.mrf.mxu0  ;;  %v1910_v1 = vpop.f32.mrf.mxu1  ;;  %v1701_v54 = vunpack.c.h.bf16 %v2187_v24  ;;  %v1765_v55 = vunpack.c.h.bf16 %v2190_v25 }
  0xdf   : > { %1286 = vst.msk [vmem:[%s2160_s29 + $0x8] sm:$0xf] %vm1283_vm3, %v1616_v58  ;;  %1318 = vst.msk [vmem:[%s2160_s29 + $0x88] sm:$0xf] %vm1283_vm3, %v1648_v59  ;;  %v1614_v4 = vpack.c.bf16 %v773_v60, %v773_v60  ;;  %v1646_v5 = vpack.c.bf16 %v901_v61, %v901_v61  ;;  %v784_v6 = vadd.f32 %v1878_v0, %v1685_v50  ;;  %v2223_v60 = vld [vmem:[%s2144_s26 + $0x38] sm:$0xff]   ;;  %v1697_v0 = vunpack.c.h.bf16 %v2199_v34 }
  0xe0   : > { %v912_v7 = vadd.f32 %v1910_v1, %v1749_v51  ;;  %v775_v8 = vpop.f32.mrf.mxu0  ;;  %v903_v9 = vpop.f32.mrf.mxu1  ;;  %v2226_v61 = vld [vmem:[%s2144_s26 + $0xb8] sm:$0xff]   ;;  %v1761_v1 = vunpack.c.h.bf16 %v2202_v35 }
  0xe1   : > { %1284 = vst.msk [vmem:[%s2160_s29] sm:$0xf] %vm1283_vm3, %v1614_v4  ;;  %1316 = vst.msk [vmem:[%s2160_s29 + $0x80] sm:$0xf] %vm1283_vm3, %v1646_v5  ;;  %v1617_v12 = vpack.c.bf16 %v784_v6, %v784_v6  ;;  %v776_v14 = vadd.f32 %v1681_v56, %v775_v8  ;;  %v904_v15 = vadd.f32 %v1745_v57, %v903_v9  ;;  %v2235_v6 = vld [vmem:[%s2144_s26 + $0x30] sm:$0xff]  }
  0xe2   : > { %v1649_v13 = vpack.c.bf16 %v912_v7, %v912_v7  ;;  %v1881_v16 = vpop.f32.mrf.mxu0  ;;  %v1913_v17 = vpop.f32.mrf.mxu1  ;;  %v2238_v7 = vld [vmem:[%s2144_s26 + $0xb0] sm:$0xff]  }
  0xe3   : > { %1287 = vst.msk [vmem:[%s2160_s29 + $0xc] sm:$0xf] %vm1283_vm3, %v1617_v12  ;;  %v1615_v20 = vpack.c.bf16 %v776_v14, %v776_v14  ;;  %v1647_v21 = vpack.c.bf16 %v904_v15, %v904_v15  ;;  %v797_v22 = vadd.f32 %v1881_v16, %v1692_v2  ;;  %v925_v23 = vadd.f32 %v1913_v17, %v1756_v3 }
  0xe4   : > { %1319 = vst.msk [vmem:[%s2160_s29 + $0x8c] sm:$0xf] %vm1283_vm3, %v1649_v13  ;;  %v788_v26 = vpop.f32.mrf.mxu0  ;;  %v916_v27 = vpop.f32.mrf.mxu1 }
  0xe5   : > { %1285 = vst.msk [vmem:[%s2160_s29 + $0x4] sm:$0xf] %vm1283_vm3, %v1615_v20  ;;  %1317 = vst.msk [vmem:[%s2160_s29 + $0x84] sm:$0xf] %vm1283_vm3, %v1647_v21  ;;  %v1620_v30 = vpack.c.bf16 %v797_v22, %v797_v22  ;;  %v1652_v31 = vpack.c.bf16 %v925_v23, %v925_v23  ;;  %v789_v32 = vadd.f32 %v1688_v10, %v788_v26  ;;  %v1708_v10 = vunpack.c.l.bf16 %v2223_v60 }
  0xe6   : > { %v917_v33 = vadd.f32 %v1752_v11, %v916_v27  ;;  %v1882_v36 = vpop.f32.mrf.mxu0  ;;  %v1914_v37 = vpop.f32.mrf.mxu1  ;;  %v1772_v11 = vunpack.c.l.bf16 %v2226_v61  ;;  %v1709_v26 = vunpack.c.h.bf16 %v2223_v60  ;;  %v1773_v27 = vunpack.c.h.bf16 %v2226_v61 }
  0xe7   : > { %1290 = vst.msk [vmem:[%s2160_s29 + $0x18] sm:$0xf] %vm1283_vm3, %v1620_v30  ;;  %1322 = vst.msk [vmem:[%s2160_s29 + $0x98] sm:$0xf] %vm1283_vm3, %v1652_v31  ;;  %v1618_v40 = vpack.c.bf16 %v789_v32, %v789_v32  ;;  %v800_v42 = vadd.f32 %v1882_v36, %v1693_v18  ;;  %v928_v43 = vadd.f32 %v1914_v37, %v1757_v19  ;;  %v1704_v18 = vunpack.c.l.bf16 %v2235_v6  ;;  %v2259_v32 = vld [vmem:[%s2144_s26 + $0x48] sm:$0xff]  }
  0xe8   : > { %v1650_v41 = vpack.c.bf16 %v917_v33, %v917_v33  ;;  %v791_v44 = vpop.f32.mrf.mxu0  ;;  %v919_v45 = vpop.f32.mrf.mxu1  ;;  %v1768_v19 = vunpack.c.l.bf16 %v2238_v7  ;;  %v2262_v33 = vld [vmem:[%s2144_s26 + $0xc8] sm:$0xff]   ;;  %v1705_v36 = vunpack.c.h.bf16 %v2235_v6  ;;  %v1769_v37 = vunpack.c.h.bf16 %v2238_v7 }
  0xe9   : > { %1288 = vst.msk [vmem:[%s2160_s29 + $0x10] sm:$0xf] %vm1283_vm3, %v1618_v40  ;;  %v1621_v48 = vpack.c.bf16 %v800_v42, %v800_v42  ;;  %v1653_v49 = vpack.c.bf16 %v928_v43, %v928_v43  ;;  %v792_v50 = vadd.f32 %v1689_v28, %v791_v44  ;;  %v920_v51 = vadd.f32 %v1753_v29, %v919_v45  ;;  %v2271_v42 = vld [vmem:[%s2144_s26 + $0x40] sm:$0xff]  }
  0xea   : > { %1320 = vst.msk [vmem:[%s2160_s29 + $0x90] sm:$0xf] %vm1283_vm3, %v1650_v41  ;;  %v1885_v52 = vpop.f32.mrf.mxu0  ;;  %v1917_v53 = vpop.f32.mrf.mxu1  ;;  %v2274_v43 = vld [vmem:[%s2144_s26 + $0xc0] sm:$0xff]  }
  0xeb   : > { %1291 = vst.msk [vmem:[%s2160_s29 + $0x1c] sm:$0xf] %vm1283_vm3, %v1621_v48  ;;  %1323 = vst.msk [vmem:[%s2160_s29 + $0x9c] sm:$0xf] %vm1283_vm3, %v1653_v49  ;;  %v1619_v56 = vpack.c.bf16 %v792_v50, %v792_v50  ;;  %v1651_v57 = vpack.c.bf16 %v920_v51, %v920_v51  ;;  %v813_v58 = vadd.f32 %v1885_v52, %v1700_v38 }
  0xec   : > { %v941_v59 = vadd.f32 %v1917_v53, %v1764_v39  ;;  %v804_v62 = vpop.f32.mrf.mxu0  ;;  %v932_v63 = vpop.f32.mrf.mxu1 }
  0xed   : > { %1289 = vst.msk [vmem:[%s2160_s29 + $0x14] sm:$0xf] %vm1283_vm3, %v1619_v56  ;;  %1321 = vst.msk [vmem:[%s2160_s29 + $0x94] sm:$0xf] %vm1283_vm3, %v1651_v57  ;;  %v1624_v2 = vpack.c.bf16 %v813_v58, %v813_v58  ;;  %v805_v4 = vadd.f32 %v1696_v46, %v804_v62  ;;  %v933_v5 = vadd.f32 %v1760_v47, %v932_v63  ;;  %v1716_v46 = vunpack.c.l.bf16 %v2259_v32 }
  0xee   : > { %v1656_v3 = vpack.c.bf16 %v941_v59, %v941_v59  ;;  %v1886_v8 = vpop.f32.mrf.mxu0  ;;  %v1918_v9 = vpop.f32.mrf.mxu1  ;;  %v1780_v47 = vunpack.c.l.bf16 %v2262_v33  ;;  %v1717_v62 = vunpack.c.h.bf16 %v2259_v32  ;;  %v1781_v63 = vunpack.c.h.bf16 %v2262_v33 }
  0xef   : > { %1294 = vst.msk [vmem:[%s2160_s29 + $0x28] sm:$0xf] %vm1283_vm3, %v1624_v2  ;;  %v1622_v12 = vpack.c.bf16 %v805_v4, %v805_v4  ;;  %v1654_v13 = vpack.c.bf16 %v933_v5, %v933_v5  ;;  %v816_v14 = vadd.f32 %v1886_v8, %v1701_v54  ;;  %v944_v15 = vadd.f32 %v1918_v9, %v1765_v55  ;;  %v2295_v4 = vld [vmem:[%s2144_s26 + $0x58] sm:$0xff]  }
  0xf0   : > { %1326 = vst.msk [vmem:[%s2160_s29 + $0xa8] sm:$0xf] %vm1283_vm3, %v1656_v3  ;;  %v807_v16 = vpop.f32.mrf.mxu0  ;;  %v935_v17 = vpop.f32.mrf.mxu1  ;;  %v1712_v54 = vunpack.c.l.bf16 %v2271_v42  ;;  %v1776_v55 = vunpack.c.l.bf16 %v2274_v43  ;;  %v2298_v5 = vld [vmem:[%s2144_s26 + $0xd8] sm:$0xff]   ;;  %v1713_v8 = vunpack.c.h.bf16 %v2271_v42  ;;  %v1777_v9 = vunpack.c.h.bf16 %v2274_v43 }
  0xf1   : > { %1292 = vst.msk [vmem:[%s2160_s29 + $0x20] sm:$0xf] %vm1283_vm3, %v1622_v12  ;;  %1324 = vst.msk [vmem:[%s2160_s29 + $0xa0] sm:$0xf] %vm1283_vm3, %v1654_v13  ;;  %v1625_v20 = vpack.c.bf16 %v816_v14, %v816_v14  ;;  %v1657_v21 = vpack.c.bf16 %v944_v15, %v944_v15  ;;  %v808_v22 = vadd.f32 %v1697_v0, %v807_v16  ;;  %v2307_v14 = vld [vmem:[%s2144_s26 + $0x50] sm:$0xff]  }
  0xf2   : > { %v936_v23 = vadd.f32 %v1761_v1, %v935_v17  ;;  %v1889_v24 = vpop.f32.mrf.mxu0  ;;  %v1921_v25 = vpop.f32.mrf.mxu1  ;;  %v2310_v15 = vld [vmem:[%s2144_s26 + $0xd0] sm:$0xff]  }
  0xf3   : > { %1295 = vst.msk [vmem:[%s2160_s29 + $0x2c] sm:$0xf] %vm1283_vm3, %v1625_v20  ;;  %1327 = vst.msk [vmem:[%s2160_s29 + $0xac] sm:$0xf] %vm1283_vm3, %v1657_v21  ;;  %v1623_v28 = vpack.c.bf16 %v808_v22, %v808_v22  ;;  %v829_v30 = vadd.f32 %v1889_v24, %v1708_v10  ;;  %v957_v31 = vadd.f32 %v1921_v25, %v1772_v11 }
  0xf4   : > { %v1655_v29 = vpack.c.bf16 %v936_v23, %v936_v23  ;;  %v820_v34 = vpop.f32.mrf.mxu0  ;;  %v948_v35 = vpop.f32.mrf.mxu1 }
  0xf5   : > { %1293 = vst.msk [vmem:[%s2160_s29 + $0x24] sm:$0xf] %vm1283_vm3, %v1623_v28  ;;  %v1628_v38 = vpack.c.bf16 %v829_v30, %v829_v30  ;;  %v1660_v39 = vpack.c.bf16 %v957_v31, %v957_v31  ;;  %v821_v40 = vadd.f32 %v1704_v18, %v820_v34  ;;  %v949_v41 = vadd.f32 %v1768_v19, %v948_v35 }
  0xf6   : > { %1325 = vst.msk [vmem:[%s2160_s29 + $0xa4] sm:$0xf] %vm1283_vm3, %v1655_v29  ;;  %v1890_v44 = vpop.f32.mrf.mxu0  ;;  %v1922_v45 = vpop.f32.mrf.mxu1  ;;  %v1724_v18 = vunpack.c.l.bf16 %v2295_v4  ;;  %v1788_v19 = vunpack.c.l.bf16 %v2298_v5  ;;  %v1725_v34 = vunpack.c.h.bf16 %v2295_v4  ;;  %v1789_v35 = vunpack.c.h.bf16 %v2298_v5 }
  0xf7   : > { %1298 = vst.msk [vmem:[%s2160_s29 + $0x38] sm:$0xf] %vm1283_vm3, %v1628_v38  ;;  %1330 = vst.msk [vmem:[%s2160_s29 + $0xb8] sm:$0xf] %vm1283_vm3, %v1660_v39  ;;  %v1626_v48 = vpack.c.bf16 %v821_v40, %v821_v40  ;;  %v1658_v49 = vpack.c.bf16 %v949_v41, %v949_v41  ;;  %v832_v50 = vadd.f32 %v1890_v44, %v1709_v26  ;;  %v1720_v26 = vunpack.c.l.bf16 %v2307_v14  ;;  %v2331_v40 = vld [vmem:[%s2144_s26 + $0x68] sm:$0xff]  }
  0xf8   : > { %v960_v51 = vadd.f32 %v1922_v45, %v1773_v27  ;;  %v823_v52 = vpop.f32.mrf.mxu0  ;;  %v951_v53 = vpop.f32.mrf.mxu1  ;;  %v1784_v27 = vunpack.c.l.bf16 %v2310_v15  ;;  %v2334_v41 = vld [vmem:[%s2144_s26 + $0xe8] sm:$0xff]   ;;  %v1721_v44 = vunpack.c.h.bf16 %v2307_v14  ;;  %v1785_v45 = vunpack.c.h.bf16 %v2310_v15 }
  0xf9   : > { %1296 = vst.msk [vmem:[%s2160_s29 + $0x30] sm:$0xf] %vm1283_vm3, %v1626_v48  ;;  %1328 = vst.msk [vmem:[%s2160_s29 + $0xb0] sm:$0xf] %vm1283_vm3, %v1658_v49  ;;  %v1629_v56 = vpack.c.bf16 %v832_v50, %v832_v50  ;;  %v824_v58 = vadd.f32 %v1705_v36, %v823_v52  ;;  %v952_v59 = vadd.f32 %v1769_v37, %v951_v53  ;;  %v2343_v50 = vld [vmem:[%s2144_s26 + $0x60] sm:$0xff]  }
  0xfa   : > { %v1661_v57 = vpack.c.bf16 %v960_v51, %v960_v51  ;;  %v1893_v60 = vpop.f32.mrf.mxu0  ;;  %v1925_v61 = vpop.f32.mrf.mxu1  ;;  %v2346_v51 = vld [vmem:[%s2144_s26 + $0xe0] sm:$0xff]  }
  0xfb   : > { %1299 = vst.msk [vmem:[%s2160_s29 + $0x3c] sm:$0xf] %vm1283_vm3, %v1629_v56  ;;  %v1627_v0 = vpack.c.bf16 %v824_v58, %v824_v58  ;;  %v1659_v1 = vpack.c.bf16 %v952_v59, %v952_v59  ;;  %v845_v2 = vadd.f32 %v1893_v60, %v1716_v46  ;;  %v973_v3 = vadd.f32 %v1925_v61, %v1780_v47 }
  0xfc   : > { %1331 = vst.msk [vmem:[%s2160_s29 + $0xbc] sm:$0xf] %vm1283_vm3, %v1661_v57  ;;  %v836_v6 = vpop.f32.mrf.mxu0  ;;  %v964_v7 = vpop.f32.mrf.mxu1 }
  0xfd   : > { %1297 = vst.msk [vmem:[%s2160_s29 + $0x34] sm:$0xf] %vm1283_vm3, %v1627_v0  ;;  %1329 = vst.msk [vmem:[%s2160_s29 + $0xb4] sm:$0xf] %vm1283_vm3, %v1659_v1  ;;  %v1632_v10 = vpack.c.bf16 %v845_v2, %v845_v2  ;;  %v1664_v11 = vpack.c.bf16 %v973_v3, %v973_v3  ;;  %v837_v12 = vadd.f32 %v1712_v54, %v836_v6  ;;  %v1732_v54 = vunpack.c.l.bf16 %v2331_v40 }
  0xfe   : > { %v965_v13 = vadd.f32 %v1776_v55, %v964_v7  ;;  %v1894_v16 = vpop.f32.mrf.mxu0  ;;  %v1926_v17 = vpop.f32.mrf.mxu1  ;;  %v1796_v55 = vunpack.c.l.bf16 %v2334_v41  ;;  %v1733_v6 = vunpack.c.h.bf16 %v2331_v40  ;;  %v1797_v7 = vunpack.c.h.bf16 %v2334_v41 }
  0xff   : > { %1302 = vst.msk [vmem:[%s2160_s29 + $0x48] sm:$0xf] %vm1283_vm3, %v1632_v10  ;;  %1334 = vst.msk [vmem:[%s2160_s29 + $0xc8] sm:$0xf] %vm1283_vm3, %v1664_v11  ;;  %v1630_v20 = vpack.c.bf16 %v837_v12, %v837_v12  ;;  %v848_v22 = vadd.f32 %v1894_v16, %v1717_v62  ;;  %v976_v23 = vadd.f32 %v1926_v17, %v1781_v63  ;;  %v1728_v62 = vunpack.c.l.bf16 %v2343_v50  ;;  %v1820_v12 = vld [vmem:[%s2144_s26 + $0x78] sm:$0xff]  }
 0x100   : > { %v1662_v21 = vpack.c.bf16 %v965_v13, %v965_v13  ;;  %v839_v24 = vpop.f32.mrf.mxu0  ;;  %v967_v25 = vpop.f32.mrf.mxu1  ;;  %v1792_v63 = vunpack.c.l.bf16 %v2346_v51  ;;  %v1836_v13 = vld [vmem:[%s2144_s26 + $0xf8] sm:$0xff]   ;;  %v1729_v16 = vunpack.c.h.bf16 %v2343_v50  ;;  %v1793_v17 = vunpack.c.h.bf16 %v2346_v51 }
 0x101   : > { %1300 = vst.msk [vmem:[%s2160_s29 + $0x40] sm:$0xf] %vm1283_vm3, %v1630_v20  ;;  %v1633_v28 = vpack.c.bf16 %v848_v22, %v848_v22  ;;  %v1665_v29 = vpack.c.bf16 %v976_v23, %v976_v23  ;;  %v840_v30 = vadd.f32 %v1713_v8, %v839_v24  ;;  %v968_v31 = vadd.f32 %v1777_v9, %v967_v25  ;;  %v1819_v22 = vld [vmem:[%s2144_s26 + $0x70] sm:$0xff]  }
 0x102   : > { %1332 = vst.msk [vmem:[%s2160_s29 + $0xc0] sm:$0xf] %vm1283_vm3, %v1662_v21  ;;  %v1897_v32 = vpop.f32.mrf.mxu0  ;;  %v1929_v33 = vpop.f32.mrf.mxu1  ;;  %v1835_v23 = vld [vmem:[%s2144_s26 + $0xf0] sm:$0xff]   ;;  %v1737_v50 = vunpack.c.h.bf16 %v1819_v22 }
 0x103   : > { %1303 = vst.msk [vmem:[%s2160_s29 + $0x4c] sm:$0xf] %vm1283_vm3, %v1633_v28  ;;  %1335 = vst.msk [vmem:[%s2160_s29 + $0xcc] sm:$0xf] %vm1283_vm3, %v1665_v29  ;;  %v1631_v36 = vpack.c.bf16 %v840_v30, %v840_v30  ;;  %v1663_v37 = vpack.c.bf16 %v968_v31, %v968_v31  ;;  %v861_v38 = vadd.f32 %v1897_v32, %v1724_v18  ;;  %v1801_v51 = vunpack.c.h.bf16 %v1835_v23 }
 0x104   : > { %v989_v39 = vadd.f32 %v1929_v33, %v1788_v19  ;;  %v852_v42 = vpop.f32.mrf.mxu0  ;;  %v980_v43 = vpop.f32.mrf.mxu1 }
 0x105   : > { %1301 = vst.msk [vmem:[%s2160_s29 + $0x44] sm:$0xf] %vm1283_vm3, %v1631_v36  ;;  %1333 = vst.msk [vmem:[%s2160_s29 + $0xc4] sm:$0xf] %vm1283_vm3, %v1663_v37  ;;  %v1636_v46 = vpack.c.bf16 %v861_v38, %v861_v38  ;;  %v853_v48 = vadd.f32 %v1720_v26, %v852_v42  ;;  %v981_v49 = vadd.f32 %v1784_v27, %v980_v43  ;;  %v1740_v26 = vunpack.c.l.bf16 %v1820_v12 }
 0x106   : > { %v1668_v47 = vpack.c.bf16 %v989_v39, %v989_v39  ;;  %v1898_v52 = vpop.f32.mrf.mxu0  ;;  %v1930_v53 = vpop.f32.mrf.mxu1  ;;  %v1804_v27 = vunpack.c.l.bf16 %v1836_v13  ;;  %v1741_v42 = vunpack.c.h.bf16 %v1820_v12  ;;  %v1805_v43 = vunpack.c.h.bf16 %v1836_v13 }
 0x107   : > { %1306 = vst.msk [vmem:[%s2160_s29 + $0x58] sm:$0xf] %vm1283_vm3, %v1636_v46  ;;  %v1634_v56 = vpack.c.bf16 %v853_v48, %v853_v48  ;;  %v1666_v57 = vpack.c.bf16 %v981_v49, %v981_v49  ;;  %v864_v58 = vadd.f32 %v1898_v52, %v1725_v34  ;;  %v992_v59 = vadd.f32 %v1930_v53, %v1789_v35 }
 0x108   : > { %1338 = vst.msk [vmem:[%s2160_s29 + $0xd8] sm:$0xf] %vm1283_vm3, %v1668_v47  ;;  %v855_v60 = vpop.f32.mrf.mxu0  ;;  %v983_v61 = vpop.f32.mrf.mxu1  ;;  %v1736_v34 = vunpack.c.l.bf16 %v1819_v22  ;;  %v1800_v35 = vunpack.c.l.bf16 %v1835_v23 }
 0x109   : > { %1304 = vst.msk [vmem:[%s2160_s29 + $0x50] sm:$0xf] %vm1283_vm3, %v1634_v56  ;;  %1336 = vst.msk [vmem:[%s2160_s29 + $0xd0] sm:$0xf] %vm1283_vm3, %v1666_v57  ;;  %v1637_v0 = vpack.c.bf16 %v864_v58, %v864_v58  ;;  %v1669_v1 = vpack.c.bf16 %v992_v59, %v992_v59  ;;  %v856_v2 = vadd.f32 %v1721_v44, %v855_v60 }
 0x10a   : > { %v984_v3 = vadd.f32 %v1785_v45, %v983_v61  ;;  %v1901_v4 = vpop.f32.mrf.mxu0  ;;  %v1933_v5 = vpop.f32.mrf.mxu1 }
 0x10b   : > { %1307 = vst.msk [vmem:[%s2160_s29 + $0x5c] sm:$0xf] %vm1283_vm3, %v1637_v0  ;;  %1339 = vst.msk [vmem:[%s2160_s29 + $0xdc] sm:$0xf] %vm1283_vm3, %v1669_v1  ;;  %v1635_v8 = vpack.c.bf16 %v856_v2, %v856_v2  ;;  %v877_v10 = vadd.f32 %v1901_v4, %v1732_v54  ;;  %v1005_v11 = vadd.f32 %v1933_v5, %v1796_v55 }
 0x10c   : > { %v1667_v9 = vpack.c.bf16 %v984_v3, %v984_v3  ;;  %v868_v14 = vpop.f32.mrf.mxu0  ;;  %v996_v15 = vpop.f32.mrf.mxu1 }
 0x10d   : > { %1305 = vst.msk [vmem:[%s2160_s29 + $0x54] sm:$0xf] %vm1283_vm3, %v1635_v8  ;;  %v1640_v18 = vpack.c.bf16 %v877_v10, %v877_v10  ;;  %v1672_v19 = vpack.c.bf16 %v1005_v11, %v1005_v11  ;;  %v869_v20 = vadd.f32 %v1728_v62, %v868_v14  ;;  %v997_v21 = vadd.f32 %v1792_v63, %v996_v15 }
 0x10e   : > { %1337 = vst.msk [vmem:[%s2160_s29 + $0xd4] sm:$0xf] %vm1283_vm3, %v1667_v9  ;;  %v1902_v24 = vpop.f32.mrf.mxu0  ;;  %v1934_v25 = vpop.f32.mrf.mxu1 }
 0x10f   : > { %1310 = vst.msk [vmem:[%s2160_s29 + $0x68] sm:$0xf] %vm1283_vm3, %v1640_v18  ;;  %1342 = vst.msk [vmem:[%s2160_s29 + $0xe8] sm:$0xf] %vm1283_vm3, %v1672_v19  ;;  %v1638_v28 = vpack.c.bf16 %v869_v20, %v869_v20  ;;  %v1670_v29 = vpack.c.bf16 %v997_v21, %v997_v21  ;;  %v880_v30 = vadd.f32 %v1902_v24, %v1733_v6 }
 0x110   : > { %v1008_v31 = vadd.f32 %v1934_v25, %v1797_v7  ;;  %v871_v32 = vpop.f32.mrf.mxu0  ;;  %v999_v33 = vpop.f32.mrf.mxu1 }
 0x111   : > { %1308 = vst.msk [vmem:[%s2160_s29 + $0x60] sm:$0xf] %vm1283_vm3, %v1638_v28  ;;  %1340 = vst.msk [vmem:[%s2160_s29 + $0xe0] sm:$0xf] %vm1283_vm3, %v1670_v29  ;;  %v1641_v36 = vpack.c.bf16 %v880_v30, %v880_v30  ;;  %v872_v38 = vadd.f32 %v1729_v16, %v871_v32  ;;  %v1000_v39 = vadd.f32 %v1793_v17, %v999_v33 }
 0x112   : > { %v1673_v37 = vpack.c.bf16 %v1008_v31, %v1008_v31  ;;  %v1905_v40 = vpop.f32.mrf.mxu0  ;;  %v1937_v41 = vpop.f32.mrf.mxu1 }
 0x113   : > { %1311 = vst.msk [vmem:[%s2160_s29 + $0x6c] sm:$0xf] %vm1283_vm3, %v1641_v36  ;;  %v1639_v44 = vpack.c.bf16 %v872_v38, %v872_v38  ;;  %v1671_v45 = vpack.c.bf16 %v1000_v39, %v1000_v39  ;;  %v893_v46 = vadd.f32 %v1905_v40, %v1740_v26  ;;  %v1021_v47 = vadd.f32 %v1937_v41, %v1804_v27 }
 0x114   : > { %1343 = vst.msk [vmem:[%s2160_s29 + $0xec] sm:$0xf] %vm1283_vm3, %v1673_v37  ;;  %v884_v48 = vpop.f32.mrf.mxu0  ;;  %v1012_v49 = vpop.f32.mrf.mxu1 }
 0x115   : > { %1309 = vst.msk [vmem:[%s2160_s29 + $0x64] sm:$0xf] %vm1283_vm3, %v1639_v44  ;;  %1341 = vst.msk [vmem:[%s2160_s29 + $0xe4] sm:$0xf] %vm1283_vm3, %v1671_v45  ;;  %v1644_v52 = vpack.c.bf16 %v893_v46, %v893_v46  ;;  %v1676_v53 = vpack.c.bf16 %v1021_v47, %v1021_v47  ;;  %v885_v54 = vadd.f32 %v1736_v34, %v884_v48 }
 0x116   : > { %v1013_v55 = vadd.f32 %v1800_v35, %v1012_v49  ;;  %v1906_v56 = vpop.f32.mrf.mxu0  ;;  %v1938_v57 = vpop.f32.mrf.mxu1 }
 0x117   : > { %1314 = vst.msk [vmem:[%s2160_s29 + $0x78] sm:$0xf] %vm1283_vm3, %v1644_v52  ;;  %1346 = vst.msk [vmem:[%s2160_s29 + $0xf8] sm:$0xf] %vm1283_vm3, %v1676_v53  ;;  %v1642_v58 = vpack.c.bf16 %v885_v54, %v885_v54  ;;  %v896_v60 = vadd.f32 %v1906_v56, %v1741_v42  ;;  %v1024_v61 = vadd.f32 %v1938_v57, %v1805_v43 }
 0x118   : > { %v1674_v59 = vpack.c.bf16 %v1013_v55, %v1013_v55  ;;  %v887_v62 = vpop.f32.mrf.mxu0  ;;  %v1015_v63 = vpop.f32.mrf.mxu1 }
 0x119   : > { %1312 = vst.msk [vmem:[%s2160_s29 + $0x70] sm:$0xf] %vm1283_vm3, %v1642_v58  ;;  %v1645_v0 = vpack.c.bf16 %v896_v60, %v896_v60  ;;  %v1677_v1 = vpack.c.bf16 %v1024_v61, %v1024_v61  ;;  %v888_v2 = vadd.f32 %v1737_v50, %v887_v62  ;;  %v1016_v3 = vadd.f32 %v1801_v51, %v1015_v63 }
 0x11a   : > { %1344 = vst.msk [vmem:[%s2160_s29 + $0xf0] sm:$0xf] %vm1283_vm3, %v1674_v59 }
 0x11b   : > { %1315 = vst.msk [vmem:[%s2160_s29 + $0x7c] sm:$0xf] %vm1283_vm3, %v1645_v0  ;;  %1347 = vst.msk [vmem:[%s2160_s29 + $0xfc] sm:$0xf] %vm1283_vm3, %v1677_v1  ;;  %v1643_v4 = vpack.c.bf16 %v888_v2, %v888_v2  ;;  %v1675_v5 = vpack.c.bf16 %v1016_v3, %v1016_v3 }
 0x11d   : > { %1313 = vst.msk [vmem:[%s2160_s29 + $0x74] sm:$0xf] %vm1283_vm3, %v1643_v4  ;;  %1345 = vst.msk [vmem:[%s2160_s29 + $0xf4] sm:$0xf] %vm1283_vm3, %v1675_v5 }
 0x11e PF: > { %s13_s14 = sadd.s32 1, %s2024_s14   ;;  %s2421_s12 = smov %s2020_s13 }
 0x11f   : > { %p10_p5 = scmp.ge.s32.totalorder %s13_s14, 4   ;;  %s2422_s13 = smov %s2424_s15 }
 0x121   :  { %12 = sbr.rel (!%p10_p5) target bundleno = 2 (0x2), region = 68 }

// kernel: ffc_act_forward.19
= control target key start
LH: loop header
LB: loop body
LE: loop exit
PB: predicated region body
PF: predicated region fallthrough
CT: control target
= control target key end

     0   :  { %s732_s24 = smov 0   ;;  %s777_s0 = inlined_call_operand.vmem [shape: bf16[32,64], index: 0, kind: input, shape index: {}]   ;;  %s778_s1 = inlined_call_operand.vmem [shape: bf16[32,64], index: 1, kind: input, shape index: {}]   ;;  %s779_s2 = inlined_call_operand.vmem [shape: bf16[32,64], index: 2, kind: input, shape index: {}]   ;;  %s780_s3 = inlined_call_operand.vmem [shape: bf16[32,64], index: 3, kind: input, shape index: {}]   ;;  %s781_s4 = inlined_call_operand.vmem [shape: f32[32,64], index: 4, kind: input, shape index: {}]   ;;  %s782_s5 = inlined_call_operand.vmem [shape: f32[32,64], index: 5, kind: input, shape index: {}]   ;;  %s783_s6 = inlined_call_operand.vmem [shape: f32[32,64], index: 6, kind: output, shape index: {0}]   ;;  %s784_s7 = inlined_call_operand.vmem [shape: f32[32,64], index: 7, kind: output, shape index: {1}]  }
   0x1 LB: > { %s621_s25 = sadd.s32 4294967295, %s690_s24   ;;  %p625_p0 = scmp.ge.s32.totalorder %s690_s24, 1  ;;  %s690_s24 = sphi %s732_s24, %s18_s24  }
   0x2   : > { %p296_p1 = scmp.lt.s32.totalorder %s690_s24, 3 }
   0x4   : > { %p297_p2 = pnand %p625_p0, %p296_p1 }
   0x5   : > { %s626_s26 = sshll.u32 (!%p297_p2), %s621_s25, 1 }
   0x6   : > { %300 = sbr.rel (%p297_p2) target bundleno = 60 (0x3c), region = 44  ;;  %p359_p3 = scmp.lt.s32.totalorder (!%p297_p2), %s626_s26, 3 }
   0xb   : > { %s786_s26 = smov (!%p359_p3, %s626_s26), 3  ;;  %vm460_vm1 = vcmask 523264  }
   0xc   : > { %s740_s27 = sshll.u32 %s786_s26, 3  ;;  %s627_s11 = sshll.u32 %s786_s26, 2 }
   0xd   : > { %s386_s30 = scalar_lea.vmem %s781_s4, %s740_s27  ;;  %s392_s10 = scalar_lea.vmem %s782_s5, %s740_s27 }
   0xe   : > { %v406_v0 = vld [vmem:[%s386_s30] sm:$0xff]  ;;  %v407_v1 = vld [vmem:[%s386_s30 + $0x8] sm:$0xff]  ;;  %s368_s14 = scalar_lea.vmem %s778_s1, %s627_s11  ;;  %s362_s17 = scalar_lea.vmem %s777_s0, %s627_s11 }
   0xf   : > { %v418_v2 = vld [vmem:[%s392_s10] sm:$0xff]  ;;  %v408_v3 = vsub.f32 0.0, %v406_v0  ;;  %v409_v4 = vsub.f32 0.0, %v407_v1  ;;  %v419_v5 = vld [vmem:[%s392_s10 + $0x8] sm:$0xff]  ;;  %s374_s20 = scalar_lea.vmem %s779_s2, %s627_s11  ;;  %s380_s23 = scalar_lea.vmem %s780_s3, %s627_s11 }
  0x10   : > { %v420_v6 = vsub.f32 0.0, %v418_v2  ;;  %v421_v7 = vsub.f32 0.0, %v419_v5  ;;  %v649_v20 = vld [vmem:[%s368_s14] sm:$0xff]   ;;  %s398_s28 = scalar_lea.vmem %s783_s6, %s740_s27  ;;  %s404_s8 = scalar_lea.vmem %s784_s7, %s740_s27 }
  0x11   : > { %v410_v8 = vmul.f32 1.442695, %v408_v3  ;;  %v412_v9 = vmul.f32 1.442695, %v409_v4  ;;  %v645_v21 = vld [vmem:[%s362_s17] sm:$0xff]   ;;  %v650_v23 = vunpack.c.l.bf16 %v649_v20  ;;  %v651_v25 = vunpack.c.h.bf16 %v649_v20 }
  0x12   : > { %v422_v10 = vmul.f32 1.442695, %v420_v6  ;;  %v424_v11 = vmul.f32 1.442695, %v421_v7  ;;  %v653_v22 = vld [vmem:[%s374_s20] sm:$0xff]   ;;  %v646_v26 = vunpack.c.l.bf16 %v645_v21  ;;  %v647_v29 = vunpack.c.h.bf16 %v645_v21 }
  0x13   : > { %668 = vpow2.f32 %v410_v8  ;;  %v657_v24 = vld [vmem:[%s380_s23] sm:$0xff]   ;;  %v654_v27 = vunpack.c.l.bf16 %v653_v22  ;;  %v655_v30 = vunpack.c.h.bf16 %v653_v22 }
  0x14   : > { %670 = vpow2.f32 %v412_v9  ;;  %v658_v33 = vunpack.c.l.bf16 %v657_v24  ;;  %v659_v36 = vunpack.c.h.bf16 %v657_v24 }
  0x15   : > { %672 = vpow2.f32 %v422_v10 }
  0x16   : > { %674 = vpow2.f32 %v424_v11 }
  0x20   : > { %v669_v12 = vpop.eup %668 }
  0x21   : > { %v671_v13 = vpop.eup %670  ;;  %v414_v14 = vadd.f32 1.0, %v669_v12 }
  0x22   : > { %v673_v15 = vpop.eup %672  ;;  %v415_v16 = vadd.f32 1.0, %v671_v13 }
  0x23   : > { %v675_v17 = vpop.eup %674  ;;  %676 = vrcp.f32 %v414_v14  ;;  %v426_v18 = vadd.f32 1.0, %v673_v15 }
  0x24   : > { %678 = vrcp.f32 %v415_v16  ;;  %v427_v19 = vadd.f32 1.0, %v675_v17 }
  0x25   : > { %680 = vrcp.f32 %v426_v18 }
  0x26   : > { %682 = vrcp.f32 %v427_v19 }
  0x30   : > { %v677_v28 = vpop.eup %676 }
  0x31   : > { %v679_v31 = vpop.eup %678  ;;  %v438_v32 = vmul.f32 %v677_v28, %v650_v23 }
  0x32   : > { %v681_v34 = vpop.eup %680  ;;  %v439_v35 = vmul.f32 %v679_v31, %v651_v25 }
  0x33   : > { %v683_v37 = vpop.eup %682  ;;  %v440_v38 = vadd.f32 %v646_v26, %v438_v32  ;;  %v446_v39 = vmul.f32 %v681_v34, %v654_v27 }
  0x34   : > { %v441_v40 = vadd.f32 %v647_v29, %v439_v35  ;;  %v447_v41 = vmul.f32 %v683_v37, %v655_v30 }
  0x35   : > { %vm454_vm0 = vcmp.ge.f32.partialorder %v440_v38, 0.0  ;;  %v456_v42 = vmul.f32 0.05, %v440_v38  ;;  %v452_v43 = vadd.f32 %v658_v33, %v446_v39 }
  0x36   : > { %vm455_vm2 = vcmp.ge.f32.partialorder %v441_v40, 0.0  ;;  %v457_v44 = vmul.f32 0.05, %v441_v40  ;;  %v453_v45 = vadd.f32 %v659_v36, %v447_v41 }
  0x37   : > { %v458_v46 = vsel %vm454_vm0, %v440_v38, %v456_v42  ;;  %vm463_vm3 = vcmp.ge.f32.partialorder %v452_v43, 0.0  ;;  %v465_v47 = vmul.f32 0.05, %v452_v43 }
  0x38   : > { %461 = vst.msk [vmem:[%s398_s28] sm:$0xff] %vm460_vm1, %v458_v46  ;;  %v459_v48 = vsel %vm455_vm2, %v441_v40, %v457_v44  ;;  %vm464_vm4 = vcmp.ge.f32.partialorder %v453_v45, 0.0  ;;  %v466_v49 = vmul.f32 0.05, %v453_v45 }
  0x39   : > { %v467_v50 = vsel %vm463_vm3, %v452_v43, %v465_v47  ;;  %462 = vst.msk [vmem:[%s398_s28 + $0x8] sm:$0xff] %vm460_vm1, %v459_v48 }
  0x3a   : > { %469 = vst.msk [vmem:[%s404_s8] sm:$0xff] %vm460_vm1, %v467_v50  ;;  %v468_v51 = vsel %vm464_vm4, %v453_v45, %v466_v49 }
  0x3b   : > { %470 = vst.msk [vmem:[%s404_s8 + $0x8] sm:$0xff] %vm460_vm1, %v468_v51 }
  0x3c PF: > { %s18_s24 = sadd.s32 1, %s690_s24  }
  0x3d   : > { %p15_p4 = scmp.ge.s32.totalorder %s18_s24, 4  }
  0x3f   :  { %17 = sbr.rel (!%p15_p4) target bundleno = 1 (0x1), region = 101 }

</bundles_post_ra>
